<compile_context>
chip_gen: v5e
topology: v5e:2x2
jax: 0.10.0
libtpu: 0.0.40
codegen_flags: <defaults>
</compile_context>

<pallas_src>
import math

import jax
import jax.numpy as jnp
import numpy as np
from jax.experimental import pallas as pl
from jax.experimental.pallas import tpu as pltpu

BASE = 64          # base_channels (fixed by the module)
HIDDEN = 128       # fc1 width
NUM_CLASSES = 1
MAXPAD = 12        # max conv padding: kernel 9, dilation 3 -> (9-1)//2*3 = 12
BN_EPS = 1e-5

# Row offsets inside the consolidated (78, 64) per-channel parameter table.
_OFF_B_IN = 0        # 1 row   : input_conv bias
_OFF_B_SKIP = 1      # 5 rows  : skip1, skip2, skip3, afterRB, final biases
_OFF_B_RB5 = 6       # 16 rows : conv biases of rb_group1 + rb_group2
_OFF_B_RB9 = 22      # 8 rows  : conv biases of rb_group3
_OFF_BN_SCALE = 30   # 24 rows : folded BN scale (gamma / sqrt(var+eps))
_OFF_BN_SHIFT = 54   # 24 rows : folded BN shift (beta - mean*scale)
_VEC64_ROWS = 78


# --------------------------------------------------------------------------- #
# Pallas kernel: full forward pass for one batch element per grid step.
# --------------------------------------------------------------------------- #
def bert_splice_kernel(x_ref, w_in_ref, w_qkv_ref, b_qkv_ref, w_skip_ref,
                       w_rb5_ref, w_rb9_ref, vec64_ref, w_fc1_ref, b_fc1_ref,
                       w_fc2_ref, b_fc2_ref, out_ref, pad_ref):
    f32 = jnp.float32
    L = x_ref.shape[1]
    C = BASE
    C2 = 2 * BASE

    # Zero only the halo rows (2*MAXPAD of them).  Done every grid step (cheap:
    # 24 x 128 f32) so correctness holds under "parallel" batch sharding where a
    # second core never runs program_id 0.
    halo = jnp.zeros((MAXPAD, C2), f32)
    pad_ref[0:MAXPAD, :] = halo
    pad_ref[MAXPAD + L:2 * MAXPAD + L, :] = halo

    x = x_ref[0]  # (L, C_in)

    def matmul(a, b):
        return jax.lax.dot_general(a, b, (((1,), (0,)), ((), ())),
                                   preferred_element_type=f32)

    def vrow(off):            # (1, 64) row of the packed per-channel table
        return vec64_ref[off:off + 1, :]

    def conv1x1(h, w, b):     # w: (Cin, Cout), b: (1, Cout)
        return matmul(h, w) + b

    # ---- input_conv: Conv1d(C_in, 64, k=1) ----
    h = conv1x1(x, w_in_ref[...], vrow(_OFF_B_IN))              # (L, 64)

    # ---- AttentionModule: fused QKV matmul ----
    qkv = matmul(h, w_qkv_ref[...]) + b_qkv_ref[...]            # (L, 192)
    q = qkv[:, 0:C]
    k = qkv[:, C:2 * C]
    v = qkv[:, 2 * C:3 * C]
    scores = jax.lax.dot_general(q, k, (((1,), (1,)), ((), ())),
                                 preferred_element_type=f32)     # (L, L)
    scores = scores * (1.0 / math.sqrt(float(C)))
    scores = scores - jnp.max(scores, axis=-1, keepdims=True)
    e = jnp.exp(scores)
    attn = e * pl.reciprocal(jnp.sum(e, axis=-1, keepdims=True), approx=True)
    h = matmul(attn, v) + h                                      # residual add

    # ---- dilated conv via tap-PAIRED matmuls on the dual-copy padded scratch --
    # Lane half A (lanes 0:64)  : hin at rows [MAXPAD, MAXPAD+L)
    # Lane half B (lanes 64:128): hin at rows [MAXPAD-dil, MAXPAD-dil+L)
    # => one (L, 128) row-slice carries taps (2p, 2p+1); last odd tap is padded
    #    with a zero weight half, so every matmul is a full 128-wide contraction.
    def dilated_conv(hin, w_ref, bias, idx, ksize, dil):
        pad = (ksize - 1) // 2 * dil
        npairs = (ksize + 1) // 2
        pad_ref[MAXPAD:MAXPAD + L, 0:C] = hin
        pad_ref[MAXPAD - dil:MAXPAD - dil + L, C:C2] = hin
        # re-zero the `dil` rows just below the shifted copy (a previous conv with
        # smaller dilation left stale data there; the launch halo does not cover it).
        pad_ref[MAXPAD - dil + L:MAXPAD + L, C:C2] = jnp.zeros((dil, C), f32)
        s0 = MAXPAD - pad
        acc = matmul(pad_ref[s0:s0 + L, :], w_ref[idx, 0])
        for p in range(1, npairs):
            s = s0 + 2 * p * dil                                 # static offset
            acc = acc + matmul(pad_ref[s:s + L, :], w_ref[idx, p])
        return acc + bias

    def bn_relu(hin, bn_idx):
        y = hin * vrow(_OFF_BN_SCALE + bn_idx) + vrow(_OFF_BN_SHIFT + bn_idx)
        return jnp.maximum(y, 0.0)

    def res_block(hin, w_ref, boff, conv_base, bn_base, ksize, dil):
        t = bn_relu(hin, bn_base)
        t = dilated_conv(t, w_ref, vrow(boff + conv_base), conv_base, ksize, dil)
        t = bn_relu(t, bn_base + 1)
        t = dilated_conv(t, w_ref, vrow(boff + conv_base + 1), conv_base + 1,
                         ksize, dil)
        return hin + t

    # ---- residual-block groups; accumulate skip sum incrementally ----
    skip = conv1x1(h, w_skip_ref[0], vrow(_OFF_B_SKIP + 0))      # module1_skip
    for i in range(4):                                           # group1: k=5, d=1
        h = res_block(h, w_rb5_ref, _OFF_B_RB5, 2 * i, 2 * i, 5, 1)
    skip = skip + conv1x1(h, w_skip_ref[1], vrow(_OFF_B_SKIP + 1))
    for i in range(4):                                           # group2: k=5, d=2
        h = res_block(h, w_rb5_ref, _OFF_B_RB5, 8 + 2 * i, 8 + 2 * i, 5, 2)
    skip = skip + conv1x1(h, w_skip_ref[2], vrow(_OFF_B_SKIP + 2))
    for i in range(4):                                           # group3: k=9, d=3
        h = res_block(h, w_rb9_ref, _OFF_B_RB9, 2 * i, 16 + 2 * i, 9, 3)

    h = conv1x1(h, w_skip_ref[3], vrow(_OFF_B_SKIP + 3)) + skip  # afterRB + skips
    h = conv1x1(h, w_skip_ref[4], vrow(_OFF_B_SKIP + 4))         # final_conv

    # ---- global max over sequence, FC head ----
    pooled = jnp.max(h, axis=0, keepdims=True)                   # (1, 64)
    f1 = jnp.maximum(matmul(pooled, w_fc1_ref[...]) + b_fc1_ref[...], 0.0)
    # Dropout(0.5) is identity in inference mode.
    logit = matmul(f1, w_fc2_ref[...]) + b_fc2_ref[...]          # (1, 1)
    prob = 1.0 / (1.0 + jnp.exp(-logit))
    # lane-dense store; wrapper slices lane 0
    out_ref[0] = jnp.broadcast_to(prob, (1, out_ref.shape[2]))


# --------------------------------------------------------------------------- #
# Parameter init (deterministic, synthetic) and packing for the kernel.
# --------------------------------------------------------------------------- #
def init_params(cin, seed=0):
    keys = iter(jax.random.split(jax.random.PRNGKey(seed), 512))

    def nrm(shape, scale):
        return (scale * jax.random.normal(next(keys), shape)).astype(jnp.float32)

    def uni(shape, lo, hi):
        return jax.random.uniform(next(keys), shape, jnp.float32, lo, hi)

    def conv_w(cout, cin_, k, gain=1.0):      # PyTorch layout: (Cout, Cin, K)
        return nrm((cout, cin_, k), gain / math.sqrt(cin_ * k))

    def bn_params():
        return (uni((BASE,), 0.8, 1.2), nrm((BASE,), 0.1),
                nrm((BASE,), 0.1), uni((BASE,), 0.5, 1.5))  # gamma, beta, mean, var

    def rb(k):
        return dict(bn1=bn_params(), w1=conv_w(BASE, BASE, k, 0.3), b1=nrm((BASE,), 0.02),
                    bn2=bn_params(), w2=conv_w(BASE, BASE, k, 0.3), b2=nrm((BASE,), 0.02))

    return dict(
        w_in=conv_w(BASE, cin, 1), b_in=nrm((BASE,), 0.02),
        w_q=conv_w(BASE, BASE, 1), b_q=nrm((BASE,), 0.02),
        w_k=conv_w(BASE, BASE, 1), b_k=nrm((BASE,), 0.02),
        w_v=conv_w(BASE, BASE, 1), b_v=nrm((BASE,), 0.02),
        rb1=[rb(5) for _ in range(4)],
        w_skip1=conv_w(BASE, BASE, 1), b_skip1=nrm((BASE,), 0.02),
        rb2=[rb(5) for _ in range(4)],
        w_skip2=conv_w(BASE, BASE, 1), b_skip2=nrm((BASE,), 0.02),
        rb3=[rb(9) for _ in range(4)],
        w_skip3=conv_w(BASE, BASE, 1), b_skip3=nrm((BASE,), 0.02),
        w_after=conv_w(BASE, BASE, 1), b_after=nrm((BASE,), 0.02),
        w_final=conv_w(BASE, BASE, 1), b_final=nrm((BASE,), 0.02),
        w_fc1=nrm((HIDDEN, BASE), 1.0 / math.sqrt(BASE)), b_fc1=nrm((HIDDEN,), 0.02),
        w_fc2=nrm((NUM_CLASSES, HIDDEN), 1.0 / math.sqrt(HIDDEN)),
        b_fc2=nrm((NUM_CLASSES,), 0.02),
    )


def pack_params(p):
    def t1(w):   # (Cout, Cin, 1) -> (Cin, Cout)
        return jnp.transpose(w[:, :, 0])

    def tk_pairs(w):   # (Cout, Cin, K) -> (ceil(K/2), 2*Cin, Cout), tap-pair packed
        cout, cin_, kk = w.shape
        wt = jnp.transpose(w, (2, 1, 0))                     # (K, Cin, Cout)
        if kk % 2 == 1:                                      # pad odd K with a zero tap
            wt = jnp.concatenate([wt, jnp.zeros((1, cin_, cout), wt.dtype)], axis=0)
        return wt.reshape((kk + 1) // 2, 2 * cin_, cout)

    w_in = t1(p['w_in'])
    w_qkv = jnp.concatenate([t1(p['w_q']), t1(p['w_k']), t1(p['w_v'])], axis=1)  # (64,192)
    b_qkv = jnp.concatenate([p['b_q'], p['b_k'], p['b_v']])[None, :]             # (1,192)
    w_skip = jnp.stack([t1(p['w_skip1']), t1(p['w_skip2']), t1(p['w_skip3']),
                        t1(p['w_after']), t1(p['w_final'])])                     # (5,64,64)

    w5, b5, w9, b9 = [], [], [], []
    for blk in p['rb1'] + p['rb2']:
        w5 += [tk_pairs(blk['w1']), tk_pairs(blk['w2'])]
        b5 += [blk['b1'], blk['b2']]
    for blk in p['rb3']:
        w9 += [tk_pairs(blk['w1']), tk_pairs(blk['w2'])]
        b9 += [blk['b1'], blk['b2']]
    w_rb5 = jnp.stack(w5)   # (16, 3, 128, 64)
    w_rb9 = jnp.stack(w9)   # (8, 5, 128, 64)

    scales, shifts = [], []
    for blk in p['rb1'] + p['rb2'] + p['rb3']:
        for gamma, beta, mean, var in (blk['bn1'], blk['bn2']):
            s = gamma / jnp.sqrt(var + BN_EPS)
            scales.append(s)
            shifts.append(beta - mean * s)

    vec64 = jnp.concatenate([
        p['b_in'][None, :],                                              # 1 row
        jnp.stack([p['b_skip1'], p['b_skip2'], p['b_skip3'],
                   p['b_after'], p['b_final']]),                         # 5 rows
        jnp.stack(b5),                                                   # 16 rows
        jnp.stack(b9),                                                   # 8 rows
        jnp.stack(scales),                                               # 24 rows
        jnp.stack(shifts),                                               # 24 rows
    ], axis=0)
    assert vec64.shape == (_VEC64_ROWS, BASE)

    w_fc1, b_fc1 = p['w_fc1'].T, p['b_fc1'][None, :]
    w_fc2, b_fc2 = p['w_fc2'].T, p['b_fc2'][None, :]
    return (w_in, w_qkv, b_qkv, w_skip, w_rb5, w_rb9, vec64,
            w_fc1, b_fc1, w_fc2, b_fc2)


def _full_spec(a):
    zeros = (0,) * a.ndim
    return pl.BlockSpec(a.shape, lambda b, _z=zeros: _z)


def bert_splice_forward(x, params):
    B, L, CIN = x.shape
    packed = pack_params(params)
    out = pl.pallas_call(
        bert_splice_kernel,
        out_shape=jax.ShapeDtypeStruct((B, 1, 128), jnp.float32),
        grid_spec=pltpu.PrefetchScalarGridSpec(
            num_scalar_prefetch=0,
            grid=(B,),
            in_specs=[pl.BlockSpec((1, L, CIN), lambda b: (b, 0, 0))]
                     + [_full_spec(a) for a in packed],
            out_specs=pl.BlockSpec((1, 1, 128), lambda b: (b, 0, 0)),
            scratch_shapes=[pltpu.VMEM((L + 2 * MAXPAD, 2 * BASE), jnp.float32)],
        ),
        compiler_params=pltpu.CompilerParams(
            dimension_semantics=("parallel",)),   # v7x: shard batch over both TCs
    )(x, *packed)
    return out[:, 0, :NUM_CLASSES]    # (B, num_classes)


# --------------------------------------------------------------------------- #
# Pure-JAX reference (PyTorch conv semantics) for a numeric sanity check.
# --------------------------------------------------------------------------- #
def reference_forward(x, p):
    def conv1d(h, w, b, pad=0, dil=1):   # h: (B,C,L), w: (Cout,Cin,K)
        y = jax.lax.conv_general_dilated(
            h, w, (1,), [(pad, pad)], rhs_dilation=(dil,),
            dimension_numbers=('NCH', 'OIH', 'NCH'), precision='highest')
        return y + b[None, :, None]

    def bn(h, gamma, beta, mean, var):
        return ((h - mean[None, :, None]) / jnp.sqrt(var[None, :, None] + BN_EPS)
                * gamma[None, :, None] + beta[None, :, None])

    def res_block(h, blk, K, dil):
        pad = (K - 1) // 2 * dil
        t = jax.nn.relu(bn(h, *blk['bn1']))
        t = conv1d(t, blk['w1'], blk['b1'], pad, dil)
        t = jax.nn.relu(bn(t, *blk['bn2']))
        t = conv1d(t, blk['w2'], blk['b2'], pad, dil)
        return h + t

    h = x.transpose(0, 2, 1)                               # (B, Cin, L)
    h = conv1d(h, p['w_in'], p['b_in'])
    q = conv1d(h, p['w_q'], p['b_q']).transpose(0, 2, 1)
    k = conv1d(h, p['w_k'], p['b_k']).transpose(0, 2, 1)
    v = conv1d(h, p['w_v'], p['b_v']).transpose(0, 2, 1)
    att = jnp.einsum('blc,bmc->blm', q, k, precision='highest') / math.sqrt(BASE)
    att = jax.nn.softmax(att, axis=-1)
    h = jnp.einsum('blm,bmc->blc', att, v, precision='highest').transpose(0, 2, 1) + h

    skip1 = conv1d(h, p['w_skip1'], p['b_skip1'])
    for blk in p['rb1']:
        h = res_block(h, blk, 5, 1)
    skip2 = conv1d(h, p['w_skip2'], p['b_skip2'])
    for blk in p['rb2']:
        h = res_block(h, blk, 5, 2)
    skip3 = conv1d(h, p['w_skip3'], p['b_skip3'])
    for blk in p['rb3']:
        h = res_block(h, blk, 9, 3)
    h = conv1d(h, p['w_after'], p['b_after'])
    h = h + skip1 + skip2 + skip3
    h = conv1d(h, p['w_final'], p['b_final'])
    h = jnp.max(h, axis=2)                                 # (B, 64)
    h = jax.nn.relu(jnp.matmul(h, p['w_fc1'].T, precision='highest') + p['b_fc1'])
    h = jnp.matmul(h, p['w_fc2'].T, precision='highest') + p['b_fc2']
    return jax.nn.sigmoid(h)


if __name__ == "__main__":
    B, L, CIN = 2, 16, 96   # small shapes: batch=2, seq=16, BERT hidden=96 (module default 768)
    master = jax.random.PRNGKey(0)
    k_param, k_x = jax.random.split(master)
    params = init_params(CIN, seed=0)
    x = jax.random.normal(k_x, (B, L, CIN), dtype=jnp.float32)

    out = bert_splice_forward(x, params)
    out = jax.block_until_ready(out)
    assert out.shape == (B, NUM_CLASSES)

    ref = reference_forward(x, params)
    np.testing.assert_allclose(np.asarray(out), np.asarray(ref), atol=5e-3, rtol=5e-3)
    print("KERNEL_OK")
</pallas_src>

<mosaic_0001>
module attributes {stable_mosaic.version = 11 : i64} {
  func.func @bert_splice_kernel(%arg0: i32, %arg1: memref<1x16x96xf32, #tpu.memory_space<vmem>>, %arg2: memref<96x64xf32, #tpu.memory_space<vmem>>, %arg3: memref<64x192xf32, #tpu.memory_space<vmem>>, %arg4: memref<1x192xf32, #tpu.memory_space<vmem>>, %arg5: memref<5x64x64xf32, #tpu.memory_space<vmem>>, %arg6: memref<16x3x128x64xf32, #tpu.memory_space<vmem>>, %arg7: memref<8x5x128x64xf32, #tpu.memory_space<vmem>>, %arg8: memref<78x64xf32, #tpu.memory_space<vmem>>, %arg9: memref<64x128xf32, #tpu.memory_space<vmem>>, %arg10: memref<1x128xf32, #tpu.memory_space<vmem>>, %arg11: memref<128x1xf32, #tpu.memory_space<vmem>>, %arg12: memref<1x1xf32, #tpu.memory_space<vmem>>, %arg13: memref<1x1x128xf32, #tpu.memory_space<vmem>>, %arg14: memref<40x128xf32, #tpu.memory_space<vmem>>) attributes {dimension_semantics = [#tpu.dimension_semantics<parallel>], iteration_bounds = array<i64: 2>, scalar_prefetch = 0 : i64, scratch_operands = 1 : i64, tpu.core_type = #tpu.core_type<tc>, window_params = [{transform_indices = @transform_0, window_bounds = array<i64: 1, 16, 96>}, {pipeline_mode = #tpu.pipeline_mode<synchronous>, transform_indices = @transform_1, window_bounds = array<i64: 96, 64>}, {pipeline_mode = #tpu.pipeline_mode<synchronous>, transform_indices = @transform_2, window_bounds = array<i64: 64, 192>}, {pipeline_mode = #tpu.pipeline_mode<synchronous>, transform_indices = @transform_3, window_bounds = array<i64: 1, 192>}, {pipeline_mode = #tpu.pipeline_mode<synchronous>, transform_indices = @transform_4, window_bounds = array<i64: 5, 64, 64>}, {pipeline_mode = #tpu.pipeline_mode<synchronous>, transform_indices = @transform_5, window_bounds = array<i64: 16, 3, 128, 64>}, {pipeline_mode = #tpu.pipeline_mode<synchronous>, transform_indices = @transform_6, window_bounds = array<i64: 8, 5, 128, 64>}, {pipeline_mode = #tpu.pipeline_mode<synchronous>, transform_indices = @transform_7, window_bounds = array<i64: 78, 64>}, {pipeline_mode = #tpu.pipeline_mode<synchronous>, transform_indices = @transform_8, window_bounds = array<i64: 64, 128>}, {pipeline_mode = #tpu.pipeline_mode<synchronous>, transform_indices = @transform_9, window_bounds = array<i64: 1, 128>}, {pipeline_mode = #tpu.pipeline_mode<synchronous>, transform_indices = @transform_10, window_bounds = array<i64: 128, 1>}, {pipeline_mode = #tpu.pipeline_mode<synchronous>, transform_indices = @transform_11, window_bounds = array<i64: 1, 1>}, {transform_indices = @transform_12, window_bounds = array<i64: 1, 1, 128>}]} {
    %cst = arith.constant 0.000000e+00 : f32
    %0 = vector.broadcast %cst : f32 to vector<12x128xf32>
    %c0 = arith.constant 0 : index
    %c0_0 = arith.constant 0 : index
    %1 = vector.load %arg14[%c0, %c0_0] : memref<40x128xf32, #tpu.memory_space<vmem>>, vector<12x128xf32>
    tpu.vector_store %arg14[%c0, %c0_0], %0 {strides = array<i32>} : memref<40x128xf32, #tpu.memory_space<vmem>>, vector<12x128xf32>,
    %c28 = arith.constant 28 : index
    %c0_1 = arith.constant 0 : index
    %2 = vector.load %arg14[%c28, %c0_1] : memref<40x128xf32, #tpu.memory_space<vmem>>, vector<12x128xf32>
    tpu.vector_store %arg14[%c28, %c0_1], %0 {strides = array<i32>} : memref<40x128xf32, #tpu.memory_space<vmem>>, vector<12x128xf32>,
    %c0_2 = arith.constant 0 : index
    %c0_3 = arith.constant 0 : index
    %c0_4 = arith.constant 0 : index
    %3 = vector.load %arg1[%c0_2, %c0_3, %c0_4] : memref<1x16x96xf32, #tpu.memory_space<vmem>>, vector<1x16x96xf32>
    %4 = vector.shape_cast %3 : vector<1x16x96xf32> to vector<16x96xf32>
    %c0_5 = arith.constant 0 : index
    %c0_6 = arith.constant 0 : index
    %5 = vector.load %arg2[%c0_5, %c0_6] : memref<96x64xf32, #tpu.memory_space<vmem>>, vector<96x64xf32>
    %c0_7 = arith.constant 0 : index
    %c0_8 = arith.constant 0 : index
    %6 = vector.load %arg8[%c0_7, %c0_8] : memref<78x64xf32, #tpu.memory_space<vmem>>, vector<1x64xf32>
    %cst_9 = arith.constant dense<0.000000e+00> : vector<16x64xf32>
    %7 = tpu.matmul %4, %5, %cst_9 {dimension_numbers = #tpu.dot_dimension_numbers<[1], [0], [0], [1], [0, 0, 1, 1], [], []>} : vector<16x96xf32>, vector<96x64xf32>, vector<16x64xf32> -> vector<16x64xf32>
    %8 = vector.broadcast %6 : vector<1x64xf32> to vector<16x64xf32>
    %9 = arith.addf %7, %8 : vector<16x64xf32>
    %c0_10 = arith.constant 0 : index
    %c0_11 = arith.constant 0 : index
    %10 = vector.load %arg3[%c0_10, %c0_11] : memref<64x192xf32, #tpu.memory_space<vmem>>, vector<64x192xf32>
    %cst_12 = arith.constant dense<0.000000e+00> : vector<16x192xf32>
    %11 = tpu.matmul %9, %10, %cst_12 {dimension_numbers = #tpu.dot_dimension_numbers<[1], [0], [0], [1], [0, 0, 1, 1], [], []>} : vector<16x64xf32>, vector<64x192xf32>, vector<16x192xf32> -> vector<16x192xf32>
    %c0_13 = arith.constant 0 : index
    %c0_14 = arith.constant 0 : index
    %12 = vector.load %arg4[%c0_13, %c0_14] : memref<1x192xf32, #tpu.memory_space<vmem>>, vector<1x192xf32>
    %13 = vector.broadcast %12 : vector<1x192xf32> to vector<16x192xf32>
    %14 = arith.addf %11, %13 : vector<16x192xf32>
    %15 = vector.extract_strided_slice %14 {offsets = [0, 0], sizes = [16, 64], strides = [1, 1]} : vector<16x192xf32> to vector<16x64xf32>
    %16 = vector.extract_strided_slice %14 {offsets = [0, 64], sizes = [16, 64], strides = [1, 1]} : vector<16x192xf32> to vector<16x64xf32>
    %17 = vector.extract_strided_slice %14 {offsets = [0, 128], sizes = [16, 64], strides = [1, 1]} : vector<16x192xf32> to vector<16x64xf32>
    %cst_15 = arith.constant dense<0.000000e+00> : vector<16x16xf32>
    %18 = tpu.matmul %15, %16, %cst_15 {dimension_numbers = #tpu.dot_dimension_numbers<[1], [1], [0], [0], [0, 0, 1, 0], [], []>} : vector<16x64xf32>, vector<16x64xf32>, vector<16x16xf32> -> vector<16x16xf32>
    %cst_16 = arith.constant 1.250000e-01 : f32
    %19 = vector.broadcast %cst_16 : f32 to vector<16x16xf32>
    %20 = arith.mulf %18, %19 : vector<16x16xf32>
    %cst_17 = arith.constant dense<0xFF800000> : vector<16xf32>
    %21 = vector.multi_reduction <maximumf>, %20, %cst_17 [1] : vector<16x16xf32> to vector<16xf32>
    %22 = vector.shape_cast %21 : vector<16xf32> to vector<16x1xf32>
    %23 = vector.broadcast %22 : vector<16x1xf32> to vector<16x16xf32>
    %24 = arith.subf %20, %23 : vector<16x16xf32>
    %25 = math.exp %24 : vector<16x16xf32>
    %cst_18 = arith.constant dense<0.000000e+00> : vector<16xf32>
    %26 = vector.multi_reduction <add>, %25, %cst_18 [1] : vector<16x16xf32> to vector<16xf32>
    %27 = vector.shape_cast %26 : vector<16xf32> to vector<16x1xf32>
    %28 = tpu.reciprocal %27 {approx = true} : vector<16x1xf32> -> vector<16x1xf32>
    %29 = vector.broadcast %28 : vector<16x1xf32> to vector<16x16xf32>
    %30 = arith.mulf %25, %29 : vector<16x16xf32>
    %cst_19 = arith.constant dense<0.000000e+00> : vector<16x64xf32>
    %31 = tpu.matmul %30, %17, %cst_19 {dimension_numbers = #tpu.dot_dimension_numbers<[1], [0], [0], [1], [0, 0, 1, 1], [], []>} : vector<16x16xf32>, vector<16x64xf32>, vector<16x64xf32> -> vector<16x64xf32>
    %32 = arith.addf %31, %9 : vector<16x64xf32>
    %c0_20 = arith.constant 0 : index
    %c0_21 = arith.constant 0 : index
    %c0_22 = arith.constant 0 : index
    %33 = vector.load %arg5[%c0_20, %c0_21, %c0_22] : memref<5x64x64xf32, #tpu.memory_space<vmem>>, vector<1x64x64xf32>
    %34 = vector.shape_cast %33 : vector<1x64x64xf32> to vector<64x64xf32>
    %c1 = arith.constant 1 : index
    %c0_23 = arith.constant 0 : index
    %35 = vector.load %arg8[%c1, %c0_23] : memref<78x64xf32, #tpu.memory_space<vmem>>, vector<1x64xf32>
    %cst_24 = arith.constant dense<0.000000e+00> : vector<16x64xf32>
    %36 = tpu.matmul %32, %34, %cst_24 {dimension_numbers = #tpu.dot_dimension_numbers<[1], [0], [0], [1], [0, 0, 1, 1], [], []>} : vector<16x64xf32>, vector<64x64xf32>, vector<16x64xf32> -> vector<16x64xf32>
    %37 = vector.broadcast %35 : vector<1x64xf32> to vector<16x64xf32>
    %38 = arith.addf %36, %37 : vector<16x64xf32>
    %c30 = arith.constant 30 : index
    %c0_25 = arith.constant 0 : index
    %39 = vector.load %arg8[%c30, %c0_25] : memref<78x64xf32, #tpu.memory_space<vmem>>, vector<1x64xf32>
    %40 = vector.broadcast %39 : vector<1x64xf32> to vector<16x64xf32>
    %41 = arith.mulf %32, %40 : vector<16x64xf32>
    %c54 = arith.constant 54 : index
    %c0_26 = arith.constant 0 : index
    %42 = vector.load %arg8[%c54, %c0_26] : memref<78x64xf32, #tpu.memory_space<vmem>>, vector<1x64xf32>
    %43 = vector.broadcast %42 : vector<1x64xf32> to vector<16x64xf32>
    %44 = arith.addf %41, %43 : vector<16x64xf32>
    %cst_27 = arith.constant 0.000000e+00 : f32
    %45 = vector.broadcast %cst_27 : f32 to vector<16x64xf32>
    %46 = arith.maximumf %44, %45 : vector<16x64xf32>
    %c6 = arith.constant 6 : index
    %c0_28 = arith.constant 0 : index
    %47 = vector.load %arg8[%c6, %c0_28] : memref<78x64xf32, #tpu.memory_space<vmem>>, vector<1x64xf32>
    %c12 = arith.constant 12 : index
    %c0_29 = arith.constant 0 : index
    %48 = vector.load %arg14[%c12, %c0_29] : memref<40x128xf32, #tpu.memory_space<vmem>>, vector<16x64xf32>
    tpu.vector_store %arg14[%c12, %c0_29], %46 {strides = array<i32>} : memref<40x128xf32, #tpu.memory_space<vmem>>, vector<16x64xf32>,
    %c11 = arith.constant 11 : index
    %c64 = arith.constant 64 : index
    %49 = vector.load %arg14[%c11, %c64] : memref<40x128xf32, #tpu.memory_space<vmem>>, vector<16x64xf32>
    tpu.vector_store %arg14[%c11, %c64], %46 {strides = array<i32>} : memref<40x128xf32, #tpu.memory_space<vmem>>, vector<16x64xf32>,
    %cst_30 = arith.constant 0.000000e+00 : f32
    %50 = vector.broadcast %cst_30 : f32 to vector<1x64xf32>
    %c27 = arith.constant 27 : index
    %c64_31 = arith.constant 64 : index
    %51 = vector.load %arg14[%c27, %c64_31] : memref<40x128xf32, #tpu.memory_space<vmem>>, vector<1x64xf32>
    tpu.vector_store %arg14[%c27, %c64_31], %50 {strides = array<i32>} : memref<40x128xf32, #tpu.memory_space<vmem>>, vector<1x64xf32>,
    %c10 = arith.constant 10 : index
    %c0_32 = arith.constant 0 : index
    %52 = vector.load %arg14[%c10, %c0_32] : memref<40x128xf32, #tpu.memory_space<vmem>>, vector<16x128xf32>
    %c0_33 = arith.constant 0 : index
    %c0_34 = arith.constant 0 : index
    %c0_35 = arith.constant 0 : index
    %c0_36 = arith.constant 0 : index
    %53 = vector.load %arg6[%c0_33, %c0_34, %c0_35, %c0_36] : memref<16x3x128x64xf32, #tpu.memory_space<vmem>>, vector<1x1x128x64xf32>
    %54 = vector.shape_cast %53 : vector<1x1x128x64xf32> to vector<128x64xf32>
    %cst_37 = arith.constant dense<0.000000e+00> : vector<16x64xf32>
    %55 = tpu.matmul %52, %54, %cst_37 {dimension_numbers = #tpu.dot_dimension_numbers<[1], [0], [0], [1], [0, 0, 1, 1], [], []>} : vector<16x128xf32>, vector<128x64xf32>, vector<16x64xf32> -> vector<16x64xf32>
    %c12_38 = arith.constant 12 : index
    %c0_39 = arith.constant 0 : index
    %56 = vector.load %arg14[%c12_38, %c0_39] : memref<40x128xf32, #tpu.memory_space<vmem>>, vector<16x128xf32>
    %c0_40 = arith.constant 0 : index
    %c1_41 = arith.constant 1 : index
    %c0_42 = arith.constant 0 : index
    %c0_43 = arith.constant 0 : index
    %57 = vector.load %arg6[%c0_40, %c1_41, %c0_42, %c0_43] : memref<16x3x128x64xf32, #tpu.memory_space<vmem>>, vector<1x1x128x64xf32>
    %58 = vector.shape_cast %57 : vector<1x1x128x64xf32> to vector<128x64xf32>
    %cst_44 = arith.constant dense<0.000000e+00> : vector<16x64xf32>
    %59 = tpu.matmul %56, %58, %cst_44 {dimension_numbers = #tpu.dot_dimension_numbers<[1], [0], [0], [1], [0, 0, 1, 1], [], []>} : vector<16x128xf32>, vector<128x64xf32>, vector<16x64xf32> -> vector<16x64xf32>
    %60 = arith.addf %55, %59 : vector<16x64xf32>
    %c14 = arith.constant 14 : index
    %c0_45 = arith.constant 0 : index
    %61 = vector.load %arg14[%c14, %c0_45] : memref<40x128xf32, #tpu.memory_space<vmem>>, vector<16x128xf32>
    %c0_46 = arith.constant 0 : index
    %c2 = arith.constant 2 : index
    %c0_47 = arith.constant 0 : index
    %c0_48 = arith.constant 0 : index
    %62 = vector.load %arg6[%c0_46, %c2, %c0_47, %c0_48] : memref<16x3x128x64xf32, #tpu.memory_space<vmem>>, vector<1x1x128x64xf32>
    %63 = vector.shape_cast %62 : vector<1x1x128x64xf32> to vector<128x64xf32>
    %cst_49 = arith.constant dense<0.000000e+00> : vector<16x64xf32>
    %64 = tpu.matmul %61, %63, %cst_49 {dimension_numbers = #tpu.dot_dimension_numbers<[1], [0], [0], [1], [0, 0, 1, 1], [], []>} : vector<16x128xf32>, vector<128x64xf32>, vector<16x64xf32> -> vector<16x64xf32>
    %65 = arith.addf %60, %64 : vector<16x64xf32>
    %66 = vector.broadcast %47 : vector<1x64xf32> to vector<16x64xf32>
    %67 = arith.addf %65, %66 : vector<16x64xf32>
    %c31 = arith.constant 31 : index
    %c0_50 = arith.constant 0 : index
    %68 = vector.load %arg8[%c31, %c0_50] : memref<78x64xf32, #tpu.memory_space<vmem>>, vector<1x64xf32>
    %69 = vector.broadcast %68 : vector<1x64xf32> to vector<16x64xf32>
    %70 = arith.mulf %67, %69 : vector<16x64xf32>
    %c55 = arith.constant 55 : index
    %c0_51 = arith.constant 0 : index
    %71 = vector.load %arg8[%c55, %c0_51] : memref<78x64xf32, #tpu.memory_space<vmem>>, vector<1x64xf32>
    %72 = vector.broadcast %71 : vector<1x64xf32> to vector<16x64xf32>
    %73 = arith.addf %70, %72 : vector<16x64xf32>
    %cst_52 = arith.constant 0.000000e+00 : f32
    %74 = vector.broadcast %cst_52 : f32 to vector<16x64xf32>
    %75 = arith.maximumf %73, %74 : vector<16x64xf32>
    %c7 = arith.constant 7 : index
    %c0_53 = arith.constant 0 : index
    %76 = vector.load %arg8[%c7, %c0_53] : memref<78x64xf32, #tpu.memory_space<vmem>>, vector<1x64xf32>
    %c12_54 = arith.constant 12 : index
    %c0_55 = arith.constant 0 : index
    %77 = vector.load %arg14[%c12_54, %c0_55] : memref<40x128xf32, #tpu.memory_space<vmem>>, vector<16x64xf32>
    tpu.vector_store %arg14[%c12_54, %c0_55], %75 {strides = array<i32>} : memref<40x128xf32, #tpu.memory_space<vmem>>, vector<16x64xf32>,
    %c11_56 = arith.constant 11 : index
    %c64_57 = arith.constant 64 : index
    %78 = vector.load %arg14[%c11_56, %c64_57] : memref<40x128xf32, #tpu.memory_space<vmem>>, vector<16x64xf32>
    tpu.vector_store %arg14[%c11_56, %c64_57], %75 {strides = array<i32>} : memref<40x128xf32, #tpu.memory_space<vmem>>, vector<16x64xf32>,
    %cst_58 = arith.constant 0.000000e+00 : f32
    %79 = vector.broadcast %cst_58 : f32 to vector<1x64xf32>
    %c27_59 = arith.constant 27 : index
    %c64_60 = arith.constant 64 : index
    %80 = vector.load %arg14[%c27_59, %c64_60] : memref<40x128xf32, #tpu.memory_space<vmem>>, vector<1x64xf32>
    tpu.vector_store %arg14[%c27_59, %c64_60], %79 {strides = array<i32>} : memref<40x128xf32, #tpu.memory_space<vmem>>, vector<1x64xf32>,
    %c10_61 = arith.constant 10 : index
    %c0_62 = arith.constant 0 : index
    %81 = vector.load %arg14[%c10_61, %c0_62] : memref<40x128xf32, #tpu.memory_space<vmem>>, vector<16x128xf32>
    %c1_63 = arith.constant 1 : index
    %c0_64 = arith.constant 0 : index
    %c0_65 = arith.constant 0 : index
    %c0_66 = arith.constant 0 : index
    %82 = vector.load %arg6[%c1_63, %c0_64, %c0_65, %c0_66] : memref<16x3x128x64xf32, #tpu.memory_space<vmem>>, vector<1x1x128x64xf32>
    %83 = vector.shape_cast %82 : vector<1x1x128x64xf32> to vector<128x64xf32>
    %cst_67 = arith.constant dense<0.000000e+00> : vector<16x64xf32>
    %84 = tpu.matmul %81, %83, %cst_67 {dimension_numbers = #tpu.dot_dimension_numbers<[1], [0], [0], [1], [0, 0, 1, 1], [], []>} : vector<16x128xf32>, vector<128x64xf32>, vector<16x64xf32> -> vector<16x64xf32>
    %c12_68 = arith.constant 12 : index
    %c0_69 = arith.constant 0 : index
    %85 = vector.load %arg14[%c12_68, %c0_69] : memref<40x128xf32, #tpu.memory_space<vmem>>, vector<16x128xf32>
    %c1_70 = arith.constant 1 : index
    %c1_71 = arith.constant 1 : index
    %c0_72 = arith.constant 0 : index
    %c0_73 = arith.constant 0 : index
    %86 = vector.load %arg6[%c1_70, %c1_71, %c0_72, %c0_73] : memref<16x3x128x64xf32, #tpu.memory_space<vmem>>, vector<1x1x128x64xf32>
    %87 = vector.shape_cast %86 : vector<1x1x128x64xf32> to vector<128x64xf32>
    %cst_74 = arith.constant dense<0.000000e+00> : vector<16x64xf32>
    %88 = tpu.matmul %85, %87, %cst_74 {dimension_numbers = #tpu.dot_dimension_numbers<[1], [0], [0], [1], [0, 0, 1, 1], [], []>} : vector<16x128xf32>, vector<128x64xf32>, vector<16x64xf32> -> vector<16x64xf32>
    %89 = arith.addf %84, %88 : vector<16x64xf32>
    %c14_75 = arith.constant 14 : index
    %c0_76 = arith.constant 0 : index
    %90 = vector.load %arg14[%c14_75, %c0_76] : memref<40x128xf32, #tpu.memory_space<vmem>>, vector<16x128xf32>
    %c1_77 = arith.constant 1 : index
    %c2_78 = arith.constant 2 : index
    %c0_79 = arith.constant 0 : index
    %c0_80 = arith.constant 0 : index
    %91 = vector.load %arg6[%c1_77, %c2_78, %c0_79, %c0_80] : memref<16x3x128x64xf32, #tpu.memory_space<vmem>>, vector<1x1x128x64xf32>
    %92 = vector.shape_cast %91 : vector<1x1x128x64xf32> to vector<128x64xf32>
    %cst_81 = arith.constant dense<0.000000e+00> : vector<16x64xf32>
    %93 = tpu.matmul %90, %92, %cst_81 {dimension_numbers = #tpu.dot_dimension_numbers<[1], [0], [0], [1], [0, 0, 1, 1], [], []>} : vector<16x128xf32>, vector<128x64xf32>, vector<16x64xf32> -> vector<16x64xf32>
    %94 = arith.addf %89, %93 : vector<16x64xf32>
    %95 = vector.broadcast %76 : vector<1x64xf32> to vector<16x64xf32>
    %96 = arith.addf %94, %95 : vector<16x64xf32>
    %97 = arith.addf %32, %96 : vector<16x64xf32>
    %c32 = arith.constant 32 : index
    %c0_82 = arith.constant 0 : index
    %98 = vector.load %arg8[%c32, %c0_82] : memref<78x64xf32, #tpu.memory_space<vmem>>, vector<1x64xf32>
    %99 = vector.broadcast %98 : vector<1x64xf32> to vector<16x64xf32>
    %100 = arith.mulf %97, %99 : vector<16x64xf32>
    %c56 = arith.constant 56 : index
    %c0_83 = arith.constant 0 : index
    %101 = vector.load %arg8[%c56, %c0_83] : memref<78x64xf32, #tpu.memory_space<vmem>>, vector<1x64xf32>
    %102 = vector.broadcast %101 : vector<1x64xf32> to vector<16x64xf32>
    %103 = arith.addf %100, %102 : vector<16x64xf32>
    %cst_84 = arith.constant 0.000000e+00 : f32
    %104 = vector.broadcast %cst_84 : f32 to vector<16x64xf32>
    %105 = arith.maximumf %103, %104 : vector<16x64xf32>
    %c8 = arith.constant 8 : index
    %c0_85 = arith.constant 0 : index
    %106 = vector.load %arg8[%c8, %c0_85] : memref<78x64xf32, #tpu.memory_space<vmem>>, vector<1x64xf32>
    %c12_86 = arith.constant 12 : index
    %c0_87 = arith.constant 0 : index
    %107 = vector.load %arg14[%c12_86, %c0_87] : memref<40x128xf32, #tpu.memory_space<vmem>>, vector<16x64xf32>
    tpu.vector_store %arg14[%c12_86, %c0_87], %105 {strides = array<i32>} : memref<40x128xf32, #tpu.memory_space<vmem>>, vector<16x64xf32>,
    %c11_88 = arith.constant 11 : index
    %c64_89 = arith.constant 64 : index
    %108 = vector.load %arg14[%c11_88, %c64_89] : memref<40x128xf32, #tpu.memory_space<vmem>>, vector<16x64xf32>
    tpu.vector_store %arg14[%c11_88, %c64_89], %105 {strides = array<i32>} : memref<40x128xf32, #tpu.memory_space<vmem>>, vector<16x64xf32>,
    %cst_90 = arith.constant 0.000000e+00 : f32
    %109 = vector.broadcast %cst_90 : f32 to vector<1x64xf32>
    %c27_91 = arith.constant 27 : index
    %c64_92 = arith.constant 64 : index
    %110 = vector.load %arg14[%c27_91, %c64_92] : memref<40x128xf32, #tpu.memory_space<vmem>>, vector<1x64xf32>
    tpu.vector_store %arg14[%c27_91, %c64_92], %109 {strides = array<i32>} : memref<40x128xf32, #tpu.memory_space<vmem>>, vector<1x64xf32>,
    %c10_93 = arith.constant 10 : index
    %c0_94 = arith.constant 0 : index
    %111 = vector.load %arg14[%c10_93, %c0_94] : memref<40x128xf32, #tpu.memory_space<vmem>>, vector<16x128xf32>
    %c2_95 = arith.constant 2 : index
    %c0_96 = arith.constant 0 : index
    %c0_97 = arith.constant 0 : index
    %c0_98 = arith.constant 0 : index
    %112 = vector.load %arg6[%c2_95, %c0_96, %c0_97, %c0_98] : memref<16x3x128x64xf32, #tpu.memory_space<vmem>>, vector<1x1x128x64xf32>
    %113 = vector.shape_cast %112 : vector<1x1x128x64xf32> to vector<128x64xf32>
    %cst_99 = arith.constant dense<0.000000e+00> : vector<16x64xf32>
    %114 = tpu.matmul %111, %113, %cst_99 {dimension_numbers = #tpu.dot_dimension_numbers<[1], [0], [0], [1], [0, 0, 1, 1], [], []>} : vector<16x128xf32>, vector<128x64xf32>, vector<16x64xf32> -> vector<16x64xf32>
    %c12_100 = arith.constant 12 : index
    %c0_101 = arith.constant 0 : index
    %115 = vector.load %arg14[%c12_100, %c0_101] : memref<40x128xf32, #tpu.memory_space<vmem>>, vector<16x128xf32>
    %c2_102 = arith.constant 2 : index
    %c1_103 = arith.constant 1 : index
    %c0_104 = arith.constant 0 : index
    %c0_105 = arith.constant 0 : index
    %116 = vector.load %arg6[%c2_102, %c1_103, %c0_104, %c0_105] : memref<16x3x128x64xf32, #tpu.memory_space<vmem>>, vector<1x1x128x64xf32>
    %117 = vector.shape_cast %116 : vector<1x1x128x64xf32> to vector<128x64xf32>
    %cst_106 = arith.constant dense<0.000000e+00> : vector<16x64xf32>
    %118 = tpu.matmul %115, %117, %cst_106 {dimension_numbers = #tpu.dot_dimension_numbers<[1], [0], [0], [1], [0, 0, 1, 1], [], []>} : vector<16x128xf32>, vector<128x64xf32>, vector<16x64xf32> -> vector<16x64xf32>
    %119 = arith.addf %114, %118 : vector<16x64xf32>
    %c14_107 = arith.constant 14 : index
    %c0_108 = arith.constant 0 : index
    %120 = vector.load %arg14[%c14_107, %c0_108] : memref<40x128xf32, #tpu.memory_space<vmem>>, vector<16x128xf32>
    %c2_109 = arith.constant 2 : index
    %c2_110 = arith.constant 2 : index
    %c0_111 = arith.constant 0 : index
    %c0_112 = arith.constant 0 : index
    %121 = vector.load %arg6[%c2_109, %c2_110, %c0_111, %c0_112] : memref<16x3x128x64xf32, #tpu.memory_space<vmem>>, vector<1x1x128x64xf32>
    %122 = vector.shape_cast %121 : vector<1x1x128x64xf32> to vector<128x64xf32>
    %cst_113 = arith.constant dense<0.000000e+00> : vector<16x64xf32>
    %123 = tpu.matmul %120, %122, %cst_113 {dimension_numbers = #tpu.dot_dimension_numbers<[1], [0], [0], [1], [0, 0, 1, 1], [], []>} : vector<16x128xf32>, vector<128x64xf32>, vector<16x64xf32> -> vector<16x64xf32>
    %124 = arith.addf %119, %123 : vector<16x64xf32>
    %125 = vector.broadcast %106 : vector<1x64xf32> to vector<16x64xf32>
    %126 = arith.addf %124, %125 : vector<16x64xf32>
    %c33 = arith.constant 33 : index
    %c0_114 = arith.constant 0 : index
    %127 = vector.load %arg8[%c33, %c0_114] : memref<78x64xf32, #tpu.memory_space<vmem>>, vector<1x64xf32>
    %128 = vector.broadcast %127 : vector<1x64xf32> to vector<16x64xf32>
    %129 = arith.mulf %126, %128 : vector<16x64xf32>
    %c57 = arith.constant 57 : index
    %c0_115 = arith.constant 0 : index
    %130 = vector.load %arg8[%c57, %c0_115] : memref<78x64xf32, #tpu.memory_space<vmem>>, vector<1x64xf32>
    %131 = vector.broadcast %130 : vector<1x64xf32> to vector<16x64xf32>
    %132 = arith.addf %129, %131 : vector<16x64xf32>
    %cst_116 = arith.constant 0.000000e+00 : f32
    %133 = vector.broadcast %cst_116 : f32 to vector<16x64xf32>
    %134 = arith.maximumf %132, %133 : vector<16x64xf32>
    %c9 = arith.constant 9 : index
    %c0_117 = arith.constant 0 : index
    %135 = vector.load %arg8[%c9, %c0_117] : memref<78x64xf32, #tpu.memory_space<vmem>>, vector<1x64xf32>
    %c12_118 = arith.constant 12 : index
    %c0_119 = arith.constant 0 : index
    %136 = vector.load %arg14[%c12_118, %c0_119] : memref<40x128xf32, #tpu.memory_space<vmem>>, vector<16x64xf32>
    tpu.vector_store %arg14[%c12_118, %c0_119], %134 {strides = array<i32>} : memref<40x128xf32, #tpu.memory_space<vmem>>, vector<16x64xf32>,
    %c11_120 = arith.constant 11 : index
    %c64_121 = arith.constant 64 : index
    %137 = vector.load %arg14[%c11_120, %c64_121] : memref<40x128xf32, #tpu.memory_space<vmem>>, vector<16x64xf32>
    tpu.vector_store %arg14[%c11_120, %c64_121], %134 {strides = array<i32>} : memref<40x128xf32, #tpu.memory_space<vmem>>, vector<16x64xf32>,
    %cst_122 = arith.constant 0.000000e+00 : f32
    %138 = vector.broadcast %cst_122 : f32 to vector<1x64xf32>
    %c27_123 = arith.constant 27 : index
    %c64_124 = arith.constant 64 : index
    %139 = vector.load %arg14[%c27_123, %c64_124] : memref<40x128xf32, #tpu.memory_space<vmem>>, vector<1x64xf32>
    tpu.vector_store %arg14[%c27_123, %c64_124], %138 {strides = array<i32>} : memref<40x128xf32, #tpu.memory_space<vmem>>, vector<1x64xf32>,
    %c10_125 = arith.constant 10 : index
    %c0_126 = arith.constant 0 : index
    %140 = vector.load %arg14[%c10_125, %c0_126] : memref<40x128xf32, #tpu.memory_space<vmem>>, vector<16x128xf32>
    %c3 = arith.constant 3 : index
    %c0_127 = arith.constant 0 : index
    %c0_128 = arith.constant 0 : index
    %c0_129 = arith.constant 0 : index
    %141 = vector.load %arg6[%c3, %c0_127, %c0_128, %c0_129] : memref<16x3x128x64xf32, #tpu.memory_space<vmem>>, vector<1x1x128x64xf32>
    %142 = vector.shape_cast %141 : vector<1x1x128x64xf32> to vector<128x64xf32>
    %cst_130 = arith.constant dense<0.000000e+00> : vector<16x64xf32>
    %143 = tpu.matmul %140, %142, %cst_130 {dimension_numbers = #tpu.dot_dimension_numbers<[1], [0], [0], [1], [0, 0, 1, 1], [], []>} : vector<16x128xf32>, vector<128x64xf32>, vector<16x64xf32> -> vector<16x64xf32>
    %c12_131 = arith.constant 12 : index
    %c0_132 = arith.constant 0 : index
    %144 = vector.load %arg14[%c12_131, %c0_132] : memref<40x128xf32, #tpu.memory_space<vmem>>, vector<16x128xf32>
    %c3_133 = arith.constant 3 : index
    %c1_134 = arith.constant 1 : index
    %c0_135 = arith.constant 0 : index
    %c0_136 = arith.constant 0 : index
    %145 = vector.load %arg6[%c3_133, %c1_134, %c0_135, %c0_136] : memref<16x3x128x64xf32, #tpu.memory_space<vmem>>, vector<1x1x128x64xf32>
    %146 = vector.shape_cast %145 : vector<1x1x128x64xf32> to vector<128x64xf32>
    %cst_137 = arith.constant dense<0.000000e+00> : vector<16x64xf32>
    %147 = tpu.matmul %144, %146, %cst_137 {dimension_numbers = #tpu.dot_dimension_numbers<[1], [0], [0], [1], [0, 0, 1, 1], [], []>} : vector<16x128xf32>, vector<128x64xf32>, vector<16x64xf32> -> vector<16x64xf32>
    %148 = arith.addf %143, %147 : vector<16x64xf32>
    %c14_138 = arith.constant 14 : index
    %c0_139 = arith.constant 0 : index
    %149 = vector.load %arg14[%c14_138, %c0_139] : memref<40x128xf32, #tpu.memory_space<vmem>>, vector<16x128xf32>
    %c3_140 = arith.constant 3 : index
    %c2_141 = arith.constant 2 : index
    %c0_142 = arith.constant 0 : index
    %c0_143 = arith.constant 0 : index
    %150 = vector.load %arg6[%c3_140, %c2_141, %c0_142, %c0_143] : memref<16x3x128x64xf32, #tpu.memory_space<vmem>>, vector<1x1x128x64xf32>
    %151 = vector.shape_cast %150 : vector<1x1x128x64xf32> to vector<128x64xf32>
    %cst_144 = arith.constant dense<0.000000e+00> : vector<16x64xf32>
    %152 = tpu.matmul %149, %151, %cst_144 {dimension_numbers = #tpu.dot_dimension_numbers<[1], [0], [0], [1], [0, 0, 1, 1], [], []>} : vector<16x128xf32>, vector<128x64xf32>, vector<16x64xf32> -> vector<16x64xf32>
    %153 = arith.addf %148, %152 : vector<16x64xf32>
    %154 = vector.broadcast %135 : vector<1x64xf32> to vector<16x64xf32>
    %155 = arith.addf %153, %154 : vector<16x64xf32>
    %156 = arith.addf %97, %155 : vector<16x64xf32>
    %c34 = arith.constant 34 : index
    %c0_145 = arith.constant 0 : index
    %157 = vector.load %arg8[%c34, %c0_145] : memref<78x64xf32, #tpu.memory_space<vmem>>, vector<1x64xf32>
    %158 = vector.broadcast %157 : vector<1x64xf32> to vector<16x64xf32>
    %159 = arith.mulf %156, %158 : vector<16x64xf32>
    %c58 = arith.constant 58 : index
    %c0_146 = arith.constant 0 : index
    %160 = vector.load %arg8[%c58, %c0_146] : memref<78x64xf32, #tpu.memory_space<vmem>>, vector<1x64xf32>
    %161 = vector.broadcast %160 : vector<1x64xf32> to vector<16x64xf32>
    %162 = arith.addf %159, %161 : vector<16x64xf32>
    %cst_147 = arith.constant 0.000000e+00 : f32
    %163 = vector.broadcast %cst_147 : f32 to vector<16x64xf32>
    %164 = arith.maximumf %162, %163 : vector<16x64xf32>
    %c10_148 = arith.constant 10 : index
    %c0_149 = arith.constant 0 : index
    %165 = vector.load %arg8[%c10_148, %c0_149] : memref<78x64xf32, #tpu.memory_space<vmem>>, vector<1x64xf32>
    %c12_150 = arith.constant 12 : index
    %c0_151 = arith.constant 0 : index
    %166 = vector.load %arg14[%c12_150, %c0_151] : memref<40x128xf32, #tpu.memory_space<vmem>>, vector<16x64xf32>
    tpu.vector_store %arg14[%c12_150, %c0_151], %164 {strides = array<i32>} : memref<40x128xf32, #tpu.memory_space<vmem>>, vector<16x64xf32>,
    %c11_152 = arith.constant 11 : index
    %c64_153 = arith.constant 64 : index
    %167 = vector.load %arg14[%c11_152, %c64_153] : memref<40x128xf32, #tpu.memory_space<vmem>>, vector<16x64xf32>
    tpu.vector_store %arg14[%c11_152, %c64_153], %164 {strides = array<i32>} : memref<40x128xf32, #tpu.memory_space<vmem>>, vector<16x64xf32>,
    %cst_154 = arith.constant 0.000000e+00 : f32
    %168 = vector.broadcast %cst_154 : f32 to vector<1x64xf32>
    %c27_155 = arith.constant 27 : index
    %c64_156 = arith.constant 64 : index
    %169 = vector.load %arg14[%c27_155, %c64_156] : memref<40x128xf32, #tpu.memory_space<vmem>>, vector<1x64xf32>
    tpu.vector_store %arg14[%c27_155, %c64_156], %168 {strides = array<i32>} : memref<40x128xf32, #tpu.memory_space<vmem>>, vector<1x64xf32>,
    %c10_157 = arith.constant 10 : index
    %c0_158 = arith.constant 0 : index
    %170 = vector.load %arg14[%c10_157, %c0_158] : memref<40x128xf32, #tpu.memory_space<vmem>>, vector<16x128xf32>
    %c4 = arith.constant 4 : index
    %c0_159 = arith.constant 0 : index
    %c0_160 = arith.constant 0 : index
    %c0_161 = arith.constant 0 : index
    %171 = vector.load %arg6[%c4, %c0_159, %c0_160, %c0_161] : memref<16x3x128x64xf32, #tpu.memory_space<vmem>>, vector<1x1x128x64xf32>
    %172 = vector.shape_cast %171 : vector<1x1x128x64xf32> to vector<128x64xf32>
    %cst_162 = arith.constant dense<0.000000e+00> : vector<16x64xf32>
    %173 = tpu.matmul %170, %172, %cst_162 {dimension_numbers = #tpu.dot_dimension_numbers<[1], [0], [0], [1], [0, 0, 1, 1], [], []>} : vector<16x128xf32>, vector<128x64xf32>, vector<16x64xf32> -> vector<16x64xf32>
    %c12_163 = arith.constant 12 : index
    %c0_164 = arith.constant 0 : index
    %174 = vector.load %arg14[%c12_163, %c0_164] : memref<40x128xf32, #tpu.memory_space<vmem>>, vector<16x128xf32>
    %c4_165 = arith.constant 4 : index
    %c1_166 = arith.constant 1 : index
    %c0_167 = arith.constant 0 : index
    %c0_168 = arith.constant 0 : index
    %175 = vector.load %arg6[%c4_165, %c1_166, %c0_167, %c0_168] : memref<16x3x128x64xf32, #tpu.memory_space<vmem>>, vector<1x1x128x64xf32>
    %176 = vector.shape_cast %175 : vector<1x1x128x64xf32> to vector<128x64xf32>
    %cst_169 = arith.constant dense<0.000000e+00> : vector<16x64xf32>
    %177 = tpu.matmul %174, %176, %cst_169 {dimension_numbers = #tpu.dot_dimension_numbers<[1], [0], [0], [1], [0, 0, 1, 1], [], []>} : vector<16x128xf32>, vector<128x64xf32>, vector<16x64xf32> -> vector<16x64xf32>
    %178 = arith.addf %173, %177 : vector<16x64xf32>
    %c14_170 = arith.constant 14 : index
    %c0_171 = arith.constant 0 : index
    %179 = vector.load %arg14[%c14_170, %c0_171] : memref<40x128xf32, #tpu.memory_space<vmem>>, vector<16x128xf32>
    %c4_172 = arith.constant 4 : index
    %c2_173 = arith.constant 2 : index
    %c0_174 = arith.constant 0 : index
    %c0_175 = arith.constant 0 : index
    %180 = vector.load %arg6[%c4_172, %c2_173, %c0_174, %c0_175] : memref<16x3x128x64xf32, #tpu.memory_space<vmem>>, vector<1x1x128x64xf32>
    %181 = vector.shape_cast %180 : vector<1x1x128x64xf32> to vector<128x64xf32>
    %cst_176 = arith.constant dense<0.000000e+00> : vector<16x64xf32>
    %182 = tpu.matmul %179, %181, %cst_176 {dimension_numbers = #tpu.dot_dimension_numbers<[1], [0], [0], [1], [0, 0, 1, 1], [], []>} : vector<16x128xf32>, vector<128x64xf32>, vector<16x64xf32> -> vector<16x64xf32>
    %183 = arith.addf %178, %182 : vector<16x64xf32>
    %184 = vector.broadcast %165 : vector<1x64xf32> to vector<16x64xf32>
    %185 = arith.addf %183, %184 : vector<16x64xf32>
    %c35 = arith.constant 35 : index
    %c0_177 = arith.constant 0 : index
    %186 = vector.load %arg8[%c35, %c0_177] : memref<78x64xf32, #tpu.memory_space<vmem>>, vector<1x64xf32>
    %187 = vector.broadcast %186 : vector<1x64xf32> to vector<16x64xf32>
    %188 = arith.mulf %185, %187 : vector<16x64xf32>
    %c59 = arith.constant 59 : index
    %c0_178 = arith.constant 0 : index
    %189 = vector.load %arg8[%c59, %c0_178] : memref<78x64xf32, #tpu.memory_space<vmem>>, vector<1x64xf32>
    %190 = vector.broadcast %189 : vector<1x64xf32> to vector<16x64xf32>
    %191 = arith.addf %188, %190 : vector<16x64xf32>
    %cst_179 = arith.constant 0.000000e+00 : f32
    %192 = vector.broadcast %cst_179 : f32 to vector<16x64xf32>
    %193 = arith.maximumf %191, %192 : vector<16x64xf32>
    %c11_180 = arith.constant 11 : index
    %c0_181 = arith.constant 0 : index
    %194 = vector.load %arg8[%c11_180, %c0_181] : memref<78x64xf32, #tpu.memory_space<vmem>>, vector<1x64xf32>
    %c12_182 = arith.constant 12 : index
    %c0_183 = arith.constant 0 : index
    %195 = vector.load %arg14[%c12_182, %c0_183] : memref<40x128xf32, #tpu.memory_space<vmem>>, vector<16x64xf32>
    tpu.vector_store %arg14[%c12_182, %c0_183], %193 {strides = array<i32>} : memref<40x128xf32, #tpu.memory_space<vmem>>, vector<16x64xf32>,
    %c11_184 = arith.constant 11 : index
    %c64_185 = arith.constant 64 : index
    %196 = vector.load %arg14[%c11_184, %c64_185] : memref<40x128xf32, #tpu.memory_space<vmem>>, vector<16x64xf32>
    tpu.vector_store %arg14[%c11_184, %c64_185], %193 {strides = array<i32>} : memref<40x128xf32, #tpu.memory_space<vmem>>, vector<16x64xf32>,
    %cst_186 = arith.constant 0.000000e+00 : f32
    %197 = vector.broadcast %cst_186 : f32 to vector<1x64xf32>
    %c27_187 = arith.constant 27 : index
    %c64_188 = arith.constant 64 : index
    %198 = vector.load %arg14[%c27_187, %c64_188] : memref<40x128xf32, #tpu.memory_space<vmem>>, vector<1x64xf32>
    tpu.vector_store %arg14[%c27_187, %c64_188], %197 {strides = array<i32>} : memref<40x128xf32, #tpu.memory_space<vmem>>, vector<1x64xf32>,
    %c10_189 = arith.constant 10 : index
    %c0_190 = arith.constant 0 : index
    %199 = vector.load %arg14[%c10_189, %c0_190] : memref<40x128xf32, #tpu.memory_space<vmem>>, vector<16x128xf32>
    %c5 = arith.constant 5 : index
    %c0_191 = arith.constant 0 : index
    %c0_192 = arith.constant 0 : index
    %c0_193 = arith.constant 0 : index
    %200 = vector.load %arg6[%c5, %c0_191, %c0_192, %c0_193] : memref<16x3x128x64xf32, #tpu.memory_space<vmem>>, vector<1x1x128x64xf32>
    %201 = vector.shape_cast %200 : vector<1x1x128x64xf32> to vector<128x64xf32>
    %cst_194 = arith.constant dense<0.000000e+00> : vector<16x64xf32>
    %202 = tpu.matmul %199, %201, %cst_194 {dimension_numbers = #tpu.dot_dimension_numbers<[1], [0], [0], [1], [0, 0, 1, 1], [], []>} : vector<16x128xf32>, vector<128x64xf32>, vector<16x64xf32> -> vector<16x64xf32>
    %c12_195 = arith.constant 12 : index
    %c0_196 = arith.constant 0 : index
    %203 = vector.load %arg14[%c12_195, %c0_196] : memref<40x128xf32, #tpu.memory_space<vmem>>, vector<16x128xf32>
    %c5_197 = arith.constant 5 : index
    %c1_198 = arith.constant 1 : index
    %c0_199 = arith.constant 0 : index
    %c0_200 = arith.constant 0 : index
    %204 = vector.load %arg6[%c5_197, %c1_198, %c0_199, %c0_200] : memref<16x3x128x64xf32, #tpu.memory_space<vmem>>, vector<1x1x128x64xf32>
    %205 = vector.shape_cast %204 : vector<1x1x128x64xf32> to vector<128x64xf32>
    %cst_201 = arith.constant dense<0.000000e+00> : vector<16x64xf32>
    %206 = tpu.matmul %203, %205, %cst_201 {dimension_numbers = #tpu.dot_dimension_numbers<[1], [0], [0], [1], [0, 0, 1, 1], [], []>} : vector<16x128xf32>, vector<128x64xf32>, vector<16x64xf32> -> vector<16x64xf32>
    %207 = arith.addf %202, %206 : vector<16x64xf32>
    %c14_202 = arith.constant 14 : index
    %c0_203 = arith.constant 0 : index
    %208 = vector.load %arg14[%c14_202, %c0_203] : memref<40x128xf32, #tpu.memory_space<vmem>>, vector<16x128xf32>
    %c5_204 = arith.constant 5 : index
    %c2_205 = arith.constant 2 : index
    %c0_206 = arith.constant 0 : index
    %c0_207 = arith.constant 0 : index
    %209 = vector.load %arg6[%c5_204, %c2_205, %c0_206, %c0_207] : memref<16x3x128x64xf32, #tpu.memory_space<vmem>>, vector<1x1x128x64xf32>
    %210 = vector.shape_cast %209 : vector<1x1x128x64xf32> to vector<128x64xf32>
    %cst_208 = arith.constant dense<0.000000e+00> : vector<16x64xf32>
    %211 = tpu.matmul %208, %210, %cst_208 {dimension_numbers = #tpu.dot_dimension_numbers<[1], [0], [0], [1], [0, 0, 1, 1], [], []>} : vector<16x128xf32>, vector<128x64xf32>, vector<16x64xf32> -> vector<16x64xf32>
    %212 = arith.addf %207, %211 : vector<16x64xf32>
    %213 = vector.broadcast %194 : vector<1x64xf32> to vector<16x64xf32>
    %214 = arith.addf %212, %213 : vector<16x64xf32>
    %215 = arith.addf %156, %214 : vector<16x64xf32>
    %c36 = arith.constant 36 : index
    %c0_209 = arith.constant 0 : index
    %216 = vector.load %arg8[%c36, %c0_209] : memref<78x64xf32, #tpu.memory_space<vmem>>, vector<1x64xf32>
    %217 = vector.broadcast %216 : vector<1x64xf32> to vector<16x64xf32>
    %218 = arith.mulf %215, %217 : vector<16x64xf32>
    %c60 = arith.constant 60 : index
    %c0_210 = arith.constant 0 : index
    %219 = vector.load %arg8[%c60, %c0_210] : memref<78x64xf32, #tpu.memory_space<vmem>>, vector<1x64xf32>
    %220 = vector.broadcast %219 : vector<1x64xf32> to vector<16x64xf32>
    %221 = arith.addf %218, %220 : vector<16x64xf32>
    %cst_211 = arith.constant 0.000000e+00 : f32
    %222 = vector.broadcast %cst_211 : f32 to vector<16x64xf32>
    %223 = arith.maximumf %221, %222 : vector<16x64xf32>
    %c12_212 = arith.constant 12 : index
    %c0_213 = arith.constant 0 : index
    %224 = vector.load %arg8[%c12_212, %c0_213] : memref<78x64xf32, #tpu.memory_space<vmem>>, vector<1x64xf32>
    %c12_214 = arith.constant 12 : index
    %c0_215 = arith.constant 0 : index
    %225 = vector.load %arg14[%c12_214, %c0_215] : memref<40x128xf32, #tpu.memory_space<vmem>>, vector<16x64xf32>
    tpu.vector_store %arg14[%c12_214, %c0_215], %223 {strides = array<i32>} : memref<40x128xf32, #tpu.memory_space<vmem>>, vector<16x64xf32>,
    %c11_216 = arith.constant 11 : index
    %c64_217 = arith.constant 64 : index
    %226 = vector.load %arg14[%c11_216, %c64_217] : memref<40x128xf32, #tpu.memory_space<vmem>>, vector<16x64xf32>
    tpu.vector_store %arg14[%c11_216, %c64_217], %223 {strides = array<i32>} : memref<40x128xf32, #tpu.memory_space<vmem>>, vector<16x64xf32>,
    %cst_218 = arith.constant 0.000000e+00 : f32
    %227 = vector.broadcast %cst_218 : f32 to vector<1x64xf32>
    %c27_219 = arith.constant 27 : index
    %c64_220 = arith.constant 64 : index
    %228 = vector.load %arg14[%c27_219, %c64_220] : memref<40x128xf32, #tpu.memory_space<vmem>>, vector<1x64xf32>
    tpu.vector_store %arg14[%c27_219, %c64_220], %227 {strides = array<i32>} : memref<40x128xf32, #tpu.memory_space<vmem>>, vector<1x64xf32>,
    %c10_221 = arith.constant 10 : index
    %c0_222 = arith.constant 0 : index
    %229 = vector.load %arg14[%c10_221, %c0_222] : memref<40x128xf32, #tpu.memory_space<vmem>>, vector<16x128xf32>
    %c6_223 = arith.constant 6 : index
    %c0_224 = arith.constant 0 : index
    %c0_225 = arith.constant 0 : index
    %c0_226 = arith.constant 0 : index
    %230 = vector.load %arg6[%c6_223, %c0_224, %c0_225, %c0_226] : memref<16x3x128x64xf32, #tpu.memory_space<vmem>>, vector<1x1x128x64xf32>
    %231 = vector.shape_cast %230 : vector<1x1x128x64xf32> to vector<128x64xf32>
    %cst_227 = arith.constant dense<0.000000e+00> : vector<16x64xf32>
    %232 = tpu.matmul %229, %231, %cst_227 {dimension_numbers = #tpu.dot_dimension_numbers<[1], [0], [0], [1], [0, 0, 1, 1], [], []>} : vector<16x128xf32>, vector<128x64xf32>, vector<16x64xf32> -> vector<16x64xf32>
    %c12_228 = arith.constant 12 : index
    %c0_229 = arith.constant 0 : index
    %233 = vector.load %arg14[%c12_228, %c0_229] : memref<40x128xf32, #tpu.memory_space<vmem>>, vector<16x128xf32>
    %c6_230 = arith.constant 6 : index
    %c1_231 = arith.constant 1 : index
    %c0_232 = arith.constant 0 : index
    %c0_233 = arith.constant 0 : index
    %234 = vector.load %arg6[%c6_230, %c1_231, %c0_232, %c0_233] : memref<16x3x128x64xf32, #tpu.memory_space<vmem>>, vector<1x1x128x64xf32>
    %235 = vector.shape_cast %234 : vector<1x1x128x64xf32> to vector<128x64xf32>
    %cst_234 = arith.constant dense<0.000000e+00> : vector<16x64xf32>
    %236 = tpu.matmul %233, %235, %cst_234 {dimension_numbers = #tpu.dot_dimension_numbers<[1], [0], [0], [1], [0, 0, 1, 1], [], []>} : vector<16x128xf32>, vector<128x64xf32>, vector<16x64xf32> -> vector<16x64xf32>
    %237 = arith.addf %232, %236 : vector<16x64xf32>
    %c14_235 = arith.constant 14 : index
    %c0_236 = arith.constant 0 : index
    %238 = vector.load %arg14[%c14_235, %c0_236] : memref<40x128xf32, #tpu.memory_space<vmem>>, vector<16x128xf32>
    %c6_237 = arith.constant 6 : index
    %c2_238 = arith.constant 2 : index
    %c0_239 = arith.constant 0 : index
    %c0_240 = arith.constant 0 : index
    %239 = vector.load %arg6[%c6_237, %c2_238, %c0_239, %c0_240] : memref<16x3x128x64xf32, #tpu.memory_space<vmem>>, vector<1x1x128x64xf32>
    %240 = vector.shape_cast %239 : vector<1x1x128x64xf32> to vector<128x64xf32>
    %cst_241 = arith.constant dense<0.000000e+00> : vector<16x64xf32>
    %241 = tpu.matmul %238, %240, %cst_241 {dimension_numbers = #tpu.dot_dimension_numbers<[1], [0], [0], [1], [0, 0, 1, 1], [], []>} : vector<16x128xf32>, vector<128x64xf32>, vector<16x64xf32> -> vector<16x64xf32>
    %242 = arith.addf %237, %241 : vector<16x64xf32>
    %243 = vector.broadcast %224 : vector<1x64xf32> to vector<16x64xf32>
    %244 = arith.addf %242, %243 : vector<16x64xf32>
    %c37 = arith.constant 37 : index
    %c0_242 = arith.constant 0 : index
    %245 = vector.load %arg8[%c37, %c0_242] : memref<78x64xf32, #tpu.memory_space<vmem>>, vector<1x64xf32>
    %246 = vector.broadcast %245 : vector<1x64xf32> to vector<16x64xf32>
    %247 = arith.mulf %244, %246 : vector<16x64xf32>
    %c61 = arith.constant 61 : index
    %c0_243 = arith.constant 0 : index
    %248 = vector.load %arg8[%c61, %c0_243] : memref<78x64xf32, #tpu.memory_space<vmem>>, vector<1x64xf32>
    %249 = vector.broadcast %248 : vector<1x64xf32> to vector<16x64xf32>
    %250 = arith.addf %247, %249 : vector<16x64xf32>
    %cst_244 = arith.constant 0.000000e+00 : f32
    %251 = vector.broadcast %cst_244 : f32 to vector<16x64xf32>
    %252 = arith.maximumf %250, %251 : vector<16x64xf32>
    %c13 = arith.constant 13 : index
    %c0_245 = arith.constant 0 : index
    %253 = vector.load %arg8[%c13, %c0_245] : memref<78x64xf32, #tpu.memory_space<vmem>>, vector<1x64xf32>
    %c12_246 = arith.constant 12 : index
    %c0_247 = arith.constant 0 : index
    %254 = vector.load %arg14[%c12_246, %c0_247] : memref<40x128xf32, #tpu.memory_space<vmem>>, vector<16x64xf32>
    tpu.vector_store %arg14[%c12_246, %c0_247], %252 {strides = array<i32>} : memref<40x128xf32, #tpu.memory_space<vmem>>, vector<16x64xf32>,
    %c11_248 = arith.constant 11 : index
    %c64_249 = arith.constant 64 : index
    %255 = vector.load %arg14[%c11_248, %c64_249] : memref<40x128xf32, #tpu.memory_space<vmem>>, vector<16x64xf32>
    tpu.vector_store %arg14[%c11_248, %c64_249], %252 {strides = array<i32>} : memref<40x128xf32, #tpu.memory_space<vmem>>, vector<16x64xf32>,
    %cst_250 = arith.constant 0.000000e+00 : f32
    %256 = vector.broadcast %cst_250 : f32 to vector<1x64xf32>
    %c27_251 = arith.constant 27 : index
    %c64_252 = arith.constant 64 : index
    %257 = vector.load %arg14[%c27_251, %c64_252] : memref<40x128xf32, #tpu.memory_space<vmem>>, vector<1x64xf32>
    tpu.vector_store %arg14[%c27_251, %c64_252], %256 {strides = array<i32>} : memref<40x128xf32, #tpu.memory_space<vmem>>, vector<1x64xf32>,
    %c10_253 = arith.constant 10 : index
    %c0_254 = arith.constant 0 : index
    %258 = vector.load %arg14[%c10_253, %c0_254] : memref<40x128xf32, #tpu.memory_space<vmem>>, vector<16x128xf32>
    %c7_255 = arith.constant 7 : index
    %c0_256 = arith.constant 0 : index
    %c0_257 = arith.constant 0 : index
    %c0_258 = arith.constant 0 : index
    %259 = vector.load %arg6[%c7_255, %c0_256, %c0_257, %c0_258] : memref<16x3x128x64xf32, #tpu.memory_space<vmem>>, vector<1x1x128x64xf32>
    %260 = vector.shape_cast %259 : vector<1x1x128x64xf32> to vector<128x64xf32>
    %cst_259 = arith.constant dense<0.000000e+00> : vector<16x64xf32>
    %261 = tpu.matmul %258, %260, %cst_259 {dimension_numbers = #tpu.dot_dimension_numbers<[1], [0], [0], [1], [0, 0, 1, 1], [], []>} : vector<16x128xf32>, vector<128x64xf32>, vector<16x64xf32> -> vector<16x64xf32>
    %c12_260 = arith.constant 12 : index
    %c0_261 = arith.constant 0 : index
    %262 = vector.load %arg14[%c12_260, %c0_261] : memref<40x128xf32, #tpu.memory_space<vmem>>, vector<16x128xf32>
    %c7_262 = arith.constant 7 : index
    %c1_263 = arith.constant 1 : index
    %c0_264 = arith.constant 0 : index
    %c0_265 = arith.constant 0 : index
    %263 = vector.load %arg6[%c7_262, %c1_263, %c0_264, %c0_265] : memref<16x3x128x64xf32, #tpu.memory_space<vmem>>, vector<1x1x128x64xf32>
    %264 = vector.shape_cast %263 : vector<1x1x128x64xf32> to vector<128x64xf32>
    %cst_266 = arith.constant dense<0.000000e+00> : vector<16x64xf32>
    %265 = tpu.matmul %262, %264, %cst_266 {dimension_numbers = #tpu.dot_dimension_numbers<[1], [0], [0], [1], [0, 0, 1, 1], [], []>} : vector<16x128xf32>, vector<128x64xf32>, vector<16x64xf32> -> vector<16x64xf32>
    %266 = arith.addf %261, %265 : vector<16x64xf32>
    %c14_267 = arith.constant 14 : index
    %c0_268 = arith.constant 0 : index
    %267 = vector.load %arg14[%c14_267, %c0_268] : memref<40x128xf32, #tpu.memory_space<vmem>>, vector<16x128xf32>
    %c7_269 = arith.constant 7 : index
    %c2_270 = arith.constant 2 : index
    %c0_271 = arith.constant 0 : index
    %c0_272 = arith.constant 0 : index
    %268 = vector.load %arg6[%c7_269, %c2_270, %c0_271, %c0_272] : memref<16x3x128x64xf32, #tpu.memory_space<vmem>>, vector<1x1x128x64xf32>
    %269 = vector.shape_cast %268 : vector<1x1x128x64xf32> to vector<128x64xf32>
    %cst_273 = arith.constant dense<0.000000e+00> : vector<16x64xf32>
    %270 = tpu.matmul %267, %269, %cst_273 {dimension_numbers = #tpu.dot_dimension_numbers<[1], [0], [0], [1], [0, 0, 1, 1], [], []>} : vector<16x128xf32>, vector<128x64xf32>, vector<16x64xf32> -> vector<16x64xf32>
    %271 = arith.addf %266, %270 : vector<16x64xf32>
    %272 = vector.broadcast %253 : vector<1x64xf32> to vector<16x64xf32>
    %273 = arith.addf %271, %272 : vector<16x64xf32>
    %274 = arith.addf %215, %273 : vector<16x64xf32>
    %c1_274 = arith.constant 1 : index
    %c0_275 = arith.constant 0 : index
    %c0_276 = arith.constant 0 : index
    %275 = vector.load %arg5[%c1_274, %c0_275, %c0_276] : memref<5x64x64xf32, #tpu.memory_space<vmem>>, vector<1x64x64xf32>
    %276 = vector.shape_cast %275 : vector<1x64x64xf32> to vector<64x64xf32>
    %c2_277 = arith.constant 2 : index
    %c0_278 = arith.constant 0 : index
    %277 = vector.load %arg8[%c2_277, %c0_278] : memref<78x64xf32, #tpu.memory_space<vmem>>, vector<1x64xf32>
    %cst_279 = arith.constant dense<0.000000e+00> : vector<16x64xf32>
    %278 = tpu.matmul %274, %276, %cst_279 {dimension_numbers = #tpu.dot_dimension_numbers<[1], [0], [0], [1], [0, 0, 1, 1], [], []>} : vector<16x64xf32>, vector<64x64xf32>, vector<16x64xf32> -> vector<16x64xf32>
    %279 = vector.broadcast %277 : vector<1x64xf32> to vector<16x64xf32>
    %280 = arith.addf %278, %279 : vector<16x64xf32>
    %281 = arith.addf %38, %280 : vector<16x64xf32>
    %c38 = arith.constant 38 : index
    %c0_280 = arith.constant 0 : index
    %282 = vector.load %arg8[%c38, %c0_280] : memref<78x64xf32, #tpu.memory_space<vmem>>, vector<1x64xf32>
    %283 = vector.broadcast %282 : vector<1x64xf32> to vector<16x64xf32>
    %284 = arith.mulf %274, %283 : vector<16x64xf32>
    %c62 = arith.constant 62 : index
    %c0_281 = arith.constant 0 : index
    %285 = vector.load %arg8[%c62, %c0_281] : memref<78x64xf32, #tpu.memory_space<vmem>>, vector<1x64xf32>
    %286 = vector.broadcast %285 : vector<1x64xf32> to vector<16x64xf32>
    %287 = arith.addf %284, %286 : vector<16x64xf32>
    %cst_282 = arith.constant 0.000000e+00 : f32
    %288 = vector.broadcast %cst_282 : f32 to vector<16x64xf32>
    %289 = arith.maximumf %287, %288 : vector<16x64xf32>
    %c14_283 = arith.constant 14 : index
    %c0_284 = arith.constant 0 : index
    %290 = vector.load %arg8[%c14_283, %c0_284] : memref<78x64xf32, #tpu.memory_space<vmem>>, vector<1x64xf32>
    %c12_285 = arith.constant 12 : index
    %c0_286 = arith.constant 0 : index
    %291 = vector.load %arg14[%c12_285, %c0_286] : memref<40x128xf32, #tpu.memory_space<vmem>>, vector<16x64xf32>
    tpu.vector_store %arg14[%c12_285, %c0_286], %289 {strides = array<i32>} : memref<40x128xf32, #tpu.memory_space<vmem>>, vector<16x64xf32>,
    %c10_287 = arith.constant 10 : index
    %c64_288 = arith.constant 64 : index
    %292 = vector.load %arg14[%c10_287, %c64_288] : memref<40x128xf32, #tpu.memory_space<vmem>>, vector<16x64xf32>
    tpu.vector_store %arg14[%c10_287, %c64_288], %289 {strides = array<i32>} : memref<40x128xf32, #tpu.memory_space<vmem>>, vector<16x64xf32>,
    %cst_289 = arith.constant 0.000000e+00 : f32
    %293 = vector.broadcast %cst_289 : f32 to vector<2x64xf32>
    %c26 = arith.constant 26 : index
    %c64_290 = arith.constant 64 : index
    %294 = vector.load %arg14[%c26, %c64_290] : memref<40x128xf32, #tpu.memory_space<vmem>>, vector<2x64xf32>
    tpu.vector_store %arg14[%c26, %c64_290], %293 {strides = array<i32>} : memref<40x128xf32, #tpu.memory_space<vmem>>, vector<2x64xf32>,
    %c8_291 = arith.constant 8 : index
    %c0_292 = arith.constant 0 : index
    %295 = vector.load %arg14[%c8_291, %c0_292] : memref<40x128xf32, #tpu.memory_space<vmem>>, vector<16x128xf32>
    %c8_293 = arith.constant 8 : index
    %c0_294 = arith.constant 0 : index
    %c0_295 = arith.constant 0 : index
    %c0_296 = arith.constant 0 : index
    %296 = vector.load %arg6[%c8_293, %c0_294, %c0_295, %c0_296] : memref<16x3x128x64xf32, #tpu.memory_space<vmem>>, vector<1x1x128x64xf32>
    %297 = vector.shape_cast %296 : vector<1x1x128x64xf32> to vector<128x64xf32>
    %cst_297 = arith.constant dense<0.000000e+00> : vector<16x64xf32>
    %298 = tpu.matmul %295, %297, %cst_297 {dimension_numbers = #tpu.dot_dimension_numbers<[1], [0], [0], [1], [0, 0, 1, 1], [], []>} : vector<16x128xf32>, vector<128x64xf32>, vector<16x64xf32> -> vector<16x64xf32>
    %c12_298 = arith.constant 12 : index
    %c0_299 = arith.constant 0 : index
    %299 = vector.load %arg14[%c12_298, %c0_299] : memref<40x128xf32, #tpu.memory_space<vmem>>, vector<16x128xf32>
    %c8_300 = arith.constant 8 : index
    %c1_301 = arith.constant 1 : index
    %c0_302 = arith.constant 0 : index
    %c0_303 = arith.constant 0 : index
    %300 = vector.load %arg6[%c8_300, %c1_301, %c0_302, %c0_303] : memref<16x3x128x64xf32, #tpu.memory_space<vmem>>, vector<1x1x128x64xf32>
    %301 = vector.shape_cast %300 : vector<1x1x128x64xf32> to vector<128x64xf32>
    %cst_304 = arith.constant dense<0.000000e+00> : vector<16x64xf32>
    %302 = tpu.matmul %299, %301, %cst_304 {dimension_numbers = #tpu.dot_dimension_numbers<[1], [0], [0], [1], [0, 0, 1, 1], [], []>} : vector<16x128xf32>, vector<128x64xf32>, vector<16x64xf32> -> vector<16x64xf32>
    %303 = arith.addf %298, %302 : vector<16x64xf32>
    %c16 = arith.constant 16 : index
    %c0_305 = arith.constant 0 : index
    %304 = vector.load %arg14[%c16, %c0_305] : memref<40x128xf32, #tpu.memory_space<vmem>>, vector<16x128xf32>
    %c8_306 = arith.constant 8 : index
    %c2_307 = arith.constant 2 : index
    %c0_308 = arith.constant 0 : index
    %c0_309 = arith.constant 0 : index
    %305 = vector.load %arg6[%c8_306, %c2_307, %c0_308, %c0_309] : memref<16x3x128x64xf32, #tpu.memory_space<vmem>>, vector<1x1x128x64xf32>
    %306 = vector.shape_cast %305 : vector<1x1x128x64xf32> to vector<128x64xf32>
    %cst_310 = arith.constant dense<0.000000e+00> : vector<16x64xf32>
    %307 = tpu.matmul %304, %306, %cst_310 {dimension_numbers = #tpu.dot_dimension_numbers<[1], [0], [0], [1], [0, 0, 1, 1], [], []>} : vector<16x128xf32>, vector<128x64xf32>, vector<16x64xf32> -> vector<16x64xf32>
    %308 = arith.addf %303, %307 : vector<16x64xf32>
    %309 = vector.broadcast %290 : vector<1x64xf32> to vector<16x64xf32>
    %310 = arith.addf %308, %309 : vector<16x64xf32>
    %c39 = arith.constant 39 : index
    %c0_311 = arith.constant 0 : index
    %311 = vector.load %arg8[%c39, %c0_311] : memref<78x64xf32, #tpu.memory_space<vmem>>, vector<1x64xf32>
    %312 = vector.broadcast %311 : vector<1x64xf32> to vector<16x64xf32>
    %313 = arith.mulf %310, %312 : vector<16x64xf32>
    %c63 = arith.constant 63 : index
    %c0_312 = arith.constant 0 : index
    %314 = vector.load %arg8[%c63, %c0_312] : memref<78x64xf32, #tpu.memory_space<vmem>>, vector<1x64xf32>
    %315 = vector.broadcast %314 : vector<1x64xf32> to vector<16x64xf32>
    %316 = arith.addf %313, %315 : vector<16x64xf32>
    %cst_313 = arith.constant 0.000000e+00 : f32
    %317 = vector.broadcast %cst_313 : f32 to vector<16x64xf32>
    %318 = arith.maximumf %316, %317 : vector<16x64xf32>
    %c15 = arith.constant 15 : index
    %c0_314 = arith.constant 0 : index
    %319 = vector.load %arg8[%c15, %c0_314] : memref<78x64xf32, #tpu.memory_space<vmem>>, vector<1x64xf32>
    %c12_315 = arith.constant 12 : index
    %c0_316 = arith.constant 0 : index
    %320 = vector.load %arg14[%c12_315, %c0_316] : memref<40x128xf32, #tpu.memory_space<vmem>>, vector<16x64xf32>
    tpu.vector_store %arg14[%c12_315, %c0_316], %318 {strides = array<i32>} : memref<40x128xf32, #tpu.memory_space<vmem>>, vector<16x64xf32>,
    %c10_317 = arith.constant 10 : index
    %c64_318 = arith.constant 64 : index
    %321 = vector.load %arg14[%c10_317, %c64_318] : memref<40x128xf32, #tpu.memory_space<vmem>>, vector<16x64xf32>
    tpu.vector_store %arg14[%c10_317, %c64_318], %318 {strides = array<i32>} : memref<40x128xf32, #tpu.memory_space<vmem>>, vector<16x64xf32>,
    %cst_319 = arith.constant 0.000000e+00 : f32
    %322 = vector.broadcast %cst_319 : f32 to vector<2x64xf32>
    %c26_320 = arith.constant 26 : index
    %c64_321 = arith.constant 64 : index
    %323 = vector.load %arg14[%c26_320, %c64_321] : memref<40x128xf32, #tpu.memory_space<vmem>>, vector<2x64xf32>
    tpu.vector_store %arg14[%c26_320, %c64_321], %322 {strides = array<i32>} : memref<40x128xf32, #tpu.memory_space<vmem>>, vector<2x64xf32>,
    %c8_322 = arith.constant 8 : index
    %c0_323 = arith.constant 0 : index
    %324 = vector.load %arg14[%c8_322, %c0_323] : memref<40x128xf32, #tpu.memory_space<vmem>>, vector<16x128xf32>
    %c9_324 = arith.constant 9 : index
    %c0_325 = arith.constant 0 : index
    %c0_326 = arith.constant 0 : index
    %c0_327 = arith.constant 0 : index
    %325 = vector.load %arg6[%c9_324, %c0_325, %c0_326, %c0_327] : memref<16x3x128x64xf32, #tpu.memory_space<vmem>>, vector<1x1x128x64xf32>
    %326 = vector.shape_cast %325 : vector<1x1x128x64xf32> to vector<128x64xf32>
    %cst_328 = arith.constant dense<0.000000e+00> : vector<16x64xf32>
    %327 = tpu.matmul %324, %326, %cst_328 {dimension_numbers = #tpu.dot_dimension_numbers<[1], [0], [0], [1], [0, 0, 1, 1], [], []>} : vector<16x128xf32>, vector<128x64xf32>, vector<16x64xf32> -> vector<16x64xf32>
    %c12_329 = arith.constant 12 : index
    %c0_330 = arith.constant 0 : index
    %328 = vector.load %arg14[%c12_329, %c0_330] : memref<40x128xf32, #tpu.memory_space<vmem>>, vector<16x128xf32>
    %c9_331 = arith.constant 9 : index
    %c1_332 = arith.constant 1 : index
    %c0_333 = arith.constant 0 : index
    %c0_334 = arith.constant 0 : index
    %329 = vector.load %arg6[%c9_331, %c1_332, %c0_333, %c0_334] : memref<16x3x128x64xf32, #tpu.memory_space<vmem>>, vector<1x1x128x64xf32>
    %330 = vector.shape_cast %329 : vector<1x1x128x64xf32> to vector<128x64xf32>
    %cst_335 = arith.constant dense<0.000000e+00> : vector<16x64xf32>
    %331 = tpu.matmul %328, %330, %cst_335 {dimension_numbers = #tpu.dot_dimension_numbers<[1], [0], [0], [1], [0, 0, 1, 1], [], []>} : vector<16x128xf32>, vector<128x64xf32>, vector<16x64xf32> -> vector<16x64xf32>
    %332 = arith.addf %327, %331 : vector<16x64xf32>
    %c16_336 = arith.constant 16 : index
    %c0_337 = arith.constant 0 : index
    %333 = vector.load %arg14[%c16_336, %c0_337] : memref<40x128xf32, #tpu.memory_space<vmem>>, vector<16x128xf32>
    %c9_338 = arith.constant 9 : index
    %c2_339 = arith.constant 2 : index
    %c0_340 = arith.constant 0 : index
    %c0_341 = arith.constant 0 : index
    %334 = vector.load %arg6[%c9_338, %c2_339, %c0_340, %c0_341] : memref<16x3x128x64xf32, #tpu.memory_space<vmem>>, vector<1x1x128x64xf32>
    %335 = vector.shape_cast %334 : vector<1x1x128x64xf32> to vector<128x64xf32>
    %cst_342 = arith.constant dense<0.000000e+00> : vector<16x64xf32>
    %336 = tpu.matmul %333, %335, %cst_342 {dimension_numbers = #tpu.dot_dimension_numbers<[1], [0], [0], [1], [0, 0, 1, 1], [], []>} : vector<16x128xf32>, vector<128x64xf32>, vector<16x64xf32> -> vector<16x64xf32>
    %337 = arith.addf %332, %336 : vector<16x64xf32>
    %338 = vector.broadcast %319 : vector<1x64xf32> to vector<16x64xf32>
    %339 = arith.addf %337, %338 : vector<16x64xf32>
    %340 = arith.addf %274, %339 : vector<16x64xf32>
    %c40 = arith.constant 40 : index
    %c0_343 = arith.constant 0 : index
    %341 = vector.load %arg8[%c40, %c0_343] : memref<78x64xf32, #tpu.memory_space<vmem>>, vector<1x64xf32>
    %342 = vector.broadcast %341 : vector<1x64xf32> to vector<16x64xf32>
    %343 = arith.mulf %340, %342 : vector<16x64xf32>
    %c64_344 = arith.constant 64 : index
    %c0_345 = arith.constant 0 : index
    %344 = vector.load %arg8[%c64_344, %c0_345] : memref<78x64xf32, #tpu.memory_space<vmem>>, vector<1x64xf32>
    %345 = vector.broadcast %344 : vector<1x64xf32> to vector<16x64xf32>
    %346 = arith.addf %343, %345 : vector<16x64xf32>
    %cst_346 = arith.constant 0.000000e+00 : f32
    %347 = vector.broadcast %cst_346 : f32 to vector<16x64xf32>
    %348 = arith.maximumf %346, %347 : vector<16x64xf32>
    %c16_347 = arith.constant 16 : index
    %c0_348 = arith.constant 0 : index
    %349 = vector.load %arg8[%c16_347, %c0_348] : memref<78x64xf32, #tpu.memory_space<vmem>>, vector<1x64xf32>
    %c12_349 = arith.constant 12 : index
    %c0_350 = arith.constant 0 : index
    %350 = vector.load %arg14[%c12_349, %c0_350] : memref<40x128xf32, #tpu.memory_space<vmem>>, vector<16x64xf32>
    tpu.vector_store %arg14[%c12_349, %c0_350], %348 {strides = array<i32>} : memref<40x128xf32, #tpu.memory_space<vmem>>, vector<16x64xf32>,
    %c10_351 = arith.constant 10 : index
    %c64_352 = arith.constant 64 : index
    %351 = vector.load %arg14[%c10_351, %c64_352] : memref<40x128xf32, #tpu.memory_space<vmem>>, vector<16x64xf32>
    tpu.vector_store %arg14[%c10_351, %c64_352], %348 {strides = array<i32>} : memref<40x128xf32, #tpu.memory_space<vmem>>, vector<16x64xf32>,
    %cst_353 = arith.constant 0.000000e+00 : f32
    %352 = vector.broadcast %cst_353 : f32 to vector<2x64xf32>
    %c26_354 = arith.constant 26 : index
    %c64_355 = arith.constant 64 : index
    %353 = vector.load %arg14[%c26_354, %c64_355] : memref<40x128xf32, #tpu.memory_space<vmem>>, vector<2x64xf32>
    tpu.vector_store %arg14[%c26_354, %c64_355], %352 {strides = array<i32>} : memref<40x128xf32, #tpu.memory_space<vmem>>, vector<2x64xf32>,
    %c8_356 = arith.constant 8 : index
    %c0_357 = arith.constant 0 : index
    %354 = vector.load %arg14[%c8_356, %c0_357] : memref<40x128xf32, #tpu.memory_space<vmem>>, vector<16x128xf32>
    %c10_358 = arith.constant 10 : index
    %c0_359 = arith.constant 0 : index
    %c0_360 = arith.constant 0 : index
    %c0_361 = arith.constant 0 : index
    %355 = vector.load %arg6[%c10_358, %c0_359, %c0_360, %c0_361] : memref<16x3x128x64xf32, #tpu.memory_space<vmem>>, vector<1x1x128x64xf32>
    %356 = vector.shape_cast %355 : vector<1x1x128x64xf32> to vector<128x64xf32>
    %cst_362 = arith.constant dense<0.000000e+00> : vector<16x64xf32>
    %357 = tpu.matmul %354, %356, %cst_362 {dimension_numbers = #tpu.dot_dimension_numbers<[1], [0], [0], [1], [0, 0, 1, 1], [], []>} : vector<16x128xf32>, vector<128x64xf32>, vector<16x64xf32> -> vector<16x64xf32>
    %c12_363 = arith.constant 12 : index
    %c0_364 = arith.constant 0 : index
    %358 = vector.load %arg14[%c12_363, %c0_364] : memref<40x128xf32, #tpu.memory_space<vmem>>, vector<16x128xf32>
    %c10_365 = arith.constant 10 : index
    %c1_366 = arith.constant 1 : index
    %c0_367 = arith.constant 0 : index
    %c0_368 = arith.constant 0 : index
    %359 = vector.load %arg6[%c10_365, %c1_366, %c0_367, %c0_368] : memref<16x3x128x64xf32, #tpu.memory_space<vmem>>, vector<1x1x128x64xf32>
    %360 = vector.shape_cast %359 : vector<1x1x128x64xf32> to vector<128x64xf32>
    %cst_369 = arith.constant dense<0.000000e+00> : vector<16x64xf32>
    %361 = tpu.matmul %358, %360, %cst_369 {dimension_numbers = #tpu.dot_dimension_numbers<[1], [0], [0], [1], [0, 0, 1, 1], [], []>} : vector<16x128xf32>, vector<128x64xf32>, vector<16x64xf32> -> vector<16x64xf32>
    %362 = arith.addf %357, %361 : vector<16x64xf32>
    %c16_370 = arith.constant 16 : index
    %c0_371 = arith.constant 0 : index
    %363 = vector.load %arg14[%c16_370, %c0_371] : memref<40x128xf32, #tpu.memory_space<vmem>>, vector<16x128xf32>
    %c10_372 = arith.constant 10 : index
    %c2_373 = arith.constant 2 : index
    %c0_374 = arith.constant 0 : index
    %c0_375 = arith.constant 0 : index
    %364 = vector.load %arg6[%c10_372, %c2_373, %c0_374, %c0_375] : memref<16x3x128x64xf32, #tpu.memory_space<vmem>>, vector<1x1x128x64xf32>
    %365 = vector.shape_cast %364 : vector<1x1x128x64xf32> to vector<128x64xf32>
    %cst_376 = arith.constant dense<0.000000e+00> : vector<16x64xf32>
    %366 = tpu.matmul %363, %365, %cst_376 {dimension_numbers = #tpu.dot_dimension_numbers<[1], [0], [0], [1], [0, 0, 1, 1], [], []>} : vector<16x128xf32>, vector<128x64xf32>, vector<16x64xf32> -> vector<16x64xf32>
    %367 = arith.addf %362, %366 : vector<16x64xf32>
    %368 = vector.broadcast %349 : vector<1x64xf32> to vector<16x64xf32>
    %369 = arith.addf %367, %368 : vector<16x64xf32>
    %c41 = arith.constant 41 : index
    %c0_377 = arith.constant 0 : index
    %370 = vector.load %arg8[%c41, %c0_377] : memref<78x64xf32, #tpu.memory_space<vmem>>, vector<1x64xf32>
    %371 = vector.broadcast %370 : vector<1x64xf32> to vector<16x64xf32>
    %372 = arith.mulf %369, %371 : vector<16x64xf32>
    %c65 = arith.constant 65 : index
    %c0_378 = arith.constant 0 : index
    %373 = vector.load %arg8[%c65, %c0_378] : memref<78x64xf32, #tpu.memory_space<vmem>>, vector<1x64xf32>
    %374 = vector.broadcast %373 : vector<1x64xf32> to vector<16x64xf32>
    %375 = arith.addf %372, %374 : vector<16x64xf32>
    %cst_379 = arith.constant 0.000000e+00 : f32
    %376 = vector.broadcast %cst_379 : f32 to vector<16x64xf32>
    %377 = arith.maximumf %375, %376 : vector<16x64xf32>
    %c17 = arith.constant 17 : index
    %c0_380 = arith.constant 0 : index
    %378 = vector.load %arg8[%c17, %c0_380] : memref<78x64xf32, #tpu.memory_space<vmem>>, vector<1x64xf32>
    %c12_381 = arith.constant 12 : index
    %c0_382 = arith.constant 0 : index
    %379 = vector.load %arg14[%c12_381, %c0_382] : memref<40x128xf32, #tpu.memory_space<vmem>>, vector<16x64xf32>
    tpu.vector_store %arg14[%c12_381, %c0_382], %377 {strides = array<i32>} : memref<40x128xf32, #tpu.memory_space<vmem>>, vector<16x64xf32>,
    %c10_383 = arith.constant 10 : index
    %c64_384 = arith.constant 64 : index
    %380 = vector.load %arg14[%c10_383, %c64_384] : memref<40x128xf32, #tpu.memory_space<vmem>>, vector<16x64xf32>
    tpu.vector_store %arg14[%c10_383, %c64_384], %377 {strides = array<i32>} : memref<40x128xf32, #tpu.memory_space<vmem>>, vector<16x64xf32>,
    %cst_385 = arith.constant 0.000000e+00 : f32
    %381 = vector.broadcast %cst_385 : f32 to vector<2x64xf32>
    %c26_386 = arith.constant 26 : index
    %c64_387 = arith.constant 64 : index
    %382 = vector.load %arg14[%c26_386, %c64_387] : memref<40x128xf32, #tpu.memory_space<vmem>>, vector<2x64xf32>
    tpu.vector_store %arg14[%c26_386, %c64_387], %381 {strides = array<i32>} : memref<40x128xf32, #tpu.memory_space<vmem>>, vector<2x64xf32>,
    %c8_388 = arith.constant 8 : index
    %c0_389 = arith.constant 0 : index
    %383 = vector.load %arg14[%c8_388, %c0_389] : memref<40x128xf32, #tpu.memory_space<vmem>>, vector<16x128xf32>
    %c11_390 = arith.constant 11 : index
    %c0_391 = arith.constant 0 : index
    %c0_392 = arith.constant 0 : index
    %c0_393 = arith.constant 0 : index
    %384 = vector.load %arg6[%c11_390, %c0_391, %c0_392, %c0_393] : memref<16x3x128x64xf32, #tpu.memory_space<vmem>>, vector<1x1x128x64xf32>
    %385 = vector.shape_cast %384 : vector<1x1x128x64xf32> to vector<128x64xf32>
    %cst_394 = arith.constant dense<0.000000e+00> : vector<16x64xf32>
    %386 = tpu.matmul %383, %385, %cst_394 {dimension_numbers = #tpu.dot_dimension_numbers<[1], [0], [0], [1], [0, 0, 1, 1], [], []>} : vector<16x128xf32>, vector<128x64xf32>, vector<16x64xf32> -> vector<16x64xf32>
    %c12_395 = arith.constant 12 : index
    %c0_396 = arith.constant 0 : index
    %387 = vector.load %arg14[%c12_395, %c0_396] : memref<40x128xf32, #tpu.memory_space<vmem>>, vector<16x128xf32>
    %c11_397 = arith.constant 11 : index
    %c1_398 = arith.constant 1 : index
    %c0_399 = arith.constant 0 : index
    %c0_400 = arith.constant 0 : index
    %388 = vector.load %arg6[%c11_397, %c1_398, %c0_399, %c0_400] : memref<16x3x128x64xf32, #tpu.memory_space<vmem>>, vector<1x1x128x64xf32>
    %389 = vector.shape_cast %388 : vector<1x1x128x64xf32> to vector<128x64xf32>
    %cst_401 = arith.constant dense<0.000000e+00> : vector<16x64xf32>
    %390 = tpu.matmul %387, %389, %cst_401 {dimension_numbers = #tpu.dot_dimension_numbers<[1], [0], [0], [1], [0, 0, 1, 1], [], []>} : vector<16x128xf32>, vector<128x64xf32>, vector<16x64xf32> -> vector<16x64xf32>
    %391 = arith.addf %386, %390 : vector<16x64xf32>
    %c16_402 = arith.constant 16 : index
    %c0_403 = arith.constant 0 : index
    %392 = vector.load %arg14[%c16_402, %c0_403] : memref<40x128xf32, #tpu.memory_space<vmem>>, vector<16x128xf32>
    %c11_404 = arith.constant 11 : index
    %c2_405 = arith.constant 2 : index
    %c0_406 = arith.constant 0 : index
    %c0_407 = arith.constant 0 : index
    %393 = vector.load %arg6[%c11_404, %c2_405, %c0_406, %c0_407] : memref<16x3x128x64xf32, #tpu.memory_space<vmem>>, vector<1x1x128x64xf32>
    %394 = vector.shape_cast %393 : vector<1x1x128x64xf32> to vector<128x64xf32>
    %cst_408 = arith.constant dense<0.000000e+00> : vector<16x64xf32>
    %395 = tpu.matmul %392, %394, %cst_408 {dimension_numbers = #tpu.dot_dimension_numbers<[1], [0], [0], [1], [0, 0, 1, 1], [], []>} : vector<16x128xf32>, vector<128x64xf32>, vector<16x64xf32> -> vector<16x64xf32>
    %396 = arith.addf %391, %395 : vector<16x64xf32>
    %397 = vector.broadcast %378 : vector<1x64xf32> to vector<16x64xf32>
    %398 = arith.addf %396, %397 : vector<16x64xf32>
    %399 = arith.addf %340, %398 : vector<16x64xf32>
    %c42 = arith.constant 42 : index
    %c0_409 = arith.constant 0 : index
    %400 = vector.load %arg8[%c42, %c0_409] : memref<78x64xf32, #tpu.memory_space<vmem>>, vector<1x64xf32>
    %401 = vector.broadcast %400 : vector<1x64xf32> to vector<16x64xf32>
    %402 = arith.mulf %399, %401 : vector<16x64xf32>
    %c66 = arith.constant 66 : index
    %c0_410 = arith.constant 0 : index
    %403 = vector.load %arg8[%c66, %c0_410] : memref<78x64xf32, #tpu.memory_space<vmem>>, vector<1x64xf32>
    %404 = vector.broadcast %403 : vector<1x64xf32> to vector<16x64xf32>
    %405 = arith.addf %402, %404 : vector<16x64xf32>
    %cst_411 = arith.constant 0.000000e+00 : f32
    %406 = vector.broadcast %cst_411 : f32 to vector<16x64xf32>
    %407 = arith.maximumf %405, %406 : vector<16x64xf32>
    %c18 = arith.constant 18 : index
    %c0_412 = arith.constant 0 : index
    %408 = vector.load %arg8[%c18, %c0_412] : memref<78x64xf32, #tpu.memory_space<vmem>>, vector<1x64xf32>
    %c12_413 = arith.constant 12 : index
    %c0_414 = arith.constant 0 : index
    %409 = vector.load %arg14[%c12_413, %c0_414] : memref<40x128xf32, #tpu.memory_space<vmem>>, vector<16x64xf32>
    tpu.vector_store %arg14[%c12_413, %c0_414], %407 {strides = array<i32>} : memref<40x128xf32, #tpu.memory_space<vmem>>, vector<16x64xf32>,
    %c10_415 = arith.constant 10 : index
    %c64_416 = arith.constant 64 : index
    %410 = vector.load %arg14[%c10_415, %c64_416] : memref<40x128xf32, #tpu.memory_space<vmem>>, vector<16x64xf32>
    tpu.vector_store %arg14[%c10_415, %c64_416], %407 {strides = array<i32>} : memref<40x128xf32, #tpu.memory_space<vmem>>, vector<16x64xf32>,
    %cst_417 = arith.constant 0.000000e+00 : f32
    %411 = vector.broadcast %cst_417 : f32 to vector<2x64xf32>
    %c26_418 = arith.constant 26 : index
    %c64_419 = arith.constant 64 : index
    %412 = vector.load %arg14[%c26_418, %c64_419] : memref<40x128xf32, #tpu.memory_space<vmem>>, vector<2x64xf32>
    tpu.vector_store %arg14[%c26_418, %c64_419], %411 {strides = array<i32>} : memref<40x128xf32, #tpu.memory_space<vmem>>, vector<2x64xf32>,
    %c8_420 = arith.constant 8 : index
    %c0_421 = arith.constant 0 : index
    %413 = vector.load %arg14[%c8_420, %c0_421] : memref<40x128xf32, #tpu.memory_space<vmem>>, vector<16x128xf32>
    %c12_422 = arith.constant 12 : index
    %c0_423 = arith.constant 0 : index
    %c0_424 = arith.constant 0 : index
    %c0_425 = arith.constant 0 : index
    %414 = vector.load %arg6[%c12_422, %c0_423, %c0_424, %c0_425] : memref<16x3x128x64xf32, #tpu.memory_space<vmem>>, vector<1x1x128x64xf32>
    %415 = vector.shape_cast %414 : vector<1x1x128x64xf32> to vector<128x64xf32>
    %cst_426 = arith.constant dense<0.000000e+00> : vector<16x64xf32>
    %416 = tpu.matmul %413, %415, %cst_426 {dimension_numbers = #tpu.dot_dimension_numbers<[1], [0], [0], [1], [0, 0, 1, 1], [], []>} : vector<16x128xf32>, vector<128x64xf32>, vector<16x64xf32> -> vector<16x64xf32>
    %c12_427 = arith.constant 12 : index
    %c0_428 = arith.constant 0 : index
    %417 = vector.load %arg14[%c12_427, %c0_428] : memref<40x128xf32, #tpu.memory_space<vmem>>, vector<16x128xf32>
    %c12_429 = arith.constant 12 : index
    %c1_430 = arith.constant 1 : index
    %c0_431 = arith.constant 0 : index
    %c0_432 = arith.constant 0 : index
    %418 = vector.load %arg6[%c12_429, %c1_430, %c0_431, %c0_432] : memref<16x3x128x64xf32, #tpu.memory_space<vmem>>, vector<1x1x128x64xf32>
    %419 = vector.shape_cast %418 : vector<1x1x128x64xf32> to vector<128x64xf32>
    %cst_433 = arith.constant dense<0.000000e+00> : vector<16x64xf32>
    %420 = tpu.matmul %417, %419, %cst_433 {dimension_numbers = #tpu.dot_dimension_numbers<[1], [0], [0], [1], [0, 0, 1, 1], [], []>} : vector<16x128xf32>, vector<128x64xf32>, vector<16x64xf32> -> vector<16x64xf32>
    %421 = arith.addf %416, %420 : vector<16x64xf32>
    %c16_434 = arith.constant 16 : index
    %c0_435 = arith.constant 0 : index
    %422 = vector.load %arg14[%c16_434, %c0_435] : memref<40x128xf32, #tpu.memory_space<vmem>>, vector<16x128xf32>
    %c12_436 = arith.constant 12 : index
    %c2_437 = arith.constant 2 : index
    %c0_438 = arith.constant 0 : index
    %c0_439 = arith.constant 0 : index
    %423 = vector.load %arg6[%c12_436, %c2_437, %c0_438, %c0_439] : memref<16x3x128x64xf32, #tpu.memory_space<vmem>>, vector<1x1x128x64xf32>
    %424 = vector.shape_cast %423 : vector<1x1x128x64xf32> to vector<128x64xf32>
    %cst_440 = arith.constant dense<0.000000e+00> : vector<16x64xf32>
    %425 = tpu.matmul %422, %424, %cst_440 {dimension_numbers = #tpu.dot_dimension_numbers<[1], [0], [0], [1], [0, 0, 1, 1], [], []>} : vector<16x128xf32>, vector<128x64xf32>, vector<16x64xf32> -> vector<16x64xf32>
    %426 = arith.addf %421, %425 : vector<16x64xf32>
    %427 = vector.broadcast %408 : vector<1x64xf32> to vector<16x64xf32>
    %428 = arith.addf %426, %427 : vector<16x64xf32>
    %c43 = arith.constant 43 : index
    %c0_441 = arith.constant 0 : index
    %429 = vector.load %arg8[%c43, %c0_441] : memref<78x64xf32, #tpu.memory_space<vmem>>, vector<1x64xf32>
    %430 = vector.broadcast %429 : vector<1x64xf32> to vector<16x64xf32>
    %431 = arith.mulf %428, %430 : vector<16x64xf32>
    %c67 = arith.constant 67 : index
    %c0_442 = arith.constant 0 : index
    %432 = vector.load %arg8[%c67, %c0_442] : memref<78x64xf32, #tpu.memory_space<vmem>>, vector<1x64xf32>
    %433 = vector.broadcast %432 : vector<1x64xf32> to vector<16x64xf32>
    %434 = arith.addf %431, %433 : vector<16x64xf32>
    %cst_443 = arith.constant 0.000000e+00 : f32
    %435 = vector.broadcast %cst_443 : f32 to vector<16x64xf32>
    %436 = arith.maximumf %434, %435 : vector<16x64xf32>
    %c19 = arith.constant 19 : index
    %c0_444 = arith.constant 0 : index
    %437 = vector.load %arg8[%c19, %c0_444] : memref<78x64xf32, #tpu.memory_space<vmem>>, vector<1x64xf32>
    %c12_445 = arith.constant 12 : index
    %c0_446 = arith.constant 0 : index
    %438 = vector.load %arg14[%c12_445, %c0_446] : memref<40x128xf32, #tpu.memory_space<vmem>>, vector<16x64xf32>
    tpu.vector_store %arg14[%c12_445, %c0_446], %436 {strides = array<i32>} : memref<40x128xf32, #tpu.memory_space<vmem>>, vector<16x64xf32>,
    %c10_447 = arith.constant 10 : index
    %c64_448 = arith.constant 64 : index
    %439 = vector.load %arg14[%c10_447, %c64_448] : memref<40x128xf32, #tpu.memory_space<vmem>>, vector<16x64xf32>
    tpu.vector_store %arg14[%c10_447, %c64_448], %436 {strides = array<i32>} : memref<40x128xf32, #tpu.memory_space<vmem>>, vector<16x64xf32>,
    %cst_449 = arith.constant 0.000000e+00 : f32
    %440 = vector.broadcast %cst_449 : f32 to vector<2x64xf32>
    %c26_450 = arith.constant 26 : index
    %c64_451 = arith.constant 64 : index
    %441 = vector.load %arg14[%c26_450, %c64_451] : memref<40x128xf32, #tpu.memory_space<vmem>>, vector<2x64xf32>
    tpu.vector_store %arg14[%c26_450, %c64_451], %440 {strides = array<i32>} : memref<40x128xf32, #tpu.memory_space<vmem>>, vector<2x64xf32>,
    %c8_452 = arith.constant 8 : index
    %c0_453 = arith.constant 0 : index
    %442 = vector.load %arg14[%c8_452, %c0_453] : memref<40x128xf32, #tpu.memory_space<vmem>>, vector<16x128xf32>
    %c13_454 = arith.constant 13 : index
    %c0_455 = arith.constant 0 : index
    %c0_456 = arith.constant 0 : index
    %c0_457 = arith.constant 0 : index
    %443 = vector.load %arg6[%c13_454, %c0_455, %c0_456, %c0_457] : memref<16x3x128x64xf32, #tpu.memory_space<vmem>>, vector<1x1x128x64xf32>
    %444 = vector.shape_cast %443 : vector<1x1x128x64xf32> to vector<128x64xf32>
    %cst_458 = arith.constant dense<0.000000e+00> : vector<16x64xf32>
    %445 = tpu.matmul %442, %444, %cst_458 {dimension_numbers = #tpu.dot_dimension_numbers<[1], [0], [0], [1], [0, 0, 1, 1], [], []>} : vector<16x128xf32>, vector<128x64xf32>, vector<16x64xf32> -> vector<16x64xf32>
    %c12_459 = arith.constant 12 : index
    %c0_460 = arith.constant 0 : index
    %446 = vector.load %arg14[%c12_459, %c0_460] : memref<40x128xf32, #tpu.memory_space<vmem>>, vector<16x128xf32>
    %c13_461 = arith.constant 13 : index
    %c1_462 = arith.constant 1 : index
    %c0_463 = arith.constant 0 : index
    %c0_464 = arith.constant 0 : index
    %447 = vector.load %arg6[%c13_461, %c1_462, %c0_463, %c0_464] : memref<16x3x128x64xf32, #tpu.memory_space<vmem>>, vector<1x1x128x64xf32>
    %448 = vector.shape_cast %447 : vector<1x1x128x64xf32> to vector<128x64xf32>
    %cst_465 = arith.constant dense<0.000000e+00> : vector<16x64xf32>
    %449 = tpu.matmul %446, %448, %cst_465 {dimension_numbers = #tpu.dot_dimension_numbers<[1], [0], [0], [1], [0, 0, 1, 1], [], []>} : vector<16x128xf32>, vector<128x64xf32>, vector<16x64xf32> -> vector<16x64xf32>
    %450 = arith.addf %445, %449 : vector<16x64xf32>
    %c16_466 = arith.constant 16 : index
    %c0_467 = arith.constant 0 : index
    %451 = vector.load %arg14[%c16_466, %c0_467] : memref<40x128xf32, #tpu.memory_space<vmem>>, vector<16x128xf32>
    %c13_468 = arith.constant 13 : index
    %c2_469 = arith.constant 2 : index
    %c0_470 = arith.constant 0 : index
    %c0_471 = arith.constant 0 : index
    %452 = vector.load %arg6[%c13_468, %c2_469, %c0_470, %c0_471] : memref<16x3x128x64xf32, #tpu.memory_space<vmem>>, vector<1x1x128x64xf32>
    %453 = vector.shape_cast %452 : vector<1x1x128x64xf32> to vector<128x64xf32>
    %cst_472 = arith.constant dense<0.000000e+00> : vector<16x64xf32>
    %454 = tpu.matmul %451, %453, %cst_472 {dimension_numbers = #tpu.dot_dimension_numbers<[1], [0], [0], [1], [0, 0, 1, 1], [], []>} : vector<16x128xf32>, vector<128x64xf32>, vector<16x64xf32> -> vector<16x64xf32>
    %455 = arith.addf %450, %454 : vector<16x64xf32>
    %456 = vector.broadcast %437 : vector<1x64xf32> to vector<16x64xf32>
    %457 = arith.addf %455, %456 : vector<16x64xf32>
    %458 = arith.addf %399, %457 : vector<16x64xf32>
    %c44 = arith.constant 44 : index
    %c0_473 = arith.constant 0 : index
    %459 = vector.load %arg8[%c44, %c0_473] : memref<78x64xf32, #tpu.memory_space<vmem>>, vector<1x64xf32>
    %460 = vector.broadcast %459 : vector<1x64xf32> to vector<16x64xf32>
    %461 = arith.mulf %458, %460 : vector<16x64xf32>
    %c68 = arith.constant 68 : index
    %c0_474 = arith.constant 0 : index
    %462 = vector.load %arg8[%c68, %c0_474] : memref<78x64xf32, #tpu.memory_space<vmem>>, vector<1x64xf32>
    %463 = vector.broadcast %462 : vector<1x64xf32> to vector<16x64xf32>
    %464 = arith.addf %461, %463 : vector<16x64xf32>
    %cst_475 = arith.constant 0.000000e+00 : f32
    %465 = vector.broadcast %cst_475 : f32 to vector<16x64xf32>
    %466 = arith.maximumf %464, %465 : vector<16x64xf32>
    %c20 = arith.constant 20 : index
    %c0_476 = arith.constant 0 : index
    %467 = vector.load %arg8[%c20, %c0_476] : memref<78x64xf32, #tpu.memory_space<vmem>>, vector<1x64xf32>
    %c12_477 = arith.constant 12 : index
    %c0_478 = arith.constant 0 : index
    %468 = vector.load %arg14[%c12_477, %c0_478] : memref<40x128xf32, #tpu.memory_space<vmem>>, vector<16x64xf32>
    tpu.vector_store %arg14[%c12_477, %c0_478], %466 {strides = array<i32>} : memref<40x128xf32, #tpu.memory_space<vmem>>, vector<16x64xf32>,
    %c10_479 = arith.constant 10 : index
    %c64_480 = arith.constant 64 : index
    %469 = vector.load %arg14[%c10_479, %c64_480] : memref<40x128xf32, #tpu.memory_space<vmem>>, vector<16x64xf32>
    tpu.vector_store %arg14[%c10_479, %c64_480], %466 {strides = array<i32>} : memref<40x128xf32, #tpu.memory_space<vmem>>, vector<16x64xf32>,
    %cst_481 = arith.constant 0.000000e+00 : f32
    %470 = vector.broadcast %cst_481 : f32 to vector<2x64xf32>
    %c26_482 = arith.constant 26 : index
    %c64_483 = arith.constant 64 : index
    %471 = vector.load %arg14[%c26_482, %c64_483] : memref<40x128xf32, #tpu.memory_space<vmem>>, vector<2x64xf32>
    tpu.vector_store %arg14[%c26_482, %c64_483], %470 {strides = array<i32>} : memref<40x128xf32, #tpu.memory_space<vmem>>, vector<2x64xf32>,
    %c8_484 = arith.constant 8 : index
    %c0_485 = arith.constant 0 : index
    %472 = vector.load %arg14[%c8_484, %c0_485] : memref<40x128xf32, #tpu.memory_space<vmem>>, vector<16x128xf32>
    %c14_486 = arith.constant 14 : index
    %c0_487 = arith.constant 0 : index
    %c0_488 = arith.constant 0 : index
    %c0_489 = arith.constant 0 : index
    %473 = vector.load %arg6[%c14_486, %c0_487, %c0_488, %c0_489] : memref<16x3x128x64xf32, #tpu.memory_space<vmem>>, vector<1x1x128x64xf32>
    %474 = vector.shape_cast %473 : vector<1x1x128x64xf32> to vector<128x64xf32>
    %cst_490 = arith.constant dense<0.000000e+00> : vector<16x64xf32>
    %475 = tpu.matmul %472, %474, %cst_490 {dimension_numbers = #tpu.dot_dimension_numbers<[1], [0], [0], [1], [0, 0, 1, 1], [], []>} : vector<16x128xf32>, vector<128x64xf32>, vector<16x64xf32> -> vector<16x64xf32>
    %c12_491 = arith.constant 12 : index
    %c0_492 = arith.constant 0 : index
    %476 = vector.load %arg14[%c12_491, %c0_492] : memref<40x128xf32, #tpu.memory_space<vmem>>, vector<16x128xf32>
    %c14_493 = arith.constant 14 : index
    %c1_494 = arith.constant 1 : index
    %c0_495 = arith.constant 0 : index
    %c0_496 = arith.constant 0 : index
    %477 = vector.load %arg6[%c14_493, %c1_494, %c0_495, %c0_496] : memref<16x3x128x64xf32, #tpu.memory_space<vmem>>, vector<1x1x128x64xf32>
    %478 = vector.shape_cast %477 : vector<1x1x128x64xf32> to vector<128x64xf32>
    %cst_497 = arith.constant dense<0.000000e+00> : vector<16x64xf32>
    %479 = tpu.matmul %476, %478, %cst_497 {dimension_numbers = #tpu.dot_dimension_numbers<[1], [0], [0], [1], [0, 0, 1, 1], [], []>} : vector<16x128xf32>, vector<128x64xf32>, vector<16x64xf32> -> vector<16x64xf32>
    %480 = arith.addf %475, %479 : vector<16x64xf32>
    %c16_498 = arith.constant 16 : index
    %c0_499 = arith.constant 0 : index
    %481 = vector.load %arg14[%c16_498, %c0_499] : memref<40x128xf32, #tpu.memory_space<vmem>>, vector<16x128xf32>
    %c14_500 = arith.constant 14 : index
    %c2_501 = arith.constant 2 : index
    %c0_502 = arith.constant 0 : index
    %c0_503 = arith.constant 0 : index
    %482 = vector.load %arg6[%c14_500, %c2_501, %c0_502, %c0_503] : memref<16x3x128x64xf32, #tpu.memory_space<vmem>>, vector<1x1x128x64xf32>
    %483 = vector.shape_cast %482 : vector<1x1x128x64xf32> to vector<128x64xf32>
    %cst_504 = arith.constant dense<0.000000e+00> : vector<16x64xf32>
    %484 = tpu.matmul %481, %483, %cst_504 {dimension_numbers = #tpu.dot_dimension_numbers<[1], [0], [0], [1], [0, 0, 1, 1], [], []>} : vector<16x128xf32>, vector<128x64xf32>, vector<16x64xf32> -> vector<16x64xf32>
    %485 = arith.addf %480, %484 : vector<16x64xf32>
    %486 = vector.broadcast %467 : vector<1x64xf32> to vector<16x64xf32>
    %487 = arith.addf %485, %486 : vector<16x64xf32>
    %c45 = arith.constant 45 : index
    %c0_505 = arith.constant 0 : index
    %488 = vector.load %arg8[%c45, %c0_505] : memref<78x64xf32, #tpu.memory_space<vmem>>, vector<1x64xf32>
    %489 = vector.broadcast %488 : vector<1x64xf32> to vector<16x64xf32>
    %490 = arith.mulf %487, %489 : vector<16x64xf32>
    %c69 = arith.constant 69 : index
    %c0_506 = arith.constant 0 : index
    %491 = vector.load %arg8[%c69, %c0_506] : memref<78x64xf32, #tpu.memory_space<vmem>>, vector<1x64xf32>
    %492 = vector.broadcast %491 : vector<1x64xf32> to vector<16x64xf32>
    %493 = arith.addf %490, %492 : vector<16x64xf32>
    %cst_507 = arith.constant 0.000000e+00 : f32
    %494 = vector.broadcast %cst_507 : f32 to vector<16x64xf32>
    %495 = arith.maximumf %493, %494 : vector<16x64xf32>
    %c21 = arith.constant 21 : index
    %c0_508 = arith.constant 0 : index
    %496 = vector.load %arg8[%c21, %c0_508] : memref<78x64xf32, #tpu.memory_space<vmem>>, vector<1x64xf32>
    %c12_509 = arith.constant 12 : index
    %c0_510 = arith.constant 0 : index
    %497 = vector.load %arg14[%c12_509, %c0_510] : memref<40x128xf32, #tpu.memory_space<vmem>>, vector<16x64xf32>
    tpu.vector_store %arg14[%c12_509, %c0_510], %495 {strides = array<i32>} : memref<40x128xf32, #tpu.memory_space<vmem>>, vector<16x64xf32>,
    %c10_511 = arith.constant 10 : index
    %c64_512 = arith.constant 64 : index
    %498 = vector.load %arg14[%c10_511, %c64_512] : memref<40x128xf32, #tpu.memory_space<vmem>>, vector<16x64xf32>
    tpu.vector_store %arg14[%c10_511, %c64_512], %495 {strides = array<i32>} : memref<40x128xf32, #tpu.memory_space<vmem>>, vector<16x64xf32>,
    %cst_513 = arith.constant 0.000000e+00 : f32
    %499 = vector.broadcast %cst_513 : f32 to vector<2x64xf32>
    %c26_514 = arith.constant 26 : index
    %c64_515 = arith.constant 64 : index
    %500 = vector.load %arg14[%c26_514, %c64_515] : memref<40x128xf32, #tpu.memory_space<vmem>>, vector<2x64xf32>
    tpu.vector_store %arg14[%c26_514, %c64_515], %499 {strides = array<i32>} : memref<40x128xf32, #tpu.memory_space<vmem>>, vector<2x64xf32>,
    %c8_516 = arith.constant 8 : index
    %c0_517 = arith.constant 0 : index
    %501 = vector.load %arg14[%c8_516, %c0_517] : memref<40x128xf32, #tpu.memory_space<vmem>>, vector<16x128xf32>
    %c15_518 = arith.constant 15 : index
    %c0_519 = arith.constant 0 : index
    %c0_520 = arith.constant 0 : index
    %c0_521 = arith.constant 0 : index
    %502 = vector.load %arg6[%c15_518, %c0_519, %c0_520, %c0_521] : memref<16x3x128x64xf32, #tpu.memory_space<vmem>>, vector<1x1x128x64xf32>
    %503 = vector.shape_cast %502 : vector<1x1x128x64xf32> to vector<128x64xf32>
    %cst_522 = arith.constant dense<0.000000e+00> : vector<16x64xf32>
    %504 = tpu.matmul %501, %503, %cst_522 {dimension_numbers = #tpu.dot_dimension_numbers<[1], [0], [0], [1], [0, 0, 1, 1], [], []>} : vector<16x128xf32>, vector<128x64xf32>, vector<16x64xf32> -> vector<16x64xf32>
    %c12_523 = arith.constant 12 : index
    %c0_524 = arith.constant 0 : index
    %505 = vector.load %arg14[%c12_523, %c0_524] : memref<40x128xf32, #tpu.memory_space<vmem>>, vector<16x128xf32>
    %c15_525 = arith.constant 15 : index
    %c1_526 = arith.constant 1 : index
    %c0_527 = arith.constant 0 : index
    %c0_528 = arith.constant 0 : index
    %506 = vector.load %arg6[%c15_525, %c1_526, %c0_527, %c0_528] : memref<16x3x128x64xf32, #tpu.memory_space<vmem>>, vector<1x1x128x64xf32>
    %507 = vector.shape_cast %506 : vector<1x1x128x64xf32> to vector<128x64xf32>
    %cst_529 = arith.constant dense<0.000000e+00> : vector<16x64xf32>
    %508 = tpu.matmul %505, %507, %cst_529 {dimension_numbers = #tpu.dot_dimension_numbers<[1], [0], [0], [1], [0, 0, 1, 1], [], []>} : vector<16x128xf32>, vector<128x64xf32>, vector<16x64xf32> -> vector<16x64xf32>
    %509 = arith.addf %504, %508 : vector<16x64xf32>
    %c16_530 = arith.constant 16 : index
    %c0_531 = arith.constant 0 : index
    %510 = vector.load %arg14[%c16_530, %c0_531] : memref<40x128xf32, #tpu.memory_space<vmem>>, vector<16x128xf32>
    %c15_532 = arith.constant 15 : index
    %c2_533 = arith.constant 2 : index
    %c0_534 = arith.constant 0 : index
    %c0_535 = arith.constant 0 : index
    %511 = vector.load %arg6[%c15_532, %c2_533, %c0_534, %c0_535] : memref<16x3x128x64xf32, #tpu.memory_space<vmem>>, vector<1x1x128x64xf32>
    %512 = vector.shape_cast %511 : vector<1x1x128x64xf32> to vector<128x64xf32>
    %cst_536 = arith.constant dense<0.000000e+00> : vector<16x64xf32>
    %513 = tpu.matmul %510, %512, %cst_536 {dimension_numbers = #tpu.dot_dimension_numbers<[1], [0], [0], [1], [0, 0, 1, 1], [], []>} : vector<16x128xf32>, vector<128x64xf32>, vector<16x64xf32> -> vector<16x64xf32>
    %514 = arith.addf %509, %513 : vector<16x64xf32>
    %515 = vector.broadcast %496 : vector<1x64xf32> to vector<16x64xf32>
    %516 = arith.addf %514, %515 : vector<16x64xf32>
    %517 = arith.addf %458, %516 : vector<16x64xf32>
    %c2_537 = arith.constant 2 : index
    %c0_538 = arith.constant 0 : index
    %c0_539 = arith.constant 0 : index
    %518 = vector.load %arg5[%c2_537, %c0_538, %c0_539] : memref<5x64x64xf32, #tpu.memory_space<vmem>>, vector<1x64x64xf32>
    %519 = vector.shape_cast %518 : vector<1x64x64xf32> to vector<64x64xf32>
    %c3_540 = arith.constant 3 : index
    %c0_541 = arith.constant 0 : index
    %520 = vector.load %arg8[%c3_540, %c0_541] : memref<78x64xf32, #tpu.memory_space<vmem>>, vector<1x64xf32>
    %cst_542 = arith.constant dense<0.000000e+00> : vector<16x64xf32>
    %521 = tpu.matmul %517, %519, %cst_542 {dimension_numbers = #tpu.dot_dimension_numbers<[1], [0], [0], [1], [0, 0, 1, 1], [], []>} : vector<16x64xf32>, vector<64x64xf32>, vector<16x64xf32> -> vector<16x64xf32>
    %522 = vector.broadcast %520 : vector<1x64xf32> to vector<16x64xf32>
    %523 = arith.addf %521, %522 : vector<16x64xf32>
    %524 = arith.addf %281, %523 : vector<16x64xf32>
    %c46 = arith.constant 46 : index
    %c0_543 = arith.constant 0 : index
    %525 = vector.load %arg8[%c46, %c0_543] : memref<78x64xf32, #tpu.memory_space<vmem>>, vector<1x64xf32>
    %526 = vector.broadcast %525 : vector<1x64xf32> to vector<16x64xf32>
    %527 = arith.mulf %517, %526 : vector<16x64xf32>
    %c70 = arith.constant 70 : index
    %c0_544 = arith.constant 0 : index
    %528 = vector.load %arg8[%c70, %c0_544] : memref<78x64xf32, #tpu.memory_space<vmem>>, vector<1x64xf32>
    %529 = vector.broadcast %528 : vector<1x64xf32> to vector<16x64xf32>
    %530 = arith.addf %527, %529 : vector<16x64xf32>
    %cst_545 = arith.constant 0.000000e+00 : f32
    %531 = vector.broadcast %cst_545 : f32 to vector<16x64xf32>
    %532 = arith.maximumf %530, %531 : vector<16x64xf32>
    %c22 = arith.constant 22 : index
    %c0_546 = arith.constant 0 : index
    %533 = vector.load %arg8[%c22, %c0_546] : memref<78x64xf32, #tpu.memory_space<vmem>>, vector<1x64xf32>
    %c12_547 = arith.constant 12 : index
    %c0_548 = arith.constant 0 : index
    %534 = vector.load %arg14[%c12_547, %c0_548] : memref<40x128xf32, #tpu.memory_space<vmem>>, vector<16x64xf32>
    tpu.vector_store %arg14[%c12_547, %c0_548], %532 {strides = array<i32>} : memref<40x128xf32, #tpu.memory_space<vmem>>, vector<16x64xf32>,
    %c9_549 = arith.constant 9 : index
    %c64_550 = arith.constant 64 : index
    %535 = vector.load %arg14[%c9_549, %c64_550] : memref<40x128xf32, #tpu.memory_space<vmem>>, vector<16x64xf32>
    tpu.vector_store %arg14[%c9_549, %c64_550], %532 {strides = array<i32>} : memref<40x128xf32, #tpu.memory_space<vmem>>, vector<16x64xf32>,
    %cst_551 = arith.constant 0.000000e+00 : f32
    %536 = vector.broadcast %cst_551 : f32 to vector<3x64xf32>
    %c25 = arith.constant 25 : index
    %c64_552 = arith.constant 64 : index
    %537 = vector.load %arg14[%c25, %c64_552] : memref<40x128xf32, #tpu.memory_space<vmem>>, vector<3x64xf32>
    tpu.vector_store %arg14[%c25, %c64_552], %536 {strides = array<i32>} : memref<40x128xf32, #tpu.memory_space<vmem>>, vector<3x64xf32>,
    %c0_553 = arith.constant 0 : index
    %c0_554 = arith.constant 0 : index
    %538 = vector.load %arg14[%c0_553, %c0_554] : memref<40x128xf32, #tpu.memory_space<vmem>>, vector<16x128xf32>
    %c0_555 = arith.constant 0 : index
    %c0_556 = arith.constant 0 : index
    %c0_557 = arith.constant 0 : index
    %c0_558 = arith.constant 0 : index
    %539 = vector.load %arg7[%c0_555, %c0_556, %c0_557, %c0_558] : memref<8x5x128x64xf32, #tpu.memory_space<vmem>>, vector<1x1x128x64xf32>
    %540 = vector.shape_cast %539 : vector<1x1x128x64xf32> to vector<128x64xf32>
    %cst_559 = arith.constant dense<0.000000e+00> : vector<16x64xf32>
    %541 = tpu.matmul %538, %540, %cst_559 {dimension_numbers = #tpu.dot_dimension_numbers<[1], [0], [0], [1], [0, 0, 1, 1], [], []>} : vector<16x128xf32>, vector<128x64xf32>, vector<16x64xf32> -> vector<16x64xf32>
    %c6_560 = arith.constant 6 : index
    %c0_561 = arith.constant 0 : index
    %542 = vector.load %arg14[%c6_560, %c0_561] : memref<40x128xf32, #tpu.memory_space<vmem>>, vector<16x128xf32>
    %c0_562 = arith.constant 0 : index
    %c1_563 = arith.constant 1 : index
    %c0_564 = arith.constant 0 : index
    %c0_565 = arith.constant 0 : index
    %543 = vector.load %arg7[%c0_562, %c1_563, %c0_564, %c0_565] : memref<8x5x128x64xf32, #tpu.memory_space<vmem>>, vector<1x1x128x64xf32>
    %544 = vector.shape_cast %543 : vector<1x1x128x64xf32> to vector<128x64xf32>
    %cst_566 = arith.constant dense<0.000000e+00> : vector<16x64xf32>
    %545 = tpu.matmul %542, %544, %cst_566 {dimension_numbers = #tpu.dot_dimension_numbers<[1], [0], [0], [1], [0, 0, 1, 1], [], []>} : vector<16x128xf32>, vector<128x64xf32>, vector<16x64xf32> -> vector<16x64xf32>
    %546 = arith.addf %541, %545 : vector<16x64xf32>
    %c12_567 = arith.constant 12 : index
    %c0_568 = arith.constant 0 : index
    %547 = vector.load %arg14[%c12_567, %c0_568] : memref<40x128xf32, #tpu.memory_space<vmem>>, vector<16x128xf32>
    %c0_569 = arith.constant 0 : index
    %c2_570 = arith.constant 2 : index
    %c0_571 = arith.constant 0 : index
    %c0_572 = arith.constant 0 : index
    %548 = vector.load %arg7[%c0_569, %c2_570, %c0_571, %c0_572] : memref<8x5x128x64xf32, #tpu.memory_space<vmem>>, vector<1x1x128x64xf32>
    %549 = vector.shape_cast %548 : vector<1x1x128x64xf32> to vector<128x64xf32>
    %cst_573 = arith.constant dense<0.000000e+00> : vector<16x64xf32>
    %550 = tpu.matmul %547, %549, %cst_573 {dimension_numbers = #tpu.dot_dimension_numbers<[1], [0], [0], [1], [0, 0, 1, 1], [], []>} : vector<16x128xf32>, vector<128x64xf32>, vector<16x64xf32> -> vector<16x64xf32>
    %551 = arith.addf %546, %550 : vector<16x64xf32>
    %c18_574 = arith.constant 18 : index
    %c0_575 = arith.constant 0 : index
    %552 = vector.load %arg14[%c18_574, %c0_575] : memref<40x128xf32, #tpu.memory_space<vmem>>, vector<16x128xf32>
    %c0_576 = arith.constant 0 : index
    %c3_577 = arith.constant 3 : index
    %c0_578 = arith.constant 0 : index
    %c0_579 = arith.constant 0 : index
    %553 = vector.load %arg7[%c0_576, %c3_577, %c0_578, %c0_579] : memref<8x5x128x64xf32, #tpu.memory_space<vmem>>, vector<1x1x128x64xf32>
    %554 = vector.shape_cast %553 : vector<1x1x128x64xf32> to vector<128x64xf32>
    %cst_580 = arith.constant dense<0.000000e+00> : vector<16x64xf32>
    %555 = tpu.matmul %552, %554, %cst_580 {dimension_numbers = #tpu.dot_dimension_numbers<[1], [0], [0], [1], [0, 0, 1, 1], [], []>} : vector<16x128xf32>, vector<128x64xf32>, vector<16x64xf32> -> vector<16x64xf32>
    %556 = arith.addf %551, %555 : vector<16x64xf32>
    %c24 = arith.constant 24 : index
    %c0_581 = arith.constant 0 : index
    %557 = vector.load %arg14[%c24, %c0_581] : memref<40x128xf32, #tpu.memory_space<vmem>>, vector<16x128xf32>
    %c0_582 = arith.constant 0 : index
    %c4_583 = arith.constant 4 : index
    %c0_584 = arith.constant 0 : index
    %c0_585 = arith.constant 0 : index
    %558 = vector.load %arg7[%c0_582, %c4_583, %c0_584, %c0_585] : memref<8x5x128x64xf32, #tpu.memory_space<vmem>>, vector<1x1x128x64xf32>
    %559 = vector.shape_cast %558 : vector<1x1x128x64xf32> to vector<128x64xf32>
    %cst_586 = arith.constant dense<0.000000e+00> : vector<16x64xf32>
    %560 = tpu.matmul %557, %559, %cst_586 {dimension_numbers = #tpu.dot_dimension_numbers<[1], [0], [0], [1], [0, 0, 1, 1], [], []>} : vector<16x128xf32>, vector<128x64xf32>, vector<16x64xf32> -> vector<16x64xf32>
    %561 = arith.addf %556, %560 : vector<16x64xf32>
    %562 = vector.broadcast %533 : vector<1x64xf32> to vector<16x64xf32>
    %563 = arith.addf %561, %562 : vector<16x64xf32>
    %c47 = arith.constant 47 : index
    %c0_587 = arith.constant 0 : index
    %564 = vector.load %arg8[%c47, %c0_587] : memref<78x64xf32, #tpu.memory_space<vmem>>, vector<1x64xf32>
    %565 = vector.broadcast %564 : vector<1x64xf32> to vector<16x64xf32>
    %566 = arith.mulf %563, %565 : vector<16x64xf32>
    %c71 = arith.constant 71 : index
    %c0_588 = arith.constant 0 : index
    %567 = vector.load %arg8[%c71, %c0_588] : memref<78x64xf32, #tpu.memory_space<vmem>>, vector<1x64xf32>
    %568 = vector.broadcast %567 : vector<1x64xf32> to vector<16x64xf32>
    %569 = arith.addf %566, %568 : vector<16x64xf32>
    %cst_589 = arith.constant 0.000000e+00 : f32
    %570 = vector.broadcast %cst_589 : f32 to vector<16x64xf32>
    %571 = arith.maximumf %569, %570 : vector<16x64xf32>
    %c23 = arith.constant 23 : index
    %c0_590 = arith.constant 0 : index
    %572 = vector.load %arg8[%c23, %c0_590] : memref<78x64xf32, #tpu.memory_space<vmem>>, vector<1x64xf32>
    %c12_591 = arith.constant 12 : index
    %c0_592 = arith.constant 0 : index
    %573 = vector.load %arg14[%c12_591, %c0_592] : memref<40x128xf32, #tpu.memory_space<vmem>>, vector<16x64xf32>
    tpu.vector_store %arg14[%c12_591, %c0_592], %571 {strides = array<i32>} : memref<40x128xf32, #tpu.memory_space<vmem>>, vector<16x64xf32>,
    %c9_593 = arith.constant 9 : index
    %c64_594 = arith.constant 64 : index
    %574 = vector.load %arg14[%c9_593, %c64_594] : memref<40x128xf32, #tpu.memory_space<vmem>>, vector<16x64xf32>
    tpu.vector_store %arg14[%c9_593, %c64_594], %571 {strides = array<i32>} : memref<40x128xf32, #tpu.memory_space<vmem>>, vector<16x64xf32>,
    %cst_595 = arith.constant 0.000000e+00 : f32
    %575 = vector.broadcast %cst_595 : f32 to vector<3x64xf32>
    %c25_596 = arith.constant 25 : index
    %c64_597 = arith.constant 64 : index
    %576 = vector.load %arg14[%c25_596, %c64_597] : memref<40x128xf32, #tpu.memory_space<vmem>>, vector<3x64xf32>
    tpu.vector_store %arg14[%c25_596, %c64_597], %575 {strides = array<i32>} : memref<40x128xf32, #tpu.memory_space<vmem>>, vector<3x64xf32>,
    %c0_598 = arith.constant 0 : index
    %c0_599 = arith.constant 0 : index
    %577 = vector.load %arg14[%c0_598, %c0_599] : memref<40x128xf32, #tpu.memory_space<vmem>>, vector<16x128xf32>
    %c1_600 = arith.constant 1 : index
    %c0_601 = arith.constant 0 : index
    %c0_602 = arith.constant 0 : index
    %c0_603 = arith.constant 0 : index
    %578 = vector.load %arg7[%c1_600, %c0_601, %c0_602, %c0_603] : memref<8x5x128x64xf32, #tpu.memory_space<vmem>>, vector<1x1x128x64xf32>
    %579 = vector.shape_cast %578 : vector<1x1x128x64xf32> to vector<128x64xf32>
    %cst_604 = arith.constant dense<0.000000e+00> : vector<16x64xf32>
    %580 = tpu.matmul %577, %579, %cst_604 {dimension_numbers = #tpu.dot_dimension_numbers<[1], [0], [0], [1], [0, 0, 1, 1], [], []>} : vector<16x128xf32>, vector<128x64xf32>, vector<16x64xf32> -> vector<16x64xf32>
    %c6_605 = arith.constant 6 : index
    %c0_606 = arith.constant 0 : index
    %581 = vector.load %arg14[%c6_605, %c0_606] : memref<40x128xf32, #tpu.memory_space<vmem>>, vector<16x128xf32>
    %c1_607 = arith.constant 1 : index
    %c1_608 = arith.constant 1 : index
    %c0_609 = arith.constant 0 : index
    %c0_610 = arith.constant 0 : index
    %582 = vector.load %arg7[%c1_607, %c1_608, %c0_609, %c0_610] : memref<8x5x128x64xf32, #tpu.memory_space<vmem>>, vector<1x1x128x64xf32>
    %583 = vector.shape_cast %582 : vector<1x1x128x64xf32> to vector<128x64xf32>
    %cst_611 = arith.constant dense<0.000000e+00> : vector<16x64xf32>
    %584 = tpu.matmul %581, %583, %cst_611 {dimension_numbers = #tpu.dot_dimension_numbers<[1], [0], [0], [1], [0, 0, 1, 1], [], []>} : vector<16x128xf32>, vector<128x64xf32>, vector<16x64xf32> -> vector<16x64xf32>
    %585 = arith.addf %580, %584 : vector<16x64xf32>
    %c12_612 = arith.constant 12 : index
    %c0_613 = arith.constant 0 : index
    %586 = vector.load %arg14[%c12_612, %c0_613] : memref<40x128xf32, #tpu.memory_space<vmem>>, vector<16x128xf32>
    %c1_614 = arith.constant 1 : index
    %c2_615 = arith.constant 2 : index
    %c0_616 = arith.constant 0 : index
    %c0_617 = arith.constant 0 : index
    %587 = vector.load %arg7[%c1_614, %c2_615, %c0_616, %c0_617] : memref<8x5x128x64xf32, #tpu.memory_space<vmem>>, vector<1x1x128x64xf32>
    %588 = vector.shape_cast %587 : vector<1x1x128x64xf32> to vector<128x64xf32>
    %cst_618 = arith.constant dense<0.000000e+00> : vector<16x64xf32>
    %589 = tpu.matmul %586, %588, %cst_618 {dimension_numbers = #tpu.dot_dimension_numbers<[1], [0], [0], [1], [0, 0, 1, 1], [], []>} : vector<16x128xf32>, vector<128x64xf32>, vector<16x64xf32> -> vector<16x64xf32>
    %590 = arith.addf %585, %589 : vector<16x64xf32>
    %c18_619 = arith.constant 18 : index
    %c0_620 = arith.constant 0 : index
    %591 = vector.load %arg14[%c18_619, %c0_620] : memref<40x128xf32, #tpu.memory_space<vmem>>, vector<16x128xf32>
    %c1_621 = arith.constant 1 : index
    %c3_622 = arith.constant 3 : index
    %c0_623 = arith.constant 0 : index
    %c0_624 = arith.constant 0 : index
    %592 = vector.load %arg7[%c1_621, %c3_622, %c0_623, %c0_624] : memref<8x5x128x64xf32, #tpu.memory_space<vmem>>, vector<1x1x128x64xf32>
    %593 = vector.shape_cast %592 : vector<1x1x128x64xf32> to vector<128x64xf32>
    %cst_625 = arith.constant dense<0.000000e+00> : vector<16x64xf32>
    %594 = tpu.matmul %591, %593, %cst_625 {dimension_numbers = #tpu.dot_dimension_numbers<[1], [0], [0], [1], [0, 0, 1, 1], [], []>} : vector<16x128xf32>, vector<128x64xf32>, vector<16x64xf32> -> vector<16x64xf32>
    %595 = arith.addf %590, %594 : vector<16x64xf32>
    %c24_626 = arith.constant 24 : index
    %c0_627 = arith.constant 0 : index
    %596 = vector.load %arg14[%c24_626, %c0_627] : memref<40x128xf32, #tpu.memory_space<vmem>>, vector<16x128xf32>
    %c1_628 = arith.constant 1 : index
    %c4_629 = arith.constant 4 : index
    %c0_630 = arith.constant 0 : index
    %c0_631 = arith.constant 0 : index
    %597 = vector.load %arg7[%c1_628, %c4_629, %c0_630, %c0_631] : memref<8x5x128x64xf32, #tpu.memory_space<vmem>>, vector<1x1x128x64xf32>
    %598 = vector.shape_cast %597 : vector<1x1x128x64xf32> to vector<128x64xf32>
    %cst_632 = arith.constant dense<0.000000e+00> : vector<16x64xf32>
    %599 = tpu.matmul %596, %598, %cst_632 {dimension_numbers = #tpu.dot_dimension_numbers<[1], [0], [0], [1], [0, 0, 1, 1], [], []>} : vector<16x128xf32>, vector<128x64xf32>, vector<16x64xf32> -> vector<16x64xf32>
    %600 = arith.addf %595, %599 : vector<16x64xf32>
    %601 = vector.broadcast %572 : vector<1x64xf32> to vector<16x64xf32>
    %602 = arith.addf %600, %601 : vector<16x64xf32>
    %603 = arith.addf %517, %602 : vector<16x64xf32>
    %c48 = arith.constant 48 : index
    %c0_633 = arith.constant 0 : index
    %604 = vector.load %arg8[%c48, %c0_633] : memref<78x64xf32, #tpu.memory_space<vmem>>, vector<1x64xf32>
    %605 = vector.broadcast %604 : vector<1x64xf32> to vector<16x64xf32>
    %606 = arith.mulf %603, %605 : vector<16x64xf32>
    %c72 = arith.constant 72 : index
    %c0_634 = arith.constant 0 : index
    %607 = vector.load %arg8[%c72, %c0_634] : memref<78x64xf32, #tpu.memory_space<vmem>>, vector<1x64xf32>
    %608 = vector.broadcast %607 : vector<1x64xf32> to vector<16x64xf32>
    %609 = arith.addf %606, %608 : vector<16x64xf32>
    %cst_635 = arith.constant 0.000000e+00 : f32
    %610 = vector.broadcast %cst_635 : f32 to vector<16x64xf32>
    %611 = arith.maximumf %609, %610 : vector<16x64xf32>
    %c24_636 = arith.constant 24 : index
    %c0_637 = arith.constant 0 : index
    %612 = vector.load %arg8[%c24_636, %c0_637] : memref<78x64xf32, #tpu.memory_space<vmem>>, vector<1x64xf32>
    %c12_638 = arith.constant 12 : index
    %c0_639 = arith.constant 0 : index
    %613 = vector.load %arg14[%c12_638, %c0_639] : memref<40x128xf32, #tpu.memory_space<vmem>>, vector<16x64xf32>
    tpu.vector_store %arg14[%c12_638, %c0_639], %611 {strides = array<i32>} : memref<40x128xf32, #tpu.memory_space<vmem>>, vector<16x64xf32>,
    %c9_640 = arith.constant 9 : index
    %c64_641 = arith.constant 64 : index
    %614 = vector.load %arg14[%c9_640, %c64_641] : memref<40x128xf32, #tpu.memory_space<vmem>>, vector<16x64xf32>
    tpu.vector_store %arg14[%c9_640, %c64_641], %611 {strides = array<i32>} : memref<40x128xf32, #tpu.memory_space<vmem>>, vector<16x64xf32>,
    %cst_642 = arith.constant 0.000000e+00 : f32
    %615 = vector.broadcast %cst_642 : f32 to vector<3x64xf32>
    %c25_643 = arith.constant 25 : index
    %c64_644 = arith.constant 64 : index
    %616 = vector.load %arg14[%c25_643, %c64_644] : memref<40x128xf32, #tpu.memory_space<vmem>>, vector<3x64xf32>
    tpu.vector_store %arg14[%c25_643, %c64_644], %615 {strides = array<i32>} : memref<40x128xf32, #tpu.memory_space<vmem>>, vector<3x64xf32>,
    %c0_645 = arith.constant 0 : index
    %c0_646 = arith.constant 0 : index
    %617 = vector.load %arg14[%c0_645, %c0_646] : memref<40x128xf32, #tpu.memory_space<vmem>>, vector<16x128xf32>
    %c2_647 = arith.constant 2 : index
    %c0_648 = arith.constant 0 : index
    %c0_649 = arith.constant 0 : index
    %c0_650 = arith.constant 0 : index
    %618 = vector.load %arg7[%c2_647, %c0_648, %c0_649, %c0_650] : memref<8x5x128x64xf32, #tpu.memory_space<vmem>>, vector<1x1x128x64xf32>
    %619 = vector.shape_cast %618 : vector<1x1x128x64xf32> to vector<128x64xf32>
    %cst_651 = arith.constant dense<0.000000e+00> : vector<16x64xf32>
    %620 = tpu.matmul %617, %619, %cst_651 {dimension_numbers = #tpu.dot_dimension_numbers<[1], [0], [0], [1], [0, 0, 1, 1], [], []>} : vector<16x128xf32>, vector<128x64xf32>, vector<16x64xf32> -> vector<16x64xf32>
    %c6_652 = arith.constant 6 : index
    %c0_653 = arith.constant 0 : index
    %621 = vector.load %arg14[%c6_652, %c0_653] : memref<40x128xf32, #tpu.memory_space<vmem>>, vector<16x128xf32>
    %c2_654 = arith.constant 2 : index
    %c1_655 = arith.constant 1 : index
    %c0_656 = arith.constant 0 : index
    %c0_657 = arith.constant 0 : index
    %622 = vector.load %arg7[%c2_654, %c1_655, %c0_656, %c0_657] : memref<8x5x128x64xf32, #tpu.memory_space<vmem>>, vector<1x1x128x64xf32>
    %623 = vector.shape_cast %622 : vector<1x1x128x64xf32> to vector<128x64xf32>
    %cst_658 = arith.constant dense<0.000000e+00> : vector<16x64xf32>
    %624 = tpu.matmul %621, %623, %cst_658 {dimension_numbers = #tpu.dot_dimension_numbers<[1], [0], [0], [1], [0, 0, 1, 1], [], []>} : vector<16x128xf32>, vector<128x64xf32>, vector<16x64xf32> -> vector<16x64xf32>
    %625 = arith.addf %620, %624 : vector<16x64xf32>
    %c12_659 = arith.constant 12 : index
    %c0_660 = arith.constant 0 : index
    %626 = vector.load %arg14[%c12_659, %c0_660] : memref<40x128xf32, #tpu.memory_space<vmem>>, vector<16x128xf32>
    %c2_661 = arith.constant 2 : index
    %c2_662 = arith.constant 2 : index
    %c0_663 = arith.constant 0 : index
    %c0_664 = arith.constant 0 : index
    %627 = vector.load %arg7[%c2_661, %c2_662, %c0_663, %c0_664] : memref<8x5x128x64xf32, #tpu.memory_space<vmem>>, vector<1x1x128x64xf32>
    %628 = vector.shape_cast %627 : vector<1x1x128x64xf32> to vector<128x64xf32>
    %cst_665 = arith.constant dense<0.000000e+00> : vector<16x64xf32>
    %629 = tpu.matmul %626, %628, %cst_665 {dimension_numbers = #tpu.dot_dimension_numbers<[1], [0], [0], [1], [0, 0, 1, 1], [], []>} : vector<16x128xf32>, vector<128x64xf32>, vector<16x64xf32> -> vector<16x64xf32>
    %630 = arith.addf %625, %629 : vector<16x64xf32>
    %c18_666 = arith.constant 18 : index
    %c0_667 = arith.constant 0 : index
    %631 = vector.load %arg14[%c18_666, %c0_667] : memref<40x128xf32, #tpu.memory_space<vmem>>, vector<16x128xf32>
    %c2_668 = arith.constant 2 : index
    %c3_669 = arith.constant 3 : index
    %c0_670 = arith.constant 0 : index
    %c0_671 = arith.constant 0 : index
    %632 = vector.load %arg7[%c2_668, %c3_669, %c0_670, %c0_671] : memref<8x5x128x64xf32, #tpu.memory_space<vmem>>, vector<1x1x128x64xf32>
    %633 = vector.shape_cast %632 : vector<1x1x128x64xf32> to vector<128x64xf32>
    %cst_672 = arith.constant dense<0.000000e+00> : vector<16x64xf32>
    %634 = tpu.matmul %631, %633, %cst_672 {dimension_numbers = #tpu.dot_dimension_numbers<[1], [0], [0], [1], [0, 0, 1, 1], [], []>} : vector<16x128xf32>, vector<128x64xf32>, vector<16x64xf32> -> vector<16x64xf32>
    %635 = arith.addf %630, %634 : vector<16x64xf32>
    %c24_673 = arith.constant 24 : index
    %c0_674 = arith.constant 0 : index
    %636 = vector.load %arg14[%c24_673, %c0_674] : memref<40x128xf32, #tpu.memory_space<vmem>>, vector<16x128xf32>
    %c2_675 = arith.constant 2 : index
    %c4_676 = arith.constant 4 : index
    %c0_677 = arith.constant 0 : index
    %c0_678 = arith.constant 0 : index
    %637 = vector.load %arg7[%c2_675, %c4_676, %c0_677, %c0_678] : memref<8x5x128x64xf32, #tpu.memory_space<vmem>>, vector<1x1x128x64xf32>
    %638 = vector.shape_cast %637 : vector<1x1x128x64xf32> to vector<128x64xf32>
    %cst_679 = arith.constant dense<0.000000e+00> : vector<16x64xf32>
    %639 = tpu.matmul %636, %638, %cst_679 {dimension_numbers = #tpu.dot_dimension_numbers<[1], [0], [0], [1], [0, 0, 1, 1], [], []>} : vector<16x128xf32>, vector<128x64xf32>, vector<16x64xf32> -> vector<16x64xf32>
    %640 = arith.addf %635, %639 : vector<16x64xf32>
    %641 = vector.broadcast %612 : vector<1x64xf32> to vector<16x64xf32>
    %642 = arith.addf %640, %641 : vector<16x64xf32>
    %c49 = arith.constant 49 : index
    %c0_680 = arith.constant 0 : index
    %643 = vector.load %arg8[%c49, %c0_680] : memref<78x64xf32, #tpu.memory_space<vmem>>, vector<1x64xf32>
    %644 = vector.broadcast %643 : vector<1x64xf32> to vector<16x64xf32>
    %645 = arith.mulf %642, %644 : vector<16x64xf32>
    %c73 = arith.constant 73 : index
    %c0_681 = arith.constant 0 : index
    %646 = vector.load %arg8[%c73, %c0_681] : memref<78x64xf32, #tpu.memory_space<vmem>>, vector<1x64xf32>
    %647 = vector.broadcast %646 : vector<1x64xf32> to vector<16x64xf32>
    %648 = arith.addf %645, %647 : vector<16x64xf32>
    %cst_682 = arith.constant 0.000000e+00 : f32
    %649 = vector.broadcast %cst_682 : f32 to vector<16x64xf32>
    %650 = arith.maximumf %648, %649 : vector<16x64xf32>
    %c25_683 = arith.constant 25 : index
    %c0_684 = arith.constant 0 : index
    %651 = vector.load %arg8[%c25_683, %c0_684] : memref<78x64xf32, #tpu.memory_space<vmem>>, vector<1x64xf32>
    %c12_685 = arith.constant 12 : index
    %c0_686 = arith.constant 0 : index
    %652 = vector.load %arg14[%c12_685, %c0_686] : memref<40x128xf32, #tpu.memory_space<vmem>>, vector<16x64xf32>
    tpu.vector_store %arg14[%c12_685, %c0_686], %650 {strides = array<i32>} : memref<40x128xf32, #tpu.memory_space<vmem>>, vector<16x64xf32>,
    %c9_687 = arith.constant 9 : index
    %c64_688 = arith.constant 64 : index
    %653 = vector.load %arg14[%c9_687, %c64_688] : memref<40x128xf32, #tpu.memory_space<vmem>>, vector<16x64xf32>
    tpu.vector_store %arg14[%c9_687, %c64_688], %650 {strides = array<i32>} : memref<40x128xf32, #tpu.memory_space<vmem>>, vector<16x64xf32>,
    %cst_689 = arith.constant 0.000000e+00 : f32
    %654 = vector.broadcast %cst_689 : f32 to vector<3x64xf32>
    %c25_690 = arith.constant 25 : index
    %c64_691 = arith.constant 64 : index
    %655 = vector.load %arg14[%c25_690, %c64_691] : memref<40x128xf32, #tpu.memory_space<vmem>>, vector<3x64xf32>
    tpu.vector_store %arg14[%c25_690, %c64_691], %654 {strides = array<i32>} : memref<40x128xf32, #tpu.memory_space<vmem>>, vector<3x64xf32>,
    %c0_692 = arith.constant 0 : index
    %c0_693 = arith.constant 0 : index
    %656 = vector.load %arg14[%c0_692, %c0_693] : memref<40x128xf32, #tpu.memory_space<vmem>>, vector<16x128xf32>
    %c3_694 = arith.constant 3 : index
    %c0_695 = arith.constant 0 : index
    %c0_696 = arith.constant 0 : index
    %c0_697 = arith.constant 0 : index
    %657 = vector.load %arg7[%c3_694, %c0_695, %c0_696, %c0_697] : memref<8x5x128x64xf32, #tpu.memory_space<vmem>>, vector<1x1x128x64xf32>
    %658 = vector.shape_cast %657 : vector<1x1x128x64xf32> to vector<128x64xf32>
    %cst_698 = arith.constant dense<0.000000e+00> : vector<16x64xf32>
    %659 = tpu.matmul %656, %658, %cst_698 {dimension_numbers = #tpu.dot_dimension_numbers<[1], [0], [0], [1], [0, 0, 1, 1], [], []>} : vector<16x128xf32>, vector<128x64xf32>, vector<16x64xf32> -> vector<16x64xf32>
    %c6_699 = arith.constant 6 : index
    %c0_700 = arith.constant 0 : index
    %660 = vector.load %arg14[%c6_699, %c0_700] : memref<40x128xf32, #tpu.memory_space<vmem>>, vector<16x128xf32>
    %c3_701 = arith.constant 3 : index
    %c1_702 = arith.constant 1 : index
    %c0_703 = arith.constant 0 : index
    %c0_704 = arith.constant 0 : index
    %661 = vector.load %arg7[%c3_701, %c1_702, %c0_703, %c0_704] : memref<8x5x128x64xf32, #tpu.memory_space<vmem>>, vector<1x1x128x64xf32>
    %662 = vector.shape_cast %661 : vector<1x1x128x64xf32> to vector<128x64xf32>
    %cst_705 = arith.constant dense<0.000000e+00> : vector<16x64xf32>
    %663 = tpu.matmul %660, %662, %cst_705 {dimension_numbers = #tpu.dot_dimension_numbers<[1], [0], [0], [1], [0, 0, 1, 1], [], []>} : vector<16x128xf32>, vector<128x64xf32>, vector<16x64xf32> -> vector<16x64xf32>
    %664 = arith.addf %659, %663 : vector<16x64xf32>
    %c12_706 = arith.constant 12 : index
    %c0_707 = arith.constant 0 : index
    %665 = vector.load %arg14[%c12_706, %c0_707] : memref<40x128xf32, #tpu.memory_space<vmem>>, vector<16x128xf32>
    %c3_708 = arith.constant 3 : index
    %c2_709 = arith.constant 2 : index
    %c0_710 = arith.constant 0 : index
    %c0_711 = arith.constant 0 : index
    %666 = vector.load %arg7[%c3_708, %c2_709, %c0_710, %c0_711] : memref<8x5x128x64xf32, #tpu.memory_space<vmem>>, vector<1x1x128x64xf32>
    %667 = vector.shape_cast %666 : vector<1x1x128x64xf32> to vector<128x64xf32>
    %cst_712 = arith.constant dense<0.000000e+00> : vector<16x64xf32>
    %668 = tpu.matmul %665, %667, %cst_712 {dimension_numbers = #tpu.dot_dimension_numbers<[1], [0], [0], [1], [0, 0, 1, 1], [], []>} : vector<16x128xf32>, vector<128x64xf32>, vector<16x64xf32> -> vector<16x64xf32>
    %669 = arith.addf %664, %668 : vector<16x64xf32>
    %c18_713 = arith.constant 18 : index
    %c0_714 = arith.constant 0 : index
    %670 = vector.load %arg14[%c18_713, %c0_714] : memref<40x128xf32, #tpu.memory_space<vmem>>, vector<16x128xf32>
    %c3_715 = arith.constant 3 : index
    %c3_716 = arith.constant 3 : index
    %c0_717 = arith.constant 0 : index
    %c0_718 = arith.constant 0 : index
    %671 = vector.load %arg7[%c3_715, %c3_716, %c0_717, %c0_718] : memref<8x5x128x64xf32, #tpu.memory_space<vmem>>, vector<1x1x128x64xf32>
    %672 = vector.shape_cast %671 : vector<1x1x128x64xf32> to vector<128x64xf32>
    %cst_719 = arith.constant dense<0.000000e+00> : vector<16x64xf32>
    %673 = tpu.matmul %670, %672, %cst_719 {dimension_numbers = #tpu.dot_dimension_numbers<[1], [0], [0], [1], [0, 0, 1, 1], [], []>} : vector<16x128xf32>, vector<128x64xf32>, vector<16x64xf32> -> vector<16x64xf32>
    %674 = arith.addf %669, %673 : vector<16x64xf32>
    %c24_720 = arith.constant 24 : index
    %c0_721 = arith.constant 0 : index
    %675 = vector.load %arg14[%c24_720, %c0_721] : memref<40x128xf32, #tpu.memory_space<vmem>>, vector<16x128xf32>
    %c3_722 = arith.constant 3 : index
    %c4_723 = arith.constant 4 : index
    %c0_724 = arith.constant 0 : index
    %c0_725 = arith.constant 0 : index
    %676 = vector.load %arg7[%c3_722, %c4_723, %c0_724, %c0_725] : memref<8x5x128x64xf32, #tpu.memory_space<vmem>>, vector<1x1x128x64xf32>
    %677 = vector.shape_cast %676 : vector<1x1x128x64xf32> to vector<128x64xf32>
    %cst_726 = arith.constant dense<0.000000e+00> : vector<16x64xf32>
    %678 = tpu.matmul %675, %677, %cst_726 {dimension_numbers = #tpu.dot_dimension_numbers<[1], [0], [0], [1], [0, 0, 1, 1], [], []>} : vector<16x128xf32>, vector<128x64xf32>, vector<16x64xf32> -> vector<16x64xf32>
    %679 = arith.addf %674, %678 : vector<16x64xf32>
    %680 = vector.broadcast %651 : vector<1x64xf32> to vector<16x64xf32>
    %681 = arith.addf %679, %680 : vector<16x64xf32>
    %682 = arith.addf %603, %681 : vector<16x64xf32>
    %c50 = arith.constant 50 : index
    %c0_727 = arith.constant 0 : index
    %683 = vector.load %arg8[%c50, %c0_727] : memref<78x64xf32, #tpu.memory_space<vmem>>, vector<1x64xf32>
    %684 = vector.broadcast %683 : vector<1x64xf32> to vector<16x64xf32>
    %685 = arith.mulf %682, %684 : vector<16x64xf32>
    %c74 = arith.constant 74 : index
    %c0_728 = arith.constant 0 : index
    %686 = vector.load %arg8[%c74, %c0_728] : memref<78x64xf32, #tpu.memory_space<vmem>>, vector<1x64xf32>
    %687 = vector.broadcast %686 : vector<1x64xf32> to vector<16x64xf32>
    %688 = arith.addf %685, %687 : vector<16x64xf32>
    %cst_729 = arith.constant 0.000000e+00 : f32
    %689 = vector.broadcast %cst_729 : f32 to vector<16x64xf32>
    %690 = arith.maximumf %688, %689 : vector<16x64xf32>
    %c26_730 = arith.constant 26 : index
    %c0_731 = arith.constant 0 : index
    %691 = vector.load %arg8[%c26_730, %c0_731] : memref<78x64xf32, #tpu.memory_space<vmem>>, vector<1x64xf32>
    %c12_732 = arith.constant 12 : index
    %c0_733 = arith.constant 0 : index
    %692 = vector.load %arg14[%c12_732, %c0_733] : memref<40x128xf32, #tpu.memory_space<vmem>>, vector<16x64xf32>
    tpu.vector_store %arg14[%c12_732, %c0_733], %690 {strides = array<i32>} : memref<40x128xf32, #tpu.memory_space<vmem>>, vector<16x64xf32>,
    %c9_734 = arith.constant 9 : index
    %c64_735 = arith.constant 64 : index
    %693 = vector.load %arg14[%c9_734, %c64_735] : memref<40x128xf32, #tpu.memory_space<vmem>>, vector<16x64xf32>
    tpu.vector_store %arg14[%c9_734, %c64_735], %690 {strides = array<i32>} : memref<40x128xf32, #tpu.memory_space<vmem>>, vector<16x64xf32>,
    %cst_736 = arith.constant 0.000000e+00 : f32
    %694 = vector.broadcast %cst_736 : f32 to vector<3x64xf32>
    %c25_737 = arith.constant 25 : index
    %c64_738 = arith.constant 64 : index
    %695 = vector.load %arg14[%c25_737, %c64_738] : memref<40x128xf32, #tpu.memory_space<vmem>>, vector<3x64xf32>
    tpu.vector_store %arg14[%c25_737, %c64_738], %694 {strides = array<i32>} : memref<40x128xf32, #tpu.memory_space<vmem>>, vector<3x64xf32>,
    %c0_739 = arith.constant 0 : index
    %c0_740 = arith.constant 0 : index
    %696 = vector.load %arg14[%c0_739, %c0_740] : memref<40x128xf32, #tpu.memory_space<vmem>>, vector<16x128xf32>
    %c4_741 = arith.constant 4 : index
    %c0_742 = arith.constant 0 : index
    %c0_743 = arith.constant 0 : index
    %c0_744 = arith.constant 0 : index
    %697 = vector.load %arg7[%c4_741, %c0_742, %c0_743, %c0_744] : memref<8x5x128x64xf32, #tpu.memory_space<vmem>>, vector<1x1x128x64xf32>
    %698 = vector.shape_cast %697 : vector<1x1x128x64xf32> to vector<128x64xf32>
    %cst_745 = arith.constant dense<0.000000e+00> : vector<16x64xf32>
    %699 = tpu.matmul %696, %698, %cst_745 {dimension_numbers = #tpu.dot_dimension_numbers<[1], [0], [0], [1], [0, 0, 1, 1], [], []>} : vector<16x128xf32>, vector<128x64xf32>, vector<16x64xf32> -> vector<16x64xf32>
    %c6_746 = arith.constant 6 : index
    %c0_747 = arith.constant 0 : index
    %700 = vector.load %arg14[%c6_746, %c0_747] : memref<40x128xf32, #tpu.memory_space<vmem>>, vector<16x128xf32>
    %c4_748 = arith.constant 4 : index
    %c1_749 = arith.constant 1 : index
    %c0_750 = arith.constant 0 : index
    %c0_751 = arith.constant 0 : index
    %701 = vector.load %arg7[%c4_748, %c1_749, %c0_750, %c0_751] : memref<8x5x128x64xf32, #tpu.memory_space<vmem>>, vector<1x1x128x64xf32>
    %702 = vector.shape_cast %701 : vector<1x1x128x64xf32> to vector<128x64xf32>
    %cst_752 = arith.constant dense<0.000000e+00> : vector<16x64xf32>
    %703 = tpu.matmul %700, %702, %cst_752 {dimension_numbers = #tpu.dot_dimension_numbers<[1], [0], [0], [1], [0, 0, 1, 1], [], []>} : vector<16x128xf32>, vector<128x64xf32>, vector<16x64xf32> -> vector<16x64xf32>
    %704 = arith.addf %699, %703 : vector<16x64xf32>
    %c12_753 = arith.constant 12 : index
    %c0_754 = arith.constant 0 : index
    %705 = vector.load %arg14[%c12_753, %c0_754] : memref<40x128xf32, #tpu.memory_space<vmem>>, vector<16x128xf32>
    %c4_755 = arith.constant 4 : index
    %c2_756 = arith.constant 2 : index
    %c0_757 = arith.constant 0 : index
    %c0_758 = arith.constant 0 : index
    %706 = vector.load %arg7[%c4_755, %c2_756, %c0_757, %c0_758] : memref<8x5x128x64xf32, #tpu.memory_space<vmem>>, vector<1x1x128x64xf32>
    %707 = vector.shape_cast %706 : vector<1x1x128x64xf32> to vector<128x64xf32>
    %cst_759 = arith.constant dense<0.000000e+00> : vector<16x64xf32>
    %708 = tpu.matmul %705, %707, %cst_759 {dimension_numbers = #tpu.dot_dimension_numbers<[1], [0], [0], [1], [0, 0, 1, 1], [], []>} : vector<16x128xf32>, vector<128x64xf32>, vector<16x64xf32> -> vector<16x64xf32>
    %709 = arith.addf %704, %708 : vector<16x64xf32>
    %c18_760 = arith.constant 18 : index
    %c0_761 = arith.constant 0 : index
    %710 = vector.load %arg14[%c18_760, %c0_761] : memref<40x128xf32, #tpu.memory_space<vmem>>, vector<16x128xf32>
    %c4_762 = arith.constant 4 : index
    %c3_763 = arith.constant 3 : index
    %c0_764 = arith.constant 0 : index
    %c0_765 = arith.constant 0 : index
    %711 = vector.load %arg7[%c4_762, %c3_763, %c0_764, %c0_765] : memref<8x5x128x64xf32, #tpu.memory_space<vmem>>, vector<1x1x128x64xf32>
    %712 = vector.shape_cast %711 : vector<1x1x128x64xf32> to vector<128x64xf32>
    %cst_766 = arith.constant dense<0.000000e+00> : vector<16x64xf32>
    %713 = tpu.matmul %710, %712, %cst_766 {dimension_numbers = #tpu.dot_dimension_numbers<[1], [0], [0], [1], [0, 0, 1, 1], [], []>} : vector<16x128xf32>, vector<128x64xf32>, vector<16x64xf32> -> vector<16x64xf32>
    %714 = arith.addf %709, %713 : vector<16x64xf32>
    %c24_767 = arith.constant 24 : index
    %c0_768 = arith.constant 0 : index
    %715 = vector.load %arg14[%c24_767, %c0_768] : memref<40x128xf32, #tpu.memory_space<vmem>>, vector<16x128xf32>
    %c4_769 = arith.constant 4 : index
    %c4_770 = arith.constant 4 : index
    %c0_771 = arith.constant 0 : index
    %c0_772 = arith.constant 0 : index
    %716 = vector.load %arg7[%c4_769, %c4_770, %c0_771, %c0_772] : memref<8x5x128x64xf32, #tpu.memory_space<vmem>>, vector<1x1x128x64xf32>
    %717 = vector.shape_cast %716 : vector<1x1x128x64xf32> to vector<128x64xf32>
    %cst_773 = arith.constant dense<0.000000e+00> : vector<16x64xf32>
    %718 = tpu.matmul %715, %717, %cst_773 {dimension_numbers = #tpu.dot_dimension_numbers<[1], [0], [0], [1], [0, 0, 1, 1], [], []>} : vector<16x128xf32>, vector<128x64xf32>, vector<16x64xf32> -> vector<16x64xf32>
    %719 = arith.addf %714, %718 : vector<16x64xf32>
    %720 = vector.broadcast %691 : vector<1x64xf32> to vector<16x64xf32>
    %721 = arith.addf %719, %720 : vector<16x64xf32>
    %c51 = arith.constant 51 : index
    %c0_774 = arith.constant 0 : index
    %722 = vector.load %arg8[%c51, %c0_774] : memref<78x64xf32, #tpu.memory_space<vmem>>, vector<1x64xf32>
    %723 = vector.broadcast %722 : vector<1x64xf32> to vector<16x64xf32>
    %724 = arith.mulf %721, %723 : vector<16x64xf32>
    %c75 = arith.constant 75 : index
    %c0_775 = arith.constant 0 : index
    %725 = vector.load %arg8[%c75, %c0_775] : memref<78x64xf32, #tpu.memory_space<vmem>>, vector<1x64xf32>
    %726 = vector.broadcast %725 : vector<1x64xf32> to vector<16x64xf32>
    %727 = arith.addf %724, %726 : vector<16x64xf32>
    %cst_776 = arith.constant 0.000000e+00 : f32
    %728 = vector.broadcast %cst_776 : f32 to vector<16x64xf32>
    %729 = arith.maximumf %727, %728 : vector<16x64xf32>
    %c27_777 = arith.constant 27 : index
    %c0_778 = arith.constant 0 : index
    %730 = vector.load %arg8[%c27_777, %c0_778] : memref<78x64xf32, #tpu.memory_space<vmem>>, vector<1x64xf32>
    %c12_779 = arith.constant 12 : index
    %c0_780 = arith.constant 0 : index
    %731 = vector.load %arg14[%c12_779, %c0_780] : memref<40x128xf32, #tpu.memory_space<vmem>>, vector<16x64xf32>
    tpu.vector_store %arg14[%c12_779, %c0_780], %729 {strides = array<i32>} : memref<40x128xf32, #tpu.memory_space<vmem>>, vector<16x64xf32>,
    %c9_781 = arith.constant 9 : index
    %c64_782 = arith.constant 64 : index
    %732 = vector.load %arg14[%c9_781, %c64_782] : memref<40x128xf32, #tpu.memory_space<vmem>>, vector<16x64xf32>
    tpu.vector_store %arg14[%c9_781, %c64_782], %729 {strides = array<i32>} : memref<40x128xf32, #tpu.memory_space<vmem>>, vector<16x64xf32>,
    %cst_783 = arith.constant 0.000000e+00 : f32
    %733 = vector.broadcast %cst_783 : f32 to vector<3x64xf32>
    %c25_784 = arith.constant 25 : index
    %c64_785 = arith.constant 64 : index
    %734 = vector.load %arg14[%c25_784, %c64_785] : memref<40x128xf32, #tpu.memory_space<vmem>>, vector<3x64xf32>
    tpu.vector_store %arg14[%c25_784, %c64_785], %733 {strides = array<i32>} : memref<40x128xf32, #tpu.memory_space<vmem>>, vector<3x64xf32>,
    %c0_786 = arith.constant 0 : index
    %c0_787 = arith.constant 0 : index
    %735 = vector.load %arg14[%c0_786, %c0_787] : memref<40x128xf32, #tpu.memory_space<vmem>>, vector<16x128xf32>
    %c5_788 = arith.constant 5 : index
    %c0_789 = arith.constant 0 : index
    %c0_790 = arith.constant 0 : index
    %c0_791 = arith.constant 0 : index
    %736 = vector.load %arg7[%c5_788, %c0_789, %c0_790, %c0_791] : memref<8x5x128x64xf32, #tpu.memory_space<vmem>>, vector<1x1x128x64xf32>
    %737 = vector.shape_cast %736 : vector<1x1x128x64xf32> to vector<128x64xf32>
    %cst_792 = arith.constant dense<0.000000e+00> : vector<16x64xf32>
    %738 = tpu.matmul %735, %737, %cst_792 {dimension_numbers = #tpu.dot_dimension_numbers<[1], [0], [0], [1], [0, 0, 1, 1], [], []>} : vector<16x128xf32>, vector<128x64xf32>, vector<16x64xf32> -> vector<16x64xf32>
    %c6_793 = arith.constant 6 : index
    %c0_794 = arith.constant 0 : index
    %739 = vector.load %arg14[%c6_793, %c0_794] : memref<40x128xf32, #tpu.memory_space<vmem>>, vector<16x128xf32>
    %c5_795 = arith.constant 5 : index
    %c1_796 = arith.constant 1 : index
    %c0_797 = arith.constant 0 : index
    %c0_798 = arith.constant 0 : index
    %740 = vector.load %arg7[%c5_795, %c1_796, %c0_797, %c0_798] : memref<8x5x128x64xf32, #tpu.memory_space<vmem>>, vector<1x1x128x64xf32>
    %741 = vector.shape_cast %740 : vector<1x1x128x64xf32> to vector<128x64xf32>
    %cst_799 = arith.constant dense<0.000000e+00> : vector<16x64xf32>
    %742 = tpu.matmul %739, %741, %cst_799 {dimension_numbers = #tpu.dot_dimension_numbers<[1], [0], [0], [1], [0, 0, 1, 1], [], []>} : vector<16x128xf32>, vector<128x64xf32>, vector<16x64xf32> -> vector<16x64xf32>
    %743 = arith.addf %738, %742 : vector<16x64xf32>
    %c12_800 = arith.constant 12 : index
    %c0_801 = arith.constant 0 : index
    %744 = vector.load %arg14[%c12_800, %c0_801] : memref<40x128xf32, #tpu.memory_space<vmem>>, vector<16x128xf32>
    %c5_802 = arith.constant 5 : index
    %c2_803 = arith.constant 2 : index
    %c0_804 = arith.constant 0 : index
    %c0_805 = arith.constant 0 : index
    %745 = vector.load %arg7[%c5_802, %c2_803, %c0_804, %c0_805] : memref<8x5x128x64xf32, #tpu.memory_space<vmem>>, vector<1x1x128x64xf32>
    %746 = vector.shape_cast %745 : vector<1x1x128x64xf32> to vector<128x64xf32>
    %cst_806 = arith.constant dense<0.000000e+00> : vector<16x64xf32>
    %747 = tpu.matmul %744, %746, %cst_806 {dimension_numbers = #tpu.dot_dimension_numbers<[1], [0], [0], [1], [0, 0, 1, 1], [], []>} : vector<16x128xf32>, vector<128x64xf32>, vector<16x64xf32> -> vector<16x64xf32>
    %748 = arith.addf %743, %747 : vector<16x64xf32>
    %c18_807 = arith.constant 18 : index
    %c0_808 = arith.constant 0 : index
    %749 = vector.load %arg14[%c18_807, %c0_808] : memref<40x128xf32, #tpu.memory_space<vmem>>, vector<16x128xf32>
    %c5_809 = arith.constant 5 : index
    %c3_810 = arith.constant 3 : index
    %c0_811 = arith.constant 0 : index
    %c0_812 = arith.constant 0 : index
    %750 = vector.load %arg7[%c5_809, %c3_810, %c0_811, %c0_812] : memref<8x5x128x64xf32, #tpu.memory_space<vmem>>, vector<1x1x128x64xf32>
    %751 = vector.shape_cast %750 : vector<1x1x128x64xf32> to vector<128x64xf32>
    %cst_813 = arith.constant dense<0.000000e+00> : vector<16x64xf32>
    %752 = tpu.matmul %749, %751, %cst_813 {dimension_numbers = #tpu.dot_dimension_numbers<[1], [0], [0], [1], [0, 0, 1, 1], [], []>} : vector<16x128xf32>, vector<128x64xf32>, vector<16x64xf32> -> vector<16x64xf32>
    %753 = arith.addf %748, %752 : vector<16x64xf32>
    %c24_814 = arith.constant 24 : index
    %c0_815 = arith.constant 0 : index
    %754 = vector.load %arg14[%c24_814, %c0_815] : memref<40x128xf32, #tpu.memory_space<vmem>>, vector<16x128xf32>
    %c5_816 = arith.constant 5 : index
    %c4_817 = arith.constant 4 : index
    %c0_818 = arith.constant 0 : index
    %c0_819 = arith.constant 0 : index
    %755 = vector.load %arg7[%c5_816, %c4_817, %c0_818, %c0_819] : memref<8x5x128x64xf32, #tpu.memory_space<vmem>>, vector<1x1x128x64xf32>
    %756 = vector.shape_cast %755 : vector<1x1x128x64xf32> to vector<128x64xf32>
    %cst_820 = arith.constant dense<0.000000e+00> : vector<16x64xf32>
    %757 = tpu.matmul %754, %756, %cst_820 {dimension_numbers = #tpu.dot_dimension_numbers<[1], [0], [0], [1], [0, 0, 1, 1], [], []>} : vector<16x128xf32>, vector<128x64xf32>, vector<16x64xf32> -> vector<16x64xf32>
    %758 = arith.addf %753, %757 : vector<16x64xf32>
    %759 = vector.broadcast %730 : vector<1x64xf32> to vector<16x64xf32>
    %760 = arith.addf %758, %759 : vector<16x64xf32>
    %761 = arith.addf %682, %760 : vector<16x64xf32>
    %c52 = arith.constant 52 : index
    %c0_821 = arith.constant 0 : index
    %762 = vector.load %arg8[%c52, %c0_821] : memref<78x64xf32, #tpu.memory_space<vmem>>, vector<1x64xf32>
    %763 = vector.broadcast %762 : vector<1x64xf32> to vector<16x64xf32>
    %764 = arith.mulf %761, %763 : vector<16x64xf32>
    %c76 = arith.constant 76 : index
    %c0_822 = arith.constant 0 : index
    %765 = vector.load %arg8[%c76, %c0_822] : memref<78x64xf32, #tpu.memory_space<vmem>>, vector<1x64xf32>
    %766 = vector.broadcast %765 : vector<1x64xf32> to vector<16x64xf32>
    %767 = arith.addf %764, %766 : vector<16x64xf32>
    %cst_823 = arith.constant 0.000000e+00 : f32
    %768 = vector.broadcast %cst_823 : f32 to vector<16x64xf32>
    %769 = arith.maximumf %767, %768 : vector<16x64xf32>
    %c28_824 = arith.constant 28 : index
    %c0_825 = arith.constant 0 : index
    %770 = vector.load %arg8[%c28_824, %c0_825] : memref<78x64xf32, #tpu.memory_space<vmem>>, vector<1x64xf32>
    %c12_826 = arith.constant 12 : index
    %c0_827 = arith.constant 0 : index
    %771 = vector.load %arg14[%c12_826, %c0_827] : memref<40x128xf32, #tpu.memory_space<vmem>>, vector<16x64xf32>
    tpu.vector_store %arg14[%c12_826, %c0_827], %769 {strides = array<i32>} : memref<40x128xf32, #tpu.memory_space<vmem>>, vector<16x64xf32>,
    %c9_828 = arith.constant 9 : index
    %c64_829 = arith.constant 64 : index
    %772 = vector.load %arg14[%c9_828, %c64_829] : memref<40x128xf32, #tpu.memory_space<vmem>>, vector<16x64xf32>
    tpu.vector_store %arg14[%c9_828, %c64_829], %769 {strides = array<i32>} : memref<40x128xf32, #tpu.memory_space<vmem>>, vector<16x64xf32>,
    %cst_830 = arith.constant 0.000000e+00 : f32
    %773 = vector.broadcast %cst_830 : f32 to vector<3x64xf32>
    %c25_831 = arith.constant 25 : index
    %c64_832 = arith.constant 64 : index
    %774 = vector.load %arg14[%c25_831, %c64_832] : memref<40x128xf32, #tpu.memory_space<vmem>>, vector<3x64xf32>
    tpu.vector_store %arg14[%c25_831, %c64_832], %773 {strides = array<i32>} : memref<40x128xf32, #tpu.memory_space<vmem>>, vector<3x64xf32>,
    %c0_833 = arith.constant 0 : index
    %c0_834 = arith.constant 0 : index
    %775 = vector.load %arg14[%c0_833, %c0_834] : memref<40x128xf32, #tpu.memory_space<vmem>>, vector<16x128xf32>
    %c6_835 = arith.constant 6 : index
    %c0_836 = arith.constant 0 : index
    %c0_837 = arith.constant 0 : index
    %c0_838 = arith.constant 0 : index
    %776 = vector.load %arg7[%c6_835, %c0_836, %c0_837, %c0_838] : memref<8x5x128x64xf32, #tpu.memory_space<vmem>>, vector<1x1x128x64xf32>
    %777 = vector.shape_cast %776 : vector<1x1x128x64xf32> to vector<128x64xf32>
    %cst_839 = arith.constant dense<0.000000e+00> : vector<16x64xf32>
    %778 = tpu.matmul %775, %777, %cst_839 {dimension_numbers = #tpu.dot_dimension_numbers<[1], [0], [0], [1], [0, 0, 1, 1], [], []>} : vector<16x128xf32>, vector<128x64xf32>, vector<16x64xf32> -> vector<16x64xf32>
    %c6_840 = arith.constant 6 : index
    %c0_841 = arith.constant 0 : index
    %779 = vector.load %arg14[%c6_840, %c0_841] : memref<40x128xf32, #tpu.memory_space<vmem>>, vector<16x128xf32>
    %c6_842 = arith.constant 6 : index
    %c1_843 = arith.constant 1 : index
    %c0_844 = arith.constant 0 : index
    %c0_845 = arith.constant 0 : index
    %780 = vector.load %arg7[%c6_842, %c1_843, %c0_844, %c0_845] : memref<8x5x128x64xf32, #tpu.memory_space<vmem>>, vector<1x1x128x64xf32>
    %781 = vector.shape_cast %780 : vector<1x1x128x64xf32> to vector<128x64xf32>
    %cst_846 = arith.constant dense<0.000000e+00> : vector<16x64xf32>
    %782 = tpu.matmul %779, %781, %cst_846 {dimension_numbers = #tpu.dot_dimension_numbers<[1], [0], [0], [1], [0, 0, 1, 1], [], []>} : vector<16x128xf32>, vector<128x64xf32>, vector<16x64xf32> -> vector<16x64xf32>
    %783 = arith.addf %778, %782 : vector<16x64xf32>
    %c12_847 = arith.constant 12 : index
    %c0_848 = arith.constant 0 : index
    %784 = vector.load %arg14[%c12_847, %c0_848] : memref<40x128xf32, #tpu.memory_space<vmem>>, vector<16x128xf32>
    %c6_849 = arith.constant 6 : index
    %c2_850 = arith.constant 2 : index
    %c0_851 = arith.constant 0 : index
    %c0_852 = arith.constant 0 : index
    %785 = vector.load %arg7[%c6_849, %c2_850, %c0_851, %c0_852] : memref<8x5x128x64xf32, #tpu.memory_space<vmem>>, vector<1x1x128x64xf32>
    %786 = vector.shape_cast %785 : vector<1x1x128x64xf32> to vector<128x64xf32>
    %cst_853 = arith.constant dense<0.000000e+00> : vector<16x64xf32>
    %787 = tpu.matmul %784, %786, %cst_853 {dimension_numbers = #tpu.dot_dimension_numbers<[1], [0], [0], [1], [0, 0, 1, 1], [], []>} : vector<16x128xf32>, vector<128x64xf32>, vector<16x64xf32> -> vector<16x64xf32>
    %788 = arith.addf %783, %787 : vector<16x64xf32>
    %c18_854 = arith.constant 18 : index
    %c0_855 = arith.constant 0 : index
    %789 = vector.load %arg14[%c18_854, %c0_855] : memref<40x128xf32, #tpu.memory_space<vmem>>, vector<16x128xf32>
    %c6_856 = arith.constant 6 : index
    %c3_857 = arith.constant 3 : index
    %c0_858 = arith.constant 0 : index
    %c0_859 = arith.constant 0 : index
    %790 = vector.load %arg7[%c6_856, %c3_857, %c0_858, %c0_859] : memref<8x5x128x64xf32, #tpu.memory_space<vmem>>, vector<1x1x128x64xf32>
    %791 = vector.shape_cast %790 : vector<1x1x128x64xf32> to vector<128x64xf32>
    %cst_860 = arith.constant dense<0.000000e+00> : vector<16x64xf32>
    %792 = tpu.matmul %789, %791, %cst_860 {dimension_numbers = #tpu.dot_dimension_numbers<[1], [0], [0], [1], [0, 0, 1, 1], [], []>} : vector<16x128xf32>, vector<128x64xf32>, vector<16x64xf32> -> vector<16x64xf32>
    %793 = arith.addf %788, %792 : vector<16x64xf32>
    %c24_861 = arith.constant 24 : index
    %c0_862 = arith.constant 0 : index
    %794 = vector.load %arg14[%c24_861, %c0_862] : memref<40x128xf32, #tpu.memory_space<vmem>>, vector<16x128xf32>
    %c6_863 = arith.constant 6 : index
    %c4_864 = arith.constant 4 : index
    %c0_865 = arith.constant 0 : index
    %c0_866 = arith.constant 0 : index
    %795 = vector.load %arg7[%c6_863, %c4_864, %c0_865, %c0_866] : memref<8x5x128x64xf32, #tpu.memory_space<vmem>>, vector<1x1x128x64xf32>
    %796 = vector.shape_cast %795 : vector<1x1x128x64xf32> to vector<128x64xf32>
    %cst_867 = arith.constant dense<0.000000e+00> : vector<16x64xf32>
    %797 = tpu.matmul %794, %796, %cst_867 {dimension_numbers = #tpu.dot_dimension_numbers<[1], [0], [0], [1], [0, 0, 1, 1], [], []>} : vector<16x128xf32>, vector<128x64xf32>, vector<16x64xf32> -> vector<16x64xf32>
    %798 = arith.addf %793, %797 : vector<16x64xf32>
    %799 = vector.broadcast %770 : vector<1x64xf32> to vector<16x64xf32>
    %800 = arith.addf %798, %799 : vector<16x64xf32>
    %c53 = arith.constant 53 : index
    %c0_868 = arith.constant 0 : index
    %801 = vector.load %arg8[%c53, %c0_868] : memref<78x64xf32, #tpu.memory_space<vmem>>, vector<1x64xf32>
    %802 = vector.broadcast %801 : vector<1x64xf32> to vector<16x64xf32>
    %803 = arith.mulf %800, %802 : vector<16x64xf32>
    %c77 = arith.constant 77 : index
    %c0_869 = arith.constant 0 : index
    %804 = vector.load %arg8[%c77, %c0_869] : memref<78x64xf32, #tpu.memory_space<vmem>>, vector<1x64xf32>
    %805 = vector.broadcast %804 : vector<1x64xf32> to vector<16x64xf32>
    %806 = arith.addf %803, %805 : vector<16x64xf32>
    %cst_870 = arith.constant 0.000000e+00 : f32
    %807 = vector.broadcast %cst_870 : f32 to vector<16x64xf32>
    %808 = arith.maximumf %806, %807 : vector<16x64xf32>
    %c29 = arith.constant 29 : index
    %c0_871 = arith.constant 0 : index
    %809 = vector.load %arg8[%c29, %c0_871] : memref<78x64xf32, #tpu.memory_space<vmem>>, vector<1x64xf32>
    %c12_872 = arith.constant 12 : index
    %c0_873 = arith.constant 0 : index
    %810 = vector.load %arg14[%c12_872, %c0_873] : memref<40x128xf32, #tpu.memory_space<vmem>>, vector<16x64xf32>
    tpu.vector_store %arg14[%c12_872, %c0_873], %808 {strides = array<i32>} : memref<40x128xf32, #tpu.memory_space<vmem>>, vector<16x64xf32>,
    %c9_874 = arith.constant 9 : index
    %c64_875 = arith.constant 64 : index
    %811 = vector.load %arg14[%c9_874, %c64_875] : memref<40x128xf32, #tpu.memory_space<vmem>>, vector<16x64xf32>
    tpu.vector_store %arg14[%c9_874, %c64_875], %808 {strides = array<i32>} : memref<40x128xf32, #tpu.memory_space<vmem>>, vector<16x64xf32>,
    %cst_876 = arith.constant 0.000000e+00 : f32
    %812 = vector.broadcast %cst_876 : f32 to vector<3x64xf32>
    %c25_877 = arith.constant 25 : index
    %c64_878 = arith.constant 64 : index
    %813 = vector.load %arg14[%c25_877, %c64_878] : memref<40x128xf32, #tpu.memory_space<vmem>>, vector<3x64xf32>
    tpu.vector_store %arg14[%c25_877, %c64_878], %812 {strides = array<i32>} : memref<40x128xf32, #tpu.memory_space<vmem>>, vector<3x64xf32>,
    %c0_879 = arith.constant 0 : index
    %c0_880 = arith.constant 0 : index
    %814 = vector.load %arg14[%c0_879, %c0_880] : memref<40x128xf32, #tpu.memory_space<vmem>>, vector<16x128xf32>
    %c7_881 = arith.constant 7 : index
    %c0_882 = arith.constant 0 : index
    %c0_883 = arith.constant 0 : index
    %c0_884 = arith.constant 0 : index
    %815 = vector.load %arg7[%c7_881, %c0_882, %c0_883, %c0_884] : memref<8x5x128x64xf32, #tpu.memory_space<vmem>>, vector<1x1x128x64xf32>
    %816 = vector.shape_cast %815 : vector<1x1x128x64xf32> to vector<128x64xf32>
    %cst_885 = arith.constant dense<0.000000e+00> : vector<16x64xf32>
    %817 = tpu.matmul %814, %816, %cst_885 {dimension_numbers = #tpu.dot_dimension_numbers<[1], [0], [0], [1], [0, 0, 1, 1], [], []>} : vector<16x128xf32>, vector<128x64xf32>, vector<16x64xf32> -> vector<16x64xf32>
    %c6_886 = arith.constant 6 : index
    %c0_887 = arith.constant 0 : index
    %818 = vector.load %arg14[%c6_886, %c0_887] : memref<40x128xf32, #tpu.memory_space<vmem>>, vector<16x128xf32>
    %c7_888 = arith.constant 7 : index
    %c1_889 = arith.constant 1 : index
    %c0_890 = arith.constant 0 : index
    %c0_891 = arith.constant 0 : index
    %819 = vector.load %arg7[%c7_888, %c1_889, %c0_890, %c0_891] : memref<8x5x128x64xf32, #tpu.memory_space<vmem>>, vector<1x1x128x64xf32>
    %820 = vector.shape_cast %819 : vector<1x1x128x64xf32> to vector<128x64xf32>
    %cst_892 = arith.constant dense<0.000000e+00> : vector<16x64xf32>
    %821 = tpu.matmul %818, %820, %cst_892 {dimension_numbers = #tpu.dot_dimension_numbers<[1], [0], [0], [1], [0, 0, 1, 1], [], []>} : vector<16x128xf32>, vector<128x64xf32>, vector<16x64xf32> -> vector<16x64xf32>
    %822 = arith.addf %817, %821 : vector<16x64xf32>
    %c12_893 = arith.constant 12 : index
    %c0_894 = arith.constant 0 : index
    %823 = vector.load %arg14[%c12_893, %c0_894] : memref<40x128xf32, #tpu.memory_space<vmem>>, vector<16x128xf32>
    %c7_895 = arith.constant 7 : index
    %c2_896 = arith.constant 2 : index
    %c0_897 = arith.constant 0 : index
    %c0_898 = arith.constant 0 : index
    %824 = vector.load %arg7[%c7_895, %c2_896, %c0_897, %c0_898] : memref<8x5x128x64xf32, #tpu.memory_space<vmem>>, vector<1x1x128x64xf32>
    %825 = vector.shape_cast %824 : vector<1x1x128x64xf32> to vector<128x64xf32>
    %cst_899 = arith.constant dense<0.000000e+00> : vector<16x64xf32>
    %826 = tpu.matmul %823, %825, %cst_899 {dimension_numbers = #tpu.dot_dimension_numbers<[1], [0], [0], [1], [0, 0, 1, 1], [], []>} : vector<16x128xf32>, vector<128x64xf32>, vector<16x64xf32> -> vector<16x64xf32>
    %827 = arith.addf %822, %826 : vector<16x64xf32>
    %c18_900 = arith.constant 18 : index
    %c0_901 = arith.constant 0 : index
    %828 = vector.load %arg14[%c18_900, %c0_901] : memref<40x128xf32, #tpu.memory_space<vmem>>, vector<16x128xf32>
    %c7_902 = arith.constant 7 : index
    %c3_903 = arith.constant 3 : index
    %c0_904 = arith.constant 0 : index
    %c0_905 = arith.constant 0 : index
    %829 = vector.load %arg7[%c7_902, %c3_903, %c0_904, %c0_905] : memref<8x5x128x64xf32, #tpu.memory_space<vmem>>, vector<1x1x128x64xf32>
    %830 = vector.shape_cast %829 : vector<1x1x128x64xf32> to vector<128x64xf32>
    %cst_906 = arith.constant dense<0.000000e+00> : vector<16x64xf32>
    %831 = tpu.matmul %828, %830, %cst_906 {dimension_numbers = #tpu.dot_dimension_numbers<[1], [0], [0], [1], [0, 0, 1, 1], [], []>} : vector<16x128xf32>, vector<128x64xf32>, vector<16x64xf32> -> vector<16x64xf32>
    %832 = arith.addf %827, %831 : vector<16x64xf32>
    %c24_907 = arith.constant 24 : index
    %c0_908 = arith.constant 0 : index
    %833 = vector.load %arg14[%c24_907, %c0_908] : memref<40x128xf32, #tpu.memory_space<vmem>>, vector<16x128xf32>
    %c7_909 = arith.constant 7 : index
    %c4_910 = arith.constant 4 : index
    %c0_911 = arith.constant 0 : index
    %c0_912 = arith.constant 0 : index
    %834 = vector.load %arg7[%c7_909, %c4_910, %c0_911, %c0_912] : memref<8x5x128x64xf32, #tpu.memory_space<vmem>>, vector<1x1x128x64xf32>
    %835 = vector.shape_cast %834 : vector<1x1x128x64xf32> to vector<128x64xf32>
    %cst_913 = arith.constant dense<0.000000e+00> : vector<16x64xf32>
    %836 = tpu.matmul %833, %835, %cst_913 {dimension_numbers = #tpu.dot_dimension_numbers<[1], [0], [0], [1], [0, 0, 1, 1], [], []>} : vector<16x128xf32>, vector<128x64xf32>, vector<16x64xf32> -> vector<16x64xf32>
    %837 = arith.addf %832, %836 : vector<16x64xf32>
    %838 = vector.broadcast %809 : vector<1x64xf32> to vector<16x64xf32>
    %839 = arith.addf %837, %838 : vector<16x64xf32>
    %840 = arith.addf %761, %839 : vector<16x64xf32>
    %c3_914 = arith.constant 3 : index
    %c0_915 = arith.constant 0 : index
    %c0_916 = arith.constant 0 : index
    %841 = vector.load %arg5[%c3_914, %c0_915, %c0_916] : memref<5x64x64xf32, #tpu.memory_space<vmem>>, vector<1x64x64xf32>
    %842 = vector.shape_cast %841 : vector<1x64x64xf32> to vector<64x64xf32>
    %c4_917 = arith.constant 4 : index
    %c0_918 = arith.constant 0 : index
    %843 = vector.load %arg8[%c4_917, %c0_918] : memref<78x64xf32, #tpu.memory_space<vmem>>, vector<1x64xf32>
    %cst_919 = arith.constant dense<0.000000e+00> : vector<16x64xf32>
    %844 = tpu.matmul %840, %842, %cst_919 {dimension_numbers = #tpu.dot_dimension_numbers<[1], [0], [0], [1], [0, 0, 1, 1], [], []>} : vector<16x64xf32>, vector<64x64xf32>, vector<16x64xf32> -> vector<16x64xf32>
    %845 = vector.broadcast %843 : vector<1x64xf32> to vector<16x64xf32>
    %846 = arith.addf %844, %845 : vector<16x64xf32>
    %847 = arith.addf %846, %524 : vector<16x64xf32>
    %c4_920 = arith.constant 4 : index
    %c0_921 = arith.constant 0 : index
    %c0_922 = arith.constant 0 : index
    %848 = vector.load %arg5[%c4_920, %c0_921, %c0_922] : memref<5x64x64xf32, #tpu.memory_space<vmem>>, vector<1x64x64xf32>
    %849 = vector.shape_cast %848 : vector<1x64x64xf32> to vector<64x64xf32>
    %c5_923 = arith.constant 5 : index
    %c0_924 = arith.constant 0 : index
    %850 = vector.load %arg8[%c5_923, %c0_924] : memref<78x64xf32, #tpu.memory_space<vmem>>, vector<1x64xf32>
    %cst_925 = arith.constant dense<0.000000e+00> : vector<16x64xf32>
    %851 = tpu.matmul %847, %849, %cst_925 {dimension_numbers = #tpu.dot_dimension_numbers<[1], [0], [0], [1], [0, 0, 1, 1], [], []>} : vector<16x64xf32>, vector<64x64xf32>, vector<16x64xf32> -> vector<16x64xf32>
    %852 = vector.broadcast %850 : vector<1x64xf32> to vector<16x64xf32>
    %853 = arith.addf %851, %852 : vector<16x64xf32>
    %cst_926 = arith.constant dense<0xFF800000> : vector<64xf32>
    %854 = vector.multi_reduction <maximumf>, %853, %cst_926 [0] : vector<16x64xf32> to vector<64xf32>
    %855 = vector.shape_cast %854 : vector<64xf32> to vector<1x64xf32>
    %c0_927 = arith.constant 0 : index
    %c0_928 = arith.constant 0 : index
    %856 = vector.load %arg9[%c0_927, %c0_928] : memref<64x128xf32, #tpu.memory_space<vmem>>, vector<64x128xf32>
    %cst_929 = arith.constant dense<0.000000e+00> : vector<1x128xf32>
    %857 = tpu.matmul %855, %856, %cst_929 {dimension_numbers = #tpu.dot_dimension_numbers<[1], [0], [0], [1], [0, 0, 1, 1], [], []>} : vector<1x64xf32>, vector<64x128xf32>, vector<1x128xf32> -> vector<1x128xf32>
    %c0_930 = arith.constant 0 : index
    %c0_931 = arith.constant 0 : index
    %858 = vector.load %arg10[%c0_930, %c0_931] : memref<1x128xf32, #tpu.memory_space<vmem>>, vector<1x128xf32>
    %859 = arith.addf %857, %858 : vector<1x128xf32>
    %cst_932 = arith.constant 0.000000e+00 : f32
    %860 = vector.broadcast %cst_932 : f32 to vector<1x128xf32>
    %861 = arith.maximumf %859, %860 : vector<1x128xf32>
    %c0_933 = arith.constant 0 : index
    %c0_934 = arith.constant 0 : index
    %862 = vector.load %arg11[%c0_933, %c0_934] : memref<128x1xf32, #tpu.memory_space<vmem>>, vector<128x1xf32>
    %cst_935 = arith.constant dense<0.000000e+00> : vector<1x1xf32>
    %863 = tpu.matmul %861, %862, %cst_935 {dimension_numbers = #tpu.dot_dimension_numbers<[1], [0], [0], [1], [0, 0, 1, 1], [], []>} : vector<1x128xf32>, vector<128x1xf32>, vector<1x1xf32> -> vector<1x1xf32>
    %c0_936 = arith.constant 0 : index
    %c0_937 = arith.constant 0 : index
    %864 = vector.load %arg12[%c0_936, %c0_937] : memref<1x1xf32, #tpu.memory_space<vmem>>, vector<1x1xf32>
    %865 = arith.addf %863, %864 : vector<1x1xf32>
    %cst_938 = arith.constant 0.000000e+00 : f32
    %866 = vector.broadcast %cst_938 : f32 to vector<1x1xf32>
    %867 = arith.subf %866, %865 : vector<1x1xf32>
    %868 = math.exp %867 : vector<1x1xf32>
    %cst_939 = arith.constant 1.000000e+00 : f32
    %869 = vector.broadcast %cst_939 : f32 to vector<1x1xf32>
    %870 = arith.addf %869, %868 : vector<1x1xf32>
    %cst_940 = arith.constant 1.000000e+00 : f32
    %871 = vector.broadcast %cst_940 : f32 to vector<1x1xf32>
    %872 = arith.divf %871, %870 : vector<1x1xf32>
    %873 = vector.shape_cast %872 : vector<1x1xf32> to vector<1x1xf32>
    %874 = vector.broadcast %873 : vector<1x1xf32> to vector<1x128xf32>
    %c0_941 = arith.constant 0 : index
    %c0_942 = arith.constant 0 : index
    %c0_943 = arith.constant 0 : index
    %875 = vector.load %arg13[%c0_941, %c0_942, %c0_943] : memref<1x1x128xf32, #tpu.memory_space<vmem>>, vector<1x1x128xf32>
    %876 = vector.shape_cast %875 : vector<1x1x128xf32> to vector<1x128xf32>
    %877 = vector.shape_cast %874 : vector<1x128xf32> to vector<1x1x128xf32>
    tpu.vector_store %arg13[%c0_941, %c0_942, %c0_943], %877 {strides = array<i32>} : memref<1x1x128xf32, #tpu.memory_space<vmem>>, vector<1x1x128xf32>,
    return
  }
  func.func @transform_0(%arg0: i32) -> (i32, i32, i32) {
    %c0_i32 = arith.constant 0 : i32
    %c0_i32_0 = arith.constant 0 : i32
    %c0_i32_1 = arith.constant 0 : i32
    return %arg0, %c0_i32, %c0_i32_0 : i32, i32, i32
  }
  func.func @transform_1(%arg0: i32) -> (i32, i32) {
    %c0_i32 = arith.constant 0 : i32
    %c0_i32_0 = arith.constant 0 : i32
    %c0_i32_1 = arith.constant 0 : i32
    return %c0_i32, %c0_i32_0 : i32, i32
  }
  func.func @transform_2(%arg0: i32) -> (i32, i32) {
    %c0_i32 = arith.constant 0 : i32
    %c0_i32_0 = arith.constant 0 : i32
    %c0_i32_1 = arith.constant 0 : i32
    return %c0_i32, %c0_i32_0 : i32, i32
  }
  func.func @transform_3(%arg0: i32) -> (i32, i32) {
    %c0_i32 = arith.constant 0 : i32
    %c0_i32_0 = arith.constant 0 : i32
    %c0_i32_1 = arith.constant 0 : i32
    return %c0_i32, %c0_i32_0 : i32, i32
  }
  func.func @transform_4(%arg0: i32) -> (i32, i32, i32) {
    %c0_i32 = arith.constant 0 : i32
    %c0_i32_0 = arith.constant 0 : i32
    %c0_i32_1 = arith.constant 0 : i32
    %c0_i32_2 = arith.constant 0 : i32
    return %c0_i32, %c0_i32_0, %c0_i32_1 : i32, i32, i32
  }
  func.func @transform_5(%arg0: i32) -> (i32, i32, i32, i32) {
    %c0_i32 = arith.constant 0 : i32
    %c0_i32_0 = arith.constant 0 : i32
    %c0_i32_1 = arith.constant 0 : i32
    %c0_i32_2 = arith.constant 0 : i32
    %c0_i32_3 = arith.constant 0 : i32
    return %c0_i32, %c0_i32_0, %c0_i32_1, %c0_i32_2 : i32, i32, i32, i32
  }
  func.func @transform_6(%arg0: i32) -> (i32, i32, i32, i32) {
    %c0_i32 = arith.constant 0 : i32
    %c0_i32_0 = arith.constant 0 : i32
    %c0_i32_1 = arith.constant 0 : i32
    %c0_i32_2 = arith.constant 0 : i32
    %c0_i32_3 = arith.constant 0 : i32
    return %c0_i32, %c0_i32_0, %c0_i32_1, %c0_i32_2 : i32, i32, i32, i32
  }
  func.func @transform_7(%arg0: i32) -> (i32, i32) {
    %c0_i32 = arith.constant 0 : i32
    %c0_i32_0 = arith.constant 0 : i32
    %c0_i32_1 = arith.constant 0 : i32
    return %c0_i32, %c0_i32_0 : i32, i32
  }
  func.func @transform_8(%arg0: i32) -> (i32, i32) {
    %c0_i32 = arith.constant 0 : i32
    %c0_i32_0 = arith.constant 0 : i32
    %c0_i32_1 = arith.constant 0 : i32
    return %c0_i32, %c0_i32_0 : i32, i32
  }
  func.func @transform_9(%arg0: i32) -> (i32, i32) {
    %c0_i32 = arith.constant 0 : i32
    %c0_i32_0 = arith.constant 0 : i32
    %c0_i32_1 = arith.constant 0 : i32
    return %c0_i32, %c0_i32_0 : i32, i32
  }
  func.func @transform_10(%arg0: i32) -> (i32, i32) {
    %c0_i32 = arith.constant 0 : i32
    %c0_i32_0 = arith.constant 0 : i32
    %c0_i32_1 = arith.constant 0 : i32
    return %c0_i32, %c0_i32_0 : i32, i32
  }
  func.func @transform_11(%arg0: i32) -> (i32, i32) {
    %c0_i32 = arith.constant 0 : i32
    %c0_i32_0 = arith.constant 0 : i32
    %c0_i32_1 = arith.constant 0 : i32
    return %c0_i32, %c0_i32_0 : i32, i32
  }
  func.func @transform_12(%arg0: i32) -> (i32, i32, i32) {
    %c0_i32 = arith.constant 0 : i32
    %c0_i32_0 = arith.constant 0 : i32
    %c0_i32_1 = arith.constant 0 : i32
    return %arg0, %c0_i32, %c0_i32_0 : i32, i32, i32
  }
}

</mosaic_0001>

<bundles_post_ra>
// kernel: tpu_custom_call.1
= control target key start
LH: loop header
LB: loop body
LE: loop exit
PB: predicated region body
PF: predicated region fallthrough
CT: control target
= control target key end

     0   :  { %s12394_s0 = inlined_call_operand.vmem [shape: f32[2,16,96], index: 0, kind: input, shape index: {}]   ;;  %s12395_s1 = inlined_call_operand.vmem [shape: f32[96,64], index: 1, kind: input, shape index: {}]   ;;  %s12396_s2 = inlined_call_operand.vmem [shape: f32[64,192], index: 2, kind: input, shape index: {}]   ;;  %s12397_s3 = inlined_call_operand.vmem [shape: f32[1,192], index: 3, kind: input, shape index: {}]   ;;  %s12398_s4 = inlined_call_operand.vmem [shape: f32[5,64,64], index: 4, kind: input, shape index: {}]   ;;  %s12399_s5 = inlined_call_operand.vmem [shape: f32[16,3,128,64], index: 5, kind: input, shape index: {}]   ;;  %s12400_s6 = inlined_call_operand.vmem [shape: f32[8,5,128,64], index: 6, kind: input, shape index: {}]   ;;  %s12401_s7 = inlined_call_operand.vmem [shape: f32[78,64], index: 7, kind: input, shape index: {}]   ;;  %s12402_s8 = inlined_call_operand.vmem [shape: f32[64,128], index: 8, kind: input, shape index: {}]   ;;  %s12403_s9 = inlined_call_operand.vmem [shape: f32[1,128], index: 9, kind: input, shape index: {}]   ;;  %s12404_s10 = inlined_call_operand.vmem [shape: f32[128,1], index: 10, kind: input, shape index: {}]   ;;  %s12405_s11 = inlined_call_operand.<no memory space> [shape: f32[1,1], index: 11, kind: input, shape index: {}]   ;;  %s12406_s12 = inlined_call_operand.hbm [shape: f32[2,1,128], index: 12, kind: output, shape index: {}]  }
   0x1   :  { %v17_v0 = vstv %s12405_s11 }
   0x2   :  { %18 = vst [vmem:[#allocation3] sm:$0x1] %v17_v0 }
   0x3   :  { %19 = vsyncpa [#allocation5], 0 }
   0x4   :  { %21 = vsyncpa [#allocation5 + $0x1], 0  ;;  %s7171_s23 = smov 0   ;;  %s7173_s24 = smov 0  }
   0x5   :  { %s7175_s25 = smov 0   ;;  %s7177_s26 = smov 0  }
   0x6 LB: > { %12408 = sst [smem:[#allocation7_spill]] %s7094_s25  ;;  %s7192_s11 = sadd.s32 4294967295, %s7098_s26   ;;  %s7098_s26 = sphi %s7177_s26, %s12416_s26   ;;  %s7094_s25 = sphi %s7175_s25, %s12413_s25   ;;  %s7090_s24 = sphi %s7173_s24, %s12415_s24   ;;  %s7086_s23 = sphi %s7171_s23, %s12414_s23  }
   0x7   : > { %s5456_s27 = sadd.s32 4294967294, %s7098_s26   ;;  %s7196_s28 = sadd.s32 1, %s7098_s26  }
   0x8   : > { %s291_s29 = sadd.s32 1, %s7094_s25  ;;  %s288_s30 = ssub.s32 %s7098_s26, %s7196_s28 }
   0x9   : > { %p301_p0 = scmp.ne.s32.totalorder %s7094_s25, %s7090_s24  ;;  %p289_p1 = scmp.eq.s32.totalorder %s288_s30, 0 }
   0xa   : > { %p302_p2 = scmp.eq.s32.totalorder %s7192_s11, 1  ;;  %p307_p3 = scmp.ne.s32.totalorder %s7090_s24, %s7086_s23 }
   0xb   : > { %p308_p4 = scmp.eq.s32.totalorder %s5456_s27, 1  ;;  %p5459_p7 = scmp.ge.s32.totalorder %s7098_s26, 1 }
   0xc   : > { %s7207_s13 = scalar_select %p289_p1, %s7094_s25, %s291_s29  }
   0xd   : > { %p7209_p5 = por %p302_p2, %p301_p0  ;;  %p7213_p6 = por %p308_p4, %p307_p3 }
   0xe   : > { %12409 = sst [smem:[#allocation8_spill]] %s7207_s13  ;;  %p367_p8 = scmp.lt.s32.totalorder %s7098_s26, 3 }
  0x10   : > { %p368_p9 = pnand %p5459_p7, %p367_p8 }
  0x11   : > { %p408_p10 = scmp.lt.s32.totalorder (!%p368_p9), %s7192_s11, 1  ;;  %s406_s27 = sand.u32 (!%p368_p9), 1, %s7090_s24  }
  0x12   : > { %371 = sbr.rel (%p368_p9) target bundleno = 8236 (0x202c), region = 68  ;;  %s5397_s16 = scalar_lea.hbm (!%p368_p9), %s12406_s12, %s7192_s11 }
  0x13   : > { %s407_s17 = scalar_lea.vmem (!%p368_p9), [#allocation4], %s406_s27  ;;  %s5389_s25 = scalar_lea.sflag (!%p368_p9), [#allocation5], %s406_s27 }
  0x17   : > { %v430_v1 = vld [vmem:[%s12395_s1 + $0x58] sm:$0xff]  ;;  %v429_v2 = vld [vmem:[%s12395_s1 + $0x50] sm:$0xff]  ;;  %v428_v3 = vld [vmem:[%s12395_s1 + $0x48] sm:$0xff]  ;;  %s7242_s20 = scalar_select %p408_p10, %s7192_s11, 1  ;;  %vm433_vm0 = vcmask 785408   ;;  %vm485_vm1 = vcmask 523264  }
  0x18   : > { %444 = vmatpush.msra.mxu0 %v430_v1  ;;  %v427_v4 = vld [vmem:[%s12395_s1 + $0x40] sm:$0xff]  ;;  %v477_v5 = vld [vmem:[%s12396_s2 + $0x70] sm:$0xff]  ;;  %v478_v6 = vld [vmem:[%s12396_s2 + $0x78] sm:$0xff]  ;;  %vm577_vm2 = vcmask 130048   ;;  %vm692_vm3 = vcmask 1040896   ;;  %vm689_vm4 = vcmask 1048064  }
  0x19   : > { %v475_v7 = vld [vmem:[%s12396_s2 + $0x60] sm:$0xff]  ;;  %500 = vmatpush.msra.mxu1 %v477_v5  ;;  %v476_v8 = vld [vmem:[%s12396_s2 + $0x68] sm:$0xff]  ;;  %v426_v9 = vld [vmem:[%s12395_s1 + $0x38] sm:$0xff]  ;;  %523 = vmatpush.msra.mxu2 %v478_v6  ;;  %s6895_s13 = sshll.u32 %s7242_s20, 4  ;;  %s7100_s20 = smov 64   ;;  %vm1982_vm5 = vcmask 1041920  }
  0x1a   : > { %445 = vmatpush.msra.mxu0 %v429_v2  ;;  %v473_v10 = vld [vmem:[%s12396_s2 + $0x50] sm:$0xff]  ;;  %v474_v12 = vld [vmem:[%s12396_s2 + $0x58] sm:$0xff]  ;;  %v471_v13 = vld [vmem:[%s12396_s2 + $0x40] sm:$0xff]  ;;  %s412_s29 = scalar_lea.vmem %s12394_s0, %s6895_s13  ;;  %vm3273_vm6 = vcmask 1042944   ;;  %s5399_s13 = sshll.u32 %s407_s17, 4  ;;  %s5400_s13 = int_to_ptr.vmem [resolvable:$true] %s5399_s13 }
  0x1b   : > { %v425_v11 = vld [vmem:[%s12395_s1 + $0x30] sm:$0xff]  ;;  %501 = vmatpush.msra.mxu1 %v475_v7  ;;  %v424_v14 = vld [vmem:[%s12395_s1 + $0x28] sm:$0xff]  ;;  %524 = vmatpush.msra.mxu2 %v476_v8  ;;  %v470_v17 = vld [vmem:[%s12396_s2 + $0x38] sm:$0xff] }
  0x1c   : > { %446 = vmatpush.msra.mxu0 %v428_v3  ;;  %v472_v15 = vld [vmem:[%s12396_s2 + $0x48] sm:$0xff]  ;;  %v469_v16 = vld [vmem:[%s12396_s2 + $0x30] sm:$0xff]  ;;  %v423_v18 = vld [vmem:[%s12395_s1 + $0x20] sm:$0xff] }
  0x1d   : > { %502 = vmatpush.msra.mxu1 %v473_v10  ;;  %525 = vmatpush.msra.mxu2 %v474_v12  ;;  %v467_v19 = vld [vmem:[%s12396_s2 + $0x20] sm:$0xff]  ;;  %v468_v20 = vld [vmem:[%s12396_s2 + $0x28] sm:$0xff]  ;;  %v422_v21 = vld [vmem:[%s12395_s1 + $0x18] sm:$0xff] }
  0x1e   : > { %447 = vmatpush.msra.mxu0 %v427_v4  ;;  %v421_v22 = vld [vmem:[%s12395_s1 + $0x10] sm:$0xff]  ;;  %v420_v23 = vld [vmem:[%s12395_s1 + $0x8] sm:$0xff]  ;;  %v419_v24 = vld [vmem:[%s12395_s1] sm:$0xff] }
  0x1f   : > { %503 = vmatpush.msra.mxu1 %v471_v13  ;;  %526 = vmatpush.msra.mxu2 %v472_v15  ;;  %v417_v25 = vld [vmem:[%s412_s29] sm:$0xff]  ;;  %v418_v26 = vld [vmem:[%s412_s29 + $0x8] sm:$0xff]  ;;  %v465_v27 = vld [vmem:[%s12396_s2 + $0x10] sm:$0xff]  ;;  %v7101_v15 = vmov 0.0   ;;  %s7056_s29 = scalar_lea.hbm %s12406_s12, 2 }
  0x20   : > { %448 = vmatpush.msra.mxu0 %v426_v9  ;;  %v466_v28 = vld [vmem:[%s12396_s2 + $0x18] sm:$0xff]  ;;  %v463_v29 = vld [vmem:[%s12396_s2] sm:$0xff]  ;;  %v464_v30 = vld [vmem:[%s12396_s2 + $0x8] sm:$0xff]  ;;  %415 = vst [vmem:[#allocation2 + $0x1c] sm:$0xff] %v7101_v15 }
  0x21   : > { %504 = vmatpush.msra.mxu1 %v469_v16  ;;  %527 = vmatpush.msra.mxu2 %v470_v17  ;;  %v6940_v31 = vld [vmem:[%s12401_s7] ss:$0 sm:$0xff]  ;;  %v636_v1 = vld [vmem:[%s12398_s4 + $0x38] sm:$0xff]  ;;  %v635_v2 = vld [vmem:[%s12398_s4 + $0x30] sm:$0xff]  ;;  %413 = vst [vmem:[#allocation2] sm:$0xff] %v7101_v15 }
  0x22   : > { %449 = vmatpush.msra.mxu0 %v425_v11  ;;  %v479_v37 = vld [vmem:[%s12397_s3] sm:$0x3]  ;;  %v634_v3 = vld [vmem:[%s12398_s4 + $0x28] sm:$0xff]  ;;  %v632_v5 = vld [vmem:[%s12398_s4 + $0x18] sm:$0xff]  ;;  %414 = vst [vmem:[#allocation2 + $0x8] sm:$0xf] %v7101_v15 }
  0x23   : > { %505 = vmatpush.msra.mxu1 %v467_v19  ;;  %528 = vmatpush.msra.mxu2 %v468_v20  ;;  %v481_v38 = vperm.slane %v479_v37, 0  ;;  %v482_v45 = vperm.slane %v479_v37, 1  ;;  %v633_v4 = vld [vmem:[%s12398_s4 + $0x20] sm:$0xff]  ;;  %v631_v6 = vld [vmem:[%s12398_s4 + $0x10] sm:$0xff]  ;;  %v630_v13 = vld [vmem:[%s12398_s4 + $0x8] sm:$0xff] }
  0x24   : > { %450 = vmatpush.msra.mxu0 %v424_v14  ;;  %v629_v14 = vld [vmem:[%s12398_s4] sm:$0xff]  ;;  %416 = vst [vmem:[#allocation2 + $0x24] sm:$0xf] %v7101_v15  ;;  %v711_v16 = vld [vmem:[%s12399_s5 + $0x78] sm:$0xff]  ;;  %v710_v17 = vld [vmem:[%s12399_s5 + $0x70] sm:$0xff] }
  0x25   : > { %506 = vmatpush.msra.mxu1 %v465_v27  ;;  %529 = vmatpush.msra.mxu2 %v466_v28  ;;  %v709_v19 = vld [vmem:[%s12399_s5 + $0x68] sm:$0xff]  ;;  %v5507_v20 = vld [vmem:[%s12399_s5 + $0x178] sm:$0xff]  ;;  %v5504_v28 = vld [vmem:[%s12399_s5 + $0x160] sm:$0xff] }
  0x26   : > { %451 = vmatpush.msra.mxu0 %v423_v18  ;;  %v5491_v18 = vld [vmem:[%s12399_s5 + $0xf8] sm:$0xff]  ;;  %v5485_v37 = vld [vmem:[%s12399_s5 + $0xc8] sm:$0xff] }
  0x27   : > { %507 = vmatpush.msra.mxu1 %v463_v29  ;;  %530 = vmatpush.msra.mxu2 %v464_v30  ;;  %v707_v27 = vld [vmem:[%s12399_s5 + $0x58] sm:$0xff]  ;;  %v706_v30 = vld [vmem:[%s12399_s5 + $0x50] sm:$0xff] }
  0x28   : > { %452 = vmatpush.msra.mxu0 %v422_v21  ;;  %v5490_v21 = vld [vmem:[%s12399_s5 + $0xf0] sm:$0xff]  ;;  %v5487_v29 = vld [vmem:[%s12399_s5 + $0xd8] sm:$0xff] }
  0x29   : > { %653 = vmatpush.msrb.mxu1 %v636_v1  ;;  %731 = vmatpush.msrb.mxu2 %v5491_v18  ;;  %v5480_v1 = vld [vmem:[%s12399_s5 + $0xa0] sm:$0xff] }
  0x2a   : > { %453 = vmatpush.msra.mxu0 %v421_v22  ;;  %v5506_v22 = vld [vmem:[%s12399_s5 + $0x170] sm:$0xff] }
  0x2b   : > { %654 = vmatpush.msrb.mxu1 %v635_v2  ;;  %732 = vmatpush.msrb.mxu2 %v5490_v21  ;;  %v696_v2 = vld [vmem:[%s12399_s5] sm:$0xff]  ;;  %v5523_v21 = vld [vmem:[%s12399_s5 + $0x1f8] sm:$0xff] }
  0x2c   : > { %454 = vmatpush.msra.mxu0 %v420_v23  ;;  %v5489_v23 = vld [vmem:[%s12399_s5 + $0xe8] sm:$0xff] }
  0x2d   : > { %655 = vmatpush.msrb.mxu1 %v634_v3  ;;  %733 = vmatpush.msrb.mxu2 %v5489_v23  ;;  %v5496_v3 = vld [vmem:[%s12399_s5 + $0x120] sm:$0xff]  ;;  %v5521_v23 = vld [vmem:[%s12399_s5 + $0x1e8] sm:$0xff] }
  0x2e   : > { %455 = vmatpush.msra.mxu0 %v419_v24  ;;  %v708_v24 = vld [vmem:[%s12399_s5 + $0x60] sm:$0xff] }
  0x2f   : > { %5462 = vmatmul.msk.f32.vlgmr.msra.gmra.mxu0 %vm433_vm0, %v417_v25  ;;  %656 = vmatpush.msrb.mxu1 %v633_v4  ;;  %v5505_v25 = vld [vmem:[%s12399_s5 + $0x168] sm:$0xff]  ;;  %v5479_v4 = vld [vmem:[%s12399_s5 + $0x98] sm:$0xff] }
  0x30   : > { %754 = vmatpush.msrb.mxu0 %v711_v16 }
  0x31   : > { %657 = vmatpush.msrb.mxu1 %v632_v5  ;;  %v5495_v5 = vld [vmem:[%s12399_s5 + $0x118] sm:$0xff] }
  0x32   : > { %755 = vmatpush.msrb.mxu0 %v710_v17 }
  0x33   : > { %658 = vmatpush.msrb.mxu1 %v631_v6  ;;  %v5478_v6 = vld [vmem:[%s12399_s5 + $0x90] sm:$0xff] }
  0x34   : > { %756 = vmatpush.msrb.mxu0 %v709_v19 }
  0x35   : > { %659 = vmatpush.msrb.mxu1 %v630_v13 }
  0x36   : > { %757 = vmatpush.msrb.mxu0 %v708_v24  ;;  %v5520_v24 = vld [vmem:[%s12399_s5 + $0x1e0] sm:$0xff] }
  0x37   : > { %5463 = vmatmul.msk.f32.gmra.mxu0 %vm433_vm0, %v418_v26  ;;  %660 = vmatpush.msrb.mxu1 %v629_v14  ;;  %v5488_v26 = vld [vmem:[%s12399_s5 + $0xe0] sm:$0xff] }
  0x38   : > { %734 = vmatpush.msrb.mxu2 %v5488_v26  ;;  %758 = vmatpush.msrb.mxu0 %v707_v27  ;;  %v5518_v26 = vld [vmem:[%s12399_s5 + $0x1d0] sm:$0xff] }
  0x3a   : > { %735 = vmatpush.msrb.mxu2 %v5487_v29  ;;  %759 = vmatpush.msrb.mxu0 %v706_v30 }
  0xac   : > { %v457_v32 = vpop.f32.mrf.mxu0 }
  0xad   : > { %v7316_v33 = vadd.f32 %v6940_v31, %v457_v32  ;;  %v5486_v32 = vld [vmem:[%s12399_s5 + $0xd0] sm:$0xff] }
  0xae   : > { %736 = vmatpush.msrb.mxu2 %v5486_v32  ;;  %v6944_v32 = vld [vmem:[%s12401_s7 + $0x6] ss:$0 sm:$0xff] }
  0xaf   : > { %5464 = vmatmul.msk.f32.vlgmr.msra.gmra.mxu1 %vm485_vm1, %v7316_v33  ;;  %5466 = vmatmul.msk.f32.vlgmr.msra.gmra.mxu2 %vm485_vm1, %v7316_v33 }
  0xb0   : > { %737 = vmatpush.msrb.mxu2 %v5485_v37  ;;  %v6945_v37 = vld [vmem:[%s12401_s7 + $0x1f] ss:$0 sm:$0xff] }
  0xb4   : > { %v460_v34 = vpop.f32.mrf.mxu0 }
  0xb5   : > { %v7322_v35 = vadd.f32 %v6940_v31, %v460_v34  ;;  %v5503_v31 = vld [vmem:[%s12399_s5 + $0x158] sm:$0xff]  ;;  %v705_v34 = vld [vmem:[%s12399_s5 + $0x48] sm:$0xff] }
  0xb6   : > { %760 = vmatpush.msrb.mxu0 %v705_v34  ;;  %v5516_v34 = vld [vmem:[%s12399_s5 + $0x1c0] sm:$0xff] }
  0xb7   : > { %5465 = vmatmul.msk.f32.gmra.mxu1 %vm485_vm1, %v7322_v35  ;;  %5467 = vmatmul.msk.f32.gmra.mxu2 %vm485_vm1, %v7322_v35 }
 0x12c   : > { %v509_v36 = vpop.f32.mrf.mxu1 }
 0x12d   : > { %v510_v41 = vadd.f32 %v509_v36, %v481_v38  ;;  %v5502_v36 = vld [vmem:[%s12399_s5 + $0x150] sm:$0xff] }
 0x132   : > { %v532_v42 = vpop.f32.mrf.mxu2 }
 0x133   : > { %v533_v48 = vadd.f32 %v532_v42, %v482_v45 }
 0x134   : > { %v512_v39 = vpop.f32.mrf.mxu1 }
 0x135   : > { %v513_v40 = vadd.f32 %v512_v39, %v481_v38  ;;  %v704_v38 = vld [vmem:[%s12399_s5 + $0x40] sm:$0xff]  ;;  %v5501_v39 = vld [vmem:[%s12399_s5 + $0x148] sm:$0xff] }
 0x136   : > { %761 = vmatpush.msrb.mxu0 %v704_v38  ;;  %v5515_v38 = vld [vmem:[%s12399_s5 + $0x1b8] sm:$0xff] }
 0x137   : > { %542 = vrot.lane.b32.xlu0 %v513_v40, %s7100_s20 }
 0x13a   : > { %v535_v44 = vpop.f32.mrf.mxu2 }
 0x13b   : > { %v536_v47 = vadd.f32 %v535_v44, %v482_v45  ;;  %v6942_v45 = vld [vmem:[%s12401_s7 + $0x36] ss:$0 sm:$0xff] }
 0x13f   : > { %540 = vrot.lane.b32.xlu0 %v510_v41, %s7100_s20 }
 0x1a9   : > { %v543_v43 = vpop.permute.xlu0 %542 }
 0x1aa   : > { %5468 = vmatpush.xpose.msk.msra.mxu3 %vm485_vm1, %v543_v43  ;;  %v703_v43 = vld [vmem:[%s12399_s5 + $0x38] sm:$0xff] }
 0x1ab   : > { %762 = vmatpush.msrb.mxu0 %v703_v43  ;;  %v5513_v43 = vld [vmem:[%s12399_s5 + $0x1a8] sm:$0xff] }
 0x1b1   : > { %v541_v46 = vpop.permute.xlu0 %540 }
 0x1b2   : > { %5469 = vmatpush.xpose.msk.msra.mxu3 %vm485_vm1, %v541_v46  ;;  %v5500_v46 = vld [vmem:[%s12399_s5 + $0x140] sm:$0xff] }
 0x1b5   : > { %5470 = vmatmul.msk.f32.vlgmr.msra.gmra.mxu3 %vm485_vm1, %v510_v41  ;;  %v5484_v41 = vld [vmem:[%s12399_s5 + $0xc0] sm:$0xff] }
 0x1b6   : > { %620 = vmatpush.msrb.mxu3 %v536_v47  ;;  %v702_v47 = vld [vmem:[%s12399_s5 + $0x30] sm:$0xff]  ;;  %738 = vmatpush.msrb.mxu2 %v5484_v41 }
 0x1b7   : > { %763 = vmatpush.msrb.mxu0 %v702_v47  ;;  %v5514_v41 = vld [vmem:[%s12399_s5 + $0x1b0] sm:$0xff] }
 0x1b8   : > { %621 = vmatpush.msrb.mxu3 %v533_v48 }
 0x1ba   : > { %796 = vmatpush.msra.mxu3 %v5507_v20 }
 0x1bc   : > { %797 = vmatpush.msra.mxu3 %v5506_v22  ;;  %v5522_v22 = vld [vmem:[%s12399_s5 + $0x1f0] sm:$0xff] }
 0x1bd   : > { %5471 = vmatmul.msk.f32.gmra.mxu3 %vm485_vm1, %v513_v40  ;;  %v6941_v40 = vld [vmem:[%s12401_s7 + $0x1e] ss:$0 sm:$0xff] }
 0x1be   : > { %798 = vmatpush.msra.mxu3 %v5505_v25  ;;  %v5519_v25 = vld [vmem:[%s12399_s5 + $0x1d8] sm:$0xff] }
 0x1c0   : > { %799 = vmatpush.msra.mxu3 %v5504_v28  ;;  %v5517_v28 = vld [vmem:[%s12399_s5 + $0x1c8] sm:$0xff] }
 0x1c2   : > { %800 = vmatpush.msra.mxu3 %v5503_v31 }
 0x1c4   : > { %801 = vmatpush.msra.mxu3 %v5502_v36 }
 0x1c6   : > { %802 = vmatpush.msra.mxu3 %v5501_v39 }
 0x1c8   : > { %803 = vmatpush.msra.mxu3 %v5500_v46 }
 0x238   : > { %v569_v49 = vpop.f32.mrf.mxu3 }
 0x239   : > { %v575_v50 = vmul.f32 0.125, %v569_v49 }
 0x23b   : > { %v578_v51 = vsel %vm577_vm2, %v575_v50, -inf }
 0x23c   : > { %579 = vmax.xlane.f32.xlu1 %v578_v51 }
 0x240   : > { %v572_v52 = vpop.f32.mrf.mxu3 }
 0x241   : > { %v576_v53 = vmul.f32 0.125, %v572_v52 }
 0x243   : > { %v581_v54 = vsel %vm577_vm2, %v576_v53, -inf }
 0x244   : > { %582 = vmax.xlane.f32.xlu1 %v581_v54 }
 0x2af   : > { %v580_v55 = vpop.xlane.xlu1 %579 }
 0x2b0   : > { %v584_v56 = vsub.f32 %v575_v50, %v580_v55  ;;  %v700_v50 = vld [vmem:[%s12399_s5 + $0x20] sm:$0xff] }
 0x2b2   : > { %v586_v57 = vmul.f32 1.442695, %v584_v56 }
 0x2b4   : > { %7018 = vpow2.f32 %v586_v57  ;;  %v699_v57 = vld [vmem:[%s12399_s5 + $0x18] sm:$0xff] }
 0x2b7   : > { %v583_v58 = vpop.xlane.xlu1 %582 }
 0x2b8   : > { %v585_v59 = vsub.f32 %v576_v53, %v583_v58  ;;  %v5499_v58 = vld [vmem:[%s12399_s5 + $0x138] sm:$0xff] }
 0x2b9   : > { %804 = vmatpush.msra.mxu3 %v5499_v58  ;;  %v5509_v58 = vld [vmem:[%s12399_s5 + $0x188] sm:$0xff] }
 0x2ba   : > { %v7019_v60 = vpop.eup %7018  ;;  %v588_v61 = vmul.f32 1.442695, %v585_v59  ;;  %v5482_v59 = vld [vmem:[%s12399_s5 + $0xb0] sm:$0xff] }
 0x2bb   : > { %v590_v62 = vsel %vm577_vm2, %v7019_v60, 0.0 }
 0x2bc   : > { %7020 = vpow2.f32 %v588_v61  ;;  %591 = vadd.xlane.f32.xlu2 %v590_v62  ;;  %v5498_v61 = vld [vmem:[%s12399_s5 + $0x130] sm:$0xff]  ;;  %v5481_v62 = vld [vmem:[%s12399_s5 + $0xa8] sm:$0xff] }
 0x2bd   : > { %805 = vmatpush.msra.mxu3 %v5498_v61  ;;  %v5555_v61 = vld [vmem:[%s12399_s5 + $0x2f8] sm:$0xff] }
 0x2c2   : > { %v7021_v63 = vpop.eup %7020 }
 0x2c3   : > { %v593_v0 = vsel %vm577_vm2, %v7021_v63, 0.0 }
 0x2c4   : > { %594 = vadd.xlane.f32.xlu2 %v593_v0  ;;  %v5497_v0 = vld [vmem:[%s12399_s5 + $0x128] sm:$0xff] }
 0x2c5   : > { %806 = vmatpush.msra.mxu3 %v5497_v0  ;;  %v5537_v0 = vld [vmem:[%s12399_s5 + $0x268] sm:$0xff] }
 0x2c7   : > { %807 = vmatpush.msra.mxu3 %v5496_v3  ;;  %v5552_v3 = vld [vmem:[%s12399_s5 + $0x2e0] sm:$0xff] }
 0x2c9   : > { %808 = vmatpush.msra.mxu3 %v5495_v5  ;;  %v5551_v5 = vld [vmem:[%s12399_s5 + $0x2d8] sm:$0xff] }
 0x32f   : > { %v592_v7 = vpop.xlane.xlu2 %591 }
 0x330   : > { %7022 = vrcp.f32 %v592_v7  ;;  %v5494_v7 = vld [vmem:[%s12399_s5 + $0x110] sm:$0xff] }
 0x331   : > { %809 = vmatpush.msra.mxu3 %v5494_v7  ;;  %v5550_v7 = vld [vmem:[%s12399_s5 + $0x2d0] sm:$0xff] }
 0x336   : > { %v7023_v8 = vpop.eup %7022 }
 0x337   : > { %v595_v9 = vpop.xlane.xlu2 %594  ;;  %v598_v10 = vmul.f32 %v7023_v8, %v7019_v60  ;;  %v698_v60 = vld [vmem:[%s12399_s5 + $0x10] sm:$0xff]  ;;  %v5477_v8 = vld [vmem:[%s12399_s5 + $0x88] sm:$0xff] }
 0x338   : > { %7024 = vrcp.f32 %v595_v9  ;;  %v5493_v9 = vld [vmem:[%s12399_s5 + $0x108] sm:$0xff] }
 0x339   : > { %5472 = vmatmul.msk.f32.vlgmr.msrb.gmra.mxu3 %vm577_vm2, %v598_v10  ;;  %v5476_v10 = vld [vmem:[%s12399_s5 + $0x80] sm:$0xff] }
 0x33a   : > { %810 = vmatpush.msra.mxu3 %v5493_v9  ;;  %v5549_v9 = vld [vmem:[%s12399_s5 + $0x2c8] sm:$0xff] }
 0x33e   : > { %v7025_v11 = vpop.eup %7024 }
 0x33f   : > { %v599_v12 = vmul.f32 %v7025_v11, %v7021_v63  ;;  %v697_v63 = vld [vmem:[%s12399_s5 + $0x8] sm:$0xff]  ;;  %v5492_v11 = vld [vmem:[%s12399_s5 + $0x100] sm:$0xff] }
 0x340   : > { %811 = vmatpush.msra.mxu3 %v5492_v11  ;;  %v5548_v11 = vld [vmem:[%s12399_s5 + $0x2c0] sm:$0xff] }
 0x341   : > { %5473 = vmatmul.msk.f32.gmra.mxu3 %vm577_vm2, %v599_v12 }
 0x3bc   : > { %v623_v42 = vpop.f32.mrf.mxu3 }
 0x3bd   : > { %v7447_v44 = vadd.f32 %v623_v42, %v7316_v33  ;;  %v701_v33 = vld [vmem:[%s12399_s5 + $0x28] sm:$0xff] }
 0x3be   : > { %764 = vmatpush.msrb.mxu0 %v701_v33  ;;  %v5512_v33 = vld [vmem:[%s12399_s5 + $0x1a0] sm:$0xff] }
 0x3bf   : > { %v670_v48 = vmul.f32 %v6941_v40, %v7447_v44  ;;  %5474 = vmatmul.msk.f32.vlgmr.msrb.gmra.mxu1 %vm485_vm1, %v7447_v44 }
 0x3c0   : > { %765 = vmatpush.msrb.mxu0 %v700_v50 }
 0x3c1   : > { %v674_v49 = vadd.f32 %v6942_v45, %v670_v48 }
 0x3c2   : > { %766 = vmatpush.msrb.mxu0 %v699_v57  ;;  %v5510_v57 = vld [vmem:[%s12399_s5 + $0x190] sm:$0xff] }
 0x3c3   : > { %v676_v51 = vmax.f32 %v674_v49, 0.0 }
 0x3c4   : > { %v626_v52 = vpop.f32.mrf.mxu3  ;;  %767 = vmatpush.msrb.mxu0 %v698_v60  ;;  %v5539_v60 = vld [vmem:[%s12399_s5 + $0x278] sm:$0xff] }
 0x3c5   : > { %v7468_v53 = vadd.f32 %v626_v52, %v7322_v35  ;;  %683 = vrot.lane.b32.xlu0 %v676_v51, %s7100_s20  ;;  %679 = vst.msk [vmem:[#allocation2 + $0xc] sm:$0xff] %vm485_vm1, %v676_v51  ;;  %v5483_v35 = vld [vmem:[%s12399_s5 + $0xb8] sm:$0xff]  ;;  %886 = vmatpush.msra.mxu1 %v5539_v60 }
 0x3c6   : > { %739 = vmatpush.msrb.mxu2 %v5483_v35  ;;  %768 = vmatpush.msrb.mxu0 %v697_v63  ;;  %v5511_v35 = vld [vmem:[%s12399_s5 + $0x198] sm:$0xff]  ;;  %v5554_v63 = vld [vmem:[%s12399_s5 + $0x2f0] sm:$0xff] }
 0x3c7   : > { %v671_v54 = vmul.f32 %v6941_v40, %v7468_v53  ;;  %5475 = vmatmul.msk.f32.gmra.mxu1 %vm485_vm1, %v7468_v53  ;;  %v6946_v40 = vld [vmem:[%s12401_s7 + $0x37] ss:$0 sm:$0xff] }
 0x3c8   : > { %740 = vmatpush.msrb.mxu2 %v5482_v59  ;;  %769 = vmatpush.msrb.mxu0 %v696_v2  ;;  %v5508_v59 = vld [vmem:[%s12399_s5 + $0x180] sm:$0xff] }
 0x3c9   : > { %v675_v55 = vadd.f32 %v6942_v45, %v671_v54  ;;  %v5536_v2 = vld [vmem:[%s12399_s5 + $0x260] sm:$0xff] }
 0x3ca   : > { %741 = vmatpush.msrb.mxu2 %v5481_v62  ;;  %v5538_v62 = vld [vmem:[%s12399_s5 + $0x270] sm:$0xff]  ;;  %951 = vmatpush.msra.mxu0 %v5555_v61  ;;  %v6947_v61 = vld [vmem:[%s12401_s7 + $0x7] ss:$0 sm:$0xff] }
 0x3cb   : > { %v677_v56 = vmax.f32 %v675_v55, 0.0  ;;  %887 = vmatpush.msra.mxu1 %v5538_v62  ;;  %v5565_v62 = vld [vmem:[%s12399_s5 + $0x348] sm:$0xff] }
 0x3cc   : > { %742 = vmatpush.msrb.mxu2 %v5480_v1  ;;  %v5553_v1 = vld [vmem:[%s12399_s5 + $0x2e8] sm:$0xff]  ;;  %952 = vmatpush.msra.mxu0 %v5554_v63  ;;  %v5582_v63 = vld [vmem:[%s12399_s5 + $0x3d0] sm:$0xff] }
 0x3cd   : > { %685 = vrot.lane.b32.xlu1 %v677_v56, %s7100_s20  ;;  %680 = vst.msk [vmem:[#allocation2 + $0x14] sm:$0xff] %vm485_vm1, %v677_v56  ;;  %888 = vmatpush.msra.mxu1 %v5537_v0  ;;  %v5598_v0 = vld [vmem:[%s12399_s5 + $0x450] sm:$0xff] }
 0x3ce   : > { %693 = vst.msk [vmem:[#allocation2 + $0x1b] sm:$0x1] %vm692_vm3, %v7101_v15  ;;  %743 = vmatpush.msrb.mxu2 %v5479_v4  ;;  %953 = vmatpush.msra.mxu0 %v5553_v1  ;;  %v5535_v4 = vld [vmem:[%s12399_s5 + $0x258] sm:$0xff] }
 0x3cf   : > { %889 = vmatpush.msra.mxu1 %v5536_v2  ;;  %v5564_v2 = vld [vmem:[%s12399_s5 + $0x340] sm:$0xff] }
 0x3d0   : > { %744 = vmatpush.msrb.mxu2 %v5478_v6  ;;  %954 = vmatpush.msra.mxu0 %v5552_v3  ;;  %v5534_v6 = vld [vmem:[%s12399_s5 + $0x250] sm:$0xff]  ;;  %v5581_v3 = vld [vmem:[%s12399_s5 + $0x3c8] sm:$0xff] }
 0x3d1   : > { %890 = vmatpush.msra.mxu1 %v5535_v4  ;;  %v5597_v4 = vld [vmem:[%s12399_s5 + $0x448] sm:$0xff] }
 0x3d2   : > { %745 = vmatpush.msrb.mxu2 %v5477_v8  ;;  %955 = vmatpush.msra.mxu0 %v5551_v5  ;;  %v5533_v8 = vld [vmem:[%s12399_s5 + $0x248] sm:$0xff] }
 0x3d3   : > { %891 = vmatpush.msra.mxu1 %v5534_v6  ;;  %v6948_v6 = vld [vmem:[%s12401_s7 + $0x20] ss:$0 sm:$0xff] }
 0x3d4   : > { %746 = vmatpush.msrb.mxu2 %v5476_v10  ;;  %956 = vmatpush.msra.mxu0 %v5550_v7  ;;  %v5532_v10 = vld [vmem:[%s12399_s5 + $0x240] sm:$0xff]  ;;  %v5563_v7 = vld [vmem:[%s12399_s5 + $0x338] sm:$0xff] }
 0x3d5   : > { %892 = vmatpush.msra.mxu1 %v5533_v8  ;;  %v5580_v8 = vld [vmem:[%s12399_s5 + $0x3c0] sm:$0xff] }
 0x3d6   : > { %909 = vmatpush.msra.mxu2 %v5523_v21  ;;  %957 = vmatpush.msra.mxu0 %v5549_v9  ;;  %v5596_v9 = vld [vmem:[%s12399_s5 + $0x440] sm:$0xff] }
 0x3d7   : > { %893 = vmatpush.msra.mxu1 %v5532_v10 }
 0x3d8   : > { %910 = vmatpush.msra.mxu2 %v5522_v22  ;;  %958 = vmatpush.msra.mxu0 %v5548_v11  ;;  %v5527_v22 = vld [vmem:[%s12399_s5 + $0x218] sm:$0xff] }
 0x3d9   : > { %v6949_v11 = vld [vmem:[%s12401_s7 + $0x38] ss:$0 sm:$0xff] }
 0x3da   : > { %911 = vmatpush.msra.mxu2 %v5521_v23  ;;  %v5543_v23 = vld [vmem:[%s12399_s5 + $0x298] sm:$0xff] }
 0x3dc   : > { %912 = vmatpush.msra.mxu2 %v5520_v24  ;;  %v5526_v24 = vld [vmem:[%s12399_s5 + $0x210] sm:$0xff] }
 0x3de   : > { %913 = vmatpush.msra.mxu2 %v5519_v25  ;;  %v5542_v25 = vld [vmem:[%s12399_s5 + $0x290] sm:$0xff] }
 0x3e0   : > { %914 = vmatpush.msra.mxu2 %v5518_v26  ;;  %v5525_v26 = vld [vmem:[%s12399_s5 + $0x208] sm:$0xff] }
 0x3e2   : > { %915 = vmatpush.msra.mxu2 %v5517_v28  ;;  %v5524_v28 = vld [vmem:[%s12399_s5 + $0x200] sm:$0xff] }
 0x3e4   : > { %916 = vmatpush.msra.mxu2 %v5516_v34 }
 0x3e6   : > { %917 = vmatpush.msra.mxu2 %v5515_v38 }
 0x3e8   : > { %918 = vmatpush.msra.mxu2 %v5514_v41 }
 0x3ea   : > { %919 = vmatpush.msra.mxu2 %v5513_v43  ;;  %v5569_v43 = vld [vmem:[%s12399_s5 + $0x368] sm:$0xff] }
 0x3ec   : > { %920 = vmatpush.msra.mxu2 %v5512_v33  ;;  %v5568_v33 = vld [vmem:[%s12399_s5 + $0x360] sm:$0xff] }
 0x3ee   : > { %921 = vmatpush.msra.mxu2 %v5511_v35  ;;  %v5583_v35 = vld [vmem:[%s12399_s5 + $0x3d8] sm:$0xff] }
 0x3f0   : > { %922 = vmatpush.msra.mxu2 %v5510_v57 }
 0x3f2   : > { %923 = vmatpush.msra.mxu2 %v5509_v58 }
 0x3f4   : > { %924 = vmatpush.msra.mxu2 %v5508_v59  ;;  %v5599_v59 = vld [vmem:[%s12399_s5 + $0x458] sm:$0xff] }
 0x437   : > { %v684_v12 = vpop.permute.xlu0 %683 }
 0x438   : > { %690 = vst.msk [vmem:[#allocation2 + $0xb] sm:$0xff] %vm689_vm4, %v684_v12  ;;  %v5531_v12 = vld [vmem:[%s12399_s5 + $0x238] sm:$0xff] }
 0x439   : > { %894 = vmatpush.msra.mxu1 %v5531_v12  ;;  %v5562_v12 = vld [vmem:[%s12399_s5 + $0x330] sm:$0xff] }
 0x43f   : > { %v694_v13 = vld [vmem:[#allocation2 + $0xa] sm:$0xff]  ;;  %v686_v14 = vpop.permute.xlu1 %685 }
 0x440   : > { %691 = vst.msk [vmem:[#allocation2 + $0x13] sm:$0xff] %vm689_vm4, %v686_v14  ;;  %770 = vmatmul.f32.vlgmr.msrb.gmra.mxu0 %v694_v13  ;;  %v5547_v13 = vld [vmem:[%s12399_s5 + $0x2b8] sm:$0xff]  ;;  %v5530_v14 = vld [vmem:[%s12399_s5 + $0x230] sm:$0xff] }
 0x441   : > { %959 = vmatpush.msra.mxu0 %v5547_v13  ;;  %895 = vmatpush.msra.mxu1 %v5530_v14 }
 0x447   : > { %v695_v16 = vld [vmem:[#allocation2 + $0x12] sm:$0xff] }
 0x448   : > { %v777_v17 = vld [vmem:[#allocation2 + $0xe] sm:$0xff]  ;;  %773 = vmatmul.f32.gmra.mxu0 %v695_v16  ;;  %v778_v19 = vld [vmem:[#allocation2 + $0x16] sm:$0xff] }
 0x449   : > { %v712_v18 = vld [vmem:[#allocation2 + $0xc] sm:$0xff]  ;;  %812 = vmatmul.f32.vlgmr.msra.gmra.mxu3 %v777_v17  ;;  %v713_v20 = vld [vmem:[#allocation2 + $0x14] sm:$0xff] }
 0x44a   : > { %747 = vmatmul.f32.vlgmr.msrb.gmra.mxu2 %v712_v18  ;;  %v5546_v16 = vld [vmem:[%s12399_s5 + $0x2b0] sm:$0xff]  ;;  %v5529_v17 = vld [vmem:[%s12399_s5 + $0x228] sm:$0xff] }
 0x44b   : > { %v5545_v18 = vld [vmem:[%s12399_s5 + $0x2a8] sm:$0xff]  ;;  %960 = vmatpush.msra.mxu0 %v5546_v16  ;;  %896 = vmatpush.msra.mxu1 %v5529_v17 }
 0x44d   : > { %961 = vmatpush.msra.mxu0 %v5545_v18 }
 0x451   : > { %815 = vmatmul.f32.gmra.mxu3 %v778_v19  ;;  %v5528_v19 = vld [vmem:[%s12399_s5 + $0x220] sm:$0xff] }
 0x452   : > { %750 = vmatmul.f32.gmra.mxu2 %v713_v20  ;;  %v5544_v20 = vld [vmem:[%s12399_s5 + $0x2a0] sm:$0xff]  ;;  %897 = vmatpush.msra.mxu1 %v5528_v19 }
 0x453   : > { %962 = vmatpush.msra.mxu0 %v5544_v20 }
 0x454   : > { %898 = vmatpush.msra.mxu1 %v5527_v22 }
 0x455   : > { %963 = vmatpush.msra.mxu0 %v5543_v23 }
 0x456   : > { %899 = vmatpush.msra.mxu1 %v5526_v24 }
 0x457   : > { %964 = vmatpush.msra.mxu0 %v5542_v25 }
 0x458   : > { %900 = vmatpush.msra.mxu1 %v5525_v26 }
 0x45a   : > { %901 = vmatpush.msra.mxu1 %v5524_v28  ;;  %v5559_v28 = vld [vmem:[%s12399_s5 + $0x318] sm:$0xff] }
 0x4bd   : > { %v771_v27 = vpop.f32.mrf.mxu0 }
 0x4c5   : > { %v774_v45 = vpop.f32.mrf.mxu0 }
 0x4cc   : > { %v813_v30 = vpop.f32.mrf.mxu3 }
 0x4cd   : > { %v748_v29 = vpop.f32.mrf.mxu2 }
 0x4ce   : > { %v772_v31 = vadd.f32 %v771_v27, %v748_v29  ;;  %v5541_v27 = vld [vmem:[%s12399_s5 + $0x288] sm:$0xff]  ;;  %v5540_v29 = vld [vmem:[%s12399_s5 + $0x280] sm:$0xff] }
 0x4cf   : > { %965 = vmatpush.msra.mxu0 %v5541_v27 }
 0x4d0   : > { %v819_v36 = vadd.f32 %v813_v30, %v772_v31 }
 0x4d1   : > { %966 = vmatpush.msra.mxu0 %v5540_v29  ;;  %v5595_v29 = vld [vmem:[%s12399_s5 + $0x438] sm:$0xff] }
 0x4d2   : > { %v822_v39 = vadd.f32 %v6944_v32, %v819_v36 }
 0x4d4   : > { %v826_v42 = vmul.f32 %v6945_v37, %v822_v39  ;;  %v816_v49 = vpop.f32.mrf.mxu3  ;;  %v7702_v39 = vpop.f32.mrf.mxu1 }
 0x4d5   : > { %v751_v46 = vpop.f32.mrf.mxu2 }
 0x4d6   : > { %v775_v47 = vadd.f32 %v774_v45, %v751_v46  ;;  %v830_v48 = vadd.f32 %v6946_v40, %v826_v42  ;;  %v5570_v42 = vld [vmem:[%s12399_s5 + $0x370] sm:$0xff]  ;;  %v5587_v45 = vld [vmem:[%s12399_s5 + $0x3f8] sm:$0xff] }
 0x4d7   : > { %v5603_v46 = vld [vmem:[%s12399_s5 + $0x478] sm:$0xff]  ;;  %1043 = vmatpush.msrb.mxu3 %v5587_v45 }
 0x4d8   : > { %v820_v50 = vadd.f32 %v816_v49, %v775_v47  ;;  %v832_v51 = vmax.f32 %v830_v48, 0.0  ;;  %v5586_v47 = vld [vmem:[%s12399_s5 + $0x3f0] sm:$0xff]  ;;  %1108 = vmatpush.msrb.mxu2 %v5603_v46  ;;  %v5585_v49 = vld [vmem:[%s12399_s5 + $0x3e8] sm:$0xff]  ;;  %v5591_v45 = vld [vmem:[%s12399_s5 + $0x418] sm:$0xff] }
 0x4d9   : > { %v5602_v48 = vld [vmem:[%s12399_s5 + $0x470] sm:$0xff]  ;;  %1044 = vmatpush.msrb.mxu3 %v5586_v47 }
 0x4da   : > { %v823_v52 = vadd.f32 %v6944_v32, %v820_v50  ;;  %839 = vrot.lane.b32.xlu2 %v832_v51, %s7100_s20  ;;  %835 = vst.msk [vmem:[#allocation2 + $0xc] sm:$0xff] %vm485_vm1, %v832_v51  ;;  %v5601_v50 = vld [vmem:[%s12399_s5 + $0x468] sm:$0xff]  ;;  %v5567_v51 = vld [vmem:[%s12399_s5 + $0x358] sm:$0xff]  ;;  %1109 = vmatpush.msrb.mxu2 %v5602_v48  ;;  %v5574_v46 = vld [vmem:[%s12399_s5 + $0x390] sm:$0xff] }
 0x4db   : > { %1045 = vmatpush.msrb.mxu3 %v5585_v49  ;;  %v5590_v47 = vld [vmem:[%s12399_s5 + $0x410] sm:$0xff]  ;;  %v5573_v48 = vld [vmem:[%s12399_s5 + $0x388] sm:$0xff]  ;;  %v5572_v49 = vld [vmem:[%s12399_s5 + $0x380] sm:$0xff] }
 0x4dc   : > { %v827_v54 = vmul.f32 %v6945_v37, %v823_v52  ;;  %v7707_v41 = vpop.f32.mrf.mxu1  ;;  %v5584_v52 = vld [vmem:[%s12399_s5 + $0x3e0] sm:$0xff]  ;;  %1110 = vmatpush.msrb.mxu2 %v5601_v50 }
 0x4dd   : > { %1046 = vmatpush.msrb.mxu3 %v5584_v52  ;;  %v5588_v50 = vld [vmem:[%s12399_s5 + $0x400] sm:$0xff] }
 0x4de   : > { %v831_v55 = vadd.f32 %v6946_v40, %v827_v54  ;;  %v5571_v40 = vld [vmem:[%s12399_s5 + $0x378] sm:$0xff]  ;;  %v5600_v54 = vld [vmem:[%s12399_s5 + $0x460] sm:$0xff] }
 0x4df   : > { %1066 = vmatpush.msrb.mxu1 %v5571_v40  ;;  %1111 = vmatpush.msrb.mxu2 %v5600_v54  ;;  %v5556_v40 = vld [vmem:[%s12399_s5 + $0x300] sm:$0xff] }
 0x4e0   : > { %v833_v56 = vmax.f32 %v831_v55, 0.0  ;;  %1047 = vmatpush.msrb.mxu3 %v5583_v35 }
 0x4e1   : > { %1067 = vmatpush.msrb.mxu1 %v5570_v42  ;;  %1112 = vmatpush.msrb.mxu2 %v5599_v59  ;;  %v5592_v42 = vld [vmem:[%s12399_s5 + $0x420] sm:$0xff]  ;;  %v5619_v59 = vld [vmem:[%s12399_s5 + $0x4f8] sm:$0xff] }
 0x4e2   : > { %841 = vrot.lane.b32.xlu0 %v833_v56, %s7100_s20  ;;  %836 = vst.msk [vmem:[#allocation2 + $0x14] sm:$0xff] %vm485_vm1, %v833_v56  ;;  %v5566_v56 = vld [vmem:[%s12399_s5 + $0x350] sm:$0xff]  ;;  %1048 = vmatpush.msrb.mxu3 %v5582_v63  ;;  %v5615_v63 = vld [vmem:[%s12399_s5 + $0x4d8] sm:$0xff] }
 0x4e3   : > { %847 = vst.msk [vmem:[#allocation2 + $0x1b] sm:$0x1] %vm692_vm3, %v7101_v15  ;;  %1068 = vmatpush.msrb.mxu1 %v5569_v43  ;;  %1113 = vmatpush.msrb.mxu2 %v5598_v0  ;;  %v5575_v43 = vld [vmem:[%s12399_s5 + $0x398] sm:$0xff]  ;;  %v5614_v0 = vld [vmem:[%s12399_s5 + $0x4d0] sm:$0xff] }
 0x4e4   : > { %1049 = vmatpush.msrb.mxu3 %v5581_v3 }
 0x4e5   : > { %1069 = vmatpush.msrb.mxu1 %v5568_v33  ;;  %1114 = vmatpush.msrb.mxu2 %v5597_v4  ;;  %v5589_v33 = vld [vmem:[%s12399_s5 + $0x408] sm:$0xff] }
 0x4e6   : > { %1050 = vmatpush.msrb.mxu3 %v5580_v8 }
 0x4e7   : > { %1070 = vmatpush.msrb.mxu1 %v5567_v51  ;;  %1115 = vmatpush.msrb.mxu2 %v5596_v9  ;;  %v6951_v9 = vld [vmem:[%s12401_s7 + $0x21] ss:$0 sm:$0xff] }
 0x4e9   : > { %1071 = vmatpush.msrb.mxu1 %v5566_v56  ;;  %1116 = vmatpush.msrb.mxu2 %v5595_v29  ;;  %v5607_v29 = vld [vmem:[%s12399_s5 + $0x498] sm:$0xff] }
 0x4eb   : > { %1072 = vmatpush.msrb.mxu1 %v5565_v62  ;;  %v5616_v62 = vld [vmem:[%s12399_s5 + $0x4e0] sm:$0xff] }
 0x4ed   : > { %1073 = vmatpush.msrb.mxu1 %v5564_v2  ;;  %v5613_v2 = vld [vmem:[%s12399_s5 + $0x4c8] sm:$0xff] }
 0x4ef   : > { %1074 = vmatpush.msrb.mxu1 %v5563_v7  ;;  %v5612_v7 = vld [vmem:[%s12399_s5 + $0x4c0] sm:$0xff] }
 0x4f1   : > { %1075 = vmatpush.msrb.mxu1 %v5562_v12 }
 0x534   : > { %v840_v21 = vpop.permute.xlu2 %839 }
 0x535   : > { %845 = vst.msk [vmem:[#allocation2 + $0xb] sm:$0xff] %vm689_vm4, %v840_v21  ;;  %v5560_v21 = vld [vmem:[%s12399_s5 + $0x320] sm:$0xff] }
 0x53c   : > { %v848_v30 = vld [vmem:[#allocation2 + $0xa] sm:$0xff] }
 0x53d   : > { %925 = vmatmul.f32.vlgmr.msra.gmra.mxu2 %v848_v30  ;;  %v5578_v30 = vld [vmem:[%s12399_s5 + $0x3b0] sm:$0xff] }
 0x554   : > { %v842_v31 = vpop.permute.xlu0 %841 }
 0x555   : > { %846 = vst.msk [vmem:[#allocation2 + $0x13] sm:$0xff] %vm689_vm4, %v842_v31  ;;  %v5558_v31 = vld [vmem:[%s12399_s5 + $0x310] sm:$0xff] }
 0x55c   : > { %v849_v32 = vld [vmem:[#allocation2 + $0x12] sm:$0xff] }
 0x55d   : > { %v932_v34 = vld [vmem:[#allocation2 + $0xe] sm:$0xff]  ;;  %928 = vmatmul.f32.gmra.mxu2 %v849_v32  ;;  %v933_v37 = vld [vmem:[#allocation2 + $0x16] sm:$0xff] }
 0x55e   : > { %v867_v36 = vld [vmem:[#allocation2 + $0xc] sm:$0xff]  ;;  %967 = vmatmul.f32.vlgmr.msra.gmra.mxu0 %v932_v34  ;;  %v868_v38 = vld [vmem:[#allocation2 + $0x14] sm:$0xff] }
 0x55f   : > { %902 = vmatmul.f32.vlgmr.msra.gmra.mxu1 %v867_v36  ;;  %v5594_v32 = vld [vmem:[%s12399_s5 + $0x430] sm:$0xff]  ;;  %v5577_v34 = vld [vmem:[%s12399_s5 + $0x3a8] sm:$0xff] }
 0x560   : > { %v5557_v36 = vld [vmem:[%s12399_s5 + $0x308] sm:$0xff]  ;;  %1117 = vmatpush.msrb.mxu2 %v5594_v32  ;;  %v5604_v32 = vld [vmem:[%s12399_s5 + $0x480] sm:$0xff] }
 0x566   : > { %970 = vmatmul.f32.gmra.mxu0 %v933_v37  ;;  %v5593_v37 = vld [vmem:[%s12399_s5 + $0x428] sm:$0xff] }
 0x567   : > { %905 = vmatmul.f32.gmra.mxu1 %v868_v38  ;;  %v5576_v38 = vld [vmem:[%s12399_s5 + $0x3a0] sm:$0xff]  ;;  %1118 = vmatpush.msrb.mxu2 %v5593_v37  ;;  %v5650_v37 = vld [vmem:[%s12399_s5 + $0x5f0] sm:$0xff] }
 0x569   : > { %1119 = vmatpush.msrb.mxu2 %v5592_v42  ;;  %v5632_v42 = vld [vmem:[%s12399_s5 + $0x560] sm:$0xff] }
 0x56b   : > { %1120 = vmatpush.msrb.mxu2 %v5591_v45  ;;  %v5631_v45 = vld [vmem:[%s12399_s5 + $0x558] sm:$0xff] }
 0x56d   : > { %1121 = vmatpush.msrb.mxu2 %v5590_v47  ;;  %v5630_v47 = vld [vmem:[%s12399_s5 + $0x550] sm:$0xff] }
 0x56f   : > { %1122 = vmatpush.msrb.mxu2 %v5589_v33  ;;  %v5629_v33 = vld [vmem:[%s12399_s5 + $0x548] sm:$0xff] }
 0x571   : > { %1123 = vmatpush.msrb.mxu2 %v5588_v50  ;;  %v5628_v50 = vld [vmem:[%s12399_s5 + $0x540] sm:$0xff] }
 0x5c0   : > { %v926_v55 = vpop.f32.mrf.mxu2 }
 0x5db   : > { %v968_v58 = vpop.f32.mrf.mxu0 }
 0x5dc   : > { %v903_v57 = vpop.f32.mrf.mxu1 }
 0x5dd   : > { %v927_v60 = vadd.f32 %v926_v55, %v903_v57 }
 0x5df   : > { %v974_v1 = vadd.f32 %v968_v58, %v927_v60  ;;  %v5618_v60 = vld [vmem:[%s12399_s5 + $0x4f0] sm:$0xff] }
 0x5e0   : > { %v929_v13 = vpop.f32.mrf.mxu2 }
 0x5e1   : > { %v977_v5 = vadd.f32 %v6947_v61, %v974_v1 }
 0x5e3   : > { %v7788_v10 = vadd.f32 %v977_v5, %v7447_v44  ;;  %v5561_v44 = vld [vmem:[%s12399_s5 + $0x328] sm:$0xff]  ;;  %v971_v18 = vpop.f32.mrf.mxu0 }
 0x5e4   : > { %v906_v14 = vpop.f32.mrf.mxu1  ;;  %1076 = vmatpush.msrb.mxu1 %v5561_v44 }
 0x5e5   : > { %v930_v16 = vadd.f32 %v929_v13, %v906_v14  ;;  %v983_v17 = vmul.f32 %v6948_v6, %v7788_v10  ;;  %v6952_v13 = vld [vmem:[%s12401_s7 + $0x39] ss:$0 sm:$0xff]  ;;  %v5610_v14 = vld [vmem:[%s12399_s5 + $0x4b0] sm:$0xff] }
 0x5e6   : > { %1077 = vmatpush.msrb.mxu1 %v5560_v21  ;;  %v5608_v21 = vld [vmem:[%s12399_s5 + $0x4a0] sm:$0xff] }
 0x5e7   : > { %v975_v19 = vadd.f32 %v971_v18, %v930_v16  ;;  %v987_v20 = vadd.f32 %v6949_v11, %v983_v17  ;;  %v5609_v17 = vld [vmem:[%s12399_s5 + $0x4a8] sm:$0xff] }
 0x5e8   : > { %1078 = vmatpush.msrb.mxu1 %v5559_v28 }
 0x5e9   : > { %v978_v22 = vadd.f32 %v6947_v61, %v975_v19  ;;  %v989_v23 = vmax.f32 %v987_v20, 0.0  ;;  %v5617_v61 = vld [vmem:[%s12399_s5 + $0x4e8] sm:$0xff] }
 0x5ea   : > { %1079 = vmatpush.msrb.mxu1 %v5558_v31  ;;  %v5605_v31 = vld [vmem:[%s12399_s5 + $0x488] sm:$0xff] }
 0x5eb   : > { %v7804_v24 = vadd.f32 %v978_v22, %v7468_v53  ;;  %996 = vrot.lane.b32.xlu0 %v989_v23, %s7100_s20  ;;  %992 = vst.msk [vmem:[#allocation2 + $0xc] sm:$0xff] %vm485_vm1, %v989_v23  ;;  %v5579_v53 = vld [vmem:[%s12399_s5 + $0x3b8] sm:$0xff] }
 0x5ec   : > { %1051 = vmatpush.msrb.mxu3 %v5579_v53  ;;  %1080 = vmatpush.msrb.mxu1 %v5557_v36  ;;  %v5634_v36 = vld [vmem:[%s12399_s5 + $0x570] sm:$0xff] }
 0x5ed   : > { %v984_v25 = vmul.f32 %v6948_v6, %v7804_v24  ;;  %v6950_v6 = vld [vmem:[%s12401_s7 + $0x8] ss:$0 sm:$0xff] }
 0x5ee   : > { %1052 = vmatpush.msrb.mxu3 %v5578_v30  ;;  %1081 = vmatpush.msrb.mxu1 %v5556_v40  ;;  %v5606_v30 = vld [vmem:[%s12399_s5 + $0x490] sm:$0xff]  ;;  %v5649_v40 = vld [vmem:[%s12399_s5 + $0x5e8] sm:$0xff] }
 0x5ef   : > { %v988_v26 = vadd.f32 %v6949_v11, %v984_v25  ;;  %v5611_v11 = vld [vmem:[%s12399_s5 + $0x4b8] sm:$0xff] }
 0x5f0   : > { %1053 = vmatpush.msrb.mxu3 %v5577_v34  ;;  %v5651_v34 = vld [vmem:[%s12399_s5 + $0x5f8] sm:$0xff] }
 0x5f1   : > { %v990_v27 = vmax.f32 %v988_v26, 0.0  ;;  %1263 = vmatpush.msra.mxu1 %v5651_v34  ;;  %v6955_v34 = vld [vmem:[%s12401_s7 + $0x3a] ss:$0 sm:$0xff] }
 0x5f2   : > { %1054 = vmatpush.msrb.mxu3 %v5576_v38  ;;  %v5633_v38 = vld [vmem:[%s12399_s5 + $0x568] sm:$0xff] }
 0x5f3   : > { %998 = vrot.lane.b32.xlu0 %v990_v27, %s7100_s20  ;;  %993 = vst.msk [vmem:[#allocation2 + $0x14] sm:$0xff] %vm485_vm1, %v990_v27  ;;  %1264 = vmatpush.msra.mxu1 %v5650_v37 }
 0x5f4   : > { %1004 = vst.msk [vmem:[#allocation2 + $0x1b] sm:$0x1] %vm692_vm3, %v7101_v15  ;;  %1055 = vmatpush.msrb.mxu3 %v5575_v43  ;;  %v5648_v43 = vld [vmem:[%s12399_s5 + $0x5e0] sm:$0xff] }
 0x5f5   : > { %1265 = vmatpush.msra.mxu1 %v5649_v40 }
 0x5f6   : > { %1056 = vmatpush.msrb.mxu3 %v5574_v46  ;;  %v5647_v46 = vld [vmem:[%s12399_s5 + $0x5d8] sm:$0xff] }
 0x5f7   : > { %1266 = vmatpush.msra.mxu1 %v5648_v43 }
 0x5f8   : > { %1057 = vmatpush.msrb.mxu3 %v5573_v48  ;;  %v5646_v48 = vld [vmem:[%s12399_s5 + $0x5d0] sm:$0xff] }
 0x5f9   : > { %1267 = vmatpush.msra.mxu1 %v5647_v46 }
 0x5fa   : > { %1058 = vmatpush.msrb.mxu3 %v5572_v49  ;;  %v5645_v49 = vld [vmem:[%s12399_s5 + $0x5c8] sm:$0xff] }
 0x5fb   : > { %1268 = vmatpush.msra.mxu1 %v5646_v48 }
 0x5fc   : > { %1221 = vmatpush.msra.mxu3 %v5619_v59  ;;  %v5640_v59 = vld [vmem:[%s12399_s5 + $0x5a0] sm:$0xff] }
 0x5fd   : > { %1269 = vmatpush.msra.mxu1 %v5645_v49 }
 0x5fe   : > { %1222 = vmatpush.msra.mxu3 %v5618_v60 }
 0x600   : > { %1223 = vmatpush.msra.mxu3 %v5617_v61  ;;  %v5623_v61 = vld [vmem:[%s12399_s5 + $0x518] sm:$0xff] }
 0x602   : > { %1224 = vmatpush.msra.mxu3 %v5616_v62  ;;  %v5639_v62 = vld [vmem:[%s12399_s5 + $0x598] sm:$0xff] }
 0x604   : > { %1225 = vmatpush.msra.mxu3 %v5615_v63  ;;  %v5622_v63 = vld [vmem:[%s12399_s5 + $0x510] sm:$0xff] }
 0x606   : > { %1226 = vmatpush.msra.mxu3 %v5614_v0  ;;  %v5638_v0 = vld [vmem:[%s12399_s5 + $0x590] sm:$0xff] }
 0x608   : > { %1227 = vmatpush.msra.mxu3 %v5613_v2  ;;  %v5637_v2 = vld [vmem:[%s12399_s5 + $0x588] sm:$0xff] }
 0x60a   : > { %1228 = vmatpush.msra.mxu3 %v5612_v7 }
 0x60c   : > { %1229 = vmatpush.msra.mxu3 %v5611_v11 }
 0x60e   : > { %1230 = vmatpush.msra.mxu3 %v5610_v14  ;;  %v5667_v14 = vld [vmem:[%s12399_s5 + $0x678] sm:$0xff] }
 0x610   : > { %1231 = vmatpush.msra.mxu3 %v5609_v17  ;;  %v5682_v17 = vld [vmem:[%s12399_s5 + $0x6f0] sm:$0xff] }
 0x612   : > { %1232 = vmatpush.msra.mxu3 %v5608_v21  ;;  %v5697_v21 = vld [vmem:[%s12399_s5 + $0x768] sm:$0xff] }
 0x614   : > { %1233 = vmatpush.msra.mxu3 %v5607_v29  ;;  %v6953_v29 = vld [vmem:[%s12401_s7 + $0x9] ss:$0 sm:$0xff] }
 0x616   : > { %1234 = vmatpush.msra.mxu3 %v5606_v30 }
 0x618   : > { %1235 = vmatpush.msra.mxu3 %v5605_v31 }
 0x61a   : > { %1236 = vmatpush.msra.mxu3 %v5604_v32  ;;  %v6954_v32 = vld [vmem:[%s12401_s7 + $0x22] ss:$0 sm:$0xff] }
 0x65d   : > { %v997_v51 = vpop.permute.xlu0 %996 }
 0x65e   : > { %1002 = vst.msk [vmem:[#allocation2 + $0xb] sm:$0xff] %vm689_vm4, %v997_v51  ;;  %v5644_v51 = vld [vmem:[%s12399_s5 + $0x5c0] sm:$0xff] }
 0x65f   : > { %1270 = vmatpush.msra.mxu1 %v5644_v51  ;;  %v5663_v51 = vld [vmem:[%s12399_s5 + $0x658] sm:$0xff] }
 0x665   : > { %v999_v52 = vpop.permute.xlu0 %998  ;;  %v1005_v54 = vld [vmem:[#allocation2 + $0xa] sm:$0xff] }
 0x666   : > { %1003 = vst.msk [vmem:[#allocation2 + $0x13] sm:$0xff] %vm689_vm4, %v999_v52  ;;  %1082 = vmatmul.f32.vlgmr.msrb.gmra.mxu1 %v1005_v54  ;;  %v5627_v52 = vld [vmem:[%s12399_s5 + $0x538] sm:$0xff] }
 0x667   : > { %v5643_v54 = vld [vmem:[%s12399_s5 + $0x5b8] sm:$0xff] }
 0x668   : > { %1271 = vmatpush.msra.mxu1 %v5643_v54  ;;  %v5678_v54 = vld [vmem:[%s12399_s5 + $0x6d0] sm:$0xff] }
 0x66d   : > { %v1006_v55 = vld [vmem:[#allocation2 + $0x12] sm:$0xff] }
 0x66e   : > { %v1089_v56 = vld [vmem:[#allocation2 + $0xe] sm:$0xff]  ;;  %1085 = vmatmul.f32.gmra.mxu1 %v1006_v55  ;;  %v1090_v58 = vld [vmem:[#allocation2 + $0x16] sm:$0xff] }
 0x66f   : > { %v1024_v35 = vld [vmem:[#allocation2 + $0xc] sm:$0xff]  ;;  %1124 = vmatmul.f32.vlgmr.msrb.gmra.mxu2 %v1089_v56  ;;  %v1025_v57 = vld [vmem:[#allocation2 + $0x14] sm:$0xff] }
 0x670   : > { %1059 = vmatmul.f32.vlgmr.msrb.gmra.mxu3 %v1024_v35  ;;  %v5626_v55 = vld [vmem:[%s12399_s5 + $0x530] sm:$0xff]  ;;  %v5625_v35 = vld [vmem:[%s12399_s5 + $0x528] sm:$0xff] }
 0x671   : > { %v5642_v56 = vld [vmem:[%s12399_s5 + $0x5b0] sm:$0xff] }
 0x672   : > { %1272 = vmatpush.msra.mxu1 %v5642_v56  ;;  %v5694_v56 = vld [vmem:[%s12399_s5 + $0x750] sm:$0xff] }
 0x677   : > { %1127 = vmatmul.f32.gmra.mxu2 %v1090_v58  ;;  %v5624_v58 = vld [vmem:[%s12399_s5 + $0x520] sm:$0xff] }
 0x678   : > { %1062 = vmatmul.f32.gmra.mxu3 %v1025_v57  ;;  %v5641_v57 = vld [vmem:[%s12399_s5 + $0x5a8] sm:$0xff] }
 0x679   : > { %1273 = vmatpush.msra.mxu1 %v5641_v57  ;;  %v5661_v57 = vld [vmem:[%s12399_s5 + $0x648] sm:$0xff] }
 0x67b   : > { %1274 = vmatpush.msra.mxu1 %v5640_v59  ;;  %v5676_v59 = vld [vmem:[%s12399_s5 + $0x6c0] sm:$0xff] }
 0x67d   : > { %1275 = vmatpush.msra.mxu1 %v5639_v62  ;;  %v5675_v62 = vld [vmem:[%s12399_s5 + $0x6b8] sm:$0xff] }
 0x67f   : > { %1276 = vmatpush.msra.mxu1 %v5638_v0  ;;  %v5691_v0 = vld [vmem:[%s12399_s5 + $0x738] sm:$0xff] }
 0x681   : > { %1277 = vmatpush.msra.mxu1 %v5637_v2  ;;  %v5658_v2 = vld [vmem:[%s12399_s5 + $0x630] sm:$0xff] }
 0x6e3   : > { %v1083_v1 = vpop.f32.mrf.mxu1 }
 0x6eb   : > { %v1086_v44 = vpop.f32.mrf.mxu1 }
 0x6f2   : > { %v1125_v5 = vpop.f32.mrf.mxu2 }
 0x6f3   : > { %v1060_v3 = vpop.f32.mrf.mxu3 }
 0x6f4   : > { %v1084_v4 = vadd.f32 %v1083_v1, %v1060_v3  ;;  %v5621_v1 = vld [vmem:[%s12399_s5 + $0x508] sm:$0xff]  ;;  %v5620_v3 = vld [vmem:[%s12399_s5 + $0x500] sm:$0xff] }
 0x6f6   : > { %v1131_v8 = vadd.f32 %v1125_v5, %v1084_v4  ;;  %v5636_v4 = vld [vmem:[%s12399_s5 + $0x580] sm:$0xff] }
 0x6f7   : > { %1278 = vmatpush.msra.mxu1 %v5636_v4  ;;  %v5673_v4 = vld [vmem:[%s12399_s5 + $0x6a8] sm:$0xff] }
 0x6f8   : > { %v1134_v12 = vadd.f32 %v6950_v6, %v1131_v8 }
 0x6fa   : > { %v1138_v16 = vmul.f32 %v6951_v9, %v1134_v12  ;;  %v1128_v22 = vpop.f32.mrf.mxu2 }
 0x6fb   : > { %v1063_v18 = vpop.f32.mrf.mxu3 }
 0x6fc   : > { %v1087_v19 = vadd.f32 %v1086_v44, %v1063_v18  ;;  %v1142_v20 = vadd.f32 %v6952_v13, %v1138_v16  ;;  %v5699_v16 = vld [vmem:[%s12399_s5 + $0x778] sm:$0xff]  ;;  %v5666_v44 = vld [vmem:[%s12399_s5 + $0x670] sm:$0xff] }
 0x6fd   : > { %1420 = vmatpush.msrb.mxu3 %v5699_v16  ;;  %v5698_v18 = vld [vmem:[%s12399_s5 + $0x770] sm:$0xff] }
 0x6fe   : > { %v1132_v23 = vadd.f32 %v1128_v22, %v1087_v19  ;;  %v1144_v25 = vmax.f32 %v1142_v20, 0.0  ;;  %v5681_v19 = vld [vmem:[%s12399_s5 + $0x6e8] sm:$0xff]  ;;  %v5680_v22 = vld [vmem:[%s12399_s5 + $0x6e0] sm:$0xff]  ;;  %v5654_v16 = vld [vmem:[%s12399_s5 + $0x610] sm:$0xff] }
 0x6ff   : > { %v5665_v20 = vld [vmem:[%s12399_s5 + $0x668] sm:$0xff]  ;;  %1421 = vmatpush.msrb.mxu3 %v5698_v18 }
 0x700   : > { %v1135_v26 = vadd.f32 %v6950_v6, %v1132_v23  ;;  %1151 = vrot.lane.b32.xlu2 %v1144_v25, %s7100_s20  ;;  %1147 = vst.msk [vmem:[#allocation2 + $0xc] sm:$0xff] %vm485_vm1, %v1144_v25  ;;  %v5664_v23 = vld [vmem:[%s12399_s5 + $0x660] sm:$0xff]  ;;  %v5653_v18 = vld [vmem:[%s12399_s5 + $0x608] sm:$0xff] }
 0x701   : > { %v5696_v25 = vld [vmem:[%s12399_s5 + $0x760] sm:$0xff]  ;;  %1422 = vmatpush.msrb.mxu3 %v5697_v21 }
 0x702   : > { %v1139_v27 = vmul.f32 %v6951_v9, %v1135_v26  ;;  %v5652_v21 = vld [vmem:[%s12399_s5 + $0x600] sm:$0xff] }
 0x703   : > { %1423 = vmatpush.msrb.mxu3 %v5696_v25 }
 0x704   : > { %v1143_v53 = vadd.f32 %v6952_v13, %v1139_v27  ;;  %v5683_v13 = vld [vmem:[%s12399_s5 + $0x6f8] sm:$0xff] }
 0x705   : > { %1355 = vmatpush.msra.mxu2 %v5683_v13  ;;  %v5687_v13 = vld [vmem:[%s12399_s5 + $0x718] sm:$0xff] }
 0x706   : > { %v1145_v28 = vmax.f32 %v1143_v53, 0.0 }
 0x707   : > { %1356 = vmatpush.msra.mxu2 %v5682_v17  ;;  %v5686_v17 = vld [vmem:[%s12399_s5 + $0x710] sm:$0xff] }
 0x708   : > { %1153 = vrot.lane.b32.xlu1 %v1145_v28, %s7100_s20  ;;  %1148 = vst.msk [vmem:[#allocation2 + $0x14] sm:$0xff] %vm485_vm1, %v1145_v28 }
 0x709   : > { %1159 = vst.msk [vmem:[#allocation2 + $0x1b] sm:$0x1] %vm692_vm3, %v7101_v15  ;;  %v5635_v15 = vld [vmem:[%s12399_s5 + $0x578] sm:$0xff]  ;;  %1357 = vmatpush.msra.mxu2 %v5681_v19  ;;  %v5685_v19 = vld [vmem:[%s12399_s5 + $0x708] sm:$0xff] }
 0x70a   : > { %1198 = vmatpush.msrb.mxu0 %v5635_v15 }
 0x70b   : > { %1358 = vmatpush.msra.mxu2 %v5680_v22  ;;  %v5684_v22 = vld [vmem:[%s12399_s5 + $0x700] sm:$0xff] }
 0x70c   : > { %1199 = vmatpush.msrb.mxu0 %v5634_v36 }
 0x70e   : > { %1200 = vmatpush.msrb.mxu0 %v5633_v38 }
 0x710   : > { %1201 = vmatpush.msrb.mxu0 %v5632_v42 }
 0x712   : > { %1202 = vmatpush.msrb.mxu0 %v5631_v45 }
 0x714   : > { %1203 = vmatpush.msrb.mxu0 %v5630_v47 }
 0x716   : > { %1204 = vmatpush.msrb.mxu0 %v5629_v33 }
 0x718   : > { %1205 = vmatpush.msrb.mxu0 %v5628_v50  ;;  %v8093_v50 = vld [vmem:[#allocation2 + $0x1c] sm:$0xff] }
 0x71a   : > { %1206 = vmatpush.msrb.mxu0 %v5627_v52  ;;  %v5695_v52 = vld [vmem:[%s12399_s5 + $0x758] sm:$0xff] }
 0x71b   : > { %1424 = vmatpush.msrb.mxu3 %v5695_v52  ;;  %v5709_v52 = vld [vmem:[%s12399_s5 + $0x7c8] sm:$0xff] }
 0x71c   : > { %1207 = vmatpush.msrb.mxu0 %v5626_v55  ;;  %v5662_v55 = vld [vmem:[%s12399_s5 + $0x650] sm:$0xff] }
 0x71d   : > { %1425 = vmatpush.msrb.mxu3 %v5694_v56  ;;  %v5742_v56 = vld [vmem:[%s12399_s5 + $0x8d0] sm:$0xff] }
 0x71e   : > { %1208 = vmatpush.msrb.mxu0 %v5625_v35  ;;  %v5677_v35 = vld [vmem:[%s12399_s5 + $0x6c8] sm:$0xff] }
 0x720   : > { %1209 = vmatpush.msrb.mxu0 %v5624_v58  ;;  %v5693_v58 = vld [vmem:[%s12399_s5 + $0x748] sm:$0xff] }
 0x721   : > { %1426 = vmatpush.msrb.mxu3 %v5693_v58  ;;  %v6956_v58 = vld [vmem:[%s12401_s7 + $0xa] ss:$0 sm:$0xff] }
 0x722   : > { %1210 = vmatpush.msrb.mxu0 %v5623_v61  ;;  %v5692_v61 = vld [vmem:[%s12399_s5 + $0x740] sm:$0xff] }
 0x723   : > { %1427 = vmatpush.msrb.mxu3 %v5692_v61  ;;  %v5741_v61 = vld [vmem:[%s12399_s5 + $0x8c8] sm:$0xff] }
 0x724   : > { %1211 = vmatpush.msrb.mxu0 %v5622_v63  ;;  %v5659_v63 = vld [vmem:[%s12399_s5 + $0x638] sm:$0xff] }
 0x725   : > { %1428 = vmatpush.msrb.mxu3 %v5691_v0  ;;  %v5707_v0 = vld [vmem:[%s12399_s5 + $0x7b8] sm:$0xff] }
 0x726   : > { %1212 = vmatpush.msrb.mxu0 %v5621_v1  ;;  %v5674_v1 = vld [vmem:[%s12399_s5 + $0x6b0] sm:$0xff] }
 0x728   : > { %1213 = vmatpush.msrb.mxu0 %v5620_v3  ;;  %v5690_v3 = vld [vmem:[%s12399_s5 + $0x730] sm:$0xff] }
 0x729   : > { %1429 = vmatpush.msrb.mxu3 %v5690_v3 }
 0x72a   : > { %1378 = vmatpush.msra.mxu0 %v5667_v14  ;;  %v5670_v14 = vld [vmem:[%s12399_s5 + $0x690] sm:$0xff] }
 0x72c   : > { %1379 = vmatpush.msra.mxu0 %v5666_v44  ;;  %v5669_v44 = vld [vmem:[%s12399_s5 + $0x688] sm:$0xff] }
 0x72e   : > { %1380 = vmatpush.msra.mxu0 %v5665_v20  ;;  %v5668_v20 = vld [vmem:[%s12399_s5 + $0x680] sm:$0xff] }
 0x730   : > { %1381 = vmatpush.msra.mxu0 %v5664_v23 }
 0x732   : > { %1382 = vmatpush.msra.mxu0 %v5663_v51  ;;  %v5743_v51 = vld [vmem:[%s12399_s5 + $0x8d8] sm:$0xff] }
 0x734   : > { %1383 = vmatpush.msra.mxu0 %v5662_v55 }
 0x736   : > { %1384 = vmatpush.msra.mxu0 %v5661_v57 }
 0x75a   : > { %v1152_v60 = vpop.permute.xlu2 %1151 }
 0x75b   : > { %1157 = vst.msk [vmem:[#allocation2 + $0xb] sm:$0xff] %vm689_vm4, %v1152_v60  ;;  %v5660_v60 = vld [vmem:[%s12399_s5 + $0x640] sm:$0xff] }
 0x75c   : > { %1385 = vmatpush.msra.mxu0 %v5660_v60  ;;  %v5725_v60 = vld [vmem:[%s12399_s5 + $0x848] sm:$0xff] }
 0x75e   : > { %1386 = vmatpush.msra.mxu0 %v5659_v63  ;;  %v6957_v63 = vld [vmem:[%s12401_s7 + $0x23] ss:$0 sm:$0xff] }
 0x760   : > { %1387 = vmatpush.msra.mxu0 %v5658_v2  ;;  %v5740_v2 = vld [vmem:[%s12399_s5 + $0x8c0] sm:$0xff] }
 0x762   : > { %v1160_v5 = vld [vmem:[#allocation2 + $0xa] sm:$0xff] }
 0x763   : > { %1237 = vmatmul.f32.vlgmr.msra.gmra.mxu3 %v1160_v5  ;;  %v5657_v5 = vld [vmem:[%s12399_s5 + $0x628] sm:$0xff] }
 0x764   : > { %1388 = vmatpush.msra.mxu0 %v5657_v5  ;;  %v5706_v5 = vld [vmem:[%s12399_s5 + $0x7b0] sm:$0xff] }
 0x77a   : > { %v1154_v6 = vpop.permute.xlu1 %1153 }
 0x77b   : > { %1158 = vst.msk [vmem:[#allocation2 + $0x13] sm:$0xff] %vm689_vm4, %v1154_v6  ;;  %v5689_v6 = vld [vmem:[%s12399_s5 + $0x728] sm:$0xff] }
 0x77c   : > { %1430 = vmatpush.msrb.mxu3 %v5689_v6 }
 0x782   : > { %v1161_v7 = vld [vmem:[#allocation2 + $0x12] sm:$0xff] }
 0x783   : > { %v1179_v8 = vld [vmem:[#allocation2 + $0xc] sm:$0xff]  ;;  %1240 = vmatmul.f32.gmra.mxu3 %v1161_v7  ;;  %v1180_v11 = vld [vmem:[#allocation2 + $0x14] sm:$0xff]  ;;  %v5672_v7 = vld [vmem:[%s12399_s5 + $0x6a0] sm:$0xff] }
 0x784   : > { %v1244_v9 = vld [vmem:[#allocation2 + $0xe] sm:$0xff]  ;;  %1214 = vmatmul.f32.vlgmr.msrb.gmra.mxu0 %v1179_v8  ;;  %v1245_v12 = vld [vmem:[#allocation2 + $0x16] sm:$0xff]  ;;  %v5656_v8 = vld [vmem:[%s12399_s5 + $0x620] sm:$0xff] }
 0x785   : > { %1279 = vmatmul.f32.vlgmr.msra.gmra.mxu1 %v1244_v9  ;;  %v5688_v9 = vld [vmem:[%s12399_s5 + $0x720] sm:$0xff]  ;;  %1389 = vmatpush.msra.mxu0 %v5656_v8 }
 0x786   : > { %1431 = vmatpush.msrb.mxu3 %v5688_v9 }
 0x788   : > { %1432 = vmatpush.msrb.mxu3 %v5687_v13  ;;  %v5704_v13 = vld [vmem:[%s12399_s5 + $0x7a0] sm:$0xff] }
 0x78a   : > { %1433 = vmatpush.msrb.mxu3 %v5686_v17 }
 0x78c   : > { %1217 = vmatmul.f32.gmra.mxu0 %v1180_v11  ;;  %v5671_v11 = vld [vmem:[%s12399_s5 + $0x698] sm:$0xff]  ;;  %1434 = vmatpush.msrb.mxu3 %v5685_v19 }
 0x78d   : > { %1282 = vmatmul.f32.gmra.mxu1 %v1245_v12  ;;  %v5655_v12 = vld [vmem:[%s12399_s5 + $0x618] sm:$0xff] }
 0x78e   : > { %1390 = vmatpush.msra.mxu0 %v5655_v12  ;;  %1435 = vmatpush.msrb.mxu3 %v5684_v22  ;;  %v5703_v22 = vld [vmem:[%s12399_s5 + $0x798] sm:$0xff] }
 0x790   : > { %1391 = vmatpush.msra.mxu0 %v5654_v16 }
 0x792   : > { %1392 = vmatpush.msra.mxu0 %v5653_v18 }
 0x794   : > { %1393 = vmatpush.msra.mxu0 %v5652_v21  ;;  %v5723_v21 = vld [vmem:[%s12399_s5 + $0x838] sm:$0xff] }
 0x7e6   : > { %v1238_v26 = vpop.f32.mrf.mxu3 }
 0x801   : > { %v1215_v27 = vpop.f32.mrf.mxu0 }
 0x802   : > { %v1239_v53 = vadd.f32 %v1238_v26, %v1215_v27  ;;  %v1280_v28 = vpop.f32.mrf.mxu1 }
 0x804   : > { %v1286_v30 = vadd.f32 %v1280_v28, %v1239_v53 }
 0x806   : > { %v1289_v31 = vadd.f32 %v6953_v29, %v1286_v30  ;;  %v1241_v36 = vpop.f32.mrf.mxu3 }
 0x808   : > { %v8079_v15 = vadd.f32 %v1289_v31, %v7788_v10  ;;  %v5715_v31 = vld [vmem:[%s12399_s5 + $0x7f8] sm:$0xff] }
 0x809   : > { %v1218_v37 = vpop.f32.mrf.mxu0 }
 0x80a   : > { %v1242_v38 = vadd.f32 %v1241_v36, %v1218_v37  ;;  %v1295_v40 = vmul.f32 %v6954_v32, %v8079_v15  ;;  %v1283_v42 = vpop.f32.mrf.mxu1  ;;  %v5731_v36 = vld [vmem:[%s12399_s5 + $0x878] sm:$0xff] }
 0x80b   : > { %v5747_v37 = vld [vmem:[%s12399_s5 + $0x8f8] sm:$0xff]  ;;  %1510 = vmatpush.msrb.mxu1 %v5731_v36 }
 0x80c   : > { %v1287_v43 = vadd.f32 %v1283_v42, %v1242_v38  ;;  %v1299_v45 = vadd.f32 %v6955_v34, %v1295_v40  ;;  %v5730_v38 = vld [vmem:[%s12399_s5 + $0x870] sm:$0xff]  ;;  %v5712_v42 = vld [vmem:[%s12399_s5 + $0x7e0] sm:$0xff]  ;;  %1575 = vmatpush.msrb.mxu0 %v5747_v37  ;;  %v5735_v36 = vld [vmem:[%s12399_s5 + $0x898] sm:$0xff] }
 0x80d   : > { %v5746_v40 = vld [vmem:[%s12399_s5 + $0x8f0] sm:$0xff]  ;;  %1511 = vmatpush.msrb.mxu1 %v5730_v38 }
 0x80e   : > { %v1290_v46 = vadd.f32 %v6953_v29, %v1287_v43  ;;  %v1301_v47 = vmax.f32 %v1299_v45, 0.0  ;;  %v5729_v43 = vld [vmem:[%s12399_s5 + $0x868] sm:$0xff]  ;;  %1576 = vmatpush.msrb.mxu0 %v5746_v40  ;;  %v5718_v37 = vld [vmem:[%s12399_s5 + $0x810] sm:$0xff] }
 0x80f   : > { %v5745_v45 = vld [vmem:[%s12399_s5 + $0x8e8] sm:$0xff]  ;;  %1512 = vmatpush.msrb.mxu1 %v5729_v43  ;;  %v5734_v38 = vld [vmem:[%s12399_s5 + $0x890] sm:$0xff]  ;;  %v5716_v43 = vld [vmem:[%s12399_s5 + $0x800] sm:$0xff] }
 0x810   : > { %v8086_v48 = vadd.f32 %v1290_v46, %v7804_v24  ;;  %1308 = vrot.lane.b32.xlu0 %v1301_v47, %s7100_s20  ;;  %1304 = vst.msk [vmem:[#allocation2 + $0xc] sm:$0xff] %vm485_vm1, %v1301_v47  ;;  %v5679_v24 = vld [vmem:[%s12399_s5 + $0x6d8] sm:$0xff]  ;;  %v5728_v47 = vld [vmem:[%s12399_s5 + $0x860] sm:$0xff]  ;;  %1577 = vmatpush.msrb.mxu0 %v5745_v45  ;;  %v5717_v40 = vld [vmem:[%s12399_s5 + $0x808] sm:$0xff] }
 0x811   : > { %1359 = vmatpush.msra.mxu2 %v5679_v24  ;;  %v5711_v46 = vld [vmem:[%s12399_s5 + $0x7d8] sm:$0xff]  ;;  %1513 = vmatpush.msrb.mxu1 %v5728_v47  ;;  %v5732_v45 = vld [vmem:[%s12399_s5 + $0x880] sm:$0xff] }
 0x812   : > { %v1296_v10 = vmul.f32 %v6954_v32, %v8086_v48  ;;  %v5714_v32 = vld [vmem:[%s12399_s5 + $0x7f0] sm:$0xff] }
 0x813   : > { %1360 = vmatpush.msra.mxu2 %v5678_v54  ;;  %v5726_v54 = vld [vmem:[%s12399_s5 + $0x850] sm:$0xff] }
 0x814   : > { %v1300_v33 = vadd.f32 %v6955_v34, %v1296_v10  ;;  %v5713_v34 = vld [vmem:[%s12399_s5 + $0x7e8] sm:$0xff]  ;;  %v5744_v10 = vld [vmem:[%s12399_s5 + $0x8e0] sm:$0xff] }
 0x815   : > { %1361 = vmatpush.msra.mxu2 %v5677_v35  ;;  %1578 = vmatpush.msrb.mxu0 %v5744_v10 }
 0x816   : > { %v1302_v49 = vmax.f32 %v1300_v33, 0.0  ;;  %v5710_v33 = vld [vmem:[%s12399_s5 + $0x7d0] sm:$0xff] }
 0x817   : > { %1362 = vmatpush.msra.mxu2 %v5676_v59  ;;  %v5708_v59 = vld [vmem:[%s12399_s5 + $0x7c0] sm:$0xff]  ;;  %1579 = vmatpush.msrb.mxu0 %v5743_v51 }
 0x818   : > { %1310 = vrot.lane.b32.xlu2 %v1302_v49, %s7100_s20  ;;  %1305 = vst.msk [vmem:[#allocation2 + $0x14] sm:$0xff] %vm485_vm1, %v1302_v49  ;;  %v5727_v49 = vld [vmem:[%s12399_s5 + $0x858] sm:$0xff] }
 0x819   : > { %1316 = vst.msk [vmem:[#allocation2 + $0x1b] sm:$0x1] %vm692_vm3, %v8093_v50  ;;  %1363 = vmatpush.msra.mxu2 %v5675_v62  ;;  %1514 = vmatpush.msrb.mxu1 %v5727_v49 }
 0x81a   : > { %1580 = vmatpush.msrb.mxu0 %v5742_v56  ;;  %v5761_v56 = vld [vmem:[%s12399_s5 + $0x968] sm:$0xff] }
 0x81b   : > { %1364 = vmatpush.msra.mxu2 %v5674_v1  ;;  %1515 = vmatpush.msrb.mxu1 %v5726_v54  ;;  %v5724_v1 = vld [vmem:[%s12399_s5 + $0x840] sm:$0xff]  ;;  %v5763_v54 = vld [vmem:[%s12399_s5 + $0x978] sm:$0xff] }
 0x81c   : > { %1581 = vmatpush.msrb.mxu0 %v5741_v61 }
 0x81d   : > { %1365 = vmatpush.msra.mxu2 %v5673_v4  ;;  %1516 = vmatpush.msrb.mxu1 %v5725_v60  ;;  %v6958_v4 = vld [vmem:[%s12401_s7 + $0x3b] ss:$0 sm:$0xff] }
 0x81e   : > { %1582 = vmatpush.msrb.mxu0 %v5740_v2  ;;  %v5756_v2 = vld [vmem:[%s12399_s5 + $0x940] sm:$0xff] }
 0x81f   : > { %1366 = vmatpush.msra.mxu2 %v5672_v7  ;;  %1517 = vmatpush.msrb.mxu1 %v5724_v1  ;;  %v5705_v7 = vld [vmem:[%s12399_s5 + $0x7a8] sm:$0xff] }
 0x821   : > { %1367 = vmatpush.msra.mxu2 %v5671_v11  ;;  %1518 = vmatpush.msrb.mxu1 %v5723_v21 }
 0x823   : > { %1368 = vmatpush.msra.mxu2 %v5670_v14 }
 0x825   : > { %1369 = vmatpush.msra.mxu2 %v5669_v44 }
 0x827   : > { %1370 = vmatpush.msra.mxu2 %v5668_v20 }
 0x829   : > { %1533 = vmatpush.msrb.mxu2 %v5715_v31  ;;  %v5700_v31 = vld [vmem:[%s12399_s5 + $0x780] sm:$0xff] }
 0x82b   : > { %1534 = vmatpush.msrb.mxu2 %v5714_v32  ;;  %v5736_v32 = vld [vmem:[%s12399_s5 + $0x8a0] sm:$0xff] }
 0x82d   : > { %1535 = vmatpush.msrb.mxu2 %v5713_v34  ;;  %v5719_v34 = vld [vmem:[%s12399_s5 + $0x818] sm:$0xff] }
 0x82f   : > { %1536 = vmatpush.msrb.mxu2 %v5712_v42  ;;  %v5733_v42 = vld [vmem:[%s12399_s5 + $0x888] sm:$0xff] }
 0x831   : > { %1537 = vmatpush.msrb.mxu2 %v5711_v46 }
 0x833   : > { %1538 = vmatpush.msrb.mxu2 %v5710_v33 }
 0x835   : > { %1539 = vmatpush.msrb.mxu2 %v5709_v52 }
 0x837   : > { %1540 = vmatpush.msrb.mxu2 %v5708_v59  ;;  %v5758_v59 = vld [vmem:[%s12399_s5 + $0x950] sm:$0xff] }
 0x839   : > { %1541 = vmatpush.msrb.mxu2 %v5707_v0  ;;  %v5757_v0 = vld [vmem:[%s12399_s5 + $0x948] sm:$0xff] }
 0x83b   : > { %1542 = vmatpush.msrb.mxu2 %v5706_v5  ;;  %v5755_v5 = vld [vmem:[%s12399_s5 + $0x938] sm:$0xff] }
 0x83d   : > { %1543 = vmatpush.msrb.mxu2 %v5705_v7  ;;  %v6961_v7 = vld [vmem:[%s12401_s7 + $0x3c] ss:$0 sm:$0xff] }
 0x83f   : > { %1544 = vmatpush.msrb.mxu2 %v5704_v13 }
 0x841   : > { %1545 = vmatpush.msrb.mxu2 %v5703_v22 }
 0x872   : > { %v1311_v23 = vpop.permute.xlu2 %1310 }
 0x873   : > { %1315 = vst.msk [vmem:[#allocation2 + $0x13] sm:$0xff] %vm689_vm4, %v1311_v23  ;;  %v5739_v23 = vld [vmem:[%s12399_s5 + $0x8b8] sm:$0xff] }
 0x874   : > { %1583 = vmatpush.msrb.mxu0 %v5739_v23 }
 0x87a   : > { %v1337_v28 = vld [vmem:[#allocation2 + $0x14] sm:$0xff] }
 0x87b   : > { %v1402_v30 = vld [vmem:[#allocation2 + $0x16] sm:$0xff] }
 0x882   : > { %v1309_v25 = vpop.permute.xlu0 %1308 }
 0x883   : > { %1314 = vst.msk [vmem:[#allocation2 + $0xb] sm:$0xff] %vm689_vm4, %v1309_v25  ;;  %v5722_v25 = vld [vmem:[%s12399_s5 + $0x830] sm:$0xff] }
 0x884   : > { %1519 = vmatpush.msrb.mxu1 %v5722_v25  ;;  %v5750_v25 = vld [vmem:[%s12399_s5 + $0x910] sm:$0xff] }
 0x88a   : > { %v1336_v26 = vld [vmem:[#allocation2 + $0xc] sm:$0xff] }
 0x88b   : > { %v1401_v27 = vld [vmem:[#allocation2 + $0xe] sm:$0xff]  ;;  %1371 = vmatmul.f32.vlgmr.msra.gmra.mxu2 %v1336_v26 }
 0x88c   : > { %v1317_v53 = vld [vmem:[#allocation2 + $0xa] sm:$0xff]  ;;  %1436 = vmatmul.f32.vlgmr.msrb.gmra.mxu3 %v1401_v27  ;;  %v1318_v29 = vld [vmem:[#allocation2 + $0x12] sm:$0xff] }
 0x88d   : > { %1394 = vmatmul.f32.vlgmr.msra.gmra.mxu0 %v1317_v53  ;;  %v5702_v26 = vld [vmem:[%s12399_s5 + $0x790] sm:$0xff]  ;;  %v5721_v53 = vld [vmem:[%s12399_s5 + $0x828] sm:$0xff] }
 0x88e   : > { %v5738_v27 = vld [vmem:[%s12399_s5 + $0x8b0] sm:$0xff]  ;;  %1546 = vmatpush.msrb.mxu2 %v5702_v26  ;;  %1520 = vmatpush.msrb.mxu1 %v5721_v53  ;;  %v5749_v26 = vld [vmem:[%s12399_s5 + $0x908] sm:$0xff]  ;;  %v5779_v53 = vld [vmem:[%s12399_s5 + $0x9f8] sm:$0xff] }
 0x88f   : > { %1584 = vmatpush.msrb.mxu0 %v5738_v27  ;;  %v5748_v27 = vld [vmem:[%s12399_s5 + $0x900] sm:$0xff]  ;;  %1667 = vmatpush.msra.mxu3 %v5779_v53 }
 0x893   : > { %1374 = vmatmul.f32.gmra.mxu2 %v1337_v28  ;;  %v5701_v28 = vld [vmem:[%s12399_s5 + $0x788] sm:$0xff] }
 0x894   : > { %1439 = vmatmul.f32.gmra.mxu3 %v1402_v30  ;;  %v5720_v30 = vld [vmem:[%s12399_s5 + $0x820] sm:$0xff]  ;;  %1547 = vmatpush.msrb.mxu2 %v5701_v28  ;;  %v5795_v28 = vld [vmem:[%s12399_s5 + $0xa78] sm:$0xff] }
 0x895   : > { %1397 = vmatmul.f32.gmra.mxu0 %v1318_v29  ;;  %v5737_v29 = vld [vmem:[%s12399_s5 + $0x8a8] sm:$0xff]  ;;  %1521 = vmatpush.msrb.mxu1 %v5720_v30  ;;  %v5794_v30 = vld [vmem:[%s12399_s5 + $0xa70] sm:$0xff] }
 0x896   : > { %1585 = vmatpush.msrb.mxu0 %v5737_v29  ;;  %1548 = vmatpush.msrb.mxu2 %v5700_v31  ;;  %v5778_v29 = vld [vmem:[%s12399_s5 + $0x9f0] sm:$0xff]  ;;  %v5777_v31 = vld [vmem:[%s12399_s5 + $0x9e8] sm:$0xff] }
 0x897   : > { %1522 = vmatpush.msrb.mxu1 %v5719_v34  ;;  %1668 = vmatpush.msra.mxu3 %v5778_v29  ;;  %v5776_v34 = vld [vmem:[%s12399_s5 + $0x9e0] sm:$0xff] }
 0x898   : > { %1586 = vmatpush.msrb.mxu0 %v5736_v32  ;;  %1732 = vmatpush.msra.mxu2 %v5795_v28  ;;  %v5793_v32 = vld [vmem:[%s12399_s5 + $0xa68] sm:$0xff]  ;;  %v6964_v28 = vld [vmem:[%s12401_s7 + $0x3d] ss:$0 sm:$0xff] }
 0x899   : > { %1523 = vmatpush.msrb.mxu1 %v5718_v37  ;;  %1669 = vmatpush.msra.mxu3 %v5777_v31  ;;  %v5775_v37 = vld [vmem:[%s12399_s5 + $0x9d8] sm:$0xff] }
 0x89a   : > { %1587 = vmatpush.msrb.mxu0 %v5735_v36  ;;  %1733 = vmatpush.msra.mxu2 %v5794_v30  ;;  %v5792_v36 = vld [vmem:[%s12399_s5 + $0xa60] sm:$0xff] }
 0x89b   : > { %1524 = vmatpush.msrb.mxu1 %v5717_v40  ;;  %1670 = vmatpush.msra.mxu3 %v5776_v34  ;;  %v5774_v40 = vld [vmem:[%s12399_s5 + $0x9d0] sm:$0xff] }
 0x89c   : > { %1588 = vmatpush.msrb.mxu0 %v5734_v38  ;;  %1734 = vmatpush.msra.mxu2 %v5793_v32  ;;  %v5791_v38 = vld [vmem:[%s12399_s5 + $0xa58] sm:$0xff] }
 0x89d   : > { %1525 = vmatpush.msrb.mxu1 %v5716_v43  ;;  %1671 = vmatpush.msra.mxu3 %v5775_v37  ;;  %v5773_v43 = vld [vmem:[%s12399_s5 + $0x9c8] sm:$0xff] }
 0x89e   : > { %1589 = vmatpush.msrb.mxu0 %v5733_v42  ;;  %1735 = vmatpush.msra.mxu2 %v5792_v36  ;;  %v5790_v42 = vld [vmem:[%s12399_s5 + $0xa50] sm:$0xff] }
 0x89f   : > { %1690 = vmatpush.msra.mxu1 %v5763_v54  ;;  %1672 = vmatpush.msra.mxu3 %v5774_v40  ;;  %v5768_v54 = vld [vmem:[%s12399_s5 + $0x9a0] sm:$0xff] }
 0x8a0   : > { %1590 = vmatpush.msrb.mxu0 %v5732_v45  ;;  %1736 = vmatpush.msra.mxu2 %v5791_v38  ;;  %v5789_v45 = vld [vmem:[%s12399_s5 + $0xa48] sm:$0xff] }
 0x8a1   : > { %1673 = vmatpush.msra.mxu3 %v5773_v43 }
 0x8a2   : > { %1737 = vmatpush.msra.mxu2 %v5790_v42 }
 0x8a4   : > { %1738 = vmatpush.msra.mxu2 %v5789_v45 }
 0x90a   : > { %v1395_v24 = vpop.f32.mrf.mxu0 }
 0x90e   : > { %v1372_v55 = vpop.f32.mrf.mxu2 }
 0x90f   : > { %v1396_v35 = vadd.f32 %v1395_v24, %v1372_v55  ;;  %v1437_v57 = vpop.f32.mrf.mxu3  ;;  %v5762_v55 = vld [vmem:[%s12399_s5 + $0x970] sm:$0xff] }
 0x910   : > { %1691 = vmatpush.msra.mxu1 %v5762_v55  ;;  %v5784_v55 = vld [vmem:[%s12399_s5 + $0xa20] sm:$0xff] }
 0x911   : > { %v1443_v62 = vadd.f32 %v1437_v57, %v1396_v35  ;;  %v5760_v35 = vld [vmem:[%s12399_s5 + $0x960] sm:$0xff]  ;;  %v5759_v57 = vld [vmem:[%s12399_s5 + $0x958] sm:$0xff] }
 0x912   : > { %v1398_v8 = vpop.f32.mrf.mxu0  ;;  %1692 = vmatpush.msra.mxu1 %v5761_v56 }
 0x913   : > { %v1446_v3 = vadd.f32 %v6956_v58, %v1443_v62 }
 0x914   : > { %1693 = vmatpush.msra.mxu1 %v5760_v35  ;;  %v5767_v35 = vld [vmem:[%s12399_s5 + $0x998] sm:$0xff] }
 0x915   : > { %v1450_v6 = vmul.f32 %v6957_v63, %v1446_v3 }
 0x916   : > { %v1375_v9 = vpop.f32.mrf.mxu2  ;;  %1694 = vmatpush.msra.mxu1 %v5759_v57  ;;  %v5783_v57 = vld [vmem:[%s12399_s5 + $0xa18] sm:$0xff] }
 0x917   : > { %v1399_v11 = vadd.f32 %v1398_v8, %v1375_v9  ;;  %v1454_v12 = vadd.f32 %v6958_v4, %v1450_v6  ;;  %v1440_v14 = vpop.f32.mrf.mxu3  ;;  %v5754_v8 = vld [vmem:[%s12399_s5 + $0x930] sm:$0xff] }
 0x918   : > { %1695 = vmatpush.msra.mxu1 %v5758_v59  ;;  %v5782_v59 = vld [vmem:[%s12399_s5 + $0xa10] sm:$0xff] }
 0x919   : > { %v1444_v16 = vadd.f32 %v1440_v14, %v1399_v11  ;;  %v1456_v17 = vmax.f32 %v1454_v12, 0.0  ;;  %v5753_v14 = vld [vmem:[%s12399_s5 + $0x928] sm:$0xff] }
 0x91a   : > { %1696 = vmatpush.msra.mxu1 %v5757_v0 }
 0x91b   : > { %v1447_v44 = vadd.f32 %v6956_v58, %v1444_v16  ;;  %1463 = vrot.lane.b32.xlu1 %v1456_v17, %s7100_s20  ;;  %1459 = vst.msk [vmem:[#allocation2 + $0xc] sm:$0xff] %vm485_vm1, %v1456_v17 }
 0x91c   : > { %1697 = vmatpush.msra.mxu1 %v5756_v2 }
 0x91d   : > { %v1451_v18 = vmul.f32 %v6957_v63, %v1447_v44  ;;  %v6959_v63 = vld [vmem:[%s12401_s7 + $0xb] ss:$0 sm:$0xff]  ;;  %v5752_v44 = vld [vmem:[%s12399_s5 + $0x920] sm:$0xff] }
 0x91e   : > { %1698 = vmatpush.msra.mxu1 %v5755_v5 }
 0x91f   : > { %v1455_v19 = vadd.f32 %v6958_v4, %v1451_v18  ;;  %v6960_v4 = vld [vmem:[%s12401_s7 + $0x24] ss:$0 sm:$0xff] }
 0x920   : > { %1699 = vmatpush.msra.mxu1 %v5754_v8  ;;  %v5827_v8 = vld [vmem:[%s12399_s5 + $0xb78] sm:$0xff] }
 0x921   : > { %v1457_v20 = vmax.f32 %v1455_v19, 0.0  ;;  %1822 = vmatpush.msra.mxu0 %v5827_v8  ;;  %v5814_v8 = vld [vmem:[%s12399_s5 + $0xb10] sm:$0xff] }
 0x922   : > { %1700 = vmatpush.msra.mxu1 %v5753_v14  ;;  %v5842_v14 = vld [vmem:[%s12399_s5 + $0xbf0] sm:$0xff] }
 0x923   : > { %1465 = vrot.lane.b32.xlu0 %v1457_v20, %s7100_s20  ;;  %1460 = vst.msk [vmem:[#allocation2 + $0x14] sm:$0xff] %vm485_vm1, %v1457_v20 }
 0x924   : > { %1471 = vst.msk [vmem:[#allocation2 + $0x1b] sm:$0x1] %vm692_vm3, %v8093_v50  ;;  %1701 = vmatpush.msra.mxu1 %v5752_v44  ;;  %v5824_v44 = vld [vmem:[%s12399_s5 + $0xb60] sm:$0xff] }
 0x98d   : > { %v1464_v46 = vpop.permute.xlu1 %1463 }
 0x98e   : > { %1469 = vst.msk [vmem:[#allocation2 + $0xb] sm:$0xff] %vm689_vm4, %v1464_v46  ;;  %v5772_v46 = vld [vmem:[%s12399_s5 + $0x9c0] sm:$0xff] }
 0x98f   : > { %1674 = vmatpush.msra.mxu3 %v5772_v46  ;;  %v5823_v46 = vld [vmem:[%s12399_s5 + $0xb58] sm:$0xff] }
 0x995   : > { %v1466_v47 = vpop.permute.xlu0 %1465  ;;  %v1472_v10 = vld [vmem:[#allocation2 + $0xa] sm:$0xff] }
 0x996   : > { %1470 = vst.msk [vmem:[#allocation2 + $0x13] sm:$0xff] %vm689_vm4, %v1466_v47  ;;  %1549 = vmatmul.f32.vlgmr.msrb.gmra.mxu2 %v1472_v10  ;;  %v5788_v47 = vld [vmem:[%s12399_s5 + $0xa40] sm:$0xff]  ;;  %v5771_v10 = vld [vmem:[%s12399_s5 + $0x9b8] sm:$0xff] }
 0x997   : > { %1739 = vmatpush.msra.mxu2 %v5788_v47  ;;  %1675 = vmatpush.msra.mxu3 %v5771_v10  ;;  %v5807_v47 = vld [vmem:[%s12399_s5 + $0xad8] sm:$0xff] }
 0x998   : > { %v5839_v10 = vld [vmem:[%s12399_s5 + $0xbd8] sm:$0xff] }
 0x99d   : > { %v1491_v33 = vld [vmem:[#allocation2 + $0xc] sm:$0xff]  ;;  %v1492_v51 = vld [vmem:[#allocation2 + $0x14] sm:$0xff] }
 0x99e   : > { %v1556_v49 = vld [vmem:[#allocation2 + $0xe] sm:$0xff]  ;;  %1526 = vmatmul.f32.vlgmr.msrb.gmra.mxu1 %v1491_v33  ;;  %v1557_v52 = vld [vmem:[#allocation2 + $0x16] sm:$0xff] }
 0x99f   : > { %v1473_v24 = vld [vmem:[#allocation2 + $0x12] sm:$0xff]  ;;  %1591 = vmatmul.f32.vlgmr.msrb.gmra.mxu0 %v1556_v49 }
 0x9a0   : > { %1552 = vmatmul.f32.gmra.mxu2 %v1473_v24  ;;  %v5787_v33 = vld [vmem:[%s12399_s5 + $0xa38] sm:$0xff]  ;;  %v5770_v49 = vld [vmem:[%s12399_s5 + $0x9b0] sm:$0xff] }
 0x9a1   : > { %v5786_v24 = vld [vmem:[%s12399_s5 + $0xa30] sm:$0xff]  ;;  %1740 = vmatpush.msra.mxu2 %v5787_v33  ;;  %1676 = vmatpush.msra.mxu3 %v5770_v49 }
 0x9a2   : > { %v5822_v33 = vld [vmem:[%s12399_s5 + $0xb50] sm:$0xff] }
 0x9a3   : > { %1741 = vmatpush.msra.mxu2 %v5786_v24  ;;  %v5838_v49 = vld [vmem:[%s12399_s5 + $0xbd0] sm:$0xff]  ;;  %v5821_v24 = vld [vmem:[%s12399_s5 + $0xb48] sm:$0xff] }
 0x9a6   : > { %1529 = vmatmul.f32.gmra.mxu1 %v1492_v51  ;;  %v5769_v51 = vld [vmem:[%s12399_s5 + $0x9a8] sm:$0xff] }
 0x9a7   : > { %1594 = vmatmul.f32.gmra.mxu0 %v1557_v52  ;;  %v5785_v52 = vld [vmem:[%s12399_s5 + $0xa28] sm:$0xff]  ;;  %1677 = vmatpush.msra.mxu3 %v5769_v51 }
 0x9a8   : > { %1742 = vmatpush.msra.mxu2 %v5785_v52  ;;  %v5805_v51 = vld [vmem:[%s12399_s5 + $0xac8] sm:$0xff] }
 0x9a9   : > { %1678 = vmatpush.msra.mxu3 %v5768_v54  ;;  %v5837_v52 = vld [vmem:[%s12399_s5 + $0xbc8] sm:$0xff]  ;;  %v5820_v54 = vld [vmem:[%s12399_s5 + $0xb40] sm:$0xff] }
 0x9aa   : > { %1743 = vmatpush.msra.mxu2 %v5784_v55  ;;  %v5804_v55 = vld [vmem:[%s12399_s5 + $0xac0] sm:$0xff] }
 0x9ab   : > { %1679 = vmatpush.msra.mxu3 %v5767_v35  ;;  %v5819_v35 = vld [vmem:[%s12399_s5 + $0xb38] sm:$0xff] }
 0x9ac   : > { %1744 = vmatpush.msra.mxu2 %v5783_v57  ;;  %v5803_v57 = vld [vmem:[%s12399_s5 + $0xab8] sm:$0xff] }
 0x9ae   : > { %1745 = vmatpush.msra.mxu2 %v5782_v59  ;;  %v5818_v59 = vld [vmem:[%s12399_s5 + $0xb30] sm:$0xff] }
 0xa19   : > { %v1550_v58 = vpop.f32.mrf.mxu2 }
 0xa1b   : > { %v1527_v60 = vpop.f32.mrf.mxu1 }
 0xa1c   : > { %v1551_v61 = vadd.f32 %v1550_v58, %v1527_v60  ;;  %v1592_v62 = vpop.f32.mrf.mxu0  ;;  %v5766_v58 = vld [vmem:[%s12399_s5 + $0x990] sm:$0xff]  ;;  %v5765_v60 = vld [vmem:[%s12399_s5 + $0x988] sm:$0xff] }
 0xa1d   : > { %1680 = vmatpush.msra.mxu3 %v5766_v58  ;;  %v5835_v58 = vld [vmem:[%s12399_s5 + $0xbb8] sm:$0xff] }
 0xa1e   : > { %v1598_v1 = vadd.f32 %v1592_v62, %v1551_v61  ;;  %v5781_v61 = vld [vmem:[%s12399_s5 + $0xa08] sm:$0xff]  ;;  %v5764_v62 = vld [vmem:[%s12399_s5 + $0x980] sm:$0xff] }
 0xa1f   : > { %1681 = vmatpush.msra.mxu3 %v5765_v60  ;;  %1746 = vmatpush.msra.mxu2 %v5781_v61  ;;  %v5802_v60 = vld [vmem:[%s12399_s5 + $0xab0] sm:$0xff] }
 0xa20   : > { %v1601_v3 = vadd.f32 %v6959_v63, %v1598_v1  ;;  %v5834_v61 = vld [vmem:[%s12399_s5 + $0xbb0] sm:$0xff] }
 0xa21   : > { %1682 = vmatpush.msra.mxu3 %v5764_v62  ;;  %v5817_v62 = vld [vmem:[%s12399_s5 + $0xb28] sm:$0xff] }
 0xa22   : > { %v8402_v6 = vadd.f32 %v1601_v3, %v8079_v15 }
 0xa23   : > { %v1553_v9 = vpop.f32.mrf.mxu2  ;;  %v1530_v11 = vpop.f32.mrf.mxu1 }
 0xa24   : > { %v1554_v12 = vadd.f32 %v1553_v9, %v1530_v11  ;;  %v1607_v13 = vmul.f32 %v6960_v4, %v8402_v6  ;;  %v1595_v15 = vpop.f32.mrf.mxu0  ;;  %v5811_v9 = vld [vmem:[%s12399_s5 + $0xaf8] sm:$0xff] }
 0xa25   : > { %v5843_v11 = vld [vmem:[%s12399_s5 + $0xbf8] sm:$0xff]  ;;  %1845 = vmatpush.msrb.mxu3 %v5811_v9  ;;  %v5798_v9 = vld [vmem:[%s12399_s5 + $0xa90] sm:$0xff] }
 0xa26   : > { %v1599_v16 = vadd.f32 %v1595_v15, %v1554_v12  ;;  %v1611_v17 = vadd.f32 %v6961_v7, %v1607_v13  ;;  %v5826_v12 = vld [vmem:[%s12399_s5 + $0xb70] sm:$0xff]  ;;  %v5825_v15 = vld [vmem:[%s12399_s5 + $0xb68] sm:$0xff] }
 0xa27   : > { %v5810_v13 = vld [vmem:[%s12399_s5 + $0xaf0] sm:$0xff]  ;;  %1823 = vmatpush.msra.mxu0 %v5826_v12  ;;  %v5813_v12 = vld [vmem:[%s12399_s5 + $0xb08] sm:$0xff] }
 0xa28   : > { %v1602_v18 = vadd.f32 %v6959_v63, %v1599_v16  ;;  %v1613_v19 = vmax.f32 %v1611_v17, 0.0  ;;  %v5780_v63 = vld [vmem:[%s12399_s5 + $0xa00] sm:$0xff]  ;;  %v5809_v16 = vld [vmem:[%s12399_s5 + $0xae8] sm:$0xff]  ;;  %1846 = vmatpush.msrb.mxu3 %v5810_v13 }
 0xa29   : > { %1747 = vmatpush.msra.mxu2 %v5780_v63  ;;  %v5841_v17 = vld [vmem:[%s12399_s5 + $0xbe8] sm:$0xff]  ;;  %1824 = vmatpush.msra.mxu0 %v5825_v15  ;;  %v5812_v15 = vld [vmem:[%s12399_s5 + $0xb00] sm:$0xff] }
 0xa2a   : > { %v8418_v20 = vadd.f32 %v1602_v18, %v8086_v48  ;;  %1620 = vrot.lane.b32.xlu2 %v1613_v19, %s7100_s20  ;;  %1616 = vst.msk [vmem:[#allocation2 + $0xc] sm:$0xff] %vm485_vm1, %v1613_v19  ;;  %v5751_v48 = vld [vmem:[%s12399_s5 + $0x918] sm:$0xff]  ;;  %v5808_v18 = vld [vmem:[%s12399_s5 + $0xae0] sm:$0xff]  ;;  %1847 = vmatpush.msrb.mxu3 %v5809_v16  ;;  %v5801_v63 = vld [vmem:[%s12399_s5 + $0xaa8] sm:$0xff] }
 0xa2b   : > { %1702 = vmatpush.msra.mxu1 %v5751_v48  ;;  %v5840_v19 = vld [vmem:[%s12399_s5 + $0xbe0] sm:$0xff]  ;;  %1825 = vmatpush.msra.mxu0 %v5824_v44  ;;  %v5797_v13 = vld [vmem:[%s12399_s5 + $0xa88] sm:$0xff] }
 0xa2c   : > { %v1608_v21 = vmul.f32 %v6960_v4, %v8418_v20  ;;  %1848 = vmatpush.msrb.mxu3 %v5808_v18  ;;  %v5796_v16 = vld [vmem:[%s12399_s5 + $0xa80] sm:$0xff] }
 0xa2d   : > { %1703 = vmatpush.msra.mxu1 %v5750_v25  ;;  %v6962_v25 = vld [vmem:[%s12401_s7 + $0xc] ss:$0 sm:$0xff]  ;;  %1826 = vmatpush.msra.mxu0 %v5823_v46  ;;  %v5866_v46 = vld [vmem:[%s12399_s5 + $0xc60] sm:$0xff] }
 0xa2e   : > { %v1612_v22 = vadd.f32 %v6961_v7, %v1608_v21  ;;  %1849 = vmatpush.msrb.mxu3 %v5807_v47  ;;  %v5899_v47 = vld [vmem:[%s12399_s5 + $0xd68] sm:$0xff] }
 0xa2f   : > { %1704 = vmatpush.msra.mxu1 %v5749_v26  ;;  %1827 = vmatpush.msra.mxu0 %v5822_v33  ;;  %v5865_v33 = vld [vmem:[%s12399_s5 + $0xc58] sm:$0xff] }
 0xa30   : > { %v1614_v23 = vmax.f32 %v1612_v22, 0.0 }
 0xa31   : > { %1705 = vmatpush.msra.mxu1 %v5748_v27  ;;  %v6963_v27 = vld [vmem:[%s12401_s7 + $0x25] ss:$0 sm:$0xff]  ;;  %1828 = vmatpush.msra.mxu0 %v5821_v24  ;;  %v5881_v24 = vld [vmem:[%s12399_s5 + $0xcd8] sm:$0xff] }
 0xa32   : > { %1622 = vrot.lane.b32.xlu1 %v1614_v23, %s7100_s20  ;;  %1617 = vst.msk [vmem:[#allocation2 + $0x14] sm:$0xff] %vm485_vm1, %v1614_v23 }
 0xa33   : > { %1628 = vst.msk [vmem:[#allocation2 + $0x1b] sm:$0x1] %vm692_vm3, %v8093_v50  ;;  %1887 = vmatpush.msrb.mxu1 %v5843_v11  ;;  %1829 = vmatpush.msra.mxu0 %v5820_v54  ;;  %v5830_v11 = vld [vmem:[%s12399_s5 + $0xb90] sm:$0xff] }
 0xa35   : > { %1888 = vmatpush.msrb.mxu1 %v5842_v14  ;;  %1830 = vmatpush.msra.mxu0 %v5819_v35  ;;  %v5829_v14 = vld [vmem:[%s12399_s5 + $0xb88] sm:$0xff] }
 0xa37   : > { %1889 = vmatpush.msrb.mxu1 %v5841_v17  ;;  %1831 = vmatpush.msra.mxu0 %v5818_v59  ;;  %v5828_v17 = vld [vmem:[%s12399_s5 + $0xb80] sm:$0xff]  ;;  %v5896_v59 = vld [vmem:[%s12399_s5 + $0xd50] sm:$0xff] }
 0xa39   : > { %1890 = vmatpush.msrb.mxu1 %v5840_v19  ;;  %1832 = vmatpush.msra.mxu0 %v5817_v62  ;;  %v5862_v62 = vld [vmem:[%s12399_s5 + $0xc40] sm:$0xff] }
 0xa3b   : > { %1891 = vmatpush.msrb.mxu1 %v5839_v10  ;;  %v5882_v10 = vld [vmem:[%s12399_s5 + $0xce0] sm:$0xff] }
 0xa3d   : > { %1892 = vmatpush.msrb.mxu1 %v5838_v49 }
 0xa3f   : > { %1893 = vmatpush.msrb.mxu1 %v5837_v52  ;;  %v5897_v52 = vld [vmem:[%s12399_s5 + $0xd58] sm:$0xff] }
 0xa84   : > { %v1621_v56 = vpop.permute.xlu2 %1620 }
 0xa85   : > { %1626 = vst.msk [vmem:[#allocation2 + $0xb] sm:$0xff] %vm689_vm4, %v1621_v56  ;;  %v5836_v56 = vld [vmem:[%s12399_s5 + $0xbc0] sm:$0xff] }
 0xa86   : > { %1894 = vmatpush.msrb.mxu1 %v5836_v56  ;;  %v5880_v56 = vld [vmem:[%s12399_s5 + $0xcd0] sm:$0xff] }
 0xa88   : > { %1895 = vmatpush.msrb.mxu1 %v5835_v58  ;;  %v5863_v58 = vld [vmem:[%s12399_s5 + $0xc48] sm:$0xff] }
 0xa8a   : > { %1896 = vmatpush.msrb.mxu1 %v5834_v61 }
 0xa8c   : > { %v1629_v0 = vld [vmem:[#allocation2 + $0xa] sm:$0xff] }
 0xa8d   : > { %1706 = vmatmul.f32.vlgmr.msra.gmra.mxu1 %v1629_v0  ;;  %v5833_v0 = vld [vmem:[%s12399_s5 + $0xba8] sm:$0xff] }
 0xa8e   : > { %1897 = vmatpush.msrb.mxu1 %v5833_v0  ;;  %v5878_v0 = vld [vmem:[%s12399_s5 + $0xcc0] sm:$0xff] }
 0xaa4   : > { %v1623_v1 = vpop.permute.xlu1 %1622 }
 0xaa5   : > { %1627 = vst.msk [vmem:[#allocation2 + $0x13] sm:$0xff] %vm689_vm4, %v1623_v1  ;;  %v5816_v1 = vld [vmem:[%s12399_s5 + $0xb20] sm:$0xff] }
 0xaa6   : > { %1833 = vmatpush.msra.mxu0 %v5816_v1 }
 0xaac   : > { %v1648_v2 = vld [vmem:[#allocation2 + $0xc] sm:$0xff]  ;;  %v1649_v5 = vld [vmem:[#allocation2 + $0x14] sm:$0xff] }
 0xaad   : > { %v1713_v3 = vld [vmem:[#allocation2 + $0xe] sm:$0xff]  ;;  %1683 = vmatmul.f32.vlgmr.msra.gmra.mxu3 %v1648_v2  ;;  %v1714_v7 = vld [vmem:[#allocation2 + $0x16] sm:$0xff]  ;;  %v5800_v2 = vld [vmem:[%s12399_s5 + $0xaa0] sm:$0xff] }
 0xaae   : > { %v1630_v4 = vld [vmem:[#allocation2 + $0x12] sm:$0xff]  ;;  %1748 = vmatmul.f32.vlgmr.msra.gmra.mxu2 %v1713_v3  ;;  %v5832_v3 = vld [vmem:[%s12399_s5 + $0xba0] sm:$0xff] }
 0xaaf   : > { %1709 = vmatmul.f32.gmra.mxu1 %v1630_v4  ;;  %v5815_v4 = vld [vmem:[%s12399_s5 + $0xb18] sm:$0xff] }
 0xab0   : > { %1898 = vmatpush.msrb.mxu1 %v5832_v3  ;;  %1834 = vmatpush.msra.mxu0 %v5815_v4  ;;  %v5861_v3 = vld [vmem:[%s12399_s5 + $0xc38] sm:$0xff]  ;;  %v5894_v4 = vld [vmem:[%s12399_s5 + $0xd40] sm:$0xff] }
 0xab2   : > { %1835 = vmatpush.msra.mxu0 %v5814_v8  ;;  %v5860_v8 = vld [vmem:[%s12399_s5 + $0xc30] sm:$0xff] }
 0xab4   : > { %1836 = vmatpush.msra.mxu0 %v5813_v12 }
 0xab5   : > { %1686 = vmatmul.f32.gmra.mxu3 %v1649_v5  ;;  %v5799_v5 = vld [vmem:[%s12399_s5 + $0xa98] sm:$0xff] }
 0xab6   : > { %1751 = vmatmul.f32.gmra.mxu2 %v1714_v7  ;;  %v5831_v7 = vld [vmem:[%s12399_s5 + $0xb98] sm:$0xff]  ;;  %1837 = vmatpush.msra.mxu0 %v5812_v15 }
 0xab7   : > { %1899 = vmatpush.msrb.mxu1 %v5831_v7  ;;  %v6967_v7 = vld [vmem:[%s12401_s7 + $0x3e] ss:$0 sm:$0xff] }
 0xab9   : > { %1900 = vmatpush.msrb.mxu1 %v5830_v11 }
 0xabb   : > { %1901 = vmatpush.msrb.mxu1 %v5829_v14 }
 0xabd   : > { %1902 = vmatpush.msrb.mxu1 %v5828_v17  ;;  %v5858_v17 = vld [vmem:[%s12399_s5 + $0xc20] sm:$0xff] }
 0xb0a   : > { %v1707_v21 = vpop.f32.mrf.mxu1 }
 0xb2c   : > { %v1710_v30 = vpop.f32.mrf.mxu1 }
 0xb30   : > { %v1684_v22 = vpop.f32.mrf.mxu3 }
 0xb31   : > { %v1708_v23 = vadd.f32 %v1707_v21, %v1684_v22  ;;  %v1749_v48 = vpop.f32.mrf.mxu2 }
 0xb33   : > { %v1755_v26 = vadd.f32 %v1749_v48, %v1708_v23 }
 0xb35   : > { %v1758_v53 = vadd.f32 %v6962_v25, %v1755_v26  ;;  %v5851_v26 = vld [vmem:[%s12398_s4 + $0x78] sm:$0xff] }
 0xb36   : > { %1942 = vmatpush.msrb.mxu2 %v5851_v26  ;;  %v5876_v26 = vld [vmem:[%s12399_s5 + $0xcb0] sm:$0xff] }
 0xb37   : > { %v1762_v29 = vmul.f32 %v6963_v27, %v1758_v53  ;;  %v5849_v53 = vld [vmem:[%s12398_s4 + $0x68] sm:$0xff] }
 0xb38   : > { %v1687_v31 = vpop.f32.mrf.mxu3 }
 0xb39   : > { %v1711_v32 = vadd.f32 %v1710_v30, %v1687_v31  ;;  %v1766_v34 = vadd.f32 %v6964_v28, %v1762_v29  ;;  %v1752_v36 = vpop.f32.mrf.mxu2  ;;  %v5847_v29 = vld [vmem:[%s12398_s4 + $0x58] sm:$0xff]  ;;  %v5846_v30 = vld [vmem:[%s12398_s4 + $0x50] sm:$0xff]  ;;  %v5845_v31 = vld [vmem:[%s12398_s4 + $0x48] sm:$0xff] }
 0xb3b   : > { %v1756_v37 = vadd.f32 %v1752_v36, %v1711_v32  ;;  %v1768_v38 = vmax.f32 %v1766_v34, 0.0  ;;  %v5844_v32 = vld [vmem:[%s12398_s4 + $0x40] sm:$0xff]  ;;  %v5869_v34 = vld [vmem:[%s12399_s5 + $0xc78] sm:$0xff]  ;;  %v5868_v36 = vld [vmem:[%s12399_s5 + $0xc70] sm:$0xff] }
 0xb3d   : > { %v1759_v40 = vadd.f32 %v6962_v25, %v1756_v37  ;;  %1775 = vrot.lane.b32.xlu0 %v1768_v38, %s7100_s20  ;;  %1771 = vst.msk [vmem:[#allocation2 + $0xc] sm:$0xff] %vm485_vm1, %v1768_v38  ;;  %v5885_v37 = vld [vmem:[%s12399_s5 + $0xcf8] sm:$0xff]  ;;  %v5867_v38 = vld [vmem:[%s12399_s5 + $0xc68] sm:$0xff] }
 0xb3e   : > { %2022 = vmatpush.msrb.mxu0 %v5885_v37  ;;  %v5889_v37 = vld [vmem:[%s12399_s5 + $0xd18] sm:$0xff] }
 0xb3f   : > { %v1763_v42 = vmul.f32 %v6963_v27, %v1759_v40  ;;  %v5850_v27 = vld [vmem:[%s12398_s4 + $0x70] sm:$0xff]  ;;  %v5901_v40 = vld [vmem:[%s12399_s5 + $0xd78] sm:$0xff] }
 0xb40   : > { %1943 = vmatpush.msrb.mxu2 %v5850_v27  ;;  %2087 = vmatpush.msra.mxu1 %v5901_v40  ;;  %v5856_v27 = vld [vmem:[%s12399_s5 + $0xc10] sm:$0xff] }
 0xb41   : > { %v1767_v43 = vadd.f32 %v6964_v28, %v1763_v42  ;;  %v5848_v28 = vld [vmem:[%s12398_s4 + $0x60] sm:$0xff]  ;;  %v5884_v42 = vld [vmem:[%s12399_s5 + $0xcf0] sm:$0xff] }
 0xb42   : > { %1944 = vmatpush.msrb.mxu2 %v5849_v53  ;;  %2023 = vmatpush.msrb.mxu0 %v5884_v42  ;;  %v5892_v53 = vld [vmem:[%s12399_s5 + $0xd30] sm:$0xff] }
 0xb43   : > { %v1769_v45 = vmax.f32 %v1767_v43, 0.0  ;;  %v5900_v43 = vld [vmem:[%s12399_s5 + $0xd70] sm:$0xff] }
 0xb44   : > { %1945 = vmatpush.msrb.mxu2 %v5848_v28  ;;  %2088 = vmatpush.msra.mxu1 %v5900_v43  ;;  %v5875_v28 = vld [vmem:[%s12399_s5 + $0xca8] sm:$0xff]  ;;  %v5872_v40 = vld [vmem:[%s12399_s5 + $0xc90] sm:$0xff] }
 0xb45   : > { %1777 = vrot.lane.b32.xlu2 %v1769_v45, %s7100_s20  ;;  %1772 = vst.msk [vmem:[#allocation2 + $0x14] sm:$0xff] %vm485_vm1, %v1769_v45  ;;  %v5883_v45 = vld [vmem:[%s12399_s5 + $0xce8] sm:$0xff]  ;;  %v5888_v42 = vld [vmem:[%s12399_s5 + $0xd10] sm:$0xff] }
 0xb46   : > { %1783 = vst.msk [vmem:[#allocation2 + $0x1b] sm:$0x1] %vm692_vm3, %v8093_v50  ;;  %v5806_v50 = vld [vmem:[%s12399_s5 + $0xad0] sm:$0xff]  ;;  %1946 = vmatpush.msrb.mxu2 %v5847_v29  ;;  %2024 = vmatpush.msrb.mxu0 %v5883_v45  ;;  %v5855_v29 = vld [vmem:[%s12399_s5 + $0xc08] sm:$0xff] }
 0xb47   : > { %1850 = vmatpush.msrb.mxu3 %v5806_v50  ;;  %v5898_v50 = vld [vmem:[%s12399_s5 + $0xd60] sm:$0xff]  ;;  %2089 = vmatpush.msra.mxu1 %v5899_v47  ;;  %v5871_v43 = vld [vmem:[%s12399_s5 + $0xc88] sm:$0xff] }
 0xb48   : > { %1947 = vmatpush.msrb.mxu2 %v5846_v30  ;;  %2025 = vmatpush.msrb.mxu0 %v5882_v10  ;;  %v5891_v30 = vld [vmem:[%s12399_s5 + $0xd28] sm:$0xff]  ;;  %v5886_v47 = vld [vmem:[%s12399_s5 + $0xd00] sm:$0xff] }
 0xb49   : > { %1851 = vmatpush.msrb.mxu3 %v5805_v51  ;;  %v5864_v51 = vld [vmem:[%s12399_s5 + $0xc50] sm:$0xff]  ;;  %2090 = vmatpush.msra.mxu1 %v5898_v50  ;;  %v5887_v45 = vld [vmem:[%s12399_s5 + $0xd08] sm:$0xff] }
 0xb4a   : > { %1948 = vmatpush.msrb.mxu2 %v5845_v31  ;;  %2026 = vmatpush.msrb.mxu0 %v5881_v24  ;;  %v5874_v31 = vld [vmem:[%s12399_s5 + $0xca0] sm:$0xff] }
 0xb4b   : > { %1852 = vmatpush.msrb.mxu3 %v5804_v55  ;;  %2091 = vmatpush.msra.mxu1 %v5897_v52 }
 0xb4c   : > { %1949 = vmatpush.msrb.mxu2 %v5844_v32  ;;  %2027 = vmatpush.msrb.mxu0 %v5880_v56  ;;  %v5854_v32 = vld [vmem:[%s12399_s5 + $0xc00] sm:$0xff]  ;;  %v5915_v56 = vld [vmem:[%s12399_s5 + $0xde8] sm:$0xff] }
 0xb4d   : > { %1853 = vmatpush.msrb.mxu3 %v5803_v57  ;;  %v6965_v57 = vld [vmem:[%s12401_s7 + $0xd] ss:$0 sm:$0xff]  ;;  %2092 = vmatpush.msra.mxu1 %v5896_v59 }
 0xb4f   : > { %1854 = vmatpush.msrb.mxu3 %v5802_v60  ;;  %v5879_v60 = vld [vmem:[%s12399_s5 + $0xcc8] sm:$0xff] }
 0xb50   : > { %2028 = vmatpush.msrb.mxu0 %v5879_v60  ;;  %v5911_v60 = vld [vmem:[%s12399_s5 + $0xdc8] sm:$0xff] }
 0xb51   : > { %1855 = vmatpush.msrb.mxu3 %v5801_v63  ;;  %v5895_v63 = vld [vmem:[%s12399_s5 + $0xd48] sm:$0xff] }
 0xb52   : > { %2093 = vmatpush.msra.mxu1 %v5895_v63  ;;  %2029 = vmatpush.msrb.mxu0 %v5878_v0  ;;  %v6969_v0 = vld [vmem:[%s12401_s7 + $0xe] ss:$0 sm:$0xff] }
 0xb53   : > { %1856 = vmatpush.msrb.mxu3 %v5800_v2  ;;  %v6966_v2 = vld [vmem:[%s12401_s7 + $0x26] ss:$0 sm:$0xff] }
 0xb54   : > { %2094 = vmatpush.msra.mxu1 %v5894_v4  ;;  %v5909_v4 = vld [vmem:[%s12399_s5 + $0xdb8] sm:$0xff] }
 0xb55   : > { %1857 = vmatpush.msrb.mxu3 %v5799_v5 }
 0xb57   : > { %1858 = vmatpush.msrb.mxu3 %v5798_v9 }
 0xb59   : > { %1859 = vmatpush.msrb.mxu3 %v5797_v13  ;;  %v5859_v13 = vld [vmem:[%s12399_s5 + $0xc28] sm:$0xff] }
 0xb5b   : > { %1860 = vmatpush.msrb.mxu3 %v5796_v16 }
 0xb5d   : > { %2045 = vmatpush.msra.mxu3 %v5869_v34  ;;  %v5890_v34 = vld [vmem:[%s12399_s5 + $0xd20] sm:$0xff] }
 0xb5f   : > { %2046 = vmatpush.msra.mxu3 %v5868_v36  ;;  %v5873_v36 = vld [vmem:[%s12399_s5 + $0xc98] sm:$0xff] }
 0xb61   : > { %2047 = vmatpush.msra.mxu3 %v5867_v38  ;;  %v8873_v38 = vld [vmem:[#allocation2 + $0x1c] sm:$0xff] }
 0xb63   : > { %2048 = vmatpush.msra.mxu3 %v5866_v46  ;;  %v5870_v46 = vld [vmem:[%s12399_s5 + $0xc80] sm:$0xff] }
 0xb65   : > { %2049 = vmatpush.msra.mxu3 %v5865_v33 }
 0xb67   : > { %2050 = vmatpush.msra.mxu3 %v5864_v51 }
 0xb69   : > { %2051 = vmatpush.msra.mxu3 %v5863_v58  ;;  %v5912_v58 = vld [vmem:[%s12399_s5 + $0xdd0] sm:$0xff] }
 0xb6b   : > { %2052 = vmatpush.msra.mxu3 %v5862_v62 }
 0xb6d   : > { %2053 = vmatpush.msra.mxu3 %v5861_v3  ;;  %v6970_v3 = vld [vmem:[%s12401_s7 + $0x27] ss:$0 sm:$0xff] }
 0xb6f   : > { %2054 = vmatpush.msra.mxu3 %v5860_v8  ;;  %v6971_v8 = vld [vmem:[%s12401_s7 + $0x3f] ss:$0 sm:$0xff] }
 0xb71   : > { %2055 = vmatpush.msra.mxu3 %v5859_v13 }
 0xb73   : > { %2056 = vmatpush.msra.mxu3 %v5858_v17 }
 0xb9f   : > { %v1778_v44 = vpop.permute.xlu2 %1777 }
 0xba0   : > { %1782 = vst.msk [vmem:[#allocation2 + $0x13] sm:$0xff] %vm689_vm4, %v1778_v44 }
 0xba7   : > { %v1804_v23 = vld [vmem:[#allocation2 + $0x14] sm:$0xff] }
 0xba8   : > { %v1869_v25 = vld [vmem:[#allocation2 + $0x16] sm:$0xff] }
 0xbaf   : > { %v1776_v18 = vpop.permute.xlu0 %1775 }
 0xbb0   : > { %1781 = vst.msk [vmem:[#allocation2 + $0xb] sm:$0xff] %vm689_vm4, %v1776_v18 }
 0xbb7   : > { %v1803_v19 = vld [vmem:[#allocation2 + $0xc] sm:$0xff] }
 0xbb8   : > { %v1868_v21 = vld [vmem:[#allocation2 + $0xe] sm:$0xff]  ;;  %1838 = vmatmul.f32.vlgmr.msra.gmra.mxu0 %v1803_v19 }
 0xbb9   : > { %v1784_v22 = vld [vmem:[#allocation2 + $0xa] sm:$0xff]  ;;  %1903 = vmatmul.f32.vlgmr.msrb.gmra.mxu1 %v1868_v21  ;;  %v1785_v48 = vld [vmem:[#allocation2 + $0x12] sm:$0xff] }
 0xbba   : > { %1861 = vmatmul.f32.vlgmr.msrb.gmra.mxu3 %v1784_v22 }
 0xbc0   : > { %1841 = vmatmul.f32.gmra.mxu0 %v1804_v23 }
 0xbc1   : > { %1906 = vmatmul.f32.gmra.mxu1 %v1869_v25  ;;  %v5893_v25 = vld [vmem:[%s12399_s5 + $0xd38] sm:$0xff] }
 0xbc2   : > { %1864 = vmatmul.f32.gmra.mxu3 %v1785_v48  ;;  %v5877_v48 = vld [vmem:[%s12399_s5 + $0xcb8] sm:$0xff]  ;;  %2095 = vmatpush.msra.mxu1 %v5893_v25  ;;  %v5904_v25 = vld [vmem:[%s12399_s5 + $0xd90] sm:$0xff] }
 0xbc3   : > { %2030 = vmatpush.msrb.mxu0 %v5877_v48 }
 0xbc4   : > { %2096 = vmatpush.msra.mxu1 %v5892_v53  ;;  %v5933_v53 = vld [vmem:[%s12399_s5 + $0xe78] sm:$0xff] }
 0xbc5   : > { %2031 = vmatpush.msrb.mxu0 %v5876_v26  ;;  %v5903_v26 = vld [vmem:[%s12399_s5 + $0xd88] sm:$0xff]  ;;  %2177 = vmatpush.msra.mxu2 %v5933_v53 }
 0xbc6   : > { %2097 = vmatpush.msra.mxu1 %v5891_v30  ;;  %v5948_v30 = vld [vmem:[%s12399_s5 + $0xef0] sm:$0xff] }
 0xbc7   : > { %2032 = vmatpush.msrb.mxu0 %v5875_v28  ;;  %v5949_v28 = vld [vmem:[%s12399_s5 + $0xef8] sm:$0xff] }
 0xbc8   : > { %2098 = vmatpush.msra.mxu1 %v5890_v34  ;;  %v5930_v34 = vld [vmem:[%s12399_s5 + $0xe60] sm:$0xff] }
 0xbc9   : > { %2033 = vmatpush.msrb.mxu0 %v5874_v31  ;;  %v5931_v31 = vld [vmem:[%s12399_s5 + $0xe68] sm:$0xff] }
 0xbca   : > { %2099 = vmatpush.msra.mxu1 %v5889_v37  ;;  %v5929_v37 = vld [vmem:[%s12399_s5 + $0xe58] sm:$0xff] }
 0xbcb   : > { %2034 = vmatpush.msrb.mxu0 %v5873_v36  ;;  %v5946_v36 = vld [vmem:[%s12399_s5 + $0xee0] sm:$0xff] }
 0xbcc   : > { %2100 = vmatpush.msra.mxu1 %v5888_v42  ;;  %v5928_v42 = vld [vmem:[%s12399_s5 + $0xe50] sm:$0xff] }
 0xbcd   : > { %2035 = vmatpush.msrb.mxu0 %v5872_v40  ;;  %v5945_v40 = vld [vmem:[%s12399_s5 + $0xed8] sm:$0xff] }
 0xbce   : > { %2101 = vmatpush.msra.mxu1 %v5887_v45  ;;  %v5927_v45 = vld [vmem:[%s12399_s5 + $0xe48] sm:$0xff] }
 0xbcf   : > { %2036 = vmatpush.msrb.mxu0 %v5871_v43  ;;  %v5944_v43 = vld [vmem:[%s12399_s5 + $0xed0] sm:$0xff] }
 0xbd0   : > { %2102 = vmatpush.msra.mxu1 %v5886_v47  ;;  %v5926_v47 = vld [vmem:[%s12399_s5 + $0xe40] sm:$0xff] }
 0xbd1   : > { %2037 = vmatpush.msrb.mxu0 %v5870_v46  ;;  %v5943_v46 = vld [vmem:[%s12399_s5 + $0xec8] sm:$0xff] }
 0xc35   : > { %v1839_v49 = vpop.f32.mrf.mxu0 }
 0xc36   : > { %v1904_v54 = vpop.f32.mrf.mxu1 }
 0xc3d   : > { %v1862_v55 = vpop.f32.mrf.mxu3  ;;  %v1842_v9 = vpop.f32.mrf.mxu0 }
 0xc3e   : > { %v1863_v35 = vadd.f32 %v1862_v55, %v1839_v49  ;;  %v1907_v14 = vpop.f32.mrf.mxu1  ;;  %v5916_v55 = vld [vmem:[%s12399_s5 + $0xdf0] sm:$0xff] }
 0xc40   : > { %v1910_v61 = vadd.f32 %v1904_v54, %v1863_v35  ;;  %v5917_v54 = vld [vmem:[%s12399_s5 + $0xdf8] sm:$0xff]  ;;  %v5914_v35 = vld [vmem:[%s12399_s5 + $0xde0] sm:$0xff] }
 0xc41   : > { %2200 = vmatpush.msra.mxu0 %v5917_v54  ;;  %v5922_v54 = vld [vmem:[%s12399_s5 + $0xe20] sm:$0xff] }
 0xc42   : > { %v1913_v1 = vadd.f32 %v6965_v57, %v1910_v61 }
 0xc43   : > { %2201 = vmatpush.msra.mxu0 %v5916_v55  ;;  %v5938_v55 = vld [vmem:[%s12399_s5 + $0xea0] sm:$0xff] }
 0xc44   : > { %v8804_v5 = vadd.f32 %v1913_v1, %v8402_v6  ;;  %v5910_v1 = vld [vmem:[%s12399_s5 + $0xdc0] sm:$0xff] }
 0xc45   : > { %v1865_v11 = vpop.f32.mrf.mxu3  ;;  %2202 = vmatpush.msra.mxu0 %v5915_v56 }
 0xc46   : > { %v1866_v12 = vadd.f32 %v1865_v11, %v1842_v9  ;;  %5852 = vmatmul.msk.f32.vlgmr.msrb.gmra.mxu2 %vm485_vm1, %v8804_v5  ;;  %v1961_v6 = vmul.f32 %v6966_v2, %v8804_v5  ;;  %v5908_v9 = vld [vmem:[%s12399_s5 + $0xdb0] sm:$0xff] }
 0xc47   : > { %2203 = vmatpush.msra.mxu0 %v5914_v35  ;;  %v5921_v35 = vld [vmem:[%s12399_s5 + $0xe18] sm:$0xff] }
 0xc48   : > { %v1911_v15 = vadd.f32 %v1907_v14, %v1866_v12  ;;  %v1965_v16 = vadd.f32 %v6967_v7, %v1961_v6  ;;  %v5907_v12 = vld [vmem:[%s12399_s5 + $0xda8] sm:$0xff] }
 0xc4a   : > { %v1914_v44 = vadd.f32 %v6965_v57, %v1911_v15  ;;  %v1967_v18 = vmax.f32 %v1965_v16, 0.0  ;;  %v5913_v57 = vld [vmem:[%s12399_s5 + $0xdd8] sm:$0xff]  ;;  %v5906_v16 = vld [vmem:[%s12399_s5 + $0xda0] sm:$0xff] }
 0xc4b   : > { %2204 = vmatpush.msra.mxu0 %v5913_v57  ;;  %v5937_v57 = vld [vmem:[%s12399_s5 + $0xe98] sm:$0xff] }
 0xc4c   : > { %1974 = vrot.lane.b32.xlu1 %v1967_v18, %s7100_s20  ;;  %1970 = vst.msk [vmem:[#allocation2 + $0xc] sm:$0xff] %vm485_vm1, %v1967_v18  ;;  %v8824_v19 = vadd.f32 %v1914_v44, %v8418_v20  ;;  %v5857_v20 = vld [vmem:[%s12399_s5 + $0xc18] sm:$0xff] }
 0xc4d   : > { %2057 = vmatpush.msra.mxu3 %v5857_v20  ;;  %2205 = vmatpush.msra.mxu0 %v5912_v58  ;;  %v5905_v20 = vld [vmem:[%s12399_s5 + $0xd98] sm:$0xff]  ;;  %v5920_v58 = vld [vmem:[%s12399_s5 + $0xe10] sm:$0xff] }
 0xc4e   : > { %5853 = vmatmul.msk.f32.gmra.mxu2 %vm485_vm1, %v8824_v19  ;;  %v1962_v21 = vmul.f32 %v6966_v2, %v8824_v19 }
 0xc4f   : > { %2058 = vmatpush.msra.mxu3 %v5856_v27  ;;  %2206 = vmatpush.msra.mxu0 %v5911_v60  ;;  %v5902_v27 = vld [vmem:[%s12399_s5 + $0xd80] sm:$0xff]  ;;  %v5919_v60 = vld [vmem:[%s12399_s5 + $0xe08] sm:$0xff] }
 0xc50   : > { %v1966_v22 = vadd.f32 %v6967_v7, %v1962_v21 }
 0xc51   : > { %2059 = vmatpush.msra.mxu3 %v5855_v29  ;;  %2207 = vmatpush.msra.mxu0 %v5910_v1  ;;  %v5932_v29 = vld [vmem:[%s12399_s5 + $0xe70] sm:$0xff] }
 0xc52   : > { %v1968_v23 = vmax.f32 %v1966_v22, 0.0  ;;  %2178 = vmatpush.msra.mxu2 %v5932_v29 }
 0xc53   : > { %2060 = vmatpush.msra.mxu3 %v5854_v32  ;;  %2208 = vmatpush.msra.mxu0 %v5909_v4  ;;  %v5947_v32 = vld [vmem:[%s12399_s5 + $0xee8] sm:$0xff] }
 0xc54   : > { %1976 = vrot.lane.b32.xlu0 %v1968_v23, %s7100_s20  ;;  %1971 = vst.msk [vmem:[#allocation2 + $0x14] sm:$0xff] %vm485_vm1, %v1968_v23  ;;  %2179 = vmatpush.msra.mxu2 %v5931_v31 }
 0xc55   : > { %1983 = vst.msk [vmem:[#allocation2 + $0x1a] sm:$0x3] %vm1982_vm5, %v8873_v38  ;;  %2209 = vmatpush.msra.mxu0 %v5908_v9  ;;  %2242 = vmatpush.msrb.mxu3 %v5949_v28  ;;  %v5981_v9 = vld [vmem:[%s12399_s5 + $0xff8] sm:$0xff]  ;;  %v6973_v28 = vld [vmem:[%s12401_s7 + $0x28] ss:$0 sm:$0xff] }
 0xc56   : > { %2180 = vmatpush.msra.mxu2 %v5930_v34  ;;  %2334 = vmatpush.msrb.mxu1 %v5981_v9  ;;  %v5969_v9 = vld [vmem:[%s12399_s5 + $0xf98] sm:$0xff] }
 0xc57   : > { %2210 = vmatpush.msra.mxu0 %v5907_v12  ;;  %2243 = vmatpush.msrb.mxu3 %v5948_v30  ;;  %v5965_v12 = vld [vmem:[%s12399_s5 + $0xf78] sm:$0xff]  ;;  %v6974_v30 = vld [vmem:[%s12401_s7 + $0x40] ss:$0 sm:$0xff] }
 0xc58   : > { %2181 = vmatpush.msra.mxu2 %v5929_v37 }
 0xc59   : > { %2211 = vmatpush.msra.mxu0 %v5906_v16  ;;  %2244 = vmatpush.msrb.mxu3 %v5947_v32  ;;  %v5979_v16 = vld [vmem:[%s12399_s5 + $0xfe8] sm:$0xff] }
 0xc5a   : > { %2182 = vmatpush.msra.mxu2 %v5928_v42 }
 0xc5b   : > { %2212 = vmatpush.msra.mxu0 %v5905_v20  ;;  %2245 = vmatpush.msrb.mxu3 %v5946_v36 }
 0xc5c   : > { %2183 = vmatpush.msra.mxu2 %v5927_v45 }
 0xc5d   : > { %2213 = vmatpush.msra.mxu0 %v5904_v25  ;;  %2246 = vmatpush.msrb.mxu3 %v5945_v40 }
 0xc5e   : > { %2184 = vmatpush.msra.mxu2 %v5926_v47 }
 0xc5f   : > { %2214 = vmatpush.msra.mxu0 %v5903_v26  ;;  %2247 = vmatpush.msrb.mxu3 %v5944_v43  ;;  %v6972_v26 = vld [vmem:[%s12401_s7 + $0xf] ss:$0 sm:$0xff] }
 0xc61   : > { %2215 = vmatpush.msra.mxu0 %v5902_v27  ;;  %2248 = vmatpush.msrb.mxu3 %v5943_v46 }
 0xcbe   : > { %v1975_v10 = vpop.permute.xlu1 %1974 }
 0xcbf   : > { %1980 = vst.msk [vmem:[#allocation2 + $0xa] sm:$0xff] %vm689_vm4, %v1975_v10  ;;  %v5942_v10 = vld [vmem:[%s12399_s5 + $0xec0] sm:$0xff] }
 0xcc0   : > { %2249 = vmatpush.msrb.mxu3 %v5942_v10 }
 0xcc6   : > { %v1984_v33 = vld [vmem:[#allocation2 + $0x8] sm:$0xff]  ;;  %v1977_v50 = vpop.permute.xlu0 %1976 }
 0xcc7   : > { %1981 = vst.msk [vmem:[#allocation2 + $0x12] sm:$0xff] %vm689_vm4, %v1977_v50  ;;  %2061 = vmatmul.f32.vlgmr.msra.gmra.mxu3 %v1984_v33  ;;  %v5925_v33 = vld [vmem:[%s12399_s5 + $0xe38] sm:$0xff] }
 0xcc8   : > { %v5941_v50 = vld [vmem:[%s12399_s5 + $0xeb8] sm:$0xff]  ;;  %2185 = vmatpush.msra.mxu2 %v5925_v33 }
 0xcc9   : > { %2250 = vmatpush.msrb.mxu3 %v5941_v50  ;;  %v5961_v33 = vld [vmem:[%s12399_s5 + $0xf58] sm:$0xff] }
 0xcca   : > { %v5993_v50 = vld [vmem:[%s12399_s5 + $0x1058] sm:$0xff] }
 0xcce   : > { %v1985_v49 = vld [vmem:[#allocation2 + $0x10] sm:$0xff]  ;;  %v2069_v52 = vld [vmem:[#allocation2 + $0x18] sm:$0xff] }
 0xccf   : > { %v2003_v24 = vld [vmem:[#allocation2 + $0xc] sm:$0xff]  ;;  %2064 = vmatmul.f32.gmra.mxu3 %v1985_v49  ;;  %2103 = vmatmul.f32.vlgmr.msra.gmra.mxu1 %v1985_v49  ;;  %v2004_v51 = vld [vmem:[#allocation2 + $0x14] sm:$0xff] }
 0xcd0   : > { %2038 = vmatmul.f32.vlgmr.msrb.gmra.mxu0 %v2003_v24  ;;  %v5924_v49 = vld [vmem:[%s12399_s5 + $0xe30] sm:$0xff] }
 0xcd1   : > { %v5940_v24 = vld [vmem:[%s12399_s5 + $0xeb0] sm:$0xff]  ;;  %2186 = vmatpush.msra.mxu2 %v5924_v49 }
 0xcd2   : > { %2251 = vmatpush.msrb.mxu3 %v5940_v24  ;;  %v5976_v49 = vld [vmem:[%s12399_s5 + $0xfd0] sm:$0xff] }
 0xcd3   : > { %v5960_v24 = vld [vmem:[%s12399_s5 + $0xf50] sm:$0xff] }
 0xcd7   : > { %2106 = vmatmul.f32.gmra.mxu1 %v2069_v52  ;;  %v5939_v52 = vld [vmem:[%s12399_s5 + $0xea8] sm:$0xff] }
 0xcd8   : > { %2041 = vmatmul.f32.gmra.mxu0 %v2004_v51  ;;  %v5923_v51 = vld [vmem:[%s12399_s5 + $0xe28] sm:$0xff]  ;;  %2252 = vmatpush.msrb.mxu3 %v5939_v52 }
 0xcd9   : > { %2187 = vmatpush.msra.mxu2 %v5923_v51  ;;  %v5992_v51 = vld [vmem:[%s12399_s5 + $0x1050] sm:$0xff]  ;;  %v5975_v52 = vld [vmem:[%s12399_s5 + $0xfc8] sm:$0xff] }
 0xcda   : > { %2253 = vmatpush.msrb.mxu3 %v5938_v55  ;;  %v5991_v55 = vld [vmem:[%s12399_s5 + $0x1048] sm:$0xff] }
 0xcdb   : > { %2188 = vmatpush.msra.mxu2 %v5922_v54  ;;  %v5959_v54 = vld [vmem:[%s12399_s5 + $0xf48] sm:$0xff] }
 0xcdc   : > { %2254 = vmatpush.msrb.mxu3 %v5937_v57  ;;  %v5990_v57 = vld [vmem:[%s12399_s5 + $0x1040] sm:$0xff] }
 0xcdd   : > { %2189 = vmatpush.msra.mxu2 %v5921_v35  ;;  %v5958_v35 = vld [vmem:[%s12399_s5 + $0xf40] sm:$0xff] }
 0xcdf   : > { %2190 = vmatpush.msra.mxu2 %v5920_v58  ;;  %v5973_v58 = vld [vmem:[%s12399_s5 + $0xfb8] sm:$0xff] }
 0xce1   : > { %2191 = vmatpush.msra.mxu2 %v5919_v60  ;;  %v5989_v60 = vld [vmem:[%s12399_s5 + $0x1038] sm:$0xff] }
 0xd4a   : > { %v2062_v59 = vpop.f32.mrf.mxu3 }
 0xd4c   : > { %v2104_v63 = vpop.f32.mrf.mxu1 }
 0xd4d   : > { %v2039_v61 = vpop.f32.mrf.mxu0 }
 0xd4e   : > { %v2063_v62 = vadd.f32 %v2062_v59, %v2039_v61  ;;  %v5936_v59 = vld [vmem:[%s12399_s5 + $0xe90] sm:$0xff]  ;;  %v5935_v61 = vld [vmem:[%s12399_s5 + $0xe88] sm:$0xff] }
 0xd4f   : > { %2255 = vmatpush.msrb.mxu3 %v5936_v59  ;;  %v5957_v59 = vld [vmem:[%s12399_s5 + $0xf38] sm:$0xff] }
 0xd50   : > { %v2110_v2 = vadd.f32 %v2104_v63, %v2063_v62  ;;  %v5918_v62 = vld [vmem:[%s12399_s5 + $0xe00] sm:$0xff] }
 0xd51   : > { %v5934_v63 = vld [vmem:[%s12399_s5 + $0xe80] sm:$0xff]  ;;  %2256 = vmatpush.msrb.mxu3 %v5935_v61  ;;  %2192 = vmatpush.msra.mxu2 %v5918_v62  ;;  %v5972_v61 = vld [vmem:[%s12399_s5 + $0xfb0] sm:$0xff] }
 0xd52   : > { %v2113_v7 = vadd.f32 %v6969_v0, %v2110_v2  ;;  %v2065_v6 = vpop.f32.mrf.mxu3  ;;  %v5956_v62 = vld [vmem:[%s12399_s5 + $0xf30] sm:$0xff] }
 0xd53   : > { %2257 = vmatpush.msrb.mxu3 %v5934_v63  ;;  %2357 = vmatpush.msrb.mxu2 %v5965_v12  ;;  %v5988_v63 = vld [vmem:[%s12399_s5 + $0x1030] sm:$0xff]  ;;  %v5953_v12 = vld [vmem:[%s12399_s5 + $0xf18] sm:$0xff] }
 0xd54   : > { %v2117_v11 = vmul.f32 %v6970_v3, %v2113_v7  ;;  %v2107_v17 = vpop.f32.mrf.mxu1 }
 0xd55   : > { %v2042_v13 = vpop.f32.mrf.mxu0 }
 0xd56   : > { %v2066_v14 = vadd.f32 %v2065_v6, %v2042_v13  ;;  %v2121_v15 = vadd.f32 %v6971_v8, %v2117_v11  ;;  %v5997_v6 = vld [vmem:[%s12399_s5 + $0x1078] sm:$0xff]  ;;  %v5980_v13 = vld [vmem:[%s12399_s5 + $0xff0] sm:$0xff] }
 0xd57   : > { %2399 = vmatpush.msrb.mxu0 %v5997_v6  ;;  %2335 = vmatpush.msrb.mxu1 %v5980_v13  ;;  %v5985_v6 = vld [vmem:[%s12399_s5 + $0x1018] sm:$0xff]  ;;  %v5968_v13 = vld [vmem:[%s12399_s5 + $0xf90] sm:$0xff] }
 0xd58   : > { %v2111_v44 = vadd.f32 %v2107_v17, %v2066_v14  ;;  %v2123_v18 = vmax.f32 %v2121_v15, 0.0  ;;  %v5964_v14 = vld [vmem:[%s12399_s5 + $0xf70] sm:$0xff]  ;;  %v5963_v17 = vld [vmem:[%s12399_s5 + $0xf68] sm:$0xff] }
 0xd59   : > { %v5996_v15 = vld [vmem:[%s12399_s5 + $0x1070] sm:$0xff]  ;;  %2358 = vmatpush.msrb.mxu2 %v5964_v14  ;;  %2336 = vmatpush.msrb.mxu1 %v5979_v16  ;;  %v5967_v16 = vld [vmem:[%s12399_s5 + $0xf88] sm:$0xff] }
 0xd5a   : > { %v2114_v21 = vadd.f32 %v6969_v0, %v2111_v44  ;;  %2130 = vrot.lane.b32.xlu2 %v2123_v18, %s7100_s20  ;;  %2126 = vst.msk [vmem:[#allocation2 + $0xc] sm:$0xff] %vm485_vm1, %v2123_v18  ;;  %v5995_v44 = vld [vmem:[%s12399_s5 + $0x1068] sm:$0xff]  ;;  %2400 = vmatpush.msrb.mxu0 %v5996_v15  ;;  %v5978_v18 = vld [vmem:[%s12399_s5 + $0xfe0] sm:$0xff]  ;;  %v5952_v14 = vld [vmem:[%s12399_s5 + $0xf10] sm:$0xff] }
 0xd5b   : > { %2359 = vmatpush.msrb.mxu2 %v5963_v17  ;;  %2337 = vmatpush.msrb.mxu1 %v5978_v18  ;;  %v5984_v15 = vld [vmem:[%s12399_s5 + $0x1010] sm:$0xff]  ;;  %v5951_v17 = vld [vmem:[%s12399_s5 + $0xf08] sm:$0xff]  ;;  %v5966_v18 = vld [vmem:[%s12399_s5 + $0xf80] sm:$0xff] }
 0xd5c   : > { %v2118_v22 = vmul.f32 %v6970_v3, %v2114_v21  ;;  %v5962_v21 = vld [vmem:[%s12399_s5 + $0xf60] sm:$0xff]  ;;  %2401 = vmatpush.msrb.mxu0 %v5995_v44  ;;  %v5983_v44 = vld [vmem:[%s12399_s5 + $0x1008] sm:$0xff] }
 0xd5d   : > { %2360 = vmatpush.msrb.mxu2 %v5962_v21  ;;  %v5950_v21 = vld [vmem:[%s12399_s5 + $0xf00] sm:$0xff] }
 0xd5e   : > { %v2122_v23 = vadd.f32 %v6971_v8, %v2118_v22  ;;  %v9058_v8 = vpop.f32.mrf.mxu2  ;;  %v5994_v22 = vld [vmem:[%s12399_s5 + $0x1060] sm:$0xff] }
 0xd5f   : > { %2402 = vmatpush.msrb.mxu0 %v5994_v22  ;;  %2361 = vmatpush.msrb.mxu2 %v5961_v33  ;;  %v5982_v22 = vld [vmem:[%s12399_s5 + $0x1000] sm:$0xff] }
 0xd60   : > { %v2124_v48 = vmax.f32 %v2122_v23, 0.0 }
 0xd61   : > { %2403 = vmatpush.msrb.mxu0 %v5993_v50  ;;  %2362 = vmatpush.msrb.mxu2 %v5960_v24  ;;  %v6041_v50 = vld [vmem:[%s12399_s5 + $0x11d8] sm:$0xff]  ;;  %v6024_v24 = vld [vmem:[%s12399_s5 + $0x1150] sm:$0xff] }
 0xd62   : > { %2132 = vrot.lane.b32.xlu1 %v2124_v48, %s7100_s20  ;;  %2127 = vst.msk [vmem:[#allocation2 + $0x14] sm:$0xff] %vm485_vm1, %v2124_v48 }
 0xd63   : > { %2138 = vst.msk [vmem:[#allocation2 + $0x1a] sm:$0x3] %vm1982_vm5, %v8873_v38  ;;  %2404 = vmatpush.msrb.mxu0 %v5992_v51  ;;  %2363 = vmatpush.msrb.mxu2 %v5959_v54  ;;  %v6040_v54 = vld [vmem:[%s12399_s5 + $0x11d0] sm:$0xff] }
 0xd65   : > { %2405 = vmatpush.msrb.mxu0 %v5991_v55  ;;  %2364 = vmatpush.msrb.mxu2 %v5958_v35  ;;  %v6006_v35 = vld [vmem:[%s12399_s5 + $0x10c0] sm:$0xff] }
 0xd66   : > { %v9063_v11 = vpop.f32.mrf.mxu2 }
 0xd67   : > { %2406 = vmatpush.msrb.mxu0 %v5990_v57  ;;  %2365 = vmatpush.msrb.mxu2 %v5957_v59  ;;  %v6023_v57 = vld [vmem:[%s12399_s5 + $0x1148] sm:$0xff] }
 0xd69   : > { %2407 = vmatpush.msrb.mxu0 %v5989_v60  ;;  %2366 = vmatpush.msrb.mxu2 %v5956_v62  ;;  %v6976_v60 = vld [vmem:[%s12401_s7 + $0x29] ss:$0 sm:$0xff]  ;;  %v6022_v62 = vld [vmem:[%s12399_s5 + $0x1140] sm:$0xff] }
 0xd6b   : > { %2408 = vmatpush.msrb.mxu0 %v5988_v63  ;;  %v6038_v63 = vld [vmem:[%s12399_s5 + $0x11c0] sm:$0xff] }
 0xdb4   : > { %v2131_v56 = vpop.permute.xlu2 %2130 }
 0xdb5   : > { %2136 = vst.msk [vmem:[#allocation2 + $0xa] sm:$0xff] %vm689_vm4, %v2131_v56  ;;  %v5974_v56 = vld [vmem:[%s12399_s5 + $0xfc0] sm:$0xff] }
 0xdbc   : > { %v2139_v0 = vld [vmem:[#allocation2 + $0x8] sm:$0xff] }
 0xdbd   : > { %2216 = vmatmul.f32.vlgmr.msra.gmra.mxu0 %v2139_v0  ;;  %v5971_v0 = vld [vmem:[%s12399_s5 + $0xfa8] sm:$0xff] }
 0xdd4   : > { %v2133_v1 = vpop.permute.xlu1 %2132 }
 0xdd5   : > { %2137 = vst.msk [vmem:[#allocation2 + $0x12] sm:$0xff] %vm689_vm4, %v2133_v1  ;;  %v5955_v1 = vld [vmem:[%s12399_s5 + $0xf28] sm:$0xff] }
 0xdd6   : > { %2367 = vmatpush.msrb.mxu2 %v5955_v1  ;;  %v6977_v1 = vld [vmem:[%s12401_s7 + $0x41] ss:$0 sm:$0xff] }
 0xddc   : > { %v2140_v2 = vld [vmem:[#allocation2 + $0x10] sm:$0xff]  ;;  %v2224_v7 = vld [vmem:[#allocation2 + $0x18] sm:$0xff] }
 0xddd   : > { %v2158_v3 = vld [vmem:[#allocation2 + $0xc] sm:$0xff]  ;;  %2219 = vmatmul.f32.gmra.mxu0 %v2140_v2  ;;  %2258 = vmatmul.f32.vlgmr.msrb.gmra.mxu3 %v2140_v2  ;;  %v2159_v4 = vld [vmem:[#allocation2 + $0x14] sm:$0xff] }
 0xdde   : > { %2193 = vmatmul.f32.vlgmr.msra.gmra.mxu2 %v2158_v3  ;;  %v5987_v2 = vld [vmem:[%s12399_s5 + $0x1028] sm:$0xff]  ;;  %v5970_v3 = vld [vmem:[%s12399_s5 + $0xfa0] sm:$0xff] }
 0xddf   : > { %2409 = vmatpush.msrb.mxu0 %v5987_v2  ;;  %v6004_v2 = vld [vmem:[%s12399_s5 + $0x10b0] sm:$0xff] }
 0xde5   : > { %2261 = vmatmul.f32.gmra.mxu3 %v2224_v7  ;;  %v5986_v7 = vld [vmem:[%s12399_s5 + $0x1020] sm:$0xff] }
 0xde6   : > { %2196 = vmatmul.f32.gmra.mxu2 %v2159_v4  ;;  %v5954_v4 = vld [vmem:[%s12399_s5 + $0xf20] sm:$0xff]  ;;  %2410 = vmatpush.msrb.mxu0 %v5986_v7 }
 0xde7   : > { %2368 = vmatpush.msrb.mxu2 %v5954_v4  ;;  %v6003_v4 = vld [vmem:[%s12399_s5 + $0x10a8] sm:$0xff] }
 0xde8   : > { %2411 = vmatpush.msrb.mxu0 %v5985_v6 }
 0xde9   : > { %2369 = vmatpush.msrb.mxu2 %v5953_v12 }
 0xdea   : > { %2412 = vmatpush.msrb.mxu0 %v5984_v15 }
 0xdeb   : > { %2370 = vmatpush.msrb.mxu2 %v5952_v14 }
 0xdec   : > { %2413 = vmatpush.msrb.mxu0 %v5983_v44 }
 0xded   : > { %2371 = vmatpush.msrb.mxu2 %v5951_v17 }
 0xdee   : > { %2414 = vmatpush.msrb.mxu0 %v5982_v22  ;;  %v6021_v22 = vld [vmem:[%s12399_s5 + $0x1138] sm:$0xff] }
 0xdef   : > { %2372 = vmatpush.msrb.mxu2 %v5950_v21 }
 0xe3a   : > { %v2217_v23 = vpop.f32.mrf.mxu0 }
 0xe5a   : > { %v2220_v31 = vpop.f32.mrf.mxu0 }
 0xe60   : > { %v2259_v25 = vpop.f32.mrf.mxu3 }
 0xe61   : > { %v2194_v48 = vpop.f32.mrf.mxu2 }
 0xe62   : > { %v2218_v20 = vadd.f32 %v2217_v23, %v2194_v48 }
 0xe64   : > { %v2265_v27 = vadd.f32 %v2259_v25, %v2218_v20 }
 0xe66   : > { %v2268_v53 = vadd.f32 %v6972_v26, %v2265_v27 }
 0xe68   : > { %v9105_v29 = vadd.f32 %v2268_v53, %v8804_v5  ;;  %v2262_v37 = vpop.f32.mrf.mxu3 }
 0xe69   : > { %v2197_v32 = vpop.f32.mrf.mxu2 }
 0xe6a   : > { %v2221_v34 = vadd.f32 %v2220_v31, %v2197_v32  ;;  %v2274_v36 = vmul.f32 %v6973_v28, %v9105_v29  ;;  %v6011_v31 = vld [vmem:[%s12399_s5 + $0x10e8] sm:$0xff]  ;;  %v6029_v32 = vld [vmem:[%s12399_s5 + $0x1178] sm:$0xff] }
 0xe6b   : > { %2489 = vmatpush.msra.mxu3 %v6029_v32  ;;  %v6034_v32 = vld [vmem:[%s12399_s5 + $0x11a0] sm:$0xff] }
 0xe6c   : > { %v2266_v40 = vadd.f32 %v2262_v37, %v2221_v34  ;;  %v2278_v42 = vadd.f32 %v6974_v30, %v2274_v36  ;;  %v6045_v34 = vld [vmem:[%s12399_s5 + $0x11f8] sm:$0xff]  ;;  %v6028_v36 = vld [vmem:[%s12399_s5 + $0x1170] sm:$0xff] }
 0xe6d   : > { %v6044_v37 = vld [vmem:[%s12399_s5 + $0x11f0] sm:$0xff]  ;;  %2554 = vmatpush.msra.mxu2 %v6045_v34  ;;  %2490 = vmatpush.msra.mxu3 %v6028_v36  ;;  %v6017_v34 = vld [vmem:[%s12399_s5 + $0x1118] sm:$0xff] }
 0xe6e   : > { %v2269_v43 = vadd.f32 %v6972_v26, %v2266_v40  ;;  %v2280_v45 = vmax.f32 %v2278_v42, 0.0  ;;  %v6010_v40 = vld [vmem:[%s12399_s5 + $0x10e0] sm:$0xff]  ;;  %v6027_v42 = vld [vmem:[%s12399_s5 + $0x1168] sm:$0xff]  ;;  %v6033_v36 = vld [vmem:[%s12399_s5 + $0x1198] sm:$0xff] }
 0xe6f   : > { %2555 = vmatpush.msra.mxu2 %v6044_v37  ;;  %2491 = vmatpush.msra.mxu3 %v6027_v42  ;;  %v6016_v37 = vld [vmem:[%s12399_s5 + $0x1110] sm:$0xff]  ;;  %v6015_v42 = vld [vmem:[%s12399_s5 + $0x1108] sm:$0xff] }
 0xe70   : > { %v9112_v46 = vadd.f32 %v2269_v43, %v8824_v19  ;;  %2287 = vrot.lane.b32.xlu0 %v2280_v45, %s7100_s20  ;;  %2283 = vst.msk [vmem:[#allocation2 + $0xc] sm:$0xff] %vm485_vm1, %v2280_v45  ;;  %v5977_v19 = vld [vmem:[%s12399_s5 + $0xfd8] sm:$0xff]  ;;  %v6043_v43 = vld [vmem:[%s12399_s5 + $0x11e8] sm:$0xff] }
 0xe71   : > { %2338 = vmatpush.msrb.mxu1 %v5977_v19  ;;  %v6009_v45 = vld [vmem:[%s12399_s5 + $0x10d8] sm:$0xff]  ;;  %2556 = vmatpush.msra.mxu2 %v6043_v43  ;;  %v6031_v43 = vld [vmem:[%s12399_s5 + $0x1188] sm:$0xff] }
 0xe72   : > { %v2275_v5 = vmul.f32 %v6973_v28, %v9112_v46  ;;  %v6013_v28 = vld [vmem:[%s12399_s5 + $0x10f8] sm:$0xff] }
 0xe73   : > { %2339 = vmatpush.msrb.mxu1 %v5976_v49  ;;  %v6025_v19 = vld [vmem:[%s12399_s5 + $0x1158] sm:$0xff]  ;;  %v6007_v49 = vld [vmem:[%s12399_s5 + $0x10c8] sm:$0xff] }
 0xe74   : > { %v2279_v47 = vadd.f32 %v6974_v30, %v2275_v5  ;;  %v6012_v30 = vld [vmem:[%s12399_s5 + $0x10f0] sm:$0xff]  ;;  %v6026_v5 = vld [vmem:[%s12399_s5 + $0x1160] sm:$0xff] }
 0xe75   : > { %2340 = vmatpush.msrb.mxu1 %v5975_v52  ;;  %2492 = vmatpush.msra.mxu3 %v6026_v5  ;;  %v6030_v5 = vld [vmem:[%s12399_s5 + $0x1180] sm:$0xff] }
 0xe76   : > { %v2281_v10 = vmax.f32 %v2279_v47, 0.0  ;;  %v6042_v47 = vld [vmem:[%s12399_s5 + $0x11e0] sm:$0xff] }
 0xe77   : > { %2341 = vmatpush.msrb.mxu1 %v5974_v56  ;;  %2557 = vmatpush.msra.mxu2 %v6042_v47  ;;  %v6975_v56 = vld [vmem:[%s12401_s7 + $0x10] ss:$0 sm:$0xff] }
 0xe78   : > { %2289 = vrot.lane.b32.xlu2 %v2281_v10, %s7100_s20  ;;  %2284 = vst.msk [vmem:[#allocation2 + $0x14] sm:$0xff] %vm485_vm1, %v2281_v10  ;;  %v6008_v10 = vld [vmem:[%s12399_s5 + $0x10d0] sm:$0xff]  ;;  %2493 = vmatpush.msra.mxu3 %v6025_v19 }
 0xe79   : > { %2295 = vst.msk [vmem:[#allocation2 + $0x1a] sm:$0x3] %vm1982_vm5, %v8873_v38  ;;  %2342 = vmatpush.msrb.mxu1 %v5973_v58  ;;  %2558 = vmatpush.msra.mxu2 %v6041_v50  ;;  %v6039_v58 = vld [vmem:[%s12399_s5 + $0x11c8] sm:$0xff] }
 0xe7a   : > { %2494 = vmatpush.msra.mxu3 %v6024_v24 }
 0xe7b   : > { %2343 = vmatpush.msrb.mxu1 %v5972_v61  ;;  %v6005_v61 = vld [vmem:[%s12399_s5 + $0x10b8] sm:$0xff]  ;;  %2559 = vmatpush.msra.mxu2 %v6040_v54  ;;  %v6059_v54 = vld [vmem:[%s12399_s5 + $0x1268] sm:$0xff] }
 0xe7c   : > { %2495 = vmatpush.msra.mxu3 %v6023_v57  ;;  %v6056_v57 = vld [vmem:[%s12399_s5 + $0x1250] sm:$0xff] }
 0xe7d   : > { %2344 = vmatpush.msrb.mxu1 %v5971_v0  ;;  %2560 = vmatpush.msra.mxu2 %v6039_v58 }
 0xe7e   : > { %2496 = vmatpush.msra.mxu3 %v6022_v62  ;;  %v6055_v62 = vld [vmem:[%s12399_s5 + $0x1248] sm:$0xff] }
 0xe7f   : > { %2345 = vmatpush.msrb.mxu1 %v5970_v3  ;;  %2561 = vmatpush.msra.mxu2 %v6038_v63 }
 0xe80   : > { %2497 = vmatpush.msra.mxu3 %v6021_v22 }
 0xe81   : > { %2346 = vmatpush.msrb.mxu1 %v5969_v9 }
 0xe83   : > { %2347 = vmatpush.msrb.mxu1 %v5968_v13  ;;  %v6002_v13 = vld [vmem:[%s12399_s5 + $0x10a0] sm:$0xff] }
 0xe85   : > { %2348 = vmatpush.msrb.mxu1 %v5967_v16 }
 0xe87   : > { %2349 = vmatpush.msrb.mxu1 %v5966_v18 }
 0xe89   : > { %2512 = vmatpush.msra.mxu1 %v6013_v28  ;;  %v6035_v28 = vld [vmem:[%s12399_s5 + $0x11a8] sm:$0xff] }
 0xe8b   : > { %2513 = vmatpush.msra.mxu1 %v6012_v30  ;;  %v6018_v30 = vld [vmem:[%s12399_s5 + $0x1120] sm:$0xff] }
 0xe8d   : > { %2514 = vmatpush.msra.mxu1 %v6011_v31  ;;  %v5998_v31 = vld [vmem:[%s12399_s5 + $0x1080] sm:$0xff] }
 0xe8f   : > { %2515 = vmatpush.msra.mxu1 %v6010_v40  ;;  %v6032_v40 = vld [vmem:[%s12399_s5 + $0x1190] sm:$0xff] }
 0xe91   : > { %2516 = vmatpush.msra.mxu1 %v6009_v45  ;;  %v6014_v45 = vld [vmem:[%s12399_s5 + $0x1100] sm:$0xff] }
 0xe93   : > { %2517 = vmatpush.msra.mxu1 %v6008_v10 }
 0xe95   : > { %2518 = vmatpush.msra.mxu1 %v6007_v49 }
 0xe97   : > { %2519 = vmatpush.msra.mxu1 %v6006_v35 }
 0xe99   : > { %2520 = vmatpush.msra.mxu1 %v6005_v61  ;;  %v6978_v61 = vld [vmem:[%s12401_s7 + $0x11] ss:$0 sm:$0xff] }
 0xe9b   : > { %2521 = vmatpush.msra.mxu1 %v6004_v2  ;;  %v6979_v2 = vld [vmem:[%s12401_s7 + $0x2a] ss:$0 sm:$0xff] }
 0xe9d   : > { %2522 = vmatpush.msra.mxu1 %v6003_v4 }
 0xe9f   : > { %2523 = vmatpush.msra.mxu1 %v6002_v13 }
 0xed2   : > { %v2290_v23 = vpop.permute.xlu2 %2289 }
 0xed3   : > { %2294 = vst.msk [vmem:[#allocation2 + $0x12] sm:$0xff] %vm689_vm4, %v2290_v23  ;;  %v6001_v23 = vld [vmem:[%s12399_s5 + $0x1098] sm:$0xff] }
 0xed4   : > { %2524 = vmatpush.msra.mxu1 %v6001_v23 }
 0xeda   : > { %v2316_v27 = vld [vmem:[#allocation2 + $0x14] sm:$0xff] }
 0xedb   : > { %v2381_v53 = vld [vmem:[#allocation2 + $0x18] sm:$0xff] }
 0xee2   : > { %v2288_v48 = vpop.permute.xlu0 %2287 }
 0xee3   : > { %2293 = vst.msk [vmem:[#allocation2 + $0xa] sm:$0xff] %vm689_vm4, %v2288_v48  ;;  %v6037_v48 = vld [vmem:[%s12399_s5 + $0x11b8] sm:$0xff] }
 0xee4   : > { %2562 = vmatpush.msra.mxu2 %v6037_v48 }
 0xeea   : > { %v2296_v20 = vld [vmem:[#allocation2 + $0x8] sm:$0xff]  ;;  %v2297_v25 = vld [vmem:[#allocation2 + $0x10] sm:$0xff] }
 0xeeb   : > { %v2315_v26 = vld [vmem:[#allocation2 + $0xc] sm:$0xff]  ;;  %2373 = vmatmul.f32.vlgmr.msrb.gmra.mxu2 %v2296_v20  ;;  %2415 = vmatmul.f32.vlgmr.msrb.gmra.mxu0 %v2297_v25 }
 0xeec   : > { %2350 = vmatmul.f32.vlgmr.msrb.gmra.mxu1 %v2315_v26  ;;  %v6020_v20 = vld [vmem:[%s12399_s5 + $0x1130] sm:$0xff] }
 0xeed   : > { %v6036_v26 = vld [vmem:[%s12399_s5 + $0x11b0] sm:$0xff]  ;;  %2498 = vmatpush.msra.mxu3 %v6020_v20 }
 0xeee   : > { %2563 = vmatpush.msra.mxu2 %v6036_v26  ;;  %v6047_v26 = vld [vmem:[%s12399_s5 + $0x1208] sm:$0xff] }
 0xef0   : > { %2564 = vmatpush.msra.mxu2 %v6035_v28  ;;  %v6076_v28 = vld [vmem:[%s12399_s5 + $0x12f0] sm:$0xff] }
 0xef2   : > { %2565 = vmatpush.msra.mxu2 %v6034_v32  ;;  %v6091_v32 = vld [vmem:[%s12399_s5 + $0x1368] sm:$0xff] }
 0xef3   : > { %2376 = vmatmul.f32.gmra.mxu2 %v2297_v25  ;;  %2418 = vmatmul.f32.gmra.mxu0 %v2381_v53  ;;  %v6000_v25 = vld [vmem:[%s12399_s5 + $0x1090] sm:$0xff]  ;;  %v5999_v53 = vld [vmem:[%s12399_s5 + $0x1088] sm:$0xff] }
 0xef4   : > { %2353 = vmatmul.f32.gmra.mxu1 %v2316_v27  ;;  %v6019_v27 = vld [vmem:[%s12399_s5 + $0x1128] sm:$0xff]  ;;  %2566 = vmatpush.msra.mxu2 %v6033_v36  ;;  %v6090_v36 = vld [vmem:[%s12399_s5 + $0x1360] sm:$0xff] }
 0xef5   : > { %2525 = vmatpush.msra.mxu1 %v6000_v25  ;;  %2499 = vmatpush.msra.mxu3 %v6019_v27  ;;  %v6048_v25 = vld [vmem:[%s12399_s5 + $0x1210] sm:$0xff]  ;;  %v6046_v27 = vld [vmem:[%s12399_s5 + $0x1200] sm:$0xff] }
 0xef6   : > { %2567 = vmatpush.msra.mxu2 %v6032_v40  ;;  %v6089_v40 = vld [vmem:[%s12399_s5 + $0x1358] sm:$0xff] }
 0xef7   : > { %2526 = vmatpush.msra.mxu1 %v5999_v53  ;;  %2500 = vmatpush.msra.mxu3 %v6018_v30  ;;  %v6093_v53 = vld [vmem:[%s12399_s5 + $0x1378] sm:$0xff]  ;;  %v6092_v30 = vld [vmem:[%s12399_s5 + $0x1370] sm:$0xff] }
 0xef8   : > { %2568 = vmatpush.msra.mxu2 %v6031_v43  ;;  %v6088_v43 = vld [vmem:[%s12399_s5 + $0x1350] sm:$0xff] }
 0xef9   : > { %2527 = vmatpush.msra.mxu1 %v5998_v31  ;;  %2501 = vmatpush.msra.mxu3 %v6017_v34  ;;  %v6075_v31 = vld [vmem:[%s12399_s5 + $0x12e8] sm:$0xff]  ;;  %v6074_v34 = vld [vmem:[%s12399_s5 + $0x12e0] sm:$0xff] }
 0xefa   : > { %2569 = vmatpush.msra.mxu2 %v6030_v5  ;;  %v6087_v5 = vld [vmem:[%s12399_s5 + $0x1348] sm:$0xff] }
 0xefb   : > { %2502 = vmatpush.msra.mxu3 %v6016_v37  ;;  %2711 = vmatpush.msrb.mxu1 %v6093_v53  ;;  %v6073_v37 = vld [vmem:[%s12399_s5 + $0x12d8] sm:$0xff]  ;;  %v6983_v53 = vld [vmem:[%s12401_s7 + $0x43] ss:$0 sm:$0xff] }
 0xefd   : > { %2503 = vmatpush.msra.mxu3 %v6015_v42  ;;  %2712 = vmatpush.msrb.mxu1 %v6092_v30  ;;  %v6072_v42 = vld [vmem:[%s12399_s5 + $0x12d0] sm:$0xff] }
 0xeff   : > { %2504 = vmatpush.msra.mxu3 %v6014_v45  ;;  %2713 = vmatpush.msrb.mxu1 %v6091_v32  ;;  %v6071_v45 = vld [vmem:[%s12399_s5 + $0x12c8] sm:$0xff] }
 0xf01   : > { %2714 = vmatpush.msrb.mxu1 %v6090_v36 }
 0xf03   : > { %2715 = vmatpush.msrb.mxu1 %v6089_v40 }
 0xf05   : > { %2716 = vmatpush.msrb.mxu1 %v6088_v43 }
 0xf07   : > { %2717 = vmatpush.msrb.mxu1 %v6087_v5 }
 0xf68   : > { %v2416_v51 = vpop.f32.mrf.mxu0 }
 0xf69   : > { %v2351_v33 = vpop.f32.mrf.mxu1 }
 0xf6e   : > { %v2374_v52 = vpop.f32.mrf.mxu2 }
 0xf6f   : > { %v2375_v55 = vadd.f32 %v2374_v52, %v2351_v33  ;;  %v6060_v52 = vld [vmem:[%s12399_s5 + $0x1270] sm:$0xff] }
 0xf70   : > { %v2419_v14 = vpop.f32.mrf.mxu0 }
 0xf71   : > { %v2422_v59 = vadd.f32 %v2416_v51, %v2375_v55  ;;  %v2354_v7 = vpop.f32.mrf.mxu1  ;;  %v6061_v51 = vld [vmem:[%s12399_s5 + $0x1278] sm:$0xff]  ;;  %v6058_v55 = vld [vmem:[%s12399_s5 + $0x1260] sm:$0xff] }
 0xf72   : > { %2669 = vmatpush.msrb.mxu3 %v6061_v51  ;;  %v6083_v51 = vld [vmem:[%s12399_s5 + $0x1328] sm:$0xff] }
 0xf73   : > { %v2425_v0 = vadd.f32 %v6975_v56, %v2422_v59 }
 0xf74   : > { %2670 = vmatpush.msrb.mxu3 %v6060_v52  ;;  %v6066_v52 = vld [vmem:[%s12399_s5 + $0x12a0] sm:$0xff] }
 0xf75   : > { %v2429_v3 = vmul.f32 %v6976_v60, %v2425_v0  ;;  %v6054_v0 = vld [vmem:[%s12399_s5 + $0x1240] sm:$0xff] }
 0xf76   : > { %v2377_v9 = vpop.f32.mrf.mxu2  ;;  %2671 = vmatpush.msrb.mxu3 %v6059_v54  ;;  %v6082_v54 = vld [vmem:[%s12399_s5 + $0x1320] sm:$0xff] }
 0xf77   : > { %v2378_v12 = vadd.f32 %v2377_v9, %v2354_v7  ;;  %v2433_v6 = vadd.f32 %v6977_v1, %v2429_v3  ;;  %v6053_v3 = vld [vmem:[%s12399_s5 + $0x1238] sm:$0xff]  ;;  %v6980_v7 = vld [vmem:[%s12401_s7 + $0x42] ss:$0 sm:$0xff]  ;;  %v6052_v9 = vld [vmem:[%s12399_s5 + $0x1230] sm:$0xff] }
 0xf78   : > { %2672 = vmatpush.msrb.mxu3 %v6058_v55 }
 0xf79   : > { %v2423_v15 = vadd.f32 %v2419_v14, %v2378_v12  ;;  %v2435_v16 = vmax.f32 %v2433_v6, 0.0 }
 0xf7b   : > { %v2426_v17 = vadd.f32 %v6975_v56, %v2423_v15  ;;  %2442 = vrot.lane.b32.xlu1 %v2435_v16, %s7100_s20  ;;  %2438 = vst.msk [vmem:[#allocation2 + $0xc] sm:$0xff] %vm485_vm1, %v2435_v16  ;;  %v6057_v56 = vld [vmem:[%s12399_s5 + $0x1258] sm:$0xff]  ;;  %v6051_v15 = vld [vmem:[%s12399_s5 + $0x1228] sm:$0xff] }
 0xf7c   : > { %2673 = vmatpush.msrb.mxu3 %v6057_v56  ;;  %v6065_v56 = vld [vmem:[%s12399_s5 + $0x1298] sm:$0xff] }
 0xf7d   : > { %v2430_v44 = vmul.f32 %v6976_v60, %v2426_v17 }
 0xf7e   : > { %2674 = vmatpush.msrb.mxu3 %v6056_v57  ;;  %v6064_v57 = vld [vmem:[%s12399_s5 + $0x1290] sm:$0xff] }
 0xf7f   : > { %v2434_v18 = vadd.f32 %v6977_v1, %v2430_v44  ;;  %v6050_v44 = vld [vmem:[%s12399_s5 + $0x1220] sm:$0xff] }
 0xf80   : > { %2675 = vmatpush.msrb.mxu3 %v6055_v62  ;;  %v6078_v62 = vld [vmem:[%s12399_s5 + $0x1300] sm:$0xff] }
 0xf81   : > { %v2436_v21 = vmax.f32 %v2434_v18, 0.0 }
 0xf82   : > { %2676 = vmatpush.msrb.mxu3 %v6054_v0 }
 0xf83   : > { %2444 = vrot.lane.b32.xlu0 %v2436_v21, %s7100_s20  ;;  %2439 = vst.msk [vmem:[#allocation2 + $0x14] sm:$0xff] %vm485_vm1, %v2436_v21 }
 0xf84   : > { %2450 = vst.msk [vmem:[#allocation2 + $0x1a] sm:$0x3] %vm1982_vm5, %v8873_v38  ;;  %2677 = vmatpush.msrb.mxu3 %v6053_v3 }
 0xf86   : > { %2678 = vmatpush.msrb.mxu3 %v6052_v9  ;;  %v6125_v9 = vld [vmem:[%s12399_s5 + $0x1478] sm:$0xff] }
 0xf87   : > { %2801 = vmatpush.msrb.mxu2 %v6125_v9  ;;  %v6113_v9 = vld [vmem:[%s12399_s5 + $0x1418] sm:$0xff] }
 0xf88   : > { %2679 = vmatpush.msrb.mxu3 %v6051_v15  ;;  %v6140_v15 = vld [vmem:[%s12399_s5 + $0x14f0] sm:$0xff] }
 0xf8a   : > { %2680 = vmatpush.msrb.mxu3 %v6050_v44  ;;  %v6122_v44 = vld [vmem:[%s12399_s5 + $0x1460] sm:$0xff] }
 0xfed   : > { %v2443_v47 = vpop.permute.xlu1 %2442 }
 0xfee   : > { %2448 = vst.msk [vmem:[#allocation2 + $0xa] sm:$0xff] %vm689_vm4, %v2443_v47  ;;  %v6070_v47 = vld [vmem:[%s12399_s5 + $0x12c0] sm:$0xff] }
 0xff5   : > { %v2451_v10 = vld [vmem:[#allocation2 + $0x8] sm:$0xff]  ;;  %v2445_v19 = vpop.permute.xlu0 %2444 }
 0xff6   : > { %2449 = vst.msk [vmem:[#allocation2 + $0x12] sm:$0xff] %vm689_vm4, %v2445_v19  ;;  %2528 = vmatmul.f32.vlgmr.msra.gmra.mxu1 %v2451_v10  ;;  %v6086_v10 = vld [vmem:[%s12399_s5 + $0x1340] sm:$0xff]  ;;  %v6069_v19 = vld [vmem:[%s12399_s5 + $0x12b8] sm:$0xff] }
 0xff7   : > { %2718 = vmatpush.msrb.mxu1 %v6086_v10  ;;  %v6121_v10 = vld [vmem:[%s12399_s5 + $0x1458] sm:$0xff] }
 0xffd   : > { %v2452_v33 = vld [vmem:[#allocation2 + $0x10] sm:$0xff]  ;;  %v2536_v24 = vld [vmem:[#allocation2 + $0x18] sm:$0xff] }
 0xffe   : > { %v2470_v50 = vld [vmem:[#allocation2 + $0xc] sm:$0xff]  ;;  %2531 = vmatmul.f32.gmra.mxu1 %v2452_v33  ;;  %2570 = vmatmul.f32.vlgmr.msra.gmra.mxu2 %v2452_v33  ;;  %v2471_v49 = vld [vmem:[#allocation2 + $0x14] sm:$0xff] }
 0xfff   : > { %2505 = vmatmul.f32.vlgmr.msra.gmra.mxu3 %v2470_v50  ;;  %v6085_v33 = vld [vmem:[%s12399_s5 + $0x1338] sm:$0xff]  ;;  %v6068_v50 = vld [vmem:[%s12399_s5 + $0x12b0] sm:$0xff] }
0x1000   : > { %2719 = vmatpush.msrb.mxu1 %v6085_v33  ;;  %v6137_v33 = vld [vmem:[%s12399_s5 + $0x14d8] sm:$0xff] }
0x1006   : > { %2573 = vmatmul.f32.gmra.mxu2 %v2536_v24  ;;  %v6067_v24 = vld [vmem:[%s12399_s5 + $0x12a8] sm:$0xff] }
0x1007   : > { %2508 = vmatmul.f32.gmra.mxu3 %v2471_v49  ;;  %v6084_v49 = vld [vmem:[%s12399_s5 + $0x1330] sm:$0xff] }
0x1008   : > { %2720 = vmatpush.msrb.mxu1 %v6084_v49  ;;  %v6104_v49 = vld [vmem:[%s12399_s5 + $0x13d0] sm:$0xff] }
0x100a   : > { %2721 = vmatpush.msrb.mxu1 %v6083_v51  ;;  %v6119_v51 = vld [vmem:[%s12399_s5 + $0x1448] sm:$0xff] }
0x100c   : > { %2722 = vmatpush.msrb.mxu1 %v6082_v54  ;;  %v6135_v54 = vld [vmem:[%s12399_s5 + $0x14c8] sm:$0xff] }
0x1073   : > { %v2529_v35 = vpop.f32.mrf.mxu1 }
0x107b   : > { %v2532_v12 = vpop.f32.mrf.mxu1 }
0x1081   : > { %v2571_v60 = vpop.f32.mrf.mxu2 }
0x1082   : > { %v2506_v58 = vpop.f32.mrf.mxu3 }
0x1083   : > { %v2530_v59 = vadd.f32 %v2529_v35, %v2506_v58  ;;  %v6081_v35 = vld [vmem:[%s12399_s5 + $0x1318] sm:$0xff]  ;;  %v6080_v58 = vld [vmem:[%s12399_s5 + $0x1310] sm:$0xff] }
0x1084   : > { %2723 = vmatpush.msrb.mxu1 %v6081_v35  ;;  %v6134_v35 = vld [vmem:[%s12399_s5 + $0x14c0] sm:$0xff] }
0x1085   : > { %v2577_v63 = vadd.f32 %v2571_v60, %v2530_v59  ;;  %v6063_v59 = vld [vmem:[%s12399_s5 + $0x1288] sm:$0xff] }
0x1086   : > { %v6079_v60 = vld [vmem:[%s12399_s5 + $0x1308] sm:$0xff]  ;;  %2724 = vmatpush.msrb.mxu1 %v6080_v58  ;;  %v6101_v58 = vld [vmem:[%s12399_s5 + $0x13b8] sm:$0xff] }
0x1087   : > { %v2580_v1 = vadd.f32 %v6978_v61, %v2577_v63 }
0x1088   : > { %2725 = vmatpush.msrb.mxu1 %v6079_v60  ;;  %v6116_v60 = vld [vmem:[%s12399_s5 + $0x1430] sm:$0xff] }
0x1089   : > { %v9426_v4 = vadd.f32 %v2580_v1, %v9105_v29  ;;  %v2574_v29 = vpop.f32.mrf.mxu2 }
0x108a   : > { %v2509_v6 = vpop.f32.mrf.mxu3  ;;  %2726 = vmatpush.msrb.mxu1 %v6078_v62  ;;  %v6132_v62 = vld [vmem:[%s12399_s5 + $0x14b0] sm:$0xff] }
0x108b   : > { %v2533_v13 = vadd.f32 %v2532_v12, %v2509_v6  ;;  %v2586_v14 = vmul.f32 %v6979_v2, %v9426_v4  ;;  %v6109_v12 = vld [vmem:[%s12399_s5 + $0x13f8] sm:$0xff] }
0x108c   : > { %v6141_v6 = vld [vmem:[%s12399_s5 + $0x14f8] sm:$0xff] }
0x108d   : > { %v2578_v16 = vadd.f32 %v2574_v29, %v2533_v13  ;;  %v2590_v17 = vadd.f32 %v6980_v7, %v2586_v14  ;;  %v6124_v13 = vld [vmem:[%s12399_s5 + $0x1470] sm:$0xff]  ;;  %v6123_v29 = vld [vmem:[%s12399_s5 + $0x1468] sm:$0xff] }
0x108e   : > { %v6108_v14 = vld [vmem:[%s12399_s5 + $0x13f0] sm:$0xff]  ;;  %2802 = vmatpush.msrb.mxu2 %v6124_v13 }
0x108f   : > { %v2581_v18 = vadd.f32 %v6978_v61, %v2578_v16  ;;  %v2592_v21 = vmax.f32 %v2590_v17, 0.0  ;;  %v6062_v61 = vld [vmem:[%s12399_s5 + $0x1280] sm:$0xff]  ;;  %v6107_v16 = vld [vmem:[%s12399_s5 + $0x13e8] sm:$0xff]  ;;  %v6112_v13 = vld [vmem:[%s12399_s5 + $0x1410] sm:$0xff] }
0x1090   : > { %v6139_v17 = vld [vmem:[%s12399_s5 + $0x14e8] sm:$0xff]  ;;  %2803 = vmatpush.msrb.mxu2 %v6123_v29 }
0x1091   : > { %v9442_v22 = vadd.f32 %v2581_v18, %v9112_v46  ;;  %2599 = vrot.lane.b32.xlu2 %v2592_v21, %s7100_s20  ;;  %2595 = vst.msk [vmem:[#allocation2 + $0xc] sm:$0xff] %vm485_vm1, %v2592_v21  ;;  %v6049_v46 = vld [vmem:[%s12399_s5 + $0x1218] sm:$0xff]  ;;  %v6106_v18 = vld [vmem:[%s12399_s5 + $0x13e0] sm:$0xff]  ;;  %v6111_v29 = vld [vmem:[%s12399_s5 + $0x1408] sm:$0xff] }
0x1092   : > { %2681 = vmatpush.msrb.mxu3 %v6049_v46  ;;  %v6138_v21 = vld [vmem:[%s12399_s5 + $0x14e0] sm:$0xff]  ;;  %2804 = vmatpush.msrb.mxu2 %v6122_v44 }
0x1093   : > { %v2587_v23 = vmul.f32 %v6979_v2, %v9442_v22  ;;  %v6110_v44 = vld [vmem:[%s12399_s5 + $0x1400] sm:$0xff] }
0x1094   : > { %2682 = vmatpush.msrb.mxu3 %v6048_v25  ;;  %v6981_v25 = vld [vmem:[%s12401_s7 + $0x12] ss:$0 sm:$0xff]  ;;  %2805 = vmatpush.msrb.mxu2 %v6121_v10 }
0x1095   : > { %v2591_v48 = vadd.f32 %v6980_v7, %v2587_v23  ;;  %v6152_v10 = vld [vmem:[%s12399_s5 + $0x1550] sm:$0xff] }
0x1096   : > { %2683 = vmatpush.msrb.mxu3 %v6047_v26 }
0x1097   : > { %v2593_v20 = vmax.f32 %v2591_v48, 0.0 }
0x1098   : > { %2684 = vmatpush.msrb.mxu3 %v6046_v27  ;;  %v6982_v27 = vld [vmem:[%s12401_s7 + $0x2b] ss:$0 sm:$0xff] }
0x1099   : > { %2601 = vrot.lane.b32.xlu1 %v2593_v20, %s7100_s20  ;;  %2596 = vst.msk [vmem:[#allocation2 + $0x14] sm:$0xff] %vm485_vm1, %v2593_v20 }
0x109a   : > { %2607 = vst.msk [vmem:[#allocation2 + $0x1a] sm:$0x3] %vm1982_vm5, %v8873_v38  ;;  %v6077_v38 = vld [vmem:[%s12399_s5 + $0x12f8] sm:$0xff]  ;;  %2866 = vmatpush.msra.mxu3 %v6141_v6 }
0x109b   : > { %2646 = vmatpush.msra.mxu0 %v6077_v38  ;;  %v6129_v6 = vld [vmem:[%s12399_s5 + $0x1498] sm:$0xff] }
0x109c   : > { %2867 = vmatpush.msra.mxu3 %v6140_v15  ;;  %v6128_v15 = vld [vmem:[%s12399_s5 + $0x1490] sm:$0xff] }
0x109d   : > { %2647 = vmatpush.msra.mxu0 %v6076_v28 }
0x109e   : > { %2868 = vmatpush.msra.mxu3 %v6139_v17  ;;  %v6127_v17 = vld [vmem:[%s12399_s5 + $0x1488] sm:$0xff] }
0x109f   : > { %2648 = vmatpush.msra.mxu0 %v6075_v31 }
0x10a0   : > { %2869 = vmatpush.msra.mxu3 %v6138_v21  ;;  %v6126_v21 = vld [vmem:[%s12399_s5 + $0x1480] sm:$0xff] }
0x10a1   : > { %2649 = vmatpush.msra.mxu0 %v6074_v34 }
0x10a2   : > { %2870 = vmatpush.msra.mxu3 %v6137_v33 }
0x10a3   : > { %2650 = vmatpush.msra.mxu0 %v6073_v37 }
0x10a5   : > { %2651 = vmatpush.msra.mxu0 %v6072_v42 }
0x10a7   : > { %2652 = vmatpush.msra.mxu0 %v6071_v45 }
0x10a9   : > { %2653 = vmatpush.msra.mxu0 %v6070_v47  ;;  %v9610_v47 = vld [vmem:[#allocation2 + $0x1c] sm:$0xff] }
0x10ab   : > { %2654 = vmatpush.msra.mxu0 %v6069_v19  ;;  %v6105_v19 = vld [vmem:[%s12399_s5 + $0x13d8] sm:$0xff] }
0x10ad   : > { %2655 = vmatpush.msra.mxu0 %v6068_v50  ;;  %v6120_v50 = vld [vmem:[%s12399_s5 + $0x1450] sm:$0xff] }
0x10ae   : > { %2806 = vmatpush.msrb.mxu2 %v6120_v50  ;;  %v6185_v50 = vld [vmem:[%s12399_s5 + $0x1658] sm:$0xff] }
0x10af   : > { %2656 = vmatpush.msra.mxu0 %v6067_v24  ;;  %v6136_v24 = vld [vmem:[%s12399_s5 + $0x14d0] sm:$0xff] }
0x10b0   : > { %2871 = vmatpush.msra.mxu3 %v6136_v24  ;;  %2807 = vmatpush.msrb.mxu2 %v6119_v51  ;;  %v6984_v51 = vld [vmem:[%s12401_s7 + $0x13] ss:$0 sm:$0xff] }
0x10b1   : > { %2657 = vmatpush.msra.mxu0 %v6066_v52  ;;  %v6103_v52 = vld [vmem:[%s12399_s5 + $0x13c8] sm:$0xff] }
0x10b2   : > { %2872 = vmatpush.msra.mxu3 %v6135_v54  ;;  %v6168_v54 = vld [vmem:[%s12399_s5 + $0x15d0] sm:$0xff] }
0x10b3   : > { %2658 = vmatpush.msra.mxu0 %v6065_v56  ;;  %v6102_v56 = vld [vmem:[%s12399_s5 + $0x13c0] sm:$0xff] }
0x10b4   : > { %2873 = vmatpush.msra.mxu3 %v6134_v35  ;;  %v6150_v35 = vld [vmem:[%s12399_s5 + $0x1540] sm:$0xff] }
0x10b5   : > { %2659 = vmatpush.msra.mxu0 %v6064_v57  ;;  %v6117_v57 = vld [vmem:[%s12399_s5 + $0x1438] sm:$0xff] }
0x10b7   : > { %2660 = vmatpush.msra.mxu0 %v6063_v59  ;;  %v6133_v59 = vld [vmem:[%s12399_s5 + $0x14b8] sm:$0xff] }
0x10b8   : > { %2874 = vmatpush.msra.mxu3 %v6133_v59 }
0x10b9   : > { %2661 = vmatpush.msra.mxu0 %v6062_v61  ;;  %v6100_v61 = vld [vmem:[%s12399_s5 + $0x13b0] sm:$0xff] }
0x10ba   : > { %2875 = vmatpush.msra.mxu3 %v6132_v62  ;;  %v6166_v62 = vld [vmem:[%s12399_s5 + $0x15c0] sm:$0xff] }
0x10bb   : > { %2824 = vmatpush.msrb.mxu0 %v6109_v12  ;;  %v6097_v12 = vld [vmem:[%s12399_s5 + $0x1398] sm:$0xff] }
0x10bd   : > { %2825 = vmatpush.msrb.mxu0 %v6108_v14  ;;  %v6096_v14 = vld [vmem:[%s12399_s5 + $0x1390] sm:$0xff] }
0x10bf   : > { %2826 = vmatpush.msrb.mxu0 %v6107_v16  ;;  %v6095_v16 = vld [vmem:[%s12399_s5 + $0x1388] sm:$0xff] }
0x10c1   : > { %2827 = vmatpush.msrb.mxu0 %v6106_v18  ;;  %v6094_v18 = vld [vmem:[%s12399_s5 + $0x1380] sm:$0xff] }
0x10c3   : > { %2828 = vmatpush.msrb.mxu0 %v6105_v19  ;;  %v6169_v19 = vld [vmem:[%s12399_s5 + $0x15d8] sm:$0xff] }
0x10c5   : > { %2829 = vmatpush.msrb.mxu0 %v6104_v49 }
0x10c7   : > { %2830 = vmatpush.msrb.mxu0 %v6103_v52  ;;  %v6151_v52 = vld [vmem:[%s12399_s5 + $0x1548] sm:$0xff] }
0x10c9   : > { %2831 = vmatpush.msrb.mxu0 %v6102_v56 }
0x10cb   : > { %2832 = vmatpush.msrb.mxu0 %v6101_v58  ;;  %v6183_v58 = vld [vmem:[%s12399_s5 + $0x1648] sm:$0xff] }
0x10cd   : > { %2833 = vmatpush.msrb.mxu0 %v6100_v61  ;;  %v6149_v61 = vld [vmem:[%s12399_s5 + $0x1538] sm:$0xff] }
0x10eb   : > { %v2600_v55 = vpop.permute.xlu2 %2599 }
0x10ec   : > { %2605 = vst.msk [vmem:[#allocation2 + $0xa] sm:$0xff] %vm689_vm4, %v2600_v55  ;;  %v6118_v55 = vld [vmem:[%s12399_s5 + $0x1440] sm:$0xff] }
0x10ed   : > { %2808 = vmatpush.msrb.mxu2 %v6118_v55  ;;  %v6184_v55 = vld [vmem:[%s12399_s5 + $0x1650] sm:$0xff] }
0x10ef   : > { %2809 = vmatpush.msrb.mxu2 %v6117_v57  ;;  %v6167_v57 = vld [vmem:[%s12399_s5 + $0x15c8] sm:$0xff] }
0x10f1   : > { %2810 = vmatpush.msrb.mxu2 %v6116_v60  ;;  %v6985_v60 = vld [vmem:[%s12401_s7 + $0x2c] ss:$0 sm:$0xff] }
0x10f3   : > { %v2608_v63 = vld [vmem:[#allocation2 + $0x8] sm:$0xff] }
0x10f4   : > { %2685 = vmatmul.f32.vlgmr.msrb.gmra.mxu3 %v2608_v63  ;;  %v6115_v63 = vld [vmem:[%s12399_s5 + $0x1428] sm:$0xff] }
0x10f5   : > { %2811 = vmatpush.msrb.mxu2 %v6115_v63  ;;  %v6182_v63 = vld [vmem:[%s12399_s5 + $0x1640] sm:$0xff] }
0x110b   : > { %v2602_v0 = vpop.permute.xlu1 %2601 }
0x110c   : > { %2606 = vst.msk [vmem:[#allocation2 + $0x12] sm:$0xff] %vm689_vm4, %v2602_v0  ;;  %v6099_v0 = vld [vmem:[%s12399_s5 + $0x13a8] sm:$0xff] }
0x110d   : > { %2834 = vmatpush.msrb.mxu0 %v6099_v0 }
0x1113   : > { %v2609_v1 = vld [vmem:[#allocation2 + $0x10] sm:$0xff]  ;;  %v2693_v7 = vld [vmem:[#allocation2 + $0x18] sm:$0xff] }
0x1114   : > { %v2627_v2 = vld [vmem:[#allocation2 + $0xc] sm:$0xff]  ;;  %2688 = vmatmul.f32.gmra.mxu3 %v2609_v1  ;;  %2727 = vmatmul.f32.vlgmr.msrb.gmra.mxu1 %v2609_v1  ;;  %v2628_v3 = vld [vmem:[#allocation2 + $0x14] sm:$0xff] }
0x1115   : > { %2662 = vmatmul.f32.vlgmr.msra.gmra.mxu0 %v2627_v2  ;;  %v6131_v1 = vld [vmem:[%s12399_s5 + $0x14a8] sm:$0xff]  ;;  %v6114_v2 = vld [vmem:[%s12399_s5 + $0x1420] sm:$0xff] }
0x1116   : > { %2876 = vmatpush.msra.mxu3 %v6131_v1  ;;  %2812 = vmatpush.msrb.mxu2 %v6114_v2  ;;  %v6986_v1 = vld [vmem:[%s12401_s7 + $0x44] ss:$0 sm:$0xff]  ;;  %v6148_v2 = vld [vmem:[%s12399_s5 + $0x1530] sm:$0xff] }
0x1118   : > { %2813 = vmatpush.msrb.mxu2 %v6113_v9 }
0x111a   : > { %2814 = vmatpush.msrb.mxu2 %v6112_v13 }
0x111c   : > { %2730 = vmatmul.f32.gmra.mxu1 %v2693_v7  ;;  %v6130_v7 = vld [vmem:[%s12399_s5 + $0x14a0] sm:$0xff]  ;;  %2815 = vmatpush.msrb.mxu2 %v6111_v29 }
0x111d   : > { %2665 = vmatmul.f32.gmra.mxu0 %v2628_v3  ;;  %v6098_v3 = vld [vmem:[%s12399_s5 + $0x13a0] sm:$0xff]  ;;  %2877 = vmatpush.msra.mxu3 %v6130_v7 }
0x111e   : > { %2835 = vmatpush.msrb.mxu0 %v6098_v3  ;;  %2816 = vmatpush.msrb.mxu2 %v6110_v44 }
0x111f   : > { %2878 = vmatpush.msra.mxu3 %v6129_v6 }
0x1120   : > { %2836 = vmatpush.msrb.mxu0 %v6097_v12 }
0x1121   : > { %2879 = vmatpush.msra.mxu3 %v6128_v15  ;;  %v6146_v15 = vld [vmem:[%s12399_s5 + $0x1520] sm:$0xff] }
0x1122   : > { %2837 = vmatpush.msrb.mxu0 %v6096_v14 }
0x1123   : > { %2880 = vmatpush.msra.mxu3 %v6127_v17 }
0x1124   : > { %2838 = vmatpush.msrb.mxu0 %v6095_v16 }
0x1125   : > { %2881 = vmatpush.msra.mxu3 %v6126_v21 }
0x1126   : > { %2839 = vmatpush.msrb.mxu0 %v6094_v18 }
0x1177   : > { %v2686_v23 = vpop.f32.mrf.mxu3 }
0x1191   : > { %v2728_v46 = vpop.f32.mrf.mxu1 }
0x1192   : > { %v2663_v48 = vpop.f32.mrf.mxu0 }
0x1193   : > { %v2687_v20 = vadd.f32 %v2686_v23, %v2663_v48 }
0x1195   : > { %v2734_v26 = vadd.f32 %v2728_v46, %v2687_v20 }
0x1197   : > { %v2737_v38 = vadd.f32 %v6981_v25, %v2734_v26  ;;  %v2689_v30 = vpop.f32.mrf.mxu3 }
0x1199   : > { %v2741_v28 = vmul.f32 %v6982_v27, %v2737_v38  ;;  %v2731_v36 = vpop.f32.mrf.mxu1  ;;  %v6157_v38 = vld [vmem:[%s12399_s5 + $0x1578] sm:$0xff] }
0x119a   : > { %v2666_v31 = vpop.f32.mrf.mxu0  ;;  %2981 = vmatpush.msra.mxu2 %v6157_v38  ;;  %v6179_v38 = vld [vmem:[%s12399_s5 + $0x1628] sm:$0xff] }
0x119b   : > { %v2690_v32 = vadd.f32 %v2689_v30, %v2666_v31  ;;  %v2745_v34 = vadd.f32 %v6983_v53, %v2741_v28  ;;  %v6155_v28 = vld [vmem:[%s12399_s5 + $0x1568] sm:$0xff]  ;;  %v6173_v30 = vld [vmem:[%s12399_s5 + $0x15f8] sm:$0xff] }
0x119c   : > { %v6189_v31 = vld [vmem:[%s12399_s5 + $0x1678] sm:$0xff]  ;;  %2958 = vmatpush.msra.mxu1 %v6173_v30  ;;  %v6178_v30 = vld [vmem:[%s12399_s5 + $0x1620] sm:$0xff] }
0x119d   : > { %v2735_v37 = vadd.f32 %v2731_v36, %v2690_v32  ;;  %v2747_v40 = vmax.f32 %v2745_v34, 0.0  ;;  %v6172_v32 = vld [vmem:[%s12399_s5 + $0x15f0] sm:$0xff]  ;;  %v6154_v36 = vld [vmem:[%s12399_s5 + $0x1560] sm:$0xff]  ;;  %3023 = vmatpush.msra.mxu0 %v6189_v31  ;;  %v6161_v31 = vld [vmem:[%s12399_s5 + $0x1598] sm:$0xff] }
0x119e   : > { %v6188_v34 = vld [vmem:[%s12399_s5 + $0x1670] sm:$0xff]  ;;  %2959 = vmatpush.msra.mxu1 %v6172_v32  ;;  %v6177_v32 = vld [vmem:[%s12399_s5 + $0x1618] sm:$0xff] }
0x119f   : > { %v2738_v42 = vadd.f32 %v6981_v25, %v2735_v37  ;;  %2754 = vrot.lane.b32.xlu0 %v2747_v40, %s7100_s20  ;;  %2750 = vst.msk [vmem:[#allocation2 + $0xc] sm:$0xff] %vm485_vm1, %v2747_v40  ;;  %v6171_v37 = vld [vmem:[%s12399_s5 + $0x15e8] sm:$0xff]  ;;  %3024 = vmatpush.msra.mxu0 %v6188_v34  ;;  %v6160_v34 = vld [vmem:[%s12399_s5 + $0x1590] sm:$0xff] }
0x11a0   : > { %v6187_v40 = vld [vmem:[%s12399_s5 + $0x1668] sm:$0xff]  ;;  %2960 = vmatpush.msra.mxu1 %v6171_v37 }
0x11a1   : > { %v2742_v43 = vmul.f32 %v6982_v27, %v2738_v42  ;;  %v6153_v42 = vld [vmem:[%s12399_s5 + $0x1558] sm:$0xff]  ;;  %3025 = vmatpush.msra.mxu0 %v6187_v40  ;;  %v6159_v37 = vld [vmem:[%s12399_s5 + $0x1588] sm:$0xff] }
0x11a2   : > { %v6175_v40 = vld [vmem:[%s12399_s5 + $0x1608] sm:$0xff] }
0x11a3   : > { %v2746_v45 = vadd.f32 %v6983_v53, %v2742_v43  ;;  %v6156_v53 = vld [vmem:[%s12399_s5 + $0x1570] sm:$0xff]  ;;  %v6170_v43 = vld [vmem:[%s12399_s5 + $0x15e0] sm:$0xff] }
0x11a4   : > { %2982 = vmatpush.msra.mxu2 %v6156_v53  ;;  %2961 = vmatpush.msra.mxu1 %v6170_v43  ;;  %v6162_v53 = vld [vmem:[%s12399_s5 + $0x15a0] sm:$0xff] }
0x11a5   : > { %v2748_v5 = vmax.f32 %v2746_v45, 0.0  ;;  %v6174_v43 = vld [vmem:[%s12399_s5 + $0x1600] sm:$0xff] }
0x11a6   : > { %2983 = vmatpush.msra.mxu2 %v6155_v28  ;;  %2962 = vmatpush.msra.mxu1 %v6169_v19  ;;  %v6142_v28 = vld [vmem:[%s12399_s5 + $0x1500] sm:$0xff] }
0x11a7   : > { %2756 = vrot.lane.b32.xlu2 %v2748_v5, %s7100_s20  ;;  %2751 = vst.msk [vmem:[#allocation2 + $0x14] sm:$0xff] %vm485_vm1, %v2748_v5  ;;  %v6186_v5 = vld [vmem:[%s12399_s5 + $0x1660] sm:$0xff] }
0x11a8   : > { %2762 = vst.msk [vmem:[#allocation2 + $0x1a] sm:$0x3] %vm1982_vm5, %v9610_v47  ;;  %2984 = vmatpush.msra.mxu2 %v6154_v36  ;;  %3026 = vmatpush.msra.mxu0 %v6186_v5  ;;  %v6176_v36 = vld [vmem:[%s12399_s5 + $0x1610] sm:$0xff] }
0x11a9   : > { %2963 = vmatpush.msra.mxu1 %v6168_v54  ;;  %v6202_v54 = vld [vmem:[%s12399_s5 + $0x16e0] sm:$0xff] }
0x11aa   : > { %2985 = vmatpush.msra.mxu2 %v6153_v42  ;;  %3027 = vmatpush.msra.mxu0 %v6185_v50  ;;  %v6158_v42 = vld [vmem:[%s12399_s5 + $0x1580] sm:$0xff] }
0x11ab   : > { %2964 = vmatpush.msra.mxu1 %v6167_v57  ;;  %v6199_v57 = vld [vmem:[%s12399_s5 + $0x16c8] sm:$0xff] }
0x11ac   : > { %2986 = vmatpush.msra.mxu2 %v6152_v10  ;;  %3028 = vmatpush.msra.mxu0 %v6184_v55  ;;  %v6201_v55 = vld [vmem:[%s12399_s5 + $0x16d8] sm:$0xff] }
0x11ad   : > { %2965 = vmatpush.msra.mxu1 %v6166_v62  ;;  %v6198_v62 = vld [vmem:[%s12399_s5 + $0x16c0] sm:$0xff] }
0x11ae   : > { %2987 = vmatpush.msra.mxu2 %v6151_v52  ;;  %3029 = vmatpush.msra.mxu0 %v6183_v58  ;;  %v6203_v52 = vld [vmem:[%s12399_s5 + $0x16e8] sm:$0xff] }
0x11b0   : > { %2988 = vmatpush.msra.mxu2 %v6150_v35  ;;  %3030 = vmatpush.msra.mxu0 %v6182_v63 }
0x11b2   : > { %2989 = vmatpush.msra.mxu2 %v6149_v61  ;;  %v6987_v61 = vld [vmem:[%s12401_s7 + $0x14] ss:$0 sm:$0xff] }
0x11b4   : > { %2990 = vmatpush.msra.mxu2 %v6148_v2  ;;  %v6197_v2 = vld [vmem:[%s12399_s5 + $0x16b8] sm:$0xff] }
0x1201   : > { %v2757_v23 = vpop.permute.xlu2 %2756 }
0x1202   : > { %2761 = vst.msk [vmem:[#allocation2 + $0x12] sm:$0xff] %vm689_vm4, %v2757_v23  ;;  %v6145_v23 = vld [vmem:[%s12399_s5 + $0x1518] sm:$0xff] }
0x1209   : > { %v2783_v26 = vld [vmem:[#allocation2 + $0x14] sm:$0xff] }
0x120a   : > { %v2848_v27 = vld [vmem:[#allocation2 + $0x18] sm:$0xff] }
0x1211   : > { %v2755_v48 = vpop.permute.xlu0 %2754 }
0x1212   : > { %2760 = vst.msk [vmem:[#allocation2 + $0xa] sm:$0xff] %vm689_vm4, %v2755_v48  ;;  %v6181_v48 = vld [vmem:[%s12399_s5 + $0x1638] sm:$0xff] }
0x1213   : > { %3031 = vmatpush.msra.mxu0 %v6181_v48 }
0x1219   : > { %v2763_v20 = vld [vmem:[#allocation2 + $0x8] sm:$0xff]  ;;  %v2764_v46 = vld [vmem:[#allocation2 + $0x10] sm:$0xff] }
0x121a   : > { %v2782_v25 = vld [vmem:[#allocation2 + $0xc] sm:$0xff]  ;;  %2840 = vmatmul.f32.vlgmr.msrb.gmra.mxu0 %v2763_v20  ;;  %2882 = vmatmul.f32.vlgmr.msra.gmra.mxu3 %v2764_v46 }
0x121b   : > { %2817 = vmatmul.f32.vlgmr.msrb.gmra.mxu2 %v2782_v25  ;;  %v6164_v20 = vld [vmem:[%s12399_s5 + $0x15b0] sm:$0xff] }
0x121c   : > { %v6180_v25 = vld [vmem:[%s12399_s5 + $0x1630] sm:$0xff] }
0x121d   : > { %3032 = vmatpush.msra.mxu0 %v6180_v25  ;;  %v6191_v25 = vld [vmem:[%s12399_s5 + $0x1688] sm:$0xff] }
0x121f   : > { %3033 = vmatpush.msra.mxu0 %v6179_v38  ;;  %v6237_v38 = vld [vmem:[%s12399_s5 + $0x17f8] sm:$0xff] }
0x1221   : > { %3034 = vmatpush.msra.mxu0 %v6178_v30  ;;  %v6219_v30 = vld [vmem:[%s12399_s5 + $0x1768] sm:$0xff] }
0x1222   : > { %2843 = vmatmul.f32.gmra.mxu0 %v2764_v46  ;;  %2885 = vmatmul.f32.gmra.mxu3 %v2848_v27  ;;  %v6144_v46 = vld [vmem:[%s12399_s5 + $0x1510] sm:$0xff]  ;;  %v6143_v27 = vld [vmem:[%s12399_s5 + $0x1508] sm:$0xff] }
0x1223   : > { %2820 = vmatmul.f32.gmra.mxu2 %v2783_v26  ;;  %v6163_v26 = vld [vmem:[%s12399_s5 + $0x15a8] sm:$0xff]  ;;  %3035 = vmatpush.msra.mxu0 %v6177_v32  ;;  %v6218_v32 = vld [vmem:[%s12399_s5 + $0x1760] sm:$0xff] }
0x1225   : > { %3036 = vmatpush.msra.mxu0 %v6176_v36  ;;  %v6217_v36 = vld [vmem:[%s12399_s5 + $0x1758] sm:$0xff] }
0x1227   : > { %3037 = vmatpush.msra.mxu0 %v6175_v40  ;;  %v6216_v40 = vld [vmem:[%s12399_s5 + $0x1750] sm:$0xff] }
0x1229   : > { %3038 = vmatpush.msra.mxu0 %v6174_v43  ;;  %v6215_v43 = vld [vmem:[%s12399_s5 + $0x1748] sm:$0xff] }
0x1297   : > { %v2841_v45 = vpop.f32.mrf.mxu0 }
0x129d   : > { %v2883_v24 = vpop.f32.mrf.mxu3 }
0x129e   : > { %v2818_v33 = vpop.f32.mrf.mxu2 }
0x129f   : > { %v2842_v49 = vadd.f32 %v2841_v45, %v2818_v33  ;;  %v2844_v3 = vpop.f32.mrf.mxu0 }
0x12a1   : > { %v2889_v56 = vadd.f32 %v2883_v24, %v2842_v49  ;;  %v6205_v24 = vld [vmem:[%s12399_s5 + $0x16f8] sm:$0xff] }
0x12a3   : > { %v2892_v59 = vadd.f32 %v6984_v51, %v2889_v56  ;;  %v6200_v56 = vld [vmem:[%s12399_s5 + $0x16d0] sm:$0xff] }
0x12a5   : > { %v9806_v0 = vadd.f32 %v2892_v59, %v9426_v4  ;;  %v6147_v4 = vld [vmem:[%s12399_s5 + $0x1528] sm:$0xff]  ;;  %v2886_v6 = vpop.f32.mrf.mxu3 }
0x12a6   : > { %v2821_v7 = vpop.f32.mrf.mxu2  ;;  %2991 = vmatpush.msra.mxu2 %v6147_v4  ;;  %v6195_v4 = vld [vmem:[%s12399_s5 + $0x16a8] sm:$0xff] }
0x12a7   : > { %v2845_v9 = vadd.f32 %v2844_v3, %v2821_v7  ;;  %v2898_v12 = vmul.f32 %v6985_v60, %v9806_v0  ;;  %v6989_v7 = vld [vmem:[%s12401_s7 + $0x45] ss:$0 sm:$0xff] }
0x12a8   : > { %2992 = vmatpush.msra.mxu2 %v6146_v15 }
0x12a9   : > { %v2890_v13 = vadd.f32 %v2886_v6, %v2845_v9  ;;  %v2902_v14 = vadd.f32 %v6986_v1, %v2898_v12  ;;  %v6196_v9 = vld [vmem:[%s12399_s5 + $0x16b0] sm:$0xff] }
0x12aa   : > { %2993 = vmatpush.msra.mxu2 %v6145_v23 }
0x12ab   : > { %v2893_v29 = vadd.f32 %v6984_v51, %v2890_v13  ;;  %v2904_v16 = vmax.f32 %v2902_v14, 0.0  ;;  %v6204_v51 = vld [vmem:[%s12399_s5 + $0x16f0] sm:$0xff] }
0x12ac   : > { %2994 = vmatpush.msra.mxu2 %v6144_v46  ;;  %v6192_v46 = vld [vmem:[%s12399_s5 + $0x1690] sm:$0xff] }
0x12ad   : > { %v9822_v17 = vadd.f32 %v2893_v29, %v9442_v22  ;;  %2911 = vrot.lane.b32.xlu1 %v2904_v16, %s7100_s20  ;;  %2907 = vst.msk [vmem:[#allocation2 + $0xc] sm:$0xff] %vm485_vm1, %v2904_v16  ;;  %v6165_v22 = vld [vmem:[%s12399_s5 + $0x15b8] sm:$0xff]  ;;  %v6194_v29 = vld [vmem:[%s12399_s5 + $0x16a0] sm:$0xff] }
0x12ae   : > { %2966 = vmatpush.msra.mxu1 %v6165_v22  ;;  %2995 = vmatpush.msra.mxu2 %v6143_v27  ;;  %v6221_v27 = vld [vmem:[%s12399_s5 + $0x1778] sm:$0xff] }
0x12af   : > { %v2899_v44 = vmul.f32 %v6985_v60, %v9822_v17  ;;  %3113 = vmatpush.msrb.mxu3 %v6221_v27  ;;  %v3290_v27 = vld [vmem:[%s12400_s6 + $0x68] sm:$0xff] }
0x12b0   : > { %2967 = vmatpush.msra.mxu1 %v6164_v20  ;;  %2996 = vmatpush.msra.mxu2 %v6142_v28  ;;  %v6193_v20 = vld [vmem:[%s12399_s5 + $0x1698] sm:$0xff]  ;;  %v6236_v28 = vld [vmem:[%s12399_s5 + $0x17f0] sm:$0xff] }
0x12b1   : > { %v2903_v18 = vadd.f32 %v6986_v1, %v2899_v44  ;;  %v6988_v1 = vld [vmem:[%s12401_s7 + $0x2d] ss:$0 sm:$0xff] }
0x12b2   : > { %2968 = vmatpush.msra.mxu1 %v6163_v26  ;;  %v6190_v26 = vld [vmem:[%s12399_s5 + $0x1680] sm:$0xff]  ;;  %3178 = vmatpush.msrb.mxu2 %v6237_v38  ;;  %v6291_v38 = vld [vmem:[%s12400_s6 + $0x1d8] sm:$0xff] }
0x12b3   : > { %v2905_v21 = vmax.f32 %v2903_v18, 0.0 }
0x12b4   : > { %2969 = vmatpush.msra.mxu1 %v6162_v53  ;;  %v6220_v53 = vld [vmem:[%s12399_s5 + $0x1770] sm:$0xff]  ;;  %3179 = vmatpush.msrb.mxu2 %v6236_v28  ;;  %v3289_v28 = vld [vmem:[%s12400_s6 + $0x60] sm:$0xff] }
0x12b5   : > { %2913 = vrot.lane.b32.xlu0 %v2905_v21, %s7100_s20  ;;  %2908 = vst.msk [vmem:[#allocation2 + $0x14] sm:$0xff] %vm485_vm1, %v2905_v21  ;;  %3114 = vmatpush.msrb.mxu3 %v6220_v53  ;;  %v6259_v53 = vld [vmem:[%s12400_s6 + $0xd8] sm:$0xff] }
0x12b6   : > { %2919 = vst.msk [vmem:[#allocation2 + $0x1a] sm:$0x3] %vm1982_vm5, %v9610_v47  ;;  %2970 = vmatpush.msra.mxu1 %v6161_v31  ;;  %v6235_v31 = vld [vmem:[%s12399_s5 + $0x17e8] sm:$0xff] }
0x12b7   : > { %3115 = vmatpush.msrb.mxu3 %v6219_v30  ;;  %3180 = vmatpush.msrb.mxu2 %v6235_v31  ;;  %v6279_v30 = vld [vmem:[%s12400_s6 + $0x178] sm:$0xff]  ;;  %v6290_v31 = vld [vmem:[%s12400_s6 + $0x1d0] sm:$0xff] }
0x12b8   : > { %2971 = vmatpush.msra.mxu1 %v6160_v34  ;;  %v6234_v34 = vld [vmem:[%s12399_s5 + $0x17e0] sm:$0xff] }
0x12b9   : > { %3116 = vmatpush.msrb.mxu3 %v6218_v32  ;;  %3181 = vmatpush.msrb.mxu2 %v6234_v34  ;;  %v6258_v32 = vld [vmem:[%s12400_s6 + $0xd0] sm:$0xff] }
0x12ba   : > { %2972 = vmatpush.msra.mxu1 %v6159_v37  ;;  %v6233_v37 = vld [vmem:[%s12399_s5 + $0x17d8] sm:$0xff]  ;;  %v6278_v34 = vld [vmem:[%s12400_s6 + $0x170] sm:$0xff] }
0x12bb   : > { %3117 = vmatpush.msrb.mxu3 %v6217_v36  ;;  %3182 = vmatpush.msrb.mxu2 %v6233_v37 }
0x12bc   : > { %2973 = vmatpush.msra.mxu1 %v6158_v42  ;;  %v6232_v42 = vld [vmem:[%s12399_s5 + $0x17d0] sm:$0xff] }
0x12bd   : > { %3118 = vmatpush.msrb.mxu3 %v6216_v40  ;;  %3183 = vmatpush.msrb.mxu2 %v6232_v42  ;;  %v3288_v40 = vld [vmem:[%s12400_s6 + $0x58] sm:$0xff]  ;;  %v6277_v42 = vld [vmem:[%s12400_s6 + $0x168] sm:$0xff] }
0x12be   : > { %3136 = vmatpush.msrb.mxu1 %v6205_v24  ;;  %v6211_v24 = vld [vmem:[%s12399_s5 + $0x1728] sm:$0xff] }
0x12bf   : > { %3119 = vmatpush.msrb.mxu3 %v6215_v43 }
0x12c0   : > { %3137 = vmatpush.msrb.mxu1 %v6204_v51  ;;  %v6227_v51 = vld [vmem:[%s12399_s5 + $0x17a8] sm:$0xff] }
0x12c2   : > { %3138 = vmatpush.msrb.mxu1 %v6203_v52  ;;  %v6210_v52 = vld [vmem:[%s12399_s5 + $0x1720] sm:$0xff] }
0x12c4   : > { %3139 = vmatpush.msrb.mxu1 %v6202_v54  ;;  %v6226_v54 = vld [vmem:[%s12399_s5 + $0x17a0] sm:$0xff] }
0x12c6   : > { %3140 = vmatpush.msrb.mxu1 %v6201_v55 }
0x12c8   : > { %3141 = vmatpush.msrb.mxu1 %v6200_v56  ;;  %v6209_v56 = vld [vmem:[%s12399_s5 + $0x1718] sm:$0xff] }
0x12ca   : > { %3142 = vmatpush.msrb.mxu1 %v6199_v57  ;;  %v6208_v57 = vld [vmem:[%s12399_s5 + $0x1710] sm:$0xff] }
0x12cc   : > { %3143 = vmatpush.msrb.mxu1 %v6198_v62  ;;  %v6222_v62 = vld [vmem:[%s12399_s5 + $0x1780] sm:$0xff] }
0x12ce   : > { %3144 = vmatpush.msrb.mxu1 %v6197_v2 }
0x12d0   : > { %3145 = vmatpush.msrb.mxu1 %v6196_v9 }
0x12d2   : > { %3146 = vmatpush.msrb.mxu1 %v6195_v4  ;;  %v6244_v4 = vld [vmem:[%s12398_s4 + $0xb0] sm:$0xff] }
0x12d4   : > { %3147 = vmatpush.msrb.mxu1 %v6194_v29  ;;  %v6239_v29 = vld [vmem:[%s12398_s4 + $0x88] sm:$0xff] }
0x12d6   : > { %3148 = vmatpush.msrb.mxu1 %v6193_v20  ;;  %v3292_v20 = vld [vmem:[%s12400_s6 + $0x78] sm:$0xff] }
0x12d8   : > { %3149 = vmatpush.msrb.mxu1 %v6192_v46  ;;  %v3291_v46 = vld [vmem:[%s12400_s6 + $0x70] sm:$0xff] }
0x12da   : > { %3150 = vmatpush.msrb.mxu1 %v6191_v25  ;;  %v6292_v25 = vld [vmem:[%s12400_s6 + $0x1e0] sm:$0xff] }
0x12dc   : > { %3151 = vmatpush.msrb.mxu1 %v6190_v26  ;;  %v6260_v26 = vld [vmem:[%s12400_s6 + $0xe0] sm:$0xff] }
0x131f   : > { %v2912_v45 = vpop.permute.xlu1 %2911 }
0x1320   : > { %2917 = vst.msk [vmem:[#allocation2 + $0xa] sm:$0xff] %vm689_vm4, %v2912_v45  ;;  %v6231_v45 = vld [vmem:[%s12399_s5 + $0x17c8] sm:$0xff] }
0x1321   : > { %3184 = vmatpush.msrb.mxu2 %v6231_v45 }
0x1327   : > { %v2914_v5 = vpop.permute.xlu0 %2913  ;;  %v2920_v10 = vld [vmem:[#allocation2 + $0x8] sm:$0xff] }
0x1328   : > { %2918 = vst.msk [vmem:[#allocation2 + $0x12] sm:$0xff] %vm689_vm4, %v2914_v5  ;;  %2997 = vmatmul.f32.vlgmr.msra.gmra.mxu2 %v2920_v10  ;;  %v6214_v5 = vld [vmem:[%s12399_s5 + $0x1740] sm:$0xff] }
0x1329   : > { %v6230_v10 = vld [vmem:[%s12399_s5 + $0x17c0] sm:$0xff]  ;;  %3120 = vmatpush.msrb.mxu3 %v6214_v5  ;;  %v6990_v5 = vld [vmem:[%s12401_s7 + $0x15] ss:$0 sm:$0xff] }
0x132a   : > { %3185 = vmatpush.msrb.mxu2 %v6230_v10  ;;  %v6289_v10 = vld [vmem:[%s12400_s6 + $0x1c8] sm:$0xff] }
0x132f   : > { %v2921_v19 = vld [vmem:[#allocation2 + $0x10] sm:$0xff]  ;;  %v3005_v49 = vld [vmem:[#allocation2 + $0x18] sm:$0xff] }
0x1330   : > { %v2939_v33 = vld [vmem:[#allocation2 + $0xc] sm:$0xff]  ;;  %3000 = vmatmul.f32.gmra.mxu2 %v2921_v19  ;;  %3039 = vmatmul.f32.vlgmr.msra.gmra.mxu0 %v2921_v19  ;;  %v2940_v50 = vld [vmem:[#allocation2 + $0x14] sm:$0xff] }
0x1331   : > { %2974 = vmatmul.f32.vlgmr.msra.gmra.mxu1 %v2939_v33  ;;  %v6213_v19 = vld [vmem:[%s12399_s5 + $0x1738] sm:$0xff] }
0x1332   : > { %v6229_v33 = vld [vmem:[%s12399_s5 + $0x17b8] sm:$0xff]  ;;  %3121 = vmatpush.msrb.mxu3 %v6213_v19  ;;  %3335 = vmatpush.msra.mxu1 %v3292_v20  ;;  %v6257_v19 = vld [vmem:[%s12400_s6 + $0xc8] sm:$0xff]  ;;  %v6282_v20 = vld [vmem:[%s12400_s6 + $0x190] sm:$0xff] }
0x1333   : > { %3186 = vmatpush.msrb.mxu2 %v6229_v33  ;;  %v3287_v33 = vld [vmem:[%s12400_s6 + $0x50] sm:$0xff] }
0x1334   : > { %3336 = vmatpush.msra.mxu1 %v3291_v46  ;;  %v6250_v46 = vld [vmem:[%s12400_s6 + $0x90] sm:$0xff] }
0x1336   : > { %3337 = vmatpush.msra.mxu1 %v3290_v27  ;;  %v6249_v27 = vld [vmem:[%s12400_s6 + $0x88] sm:$0xff] }
0x1338   : > { %3042 = vmatmul.f32.gmra.mxu0 %v3005_v49  ;;  %v6228_v49 = vld [vmem:[%s12399_s5 + $0x17b0] sm:$0xff]  ;;  %3338 = vmatpush.msra.mxu1 %v3289_v28  ;;  %v6280_v28 = vld [vmem:[%s12400_s6 + $0x180] sm:$0xff] }
0x1339   : > { %2977 = vmatmul.f32.gmra.mxu1 %v2940_v50  ;;  %v6212_v50 = vld [vmem:[%s12399_s5 + $0x1730] sm:$0xff]  ;;  %3187 = vmatpush.msrb.mxu2 %v6228_v49 }
0x133a   : > { %3122 = vmatpush.msrb.mxu3 %v6212_v50  ;;  %v6276_v50 = vld [vmem:[%s12400_s6 + $0x160] sm:$0xff]  ;;  %3339 = vmatpush.msra.mxu1 %v3288_v40  ;;  %v6310_v40 = vld [vmem:[%s12400_s6 + $0x270] sm:$0xff] }
0x133b   : > { %3188 = vmatpush.msrb.mxu2 %v6227_v51  ;;  %v6256_v51 = vld [vmem:[%s12400_s6 + $0xc0] sm:$0xff] }
0x133c   : > { %3123 = vmatpush.msrb.mxu3 %v6211_v24  ;;  %v6288_v24 = vld [vmem:[%s12400_s6 + $0x1c0] sm:$0xff]  ;;  %3340 = vmatpush.msra.mxu1 %v3287_v33  ;;  %v6267_v33 = vld [vmem:[%s12400_s6 + $0x118] sm:$0xff] }
0x133d   : > { %3189 = vmatpush.msrb.mxu2 %v6226_v54 }
0x133e   : > { %3124 = vmatpush.msrb.mxu3 %v6210_v52  ;;  %v3286_v52 = vld [vmem:[%s12400_s6 + $0x48] sm:$0xff] }
0x133f   : > { %3341 = vmatpush.msra.mxu1 %v3286_v52  ;;  %v6265_v52 = vld [vmem:[%s12400_s6 + $0x108] sm:$0xff] }
0x1340   : > { %3125 = vmatpush.msrb.mxu3 %v6209_v56  ;;  %v6287_v56 = vld [vmem:[%s12400_s6 + $0x1b8] sm:$0xff] }
0x1342   : > { %3126 = vmatpush.msrb.mxu3 %v6208_v57  ;;  %v3285_v57 = vld [vmem:[%s12400_s6 + $0x40] sm:$0xff] }
0x1343   : > { %3342 = vmatpush.msra.mxu1 %v3285_v57  ;;  %v6302_v57 = vld [vmem:[%s12400_s6 + $0x230] sm:$0xff] }
0x13ab   : > { %v2998_v35 = vpop.f32.mrf.mxu2 }
0x13ad   : > { %v3040_v60 = vpop.f32.mrf.mxu0 }
0x13ae   : > { %v2975_v58 = vpop.f32.mrf.mxu1 }
0x13af   : > { %v2999_v59 = vadd.f32 %v2998_v35, %v2975_v58  ;;  %v6225_v35 = vld [vmem:[%s12399_s5 + $0x1798] sm:$0xff]  ;;  %v6224_v58 = vld [vmem:[%s12399_s5 + $0x1790] sm:$0xff] }
0x13b0   : > { %3190 = vmatpush.msrb.mxu2 %v6225_v35  ;;  %v6255_v35 = vld [vmem:[%s12400_s6 + $0xb8] sm:$0xff] }
0x13b1   : > { %v3046_v63 = vadd.f32 %v3040_v60, %v2999_v59  ;;  %v6207_v59 = vld [vmem:[%s12399_s5 + $0x1708] sm:$0xff] }
0x13b2   : > { %v6223_v60 = vld [vmem:[%s12399_s5 + $0x1788] sm:$0xff]  ;;  %3191 = vmatpush.msrb.mxu2 %v6224_v58  ;;  %3127 = vmatpush.msrb.mxu3 %v6207_v59  ;;  %v6992_v59 = vld [vmem:[%s12401_s7 + $0x46] ss:$0 sm:$0xff] }
0x13b3   : > { %v3049_v3 = vadd.f32 %v6987_v61, %v3046_v63  ;;  %v3001_v6 = vpop.f32.mrf.mxu2 }
0x13b4   : > { %3192 = vmatpush.msrb.mxu2 %v6223_v60  ;;  %v6286_v60 = vld [vmem:[%s12400_s6 + $0x1b0] sm:$0xff] }
0x13b5   : > { %v3053_v12 = vmul.f32 %v6988_v1, %v3049_v3  ;;  %v3043_v16 = vpop.f32.mrf.mxu0 }
0x13b6   : > { %v2978_v13 = vpop.f32.mrf.mxu1  ;;  %3193 = vmatpush.msrb.mxu2 %v6222_v62 }
0x13b7   : > { %v3002_v14 = vadd.f32 %v3001_v6, %v2978_v13  ;;  %v3057_v15 = vadd.f32 %v6989_v7, %v3053_v12  ;;  %v6245_v12 = vld [vmem:[%s12398_s4 + $0xb8] sm:$0xff]  ;;  %v6243_v6 = vld [vmem:[%s12398_s4 + $0xa8] sm:$0xff]  ;;  %v6242_v13 = vld [vmem:[%s12398_s4 + $0xa0] sm:$0xff] }
0x13b8   : > { %3233 = vmatpush.msra.mxu2 %v6245_v12 }
0x13b9   : > { %v3047_v44 = vadd.f32 %v3043_v16, %v3002_v14  ;;  %v3059_v18 = vmax.f32 %v3057_v15, 0.0  ;;  %v6241_v14 = vld [vmem:[%s12398_s4 + $0x98] sm:$0xff]  ;;  %v6240_v15 = vld [vmem:[%s12398_s4 + $0x90] sm:$0xff]  ;;  %v6238_v16 = vld [vmem:[%s12398_s4 + $0x80] sm:$0xff] }
0x13ba   : > { %3234 = vmatpush.msra.mxu2 %v6244_v4  ;;  %v6284_v4 = vld [vmem:[%s12400_s6 + $0x1a0] sm:$0xff] }
0x13bb   : > { %v3050_v21 = vadd.f32 %v6987_v61, %v3047_v44  ;;  %3066 = vrot.lane.b32.xlu2 %v3059_v18, %s7100_s20  ;;  %3062 = vst.msk [vmem:[#allocation2 + $0xc] sm:$0xff] %vm485_vm1, %v3059_v18  ;;  %v6206_v61 = vld [vmem:[%s12399_s5 + $0x1700] sm:$0xff]  ;;  %v6295_v44 = vld [vmem:[%s12400_s6 + $0x1f8] sm:$0xff] }
0x13bc   : > { %3128 = vmatpush.msrb.mxu3 %v6206_v61  ;;  %3235 = vmatpush.msra.mxu2 %v6243_v6  ;;  %v6263_v18 = vld [vmem:[%s12400_s6 + $0xf8] sm:$0xff]  ;;  %v6254_v61 = vld [vmem:[%s12400_s6 + $0xb0] sm:$0xff] }
0x13bd   : > { %v3054_v22 = vmul.f32 %v6988_v1, %v3050_v21  ;;  %v6294_v21 = vld [vmem:[%s12400_s6 + $0x1f0] sm:$0xff]  ;;  %3421 = vmatpush.msrb.mxu0 %v6295_v44  ;;  %v3284_v44 = vld [vmem:[%s12400_s6 + $0x38] sm:$0xff] }
0x13be   : > { %3236 = vmatpush.msra.mxu2 %v6242_v13  ;;  %3312 = vmatpush.msra.mxu3 %v6263_v18  ;;  %v6275_v18 = vld [vmem:[%s12400_s6 + $0x158] sm:$0xff] }
0x13bf   : > { %v3058_v23 = vadd.f32 %v6989_v7, %v3054_v22  ;;  %v6262_v22 = vld [vmem:[%s12400_s6 + $0xf0] sm:$0xff]  ;;  %3422 = vmatpush.msrb.mxu0 %v6294_v21  ;;  %3343 = vmatpush.msra.mxu1 %v3284_v44  ;;  %v6283_v21 = vld [vmem:[%s12400_s6 + $0x198] sm:$0xff] }
0x13c0   : > { %3237 = vmatpush.msra.mxu2 %v6241_v14  ;;  %3313 = vmatpush.msra.mxu3 %v6262_v22  ;;  %v6251_v22 = vld [vmem:[%s12400_s6 + $0x98] sm:$0xff] }
0x13c1   : > { %v3060_v48 = vmax.f32 %v3058_v23, 0.0  ;;  %v6293_v23 = vld [vmem:[%s12400_s6 + $0x1e8] sm:$0xff] }
0x13c2   : > { %3238 = vmatpush.msra.mxu2 %v6240_v15  ;;  %3423 = vmatpush.msrb.mxu0 %v6293_v23  ;;  %v3283_v23 = vld [vmem:[%s12400_s6 + $0x30] sm:$0xff] }
0x13c3   : > { %3068 = vrot.lane.b32.xlu1 %v3060_v48, %s7100_s20  ;;  %3063 = vst.msk [vmem:[#allocation2 + $0x14] sm:$0xff] %vm485_vm1, %v3060_v48  ;;  %v6261_v48 = vld [vmem:[%s12400_s6 + $0xe8] sm:$0xff]  ;;  %3344 = vmatpush.msra.mxu1 %v3283_v23 }
0x13c4   : > { %3074 = vst.msk [vmem:[#allocation2 + $0x1a] sm:$0x3] %vm1982_vm5, %v9610_v47  ;;  %3239 = vmatpush.msra.mxu2 %v6239_v29  ;;  %3314 = vmatpush.msra.mxu3 %v6261_v48  ;;  %v6274_v48 = vld [vmem:[%s12400_s6 + $0x150] sm:$0xff]  ;;  %v6341_v23 = vld [vmem:[%s12400_s6 + $0x368] sm:$0xff] }
0x13c5   : > { %3424 = vmatpush.msrb.mxu0 %v6292_v25  ;;  %v6273_v25 = vld [vmem:[%s12400_s6 + $0x148] sm:$0xff] }
0x13c6   : > { %3240 = vmatpush.msra.mxu2 %v6238_v16  ;;  %3315 = vmatpush.msra.mxu3 %v6260_v26  ;;  %v6281_v26 = vld [vmem:[%s12400_s6 + $0x188] sm:$0xff] }
0x13c7   : > { %3425 = vmatpush.msrb.mxu0 %v6291_v38  ;;  %v3281_v38 = vld [vmem:[%s12400_s6 + $0x20] sm:$0xff] }
0x13c8   : > { %3316 = vmatpush.msra.mxu3 %v6259_v53  ;;  %v6272_v53 = vld [vmem:[%s12400_s6 + $0x140] sm:$0xff] }
0x13c9   : > { %3426 = vmatpush.msrb.mxu0 %v6290_v31  ;;  %v3280_v31 = vld [vmem:[%s12400_s6 + $0x18] sm:$0xff] }
0x13ca   : > { %3317 = vmatpush.msra.mxu3 %v6258_v32  ;;  %v6271_v32 = vld [vmem:[%s12400_s6 + $0x138] sm:$0xff] }
0x13cb   : > { %3427 = vmatpush.msrb.mxu0 %v6289_v10  ;;  %v6268_v10 = vld [vmem:[%s12400_s6 + $0x120] sm:$0xff] }
0x13cc   : > { %3318 = vmatpush.msra.mxu3 %v6257_v19  ;;  %v6308_v19 = vld [vmem:[%s12400_s6 + $0x260] sm:$0xff] }
0x13cd   : > { %3428 = vmatpush.msrb.mxu0 %v6288_v24  ;;  %v6266_v24 = vld [vmem:[%s12400_s6 + $0x110] sm:$0xff] }
0x13ce   : > { %3319 = vmatpush.msra.mxu3 %v6256_v51  ;;  %v6306_v51 = vld [vmem:[%s12400_s6 + $0x250] sm:$0xff] }
0x13cf   : > { %3429 = vmatpush.msrb.mxu0 %v6287_v56  ;;  %v6304_v56 = vld [vmem:[%s12400_s6 + $0x240] sm:$0xff] }
0x13d0   : > { %3320 = vmatpush.msra.mxu3 %v6255_v35  ;;  %v6303_v35 = vld [vmem:[%s12400_s6 + $0x238] sm:$0xff] }
0x13d1   : > { %3430 = vmatpush.msrb.mxu0 %v6286_v60  ;;  %v6300_v60 = vld [vmem:[%s12400_s6 + $0x220] sm:$0xff] }
0x13d2   : > { %3321 = vmatpush.msra.mxu3 %v6254_v61 }
0x1415   : > { %v3067_v55 = vpop.permute.xlu2 %3066 }
0x1416   : > { %3072 = vst.msk [vmem:[#allocation2 + $0xa] sm:$0xff] %vm689_vm4, %v3067_v55  ;;  %v6991_v55 = vld [vmem:[%s12401_s7 + $0x2e] ss:$0 sm:$0xff] }
0x141d   : > { %v3075_v63 = vld [vmem:[#allocation2 + $0x8] sm:$0xff] }
0x141e   : > { %3152 = vmatmul.f32.vlgmr.msrb.gmra.mxu1 %v3075_v63 }
0x1435   : > { %v3069_v1 = vpop.permute.xlu1 %3068 }
0x1436   : > { %3073 = vst.msk [vmem:[#allocation2 + $0x12] sm:$0xff] %vm689_vm4, %v3069_v1 }
0x143d   : > { %v3076_v2 = vld [vmem:[#allocation2 + $0x10] sm:$0xff]  ;;  %v3160_v9 = vld [vmem:[#allocation2 + $0x18] sm:$0xff] }
0x143e   : > { %v3094_v3 = vld [vmem:[#allocation2 + $0xc] sm:$0xff]  ;;  %3155 = vmatmul.f32.gmra.mxu1 %v3076_v2  ;;  %3194 = vmatmul.f32.vlgmr.msrb.gmra.mxu2 %v3076_v2  ;;  %v3095_v7 = vld [vmem:[#allocation2 + $0x14] sm:$0xff] }
0x143f   : > { %3129 = vmatmul.f32.vlgmr.msrb.gmra.mxu3 %v3094_v3  ;;  %3377 = vmatpush.msrb.mxu2 %v6279_v30  ;;  %v6285_v2 = vld [vmem:[%s12400_s6 + $0x1a8] sm:$0xff]  ;;  %v6248_v30 = vld [vmem:[%s12400_s6 + $0x80] sm:$0xff] }
0x1440   : > { %v6253_v3 = vld [vmem:[%s12400_s6 + $0xa8] sm:$0xff]  ;;  %3431 = vmatpush.msrb.mxu0 %v6285_v2 }
0x1441   : > { %3378 = vmatpush.msrb.mxu2 %v6278_v34  ;;  %3322 = vmatpush.msra.mxu3 %v6253_v3  ;;  %v6311_v34 = vld [vmem:[%s12400_s6 + $0x278] sm:$0xff] }
0x1442   : > { %3432 = vmatpush.msrb.mxu0 %v6284_v4 }
0x1443   : > { %3379 = vmatpush.msrb.mxu2 %v6277_v42  ;;  %v3278_v42 = vld [vmem:[%s12400_s6 + $0x8] sm:$0xff] }
0x1444   : > { %3433 = vmatpush.msrb.mxu0 %v6283_v21 }
0x1445   : > { %3380 = vmatpush.msrb.mxu2 %v6276_v50  ;;  %v6307_v50 = vld [vmem:[%s12400_s6 + $0x258] sm:$0xff] }
0x1446   : > { %3197 = vmatmul.f32.gmra.mxu2 %v3160_v9  ;;  %3434 = vmatpush.msrb.mxu0 %v6282_v20  ;;  %v6326_v20 = vld [vmem:[%s12400_s6 + $0x2f0] sm:$0xff] }
0x1447   : > { %3132 = vmatmul.f32.gmra.mxu3 %v3095_v7  ;;  %3381 = vmatpush.msrb.mxu2 %v6275_v18  ;;  %v6343_v18 = vld [vmem:[%s12400_s6 + $0x378] sm:$0xff] }
0x1448   : > { %3435 = vmatpush.msrb.mxu0 %v6281_v26 }
0x1449   : > { %3382 = vmatpush.msrb.mxu2 %v6274_v48  ;;  %v6327_v48 = vld [vmem:[%s12400_s6 + $0x2f8] sm:$0xff] }
0x144a   : > { %3436 = vmatpush.msrb.mxu0 %v6280_v28  ;;  %v6359_v28 = vld [vmem:[%s12400_s6 + $0x3f8] sm:$0xff] }
0x144b   : > { %3383 = vmatpush.msrb.mxu2 %v6273_v25  ;;  %v6325_v25 = vld [vmem:[%s12400_s6 + $0x2e8] sm:$0xff] }
0x144c   : > { %3620 = vmatpush.msra.mxu0 %v6359_v28  ;;  %v6315_v28 = vld [vmem:[%s12400_s6 + $0x298] sm:$0xff] }
0x144d   : > { %3384 = vmatpush.msrb.mxu2 %v6272_v53  ;;  %v6324_v53 = vld [vmem:[%s12400_s6 + $0x2e0] sm:$0xff] }
0x144f   : > { %3385 = vmatpush.msrb.mxu2 %v6271_v32  ;;  %v6323_v32 = vld [vmem:[%s12400_s6 + $0x2d8] sm:$0xff] }
0x149b   : > { %v3153_v36 = vpop.f32.mrf.mxu1 }
0x14bb   : > { %v3156_v62 = vpop.f32.mrf.mxu1 }
0x14c1   : > { %v3195_v45 = vpop.f32.mrf.mxu2 }
0x14c2   : > { %v3130_v37 = vpop.f32.mrf.mxu3 }
0x14c3   : > { %v3154_v43 = vadd.f32 %v3153_v36, %v3130_v37  ;;  %v3279_v36 = vld [vmem:[%s12400_s6 + $0x10] sm:$0xff] }
0x14c4   : > { %v6270_v37 = vld [vmem:[%s12400_s6 + $0x130] sm:$0xff] }
0x14c5   : > { %v3201_v49 = vadd.f32 %v3195_v45, %v3154_v43  ;;  %v6269_v43 = vld [vmem:[%s12400_s6 + $0x128] sm:$0xff]  ;;  %3386 = vmatpush.msrb.mxu2 %v6270_v37  ;;  %v6358_v37 = vld [vmem:[%s12400_s6 + $0x3f0] sm:$0xff] }
0x14c6   : > { %v6309_v45 = vld [vmem:[%s12400_s6 + $0x268] sm:$0xff]  ;;  %3621 = vmatpush.msra.mxu0 %v6358_v37 }
0x14c7   : > { %v3204_v54 = vadd.f32 %v6990_v5, %v3201_v49  ;;  %3387 = vmatpush.msrb.mxu2 %v6269_v43  ;;  %v10303_v49 = vld [vmem:[#allocation2 + $0x1c] sm:$0xff]  ;;  %v6322_v43 = vld [vmem:[%s12400_s6 + $0x2d0] sm:$0xff]  ;;  %v6313_v37 = vld [vmem:[%s12400_s6 + $0x288] sm:$0xff] }
0x14c9   : > { %v10175_v58 = vadd.f32 %v3204_v54, %v9806_v0  ;;  %v3198_v7 = vpop.f32.mrf.mxu2  ;;  %3388 = vmatpush.msrb.mxu2 %v6268_v10  ;;  %v6305_v54 = vld [vmem:[%s12400_s6 + $0x248] sm:$0xff] }
0x14ca   : > { %v3133_v63 = vpop.f32.mrf.mxu3  ;;  %v6373_v10 = vld [vmem:[%s12400_s6 + $0x468] sm:$0xff] }
0x14cb   : > { %v3157_v1 = vadd.f32 %v3156_v62, %v3133_v63  ;;  %6246 = vmatmul.msk.f32.vlgmr.msra.gmra.mxu2 %vm485_vm1, %v10175_v58  ;;  %v3252_v0 = vmul.f32 %v6991_v55, %v10175_v58  ;;  %v6299_v62 = vld [vmem:[%s12400_s6 + $0x218] sm:$0xff]  ;;  %v6298_v63 = vld [vmem:[%s12400_s6 + $0x210] sm:$0xff] }
0x14cc   : > { %3389 = vmatpush.msrb.mxu2 %v6267_v33 }
0x14cd   : > { %v3202_v9 = vadd.f32 %v3198_v7, %v3157_v1  ;;  %v3256_v12 = vadd.f32 %v6992_v59, %v3252_v0  ;;  %v6297_v1 = vld [vmem:[%s12400_s6 + $0x208] sm:$0xff]  ;;  %v6296_v0 = vld [vmem:[%s12400_s6 + $0x200] sm:$0xff] }
0x14ce   : > { %3390 = vmatpush.msrb.mxu2 %v6266_v24  ;;  %v6994_v24 = vld [vmem:[%s12401_s7 + $0x16] ss:$0 sm:$0xff] }
0x14cf   : > { %v3205_v6 = vadd.f32 %v6990_v5, %v3202_v9  ;;  %v3258_v13 = vmax.f32 %v3256_v12, 0.0  ;;  %v3277_v5 = vld [vmem:[%s12400_s6] sm:$0xff] }
0x14d0   : > { %3391 = vmatpush.msrb.mxu2 %v6265_v52  ;;  %v6321_v52 = vld [vmem:[%s12400_s6 + $0x2c8] sm:$0xff] }
0x14d1   : > { %v10199_v14 = vadd.f32 %v3205_v6, %v9822_v17  ;;  %3265 = vrot.lane.b32.xlu0 %v3258_v13, %s7100_s20  ;;  %3261 = vst.msk [vmem:[#allocation2 + $0xc] sm:$0xff] %vm485_vm1, %v3258_v13  ;;  %v6252_v17 = vld [vmem:[%s12400_s6 + $0xa0] sm:$0xff] }
0x14d2   : > { %3323 = vmatpush.msra.mxu3 %v6252_v17 }
0x14d3   : > { %6247 = vmatmul.msk.f32.gmra.mxu2 %vm485_vm1, %v10199_v14  ;;  %v3253_v15 = vmul.f32 %v6991_v55, %v10199_v14  ;;  %v6264_v55 = vld [vmem:[%s12400_s6 + $0x100] sm:$0xff] }
0x14d4   : > { %3324 = vmatpush.msra.mxu3 %v6251_v22  ;;  %3392 = vmatpush.msrb.mxu2 %v6264_v55  ;;  %v6342_v22 = vld [vmem:[%s12400_s6 + $0x370] sm:$0xff]  ;;  %v6372_v55 = vld [vmem:[%s12400_s6 + $0x460] sm:$0xff] }
0x14d5   : > { %v3257_v29 = vadd.f32 %v6992_v59, %v3253_v15  ;;  %v6301_v59 = vld [vmem:[%s12400_s6 + $0x228] sm:$0xff] }
0x14d6   : > { %3325 = vmatpush.msra.mxu3 %v6250_v46  ;;  %3578 = vmatpush.msra.mxu2 %v6327_v48  ;;  %v6317_v48 = vld [vmem:[%s12400_s6 + $0x2a8] sm:$0xff] }
0x14d7   : > { %v3259_v16 = vmax.f32 %v3257_v29, 0.0  ;;  %v10350_v29 = vld [vmem:[#allocation2 + $0x20] sm:$0xff] }
0x14d8   : > { %3326 = vmatpush.msra.mxu3 %v6249_v27  ;;  %3579 = vmatpush.msra.mxu2 %v6326_v20 }
0x14d9   : > { %3267 = vrot.lane.b32.xlu2 %v3259_v16, %s7100_s20  ;;  %3262 = vst.msk [vmem:[#allocation2 + $0x14] sm:$0xff] %vm485_vm1, %v3259_v16 }
0x14da   : > { %3274 = vst.msk [vmem:[#allocation2 + $0x19] sm:$0x7] %vm3273_vm6, %v9610_v47  ;;  %v3282_v47 = vld [vmem:[%s12400_s6 + $0x28] sm:$0xff]  ;;  %3327 = vmatpush.msra.mxu3 %v6248_v30  ;;  %3580 = vmatpush.msra.mxu2 %v6325_v25 }
0x14db   : > { %3345 = vmatpush.msra.mxu1 %v3282_v47  ;;  %v6340_v47 = vld [vmem:[%s12400_s6 + $0x360] sm:$0xff] }
0x14dc   : > { %3465 = vmatpush.msrb.mxu3 %v6311_v34  ;;  %v6375_v34 = vld [vmem:[%s12400_s6 + $0x478] sm:$0xff]  ;;  %3581 = vmatpush.msra.mxu2 %v6324_v53  ;;  %v6330_v53 = vld [vmem:[%s12400_s6 + $0x310] sm:$0xff] }
0x14dd   : > { %3346 = vmatpush.msra.mxu1 %v3281_v38  ;;  %v6339_v38 = vld [vmem:[%s12400_s6 + $0x358] sm:$0xff] }
0x14de   : > { %3466 = vmatpush.msrb.mxu3 %v6310_v40  ;;  %v6374_v40 = vld [vmem:[%s12400_s6 + $0x470] sm:$0xff]  ;;  %3582 = vmatpush.msra.mxu2 %v6323_v32 }
0x14df   : > { %3347 = vmatpush.msra.mxu1 %v3280_v31  ;;  %v6338_v31 = vld [vmem:[%s12400_s6 + $0x350] sm:$0xff] }
0x14e0   : > { %3467 = vmatpush.msrb.mxu3 %v6309_v45  ;;  %v6357_v45 = vld [vmem:[%s12400_s6 + $0x3e8] sm:$0xff]  ;;  %3583 = vmatpush.msra.mxu2 %v6322_v43  ;;  %v6314_v32 = vld [vmem:[%s12400_s6 + $0x290] sm:$0xff]  ;;  %v6312_v43 = vld [vmem:[%s12400_s6 + $0x280] sm:$0xff] }
0x14e1   : > { %3348 = vmatpush.msra.mxu1 %v3279_v36  ;;  %v3403_v3 = vld [vmem:[#allocation2 + $0x1a] sm:$0xff]  ;;  %3622 = vmatpush.msra.mxu0 %v6357_v45  ;;  %v6390_v45 = vld [vmem:[%s12400_s6 + $0x4f0] sm:$0xff] }
0x14e2   : > { %3468 = vmatpush.msrb.mxu3 %v6308_v19  ;;  %v6356_v19 = vld [vmem:[%s12400_s6 + $0x3e0] sm:$0xff]  ;;  %3584 = vmatpush.msra.mxu2 %v6321_v52  ;;  %v6386_v52 = vld [vmem:[%s12400_s6 + $0x4d0] sm:$0xff] }
0x14e3   : > { %3349 = vmatpush.msra.mxu1 %v3278_v42  ;;  %v6337_v42 = vld [vmem:[%s12400_s6 + $0x348] sm:$0xff]  ;;  %3623 = vmatpush.msra.mxu0 %v6356_v19  ;;  %v6351_v19 = vld [vmem:[%s12400_s6 + $0x3b8] sm:$0xff] }
0x14e4   : > { %3469 = vmatpush.msrb.mxu3 %v6307_v50 }
0x14e5   : > { %3350 = vmatpush.msra.mxu1 %v3277_v5 }
0x14e6   : > { %3351 = vmatmul.f32.vlgmr.msra.gmra.mxu1 %v10303_v49  ;;  %3470 = vmatpush.msrb.mxu3 %v6306_v51  ;;  %v6336_v51 = vld [vmem:[%s12400_s6 + $0x340] sm:$0xff] }
0x14e7   : > { %3555 = vmatpush.msrb.mxu1 %v6343_v18  ;;  %v6352_v18 = vld [vmem:[%s12400_s6 + $0x3c0] sm:$0xff] }
0x14e8   : > { %3471 = vmatpush.msrb.mxu3 %v6305_v54 }
0x14e9   : > { %3556 = vmatpush.msrb.mxu1 %v6342_v22 }
0x14ea   : > { %3472 = vmatpush.msrb.mxu3 %v6304_v56  ;;  %v6355_v56 = vld [vmem:[%s12400_s6 + $0x3d8] sm:$0xff] }
0x14eb   : > { %3557 = vmatpush.msrb.mxu1 %v6341_v23  ;;  %3624 = vmatpush.msra.mxu0 %v6355_v56  ;;  %v6332_v23 = vld [vmem:[%s12400_s6 + $0x320] sm:$0xff]  ;;  %v6385_v56 = vld [vmem:[%s12400_s6 + $0x4c8] sm:$0xff] }
0x14ec   : > { %3473 = vmatpush.msrb.mxu3 %v6303_v35 }
0x14ed   : > { %3558 = vmatpush.msrb.mxu1 %v6340_v47 }
0x14ee   : > { %3474 = vmatpush.msrb.mxu3 %v6302_v57  ;;  %v6995_v57 = vld [vmem:[%s12401_s7 + $0x2f] ss:$0 sm:$0xff] }
0x14ef   : > { %3559 = vmatpush.msrb.mxu1 %v6339_v38 }
0x14f0   : > { %3475 = vmatpush.msrb.mxu3 %v6301_v59  ;;  %v6335_v59 = vld [vmem:[%s12400_s6 + $0x338] sm:$0xff] }
0x14f1   : > { %3560 = vmatpush.msrb.mxu1 %v6338_v31  ;;  %v6329_v31 = vld [vmem:[%s12400_s6 + $0x308] sm:$0xff] }
0x14f2   : > { %3476 = vmatpush.msrb.mxu3 %v6300_v60  ;;  %v6320_v60 = vld [vmem:[%s12400_s6 + $0x2c0] sm:$0xff] }
0x14f3   : > { %3561 = vmatpush.msrb.mxu1 %v6337_v42  ;;  %3585 = vmatpush.msra.mxu2 %v6320_v60  ;;  %v6347_v60 = vld [vmem:[%s12400_s6 + $0x398] sm:$0xff] }
0x14f4   : > { %3477 = vmatpush.msrb.mxu3 %v6299_v62  ;;  %v6371_v62 = vld [vmem:[%s12400_s6 + $0x458] sm:$0xff] }
0x14f5   : > { %3562 = vmatpush.msrb.mxu1 %v6336_v51  ;;  %v6366_v51 = vld [vmem:[%s12400_s6 + $0x430] sm:$0xff] }
0x14f6   : > { %3478 = vmatpush.msrb.mxu3 %v6298_v63  ;;  %v6354_v63 = vld [vmem:[%s12400_s6 + $0x3d0] sm:$0xff] }
0x14f7   : > { %3563 = vmatpush.msrb.mxu1 %v6335_v59  ;;  %3625 = vmatpush.msra.mxu0 %v6354_v63  ;;  %v6384_v59 = vld [vmem:[%s12400_s6 + $0x4c0] sm:$0xff]  ;;  %v6346_v63 = vld [vmem:[%s12400_s6 + $0x390] sm:$0xff] }
0x14f8   : > { %3479 = vmatpush.msrb.mxu3 %v6297_v1 }
0x14fa   : > { %3480 = vmatpush.msrb.mxu3 %v6296_v0 }
0x1533   : > { %v3268_v61 = vpop.permute.xlu2 %3267 }
0x1534   : > { %3272 = vst.msk [vmem:[#allocation2 + $0x11] sm:$0xff] %vm689_vm4, %v3268_v61 }
0x153b   : > { %v3402_v2 = vld [vmem:[#allocation2 + $0x12] sm:$0xff] }
0x153c   : > { %3437 = vmatmul.f32.vlgmr.msrb.gmra.mxu0 %v3402_v2  ;;  %v3359_v13 = vld [vmem:[#allocation2 + $0x14] sm:$0xff]  ;;  %v6996_v2 = vld [vmem:[%s12401_s7 + $0x47] ss:$0 sm:$0xff] }
0x153d   : > { %v3446_v15 = vld [vmem:[#allocation2 + $0x18] sm:$0xff] }
0x1543   : > { %v3266_v7 = vpop.permute.xlu0 %3265 }
0x1544   : > { %3271 = vst.msk [vmem:[#allocation2 + $0x9] sm:$0xff] %vm689_vm4, %v3266_v7  ;;  %3440 = vmatmul.f32.gmra.mxu0 %v3403_v3  ;;  %v6334_v3 = vld [vmem:[%s12400_s6 + $0x330] sm:$0xff]  ;;  %v6319_v7 = vld [vmem:[%s12400_s6 + $0x2b8] sm:$0xff] }
0x1545   : > { %3564 = vmatpush.msrb.mxu1 %v6334_v3  ;;  %3586 = vmatpush.msra.mxu2 %v6319_v7  ;;  %v6361_v3 = vld [vmem:[%s12400_s6 + $0x408] sm:$0xff] }
0x1546   : > { %v6381_v7 = vld [vmem:[%s12400_s6 + $0x4a8] sm:$0xff] }
0x154b   : > { %v3293_v9 = vld [vmem:[#allocation2 + $0x6] sm:$0xff]  ;;  %v3294_v6 = vld [vmem:[#allocation2 + $0xe] sm:$0xff] }
0x154c   : > { %v3276_v12 = vld [vmem:[#allocation2 + $0x8] sm:$0xff]  ;;  %3328 = vmatmul.f32.vlgmr.msra.gmra.mxu3 %v3293_v9 }
0x154d   : > { %3354 = vmatmul.f32.gmra.mxu1 %v3276_v12  ;;  %v3358_v4 = vld [vmem:[#allocation2 + $0xc] sm:$0xff]  ;;  %3664 = vmatpush.msra.mxu3 %v6375_v34 }
0x154e   : > { %3393 = vmatmul.f32.vlgmr.msrb.gmra.mxu2 %v3358_v4  ;;  %v10353_v16 = vpop.f32.mrf.mxu2  ;;  %v6370_v12 = vld [vmem:[%s12400_s6 + $0x450] sm:$0xff]  ;;  %v6353_v4 = vld [vmem:[%s12400_s6 + $0x3c8] sm:$0xff] }
0x154f   : > { %3665 = vmatpush.msra.mxu3 %v6374_v40  ;;  %3626 = vmatpush.msra.mxu0 %v6353_v4  ;;  %v6391_v40 = vld [vmem:[%s12400_s6 + $0x4f8] sm:$0xff]  ;;  %v6380_v4 = vld [vmem:[%s12400_s6 + $0x4a0] sm:$0xff] }
0x1551   : > { %3666 = vmatpush.msra.mxu3 %v6373_v10  ;;  %3627 = vmatpush.msra.mxu0 %v6352_v18  ;;  %v6388_v10 = vld [vmem:[%s12400_s6 + $0x4e0] sm:$0xff] }
0x1553   : > { %3667 = vmatpush.msra.mxu3 %v6372_v55  ;;  %3628 = vmatpush.msra.mxu0 %v6351_v19  ;;  %v6365_v55 = vld [vmem:[%s12400_s6 + $0x428] sm:$0xff]  ;;  %v6419_v19 = vld [vmem:[%s12400_s6 + $0x5d8] sm:$0xff] }
0x1554   : > { %3331 = vmatmul.f32.gmra.mxu3 %v3294_v6 }
0x1555   : > { %3668 = vmatpush.msra.mxu3 %v6371_v62  ;;  %v6383_v62 = vld [vmem:[%s12400_s6 + $0x4b8] sm:$0xff] }
0x1556   : > { %3396 = vmatmul.f32.gmra.mxu2 %v3359_v13  ;;  %v10355_v17 = vpop.f32.mrf.mxu2  ;;  %v6333_v13 = vld [vmem:[%s12400_s6 + $0x328] sm:$0xff] }
0x1557   : > { %3669 = vmatpush.msra.mxu3 %v6370_v12  ;;  %3565 = vmatpush.msrb.mxu1 %v6333_v13  ;;  %v6360_v12 = vld [vmem:[%s12400_s6 + $0x400] sm:$0xff]  ;;  %v6378_v13 = vld [vmem:[%s12400_s6 + $0x490] sm:$0xff] }
0x1559   : > { %3566 = vmatpush.msrb.mxu1 %v6332_v23 }
0x155c   : > { %3481 = vmatmul.f32.vlgmr.msrb.gmra.mxu3 %v3446_v15  ;;  %v6318_v15 = vld [vmem:[%s12400_s6 + $0x2b0] sm:$0xff] }
0x155d   : > { %3587 = vmatpush.msra.mxu2 %v6318_v15  ;;  %v6377_v15 = vld [vmem:[%s12400_s6 + $0x488] sm:$0xff] }
0x155f   : > { %3588 = vmatpush.msra.mxu2 %v6317_v48 }
0x1563   : > { %v3352_v21 = vpop.f32.mrf.mxu1 }
0x1564   : > { %3484 = vmatmul.f32.gmra.mxu3 %v10350_v29 }
0x15b9   : > { %v3438_v36 = vpop.f32.mrf.mxu0 }
0x15c1   : > { %v3441_v9 = vpop.f32.mrf.mxu0 }
0x15ca   : > { %v3355_v5 = vpop.f32.mrf.mxu1 }
0x15cf   : > { %v3329_v44 = vpop.f32.mrf.mxu3 }
0x15d0   : > { %v3353_v46 = vadd.f32 %v3352_v21, %v3329_v44  ;;  %v6369_v44 = vld [vmem:[%s12400_s6 + $0x448] sm:$0xff] }
0x15d1   : > { %v3394_v26 = vpop.f32.mrf.mxu2  ;;  %3670 = vmatpush.msra.mxu3 %v6369_v44  ;;  %v6376_v44 = vld [vmem:[%s12400_s6 + $0x480] sm:$0xff] }
0x15d2   : > { %v3400_v30 = vadd.f32 %v3394_v26, %v3353_v46  ;;  %v6368_v46 = vld [vmem:[%s12400_s6 + $0x440] sm:$0xff]  ;;  %v6331_v26 = vld [vmem:[%s12400_s6 + $0x318] sm:$0xff] }
0x15d3   : > { %3671 = vmatpush.msra.mxu3 %v6368_v46  ;;  %3567 = vmatpush.msrb.mxu1 %v6331_v26 }
0x15d4   : > { %v3444_v50 = vadd.f32 %v3438_v36, %v3400_v30  ;;  %v6328_v36 = vld [vmem:[%s12400_s6 + $0x300] sm:$0xff] }
0x15d5   : > { %3568 = vmatpush.msrb.mxu1 %v6330_v53  ;;  %v6406_v53 = vld [vmem:[%s12400_s6 + $0x570] sm:$0xff] }
0x15d7   : > { %v3332_v27 = vpop.f32.mrf.mxu3  ;;  %3569 = vmatpush.msrb.mxu1 %v6329_v31  ;;  %v6423_v31 = vld [vmem:[%s12400_s6 + $0x5f8] sm:$0xff] }
0x15d8   : > { %v3356_v33 = vadd.f32 %v3355_v5, %v3332_v27  ;;  %v6316_v27 = vld [vmem:[%s12400_s6 + $0x2a0] sm:$0xff]  ;;  %v6389_v5 = vld [vmem:[%s12400_s6 + $0x4e8] sm:$0xff] }
0x15d9   : > { %v3397_v61 = vpop.f32.mrf.mxu2  ;;  %3589 = vmatpush.msra.mxu2 %v6316_v27  ;;  %3570 = vmatpush.msrb.mxu1 %v6328_v36 }
0x15da   : > { %v3401_v1 = vadd.f32 %v3397_v61, %v3356_v33  ;;  %v6367_v33 = vld [vmem:[%s12400_s6 + $0x438] sm:$0xff] }
0x15db   : > { %3590 = vmatpush.msra.mxu2 %v6315_v28  ;;  %3708 = vmatpush.msra.mxu1 %v6391_v40  ;;  %v6363_v61 = vld [vmem:[%s12400_s6 + $0x418] sm:$0xff]  ;;  %v6421_v40 = vld [vmem:[%s12400_s6 + $0x5e8] sm:$0xff] }
0x15dc   : > { %v3445_v21 = vadd.f32 %v3441_v9, %v3401_v1  ;;  %3672 = vmatpush.msra.mxu3 %v6367_v33  ;;  %v6362_v1 = vld [vmem:[%s12400_s6 + $0x410] sm:$0xff]  ;;  %v6344_v9 = vld [vmem:[%s12400_s6 + $0x380] sm:$0xff] }
0x15dd   : > { %3591 = vmatpush.msra.mxu2 %v6314_v32  ;;  %3709 = vmatpush.msra.mxu1 %v6390_v45  ;;  %v6422_v32 = vld [vmem:[%s12400_s6 + $0x5f0] sm:$0xff]  ;;  %v6420_v45 = vld [vmem:[%s12400_s6 + $0x5e0] sm:$0xff] }
0x15de   : > { %3673 = vmatpush.msra.mxu3 %v6366_v51  ;;  %v6997_v51 = vld [vmem:[%s12401_s7 + $0x17] ss:$0 sm:$0xff] }
0x15df   : > { %v3482_v54 = vpop.f32.mrf.mxu3  ;;  %3592 = vmatpush.msra.mxu2 %v6313_v37  ;;  %3710 = vmatpush.msra.mxu1 %v6389_v5  ;;  %v6404_v37 = vld [vmem:[%s12400_s6 + $0x560] sm:$0xff] }
0x15e0   : > { %v3488_v35 = vadd.f32 %v3482_v54, %v3444_v50  ;;  %v6387_v50 = vld [vmem:[%s12400_s6 + $0x4d8] sm:$0xff]  ;;  %v6349_v54 = vld [vmem:[%s12400_s6 + $0x3a8] sm:$0xff]  ;;  %3674 = vmatpush.msra.mxu3 %v6365_v55 }
0x15e1   : > { %3593 = vmatpush.msra.mxu2 %v6312_v43  ;;  %3711 = vmatpush.msra.mxu1 %v6388_v10  ;;  %v6403_v43 = vld [vmem:[%s12400_s6 + $0x558] sm:$0xff]  ;;  %v6402_v10 = vld [vmem:[%s12400_s6 + $0x550] sm:$0xff] }
0x15e2   : > { %v3491_v0 = vadd.f32 %v6994_v24, %v3488_v35  ;;  %3594 = vmatmul.f32.vlgmr.msra.gmra.mxu2 %v10303_v49  ;;  %v6348_v35 = vld [vmem:[%s12400_s6 + $0x3a0] sm:$0xff] }
0x15e3   : > { %3712 = vmatpush.msra.mxu1 %v6387_v50  ;;  %3800 = vmatpush.msrb.mxu2 %v6423_v31  ;;  %v6409_v31 = vld [vmem:[%s12400_s6 + $0x588] sm:$0xff] }
0x15e4   : > { %v3495_v6 = vmul.f32 %v6995_v57, %v3491_v0  ;;  %v6382_v0 = vld [vmem:[%s12400_s6 + $0x4b0] sm:$0xff] }
0x15e5   : > { %3713 = vmatpush.msra.mxu1 %v6386_v52  ;;  %3801 = vmatpush.msrb.mxu2 %v6422_v32  ;;  %v6401_v52 = vld [vmem:[%s12400_s6 + $0x548] sm:$0xff]  ;;  %v6408_v32 = vld [vmem:[%s12400_s6 + $0x580] sm:$0xff] }
0x15e6   : > { %v3499_v22 = vadd.f32 %v6996_v2, %v3495_v6  ;;  %v6379_v6 = vld [vmem:[%s12400_s6 + $0x498] sm:$0xff] }
0x15e7   : > { %v3485_v20 = vpop.f32.mrf.mxu3  ;;  %3714 = vmatpush.msra.mxu1 %v6385_v56  ;;  %3802 = vmatpush.msrb.mxu2 %v6421_v40  ;;  %v6400_v56 = vld [vmem:[%s12400_s6 + $0x540] sm:$0xff]  ;;  %v6437_v40 = vld [vmem:[%s12400_s6 + $0x668] sm:$0xff] }
0x15e8   : > { %v3489_v47 = vadd.f32 %v3485_v20, %v3445_v21  ;;  %v3501_v25 = vmax.f32 %v3499_v22, 0.0 }
0x15e9   : > { %3715 = vmatpush.msra.mxu1 %v6384_v59  ;;  %3803 = vmatpush.msrb.mxu2 %v6420_v45  ;;  %v6436_v45 = vld [vmem:[%s12400_s6 + $0x660] sm:$0xff] }
0x15ea   : > { %v3492_v38 = vadd.f32 %v6994_v24, %v3489_v47  ;;  %3508 = vrot.lane.b32.xlu1 %v3501_v25, %s7100_s20  ;;  %3504 = vst.msk [vmem:[#allocation2 + $0xc] sm:$0xff] %vm485_vm1, %v3501_v25  ;;  %v6350_v24 = vld [vmem:[%s12400_s6 + $0x3b0] sm:$0xff] }
0x15eb   : > { %3629 = vmatpush.msra.mxu0 %v6350_v24  ;;  %3716 = vmatpush.msra.mxu1 %v6383_v62  ;;  %v6998_v62 = vld [vmem:[%s12401_s7 + $0x30] ss:$0 sm:$0xff] }
0x15ec   : > { %v3496_v30 = vmul.f32 %v6995_v57, %v3492_v38  ;;  %v6364_v57 = vld [vmem:[%s12400_s6 + $0x420] sm:$0xff]  ;;  %v6407_v38 = vld [vmem:[%s12400_s6 + $0x578] sm:$0xff]  ;;  %3804 = vmatpush.msrb.mxu2 %v6419_v19  ;;  %v6469_v19 = vld [vmem:[%s12400_s6 + $0x768] sm:$0xff] }
0x15ed   : > { %3630 = vmatpush.msra.mxu0 %v6349_v54  ;;  %3675 = vmatpush.msra.mxu3 %v6364_v57  ;;  %v6418_v54 = vld [vmem:[%s12400_s6 + $0x5d0] sm:$0xff] }
0x15ee   : > { %v3500_v34 = vadd.f32 %v6996_v2, %v3496_v30  ;;  %3717 = vmatpush.msra.mxu1 %v6382_v0  ;;  %v6345_v2 = vld [vmem:[%s12400_s6 + $0x388] sm:$0xff]  ;;  %3805 = vmatpush.msrb.mxu2 %v6418_v54  ;;  %v6467_v54 = vld [vmem:[%s12400_s6 + $0x758] sm:$0xff] }
0x15ef   : > { %3631 = vmatpush.msra.mxu0 %v6348_v35  ;;  %3676 = vmatpush.msra.mxu3 %v6363_v61  ;;  %v6405_v30 = vld [vmem:[%s12400_s6 + $0x568] sm:$0xff] }
0x15f0   : > { %v3502_v42 = vmax.f32 %v3500_v34, 0.0  ;;  %3718 = vmatpush.msra.mxu1 %v6381_v7  ;;  %v6417_v35 = vld [vmem:[%s12400_s6 + $0x5c8] sm:$0xff]  ;;  %v6398_v7 = vld [vmem:[%s12400_s6 + $0x530] sm:$0xff] }
0x15f1   : > { %3632 = vmatpush.msra.mxu0 %v6347_v60  ;;  %3677 = vmatpush.msra.mxu3 %v6362_v1  ;;  %v6416_v1 = vld [vmem:[%s12400_s6 + $0x5c0] sm:$0xff] }
0x15f2   : > { %3510 = vrot.lane.b32.xlu0 %v3502_v42, %s7100_s20  ;;  %3505 = vst.msk [vmem:[#allocation2 + $0x14] sm:$0xff] %vm485_vm1, %v3502_v42  ;;  %3719 = vmatpush.msra.mxu1 %v6380_v4 }
0x15f3   : > { %3516 = vst.msk [vmem:[#allocation2 + $0x19] sm:$0x7] %vm3273_vm6, %v10303_v49  ;;  %3633 = vmatpush.msra.mxu0 %v6346_v63  ;;  %3678 = vmatpush.msra.mxu3 %v6361_v3  ;;  %v6399_v63 = vld [vmem:[%s12400_s6 + $0x538] sm:$0xff]  ;;  %v6999_v3 = vld [vmem:[%s12401_s7 + $0x48] ss:$0 sm:$0xff] }
0x15f4   : > { %3720 = vmatpush.msra.mxu1 %v6379_v6  ;;  %3806 = vmatpush.msrb.mxu2 %v6417_v35  ;;  %v6466_v35 = vld [vmem:[%s12400_s6 + $0x750] sm:$0xff] }
0x15f5   : > { %3634 = vmatpush.msra.mxu0 %v6345_v2  ;;  %3679 = vmatpush.msra.mxu3 %v6360_v12 }
0x15f6   : > { %3721 = vmatpush.msra.mxu1 %v6378_v13  ;;  %3807 = vmatpush.msrb.mxu2 %v6416_v1  ;;  %v6397_v13 = vld [vmem:[%s12400_s6 + $0x528] sm:$0xff]  ;;  %v6430_v1 = vld [vmem:[%s12400_s6 + $0x630] sm:$0xff] }
0x15f7   : > { %3635 = vmatpush.msra.mxu0 %v6344_v9  ;;  %v6415_v9 = vld [vmem:[%s12400_s6 + $0x5b8] sm:$0xff] }
0x15f8   : > { %3722 = vmatpush.msra.mxu1 %v6377_v15  ;;  %v6414_v15 = vld [vmem:[%s12400_s6 + $0x5b0] sm:$0xff]  ;;  %3808 = vmatpush.msrb.mxu2 %v6415_v9  ;;  %v6428_v9 = vld [vmem:[%s12400_s6 + $0x620] sm:$0xff] }
0x15f9   : > { %3823 = vmatpush.msrb.mxu0 %v6407_v38 }
0x15fa   : > { %3723 = vmatpush.msra.mxu1 %v6376_v44  ;;  %v3646_v47 = vld [vmem:[#allocation2 + $0x1a] sm:$0xff]  ;;  %3809 = vmatpush.msrb.mxu2 %v6414_v15  ;;  %v6426_v15 = vld [vmem:[%s12400_s6 + $0x610] sm:$0xff] }
0x15fb   : > { %3824 = vmatpush.msrb.mxu0 %v6406_v53 }
0x15fd   : > { %3825 = vmatpush.msrb.mxu0 %v6405_v30  ;;  %v6410_v30 = vld [vmem:[%s12400_s6 + $0x590] sm:$0xff] }
0x15ff   : > { %3826 = vmatpush.msrb.mxu0 %v6404_v37  ;;  %v6454_v37 = vld [vmem:[%s12400_s6 + $0x6f0] sm:$0xff] }
0x1601   : > { %3827 = vmatpush.msrb.mxu0 %v6403_v43  ;;  %v6471_v43 = vld [vmem:[%s12400_s6 + $0x778] sm:$0xff] }
0x1603   : > { %3828 = vmatpush.msrb.mxu0 %v6402_v10  ;;  %v6470_v10 = vld [vmem:[%s12400_s6 + $0x770] sm:$0xff] }
0x1605   : > { %3829 = vmatpush.msrb.mxu0 %v6401_v52  ;;  %v6450_v52 = vld [vmem:[%s12400_s6 + $0x6d0] sm:$0xff] }
0x1607   : > { %3830 = vmatpush.msrb.mxu0 %v6400_v56  ;;  %v6449_v56 = vld [vmem:[%s12400_s6 + $0x6c8] sm:$0xff] }
0x1609   : > { %3831 = vmatpush.msrb.mxu0 %v6399_v63  ;;  %v6464_v63 = vld [vmem:[%s12400_s6 + $0x740] sm:$0xff] }
0x160b   : > { %3832 = vmatpush.msrb.mxu0 %v6398_v7  ;;  %v6445_v7 = vld [vmem:[%s12400_s6 + $0x6a8] sm:$0xff] }
0x160d   : > { %3833 = vmatpush.msrb.mxu0 %v6397_v13  ;;  %v6463_v13 = vld [vmem:[%s12400_s6 + $0x738] sm:$0xff] }
0x165c   : > { %v3509_v18 = vpop.permute.xlu1 %3508 }
0x165d   : > { %3514 = vst.msk [vmem:[#allocation2 + $0x9] sm:$0xff] %vm689_vm4, %v3509_v18 }
0x1664   : > { %v3511_v21 = vpop.permute.xlu0 %3510  ;;  %v3536_v22 = vld [vmem:[#allocation2 + $0x6] sm:$0xff] }
0x1665   : > { %v3518_v23 = vld [vmem:[#allocation2 + $0x8] sm:$0xff]  ;;  %3515 = vst.msk [vmem:[#allocation2 + $0x11] sm:$0xff] %vm689_vm4, %v3511_v21  ;;  %3571 = vmatmul.f32.vlgmr.msrb.gmra.mxu1 %v3536_v22  ;;  %v3595_v34 = vpop.f32.mrf.mxu2  ;;  %v6396_v21 = vld [vmem:[%s12400_s6 + $0x520] sm:$0xff] }
0x1666   : > { %3597 = vmatmul.f32.gmra.mxu2 %v3518_v23  ;;  %v6413_v22 = vld [vmem:[%s12400_s6 + $0x5a8] sm:$0xff]  ;;  %3834 = vmatpush.msrb.mxu0 %v6396_v21 }
0x1667   : > { %3810 = vmatpush.msrb.mxu2 %v6413_v22  ;;  %v6425_v21 = vld [vmem:[%s12400_s6 + $0x608] sm:$0xff] }
0x1668   : > { %v6441_v22 = vld [vmem:[%s12400_s6 + $0x688] sm:$0xff] }
0x166c   : > { %v3537_v48 = vld [vmem:[#allocation2 + $0xe] sm:$0xff]  ;;  %v3689_v26 = vld [vmem:[#allocation2 + $0x18] sm:$0xff] }
0x166d   : > { %v3601_v20 = vld [vmem:[#allocation2 + $0xc] sm:$0xff]  ;;  %3574 = vmatmul.f32.gmra.mxu1 %v3537_v48  ;;  %v3602_v25 = vld [vmem:[#allocation2 + $0x14] sm:$0xff] }
0x166e   : > { %v3645_v46 = vld [vmem:[#allocation2 + $0x12] sm:$0xff]  ;;  %3636 = vmatmul.f32.vlgmr.msra.gmra.mxu0 %v3601_v20 }
0x166f   : > { %3680 = vmatmul.f32.vlgmr.msra.gmra.mxu3 %v3645_v46  ;;  %v6395_v20 = vld [vmem:[%s12400_s6 + $0x518] sm:$0xff]  ;;  %v6412_v46 = vld [vmem:[%s12400_s6 + $0x5a0] sm:$0xff] }
0x1670   : > { %3835 = vmatpush.msrb.mxu0 %v6395_v20  ;;  %3811 = vmatpush.msrb.mxu2 %v6412_v46  ;;  %v6440_v20 = vld [vmem:[%s12400_s6 + $0x680] sm:$0xff] }
0x1671   : > { %v6460_v46 = vld [vmem:[%s12400_s6 + $0x720] sm:$0xff] }
0x1675   : > { %3724 = vmatmul.f32.vlgmr.msra.gmra.mxu1 %v3689_v26 }
0x1676   : > { %3639 = vmatmul.f32.gmra.mxu0 %v3602_v25  ;;  %v6394_v25 = vld [vmem:[%s12400_s6 + $0x510] sm:$0xff] }
0x1677   : > { %3683 = vmatmul.f32.gmra.mxu3 %v3646_v47  ;;  %3836 = vmatpush.msrb.mxu0 %v6394_v25 }
0x167d   : > { %3727 = vmatmul.f32.gmra.mxu1 %v10350_v29 }
0x16e2   : > { %v3572_v27 = vpop.f32.mrf.mxu1 }
0x16e3   : > { %v3596_v42 = vadd.f32 %v3595_v34, %v3572_v27  ;;  %v6393_v27 = vld [vmem:[%s12400_s6 + $0x508] sm:$0xff]  ;;  %v6455_v34 = vld [vmem:[%s12400_s6 + $0x6f8] sm:$0xff] }
0x16e4   : > { %3837 = vmatpush.msrb.mxu0 %v6393_v27  ;;  %3909 = vmatpush.msrb.mxu1 %v6455_v34  ;;  %v6459_v27 = vld [vmem:[%s12400_s6 + $0x718] sm:$0xff] }
0x16e6   : > { %3910 = vmatpush.msrb.mxu1 %v6454_v37 }
0x16e9   : > { %v3598_v57 = vpop.f32.mrf.mxu2 }
0x16ea   : > { %v3575_v28 = vpop.f32.mrf.mxu1 }
0x16eb   : > { %v3637_v36 = vpop.f32.mrf.mxu0  ;;  %v3599_v60 = vadd.f32 %v3598_v57, %v3575_v28  ;;  %v6411_v28 = vld [vmem:[%s12400_s6 + $0x598] sm:$0xff]  ;;  %v6432_v57 = vld [vmem:[%s12400_s6 + $0x640] sm:$0xff] }
0x16ec   : > { %v3643_v5 = vadd.f32 %v3637_v36, %v3596_v42  ;;  %3812 = vmatpush.msrb.mxu2 %v6411_v28  ;;  %v6438_v36 = vld [vmem:[%s12400_s6 + $0x670] sm:$0xff]  ;;  %v6453_v42 = vld [vmem:[%s12400_s6 + $0x6e8] sm:$0xff] }
0x16ed   : > { %3911 = vmatpush.msrb.mxu1 %v6453_v42  ;;  %v6503_v42 = vld [vmem:[%s12400_s6 + $0x878] sm:$0xff] }
0x16ee   : > { %3813 = vmatpush.msrb.mxu2 %v6410_v30 }
0x16f0   : > { %3814 = vmatpush.msrb.mxu2 %v6409_v31 }
0x16f2   : > { %v3681_v33 = vpop.f32.mrf.mxu3  ;;  %v3725_v24 = vpop.f32.mrf.mxu1  ;;  %3815 = vmatpush.msrb.mxu2 %v6408_v32 }
0x16f3   : > { %v3687_v50 = vadd.f32 %v3681_v33, %v3643_v5  ;;  %v3640_v59 = vpop.f32.mrf.mxu0  ;;  %v6452_v5 = vld [vmem:[%s12400_s6 + $0x6e0] sm:$0xff]  ;;  %v6435_v33 = vld [vmem:[%s12400_s6 + $0x658] sm:$0xff] }
0x16f4   : > { %v3644_v0 = vadd.f32 %v3640_v59, %v3599_v60  ;;  %3953 = vmatpush.msra.mxu2 %v6471_v43  ;;  %3912 = vmatpush.msrb.mxu1 %v6452_v5  ;;  %v6448_v59 = vld [vmem:[%s12400_s6 + $0x6c0] sm:$0xff]  ;;  %v6465_v60 = vld [vmem:[%s12400_s6 + $0x748] sm:$0xff]  ;;  %v6534_v43 = vld [vmem:[%s12400_s6 + $0x970] sm:$0xff] }
0x16f5   : > { %v3731_v55 = vadd.f32 %v3725_v24, %v3687_v50  ;;  %v6451_v50 = vld [vmem:[%s12400_s6 + $0x6d8] sm:$0xff]  ;;  %v6468_v24 = vld [vmem:[%s12400_s6 + $0x760] sm:$0xff] }
0x16f6   : > { %3954 = vmatpush.msra.mxu2 %v6470_v10  ;;  %3913 = vmatpush.msrb.mxu1 %v6451_v50  ;;  %v6501_v10 = vld [vmem:[%s12400_s6 + $0x868] sm:$0xff]  ;;  %v6486_v50 = vld [vmem:[%s12400_s6 + $0x7f0] sm:$0xff] }
0x16f7   : > { %v3734_v61 = vadd.f32 %v6997_v51, %v3731_v55  ;;  %v6433_v55 = vld [vmem:[%s12400_s6 + $0x648] sm:$0xff] }
0x16f8   : > { %3955 = vmatpush.msra.mxu2 %v6469_v19  ;;  %3914 = vmatpush.msrb.mxu1 %v6450_v52  ;;  %v6487_v19 = vld [vmem:[%s12400_s6 + $0x7f8] sm:$0xff]  ;;  %v6500_v52 = vld [vmem:[%s12400_s6 + $0x860] sm:$0xff] }
0x16f9   : > { %v10674_v2 = vadd.f32 %v3734_v61, %v10175_v58  ;;  %v6431_v61 = vld [vmem:[%s12400_s6 + $0x638] sm:$0xff] }
0x16fa   : > { %v3684_v12 = vpop.f32.mrf.mxu3  ;;  %v3728_v6 = vpop.f32.mrf.mxu1  ;;  %3956 = vmatpush.msra.mxu2 %v6468_v24  ;;  %3915 = vmatpush.msrb.mxu1 %v6449_v56  ;;  %v6531_v56 = vld [vmem:[%s12400_s6 + $0x958] sm:$0xff] }
0x16fb   : > { %v3688_v4 = vadd.f32 %v3684_v12, %v3644_v0  ;;  %v3740_v58 = vmul.f32 %v6998_v62, %v10674_v2  ;;  %v6446_v0 = vld [vmem:[%s12400_s6 + $0x6b0] sm:$0xff]  ;;  %v6444_v12 = vld [vmem:[%s12400_s6 + $0x6a0] sm:$0xff] }
0x16fc   : > { %3957 = vmatpush.msra.mxu2 %v6467_v54  ;;  %3916 = vmatpush.msrb.mxu1 %v6448_v59  ;;  %v6485_v54 = vld [vmem:[%s12400_s6 + $0x7e8] sm:$0xff]  ;;  %v6519_v59 = vld [vmem:[%s12400_s6 + $0x8f8] sm:$0xff] }
0x16fd   : > { %v3732_v44 = vadd.f32 %v3728_v6, %v3688_v4  ;;  %v3744_v18 = vadd.f32 %v6999_v3, %v3740_v58  ;;  %v6427_v6 = vld [vmem:[%s12400_s6 + $0x618] sm:$0xff] }
0x16fe   : > { %3958 = vmatpush.msra.mxu2 %v6466_v35  ;;  %v6443_v58 = vld [vmem:[%s12400_s6 + $0x698] sm:$0xff] }
0x16ff   : > { %v3735_v23 = vadd.f32 %v6997_v51, %v3732_v44  ;;  %v3746_v48 = vmax.f32 %v3744_v18, 0.0  ;;  %v6434_v51 = vld [vmem:[%s12400_s6 + $0x650] sm:$0xff]  ;;  %v6499_v35 = vld [vmem:[%s12400_s6 + $0x858] sm:$0xff] }
0x1700   : > { %3959 = vmatpush.msra.mxu2 %v6465_v60  ;;  %v6442_v44 = vld [vmem:[%s12400_s6 + $0x690] sm:$0xff] }
0x1701   : > { %v10705_v47 = vadd.f32 %v3735_v23, %v10199_v14  ;;  %3753 = vrot.lane.b32.xlu2 %v3746_v48, %s7100_s20  ;;  %3749 = vst.msk [vmem:[#allocation2 + $0xc] sm:$0xff] %vm485_vm1, %v3746_v48  ;;  %v6392_v14 = vld [vmem:[%s12400_s6 + $0x500] sm:$0xff]  ;;  %v6462_v18 = vld [vmem:[%s12400_s6 + $0x730] sm:$0xff]  ;;  %v6461_v23 = vld [vmem:[%s12400_s6 + $0x728] sm:$0xff] }
0x1702   : > { %3838 = vmatpush.msrb.mxu0 %v6392_v14  ;;  %3960 = vmatpush.msra.mxu2 %v6464_v63  ;;  %v6424_v48 = vld [vmem:[%s12400_s6 + $0x600] sm:$0xff]  ;;  %v6457_v14 = vld [vmem:[%s12400_s6 + $0x708] sm:$0xff]  ;;  %v6498_v63 = vld [vmem:[%s12400_s6 + $0x850] sm:$0xff] }
0x1703   : > { %v3741_v26 = vmul.f32 %v6998_v62, %v10705_v47  ;;  %3839 = vmatmul.f32.vlgmr.msrb.gmra.mxu0 %v10303_v49  ;;  %v6447_v62 = vld [vmem:[%s12400_s6 + $0x6b8] sm:$0xff] }
0x1704   : > { %3917 = vmatpush.msrb.mxu1 %v6447_v62  ;;  %3961 = vmatpush.msra.mxu2 %v6463_v13  ;;  %v6528_v13 = vld [vmem:[%s12400_s6 + $0x940] sm:$0xff] }
0x1705   : > { %v3745_v38 = vadd.f32 %v6999_v3, %v3741_v26  ;;  %v6429_v3 = vld [vmem:[%s12400_s6 + $0x628] sm:$0xff]  ;;  %4043 = vmatpush.msra.mxu0 %v6503_v42 }
0x1706   : > { %3918 = vmatpush.msrb.mxu1 %v6446_v0  ;;  %3962 = vmatpush.msra.mxu2 %v6462_v18  ;;  %v6518_v0 = vld [vmem:[%s12400_s6 + $0x8f0] sm:$0xff] }
0x1707   : > { %v3747_v53 = vmax.f32 %v3745_v38, 0.0  ;;  %v6458_v38 = vld [vmem:[%s12400_s6 + $0x710] sm:$0xff] }
0x1708   : > { %3919 = vmatpush.msrb.mxu1 %v6445_v7  ;;  %3963 = vmatpush.msra.mxu2 %v6461_v23  ;;  %v6517_v7 = vld [vmem:[%s12400_s6 + $0x8e8] sm:$0xff] }
0x1709   : > { %3755 = vrot.lane.b32.xlu1 %v3747_v53, %s7100_s20  ;;  %3750 = vst.msk [vmem:[#allocation2 + $0x14] sm:$0xff] %vm485_vm1, %v3747_v53  ;;  %v6456_v53 = vld [vmem:[%s12400_s6 + $0x700] sm:$0xff] }
0x170a   : > { %3761 = vst.msk [vmem:[#allocation2 + $0x19] sm:$0x7] %vm3273_vm6, %v10303_v49  ;;  %v6439_v49 = vld [vmem:[%s12400_s6 + $0x678] sm:$0xff]  ;;  %3920 = vmatpush.msrb.mxu1 %v6444_v12  ;;  %3964 = vmatpush.msra.mxu2 %v6460_v46  ;;  %v6482_v12 = vld [vmem:[%s12400_s6 + $0x7d0] sm:$0xff] }
0x170b   : > { %3865 = vmatpush.msrb.mxu3 %v6439_v49  ;;  %v6527_v46 = vld [vmem:[%s12400_s6 + $0x938] sm:$0xff] }
0x170c   : > { %3921 = vmatpush.msrb.mxu1 %v6443_v58  ;;  %3965 = vmatpush.msra.mxu2 %v6459_v27  ;;  %v7000_v58 = vld [vmem:[%s12401_s7 + $0x18] ss:$0 sm:$0xff] }
0x170d   : > { %3866 = vmatpush.msrb.mxu3 %v6438_v36 }
0x170e   : > { %3922 = vmatpush.msrb.mxu1 %v6442_v44  ;;  %3966 = vmatpush.msra.mxu2 %v6458_v38 }
0x170f   : > { %3867 = vmatpush.msrb.mxu3 %v6437_v40  ;;  %v6535_v40 = vld [vmem:[%s12400_s6 + $0x978] sm:$0xff] }
0x1710   : > { %3923 = vmatpush.msrb.mxu1 %v6441_v22  ;;  %3967 = vmatpush.msra.mxu2 %v6457_v14  ;;  %v6481_v22 = vld [vmem:[%s12400_s6 + $0x7c8] sm:$0xff] }
0x1711   : > { %3868 = vmatpush.msrb.mxu3 %v6436_v45  ;;  %v3891_v49 = vld [vmem:[#allocation2 + $0x1a] sm:$0xff]  ;;  %v6502_v45 = vld [vmem:[%s12400_s6 + $0x870] sm:$0xff]  ;;  %v7002_v14 = vld [vmem:[%s12401_s7 + $0x49] ss:$0 sm:$0xff] }
0x1712   : > { %3924 = vmatpush.msrb.mxu1 %v6440_v20  ;;  %3968 = vmatpush.msra.mxu2 %v6456_v53  ;;  %v7001_v20 = vld [vmem:[%s12401_s7 + $0x31] ss:$0 sm:$0xff] }
0x1713   : > { %3869 = vmatpush.msrb.mxu3 %v6435_v33  ;;  %4044 = vmatpush.msra.mxu0 %v6502_v45  ;;  %v6532_v33 = vld [vmem:[%s12400_s6 + $0x960] sm:$0xff]  ;;  %v6526_v53 = vld [vmem:[%s12400_s6 + $0x930] sm:$0xff] }
0x1714   : > { %4108 = vmatpush.msra.mxu1 %v6519_v59  ;;  %v6513_v59 = vld [vmem:[%s12400_s6 + $0x8c8] sm:$0xff] }
0x1715   : > { %3870 = vmatpush.msrb.mxu3 %v6434_v51  ;;  %4045 = vmatpush.msra.mxu0 %v6501_v10 }
0x1716   : > { %4109 = vmatpush.msra.mxu1 %v6518_v0  ;;  %v6488_v0 = vld [vmem:[%s12400_s6 + $0x800] sm:$0xff] }
0x1717   : > { %3871 = vmatpush.msrb.mxu3 %v6433_v55  ;;  %4046 = vmatpush.msra.mxu0 %v6500_v52  ;;  %v6491_v52 = vld [vmem:[%s12400_s6 + $0x818] sm:$0xff] }
0x1718   : > { %4110 = vmatpush.msra.mxu1 %v6517_v7  ;;  %v6511_v7 = vld [vmem:[%s12400_s6 + $0x8b8] sm:$0xff] }
0x1719   : > { %3872 = vmatpush.msrb.mxu3 %v6432_v57  ;;  %v6484_v57 = vld [vmem:[%s12400_s6 + $0x7e0] sm:$0xff]  ;;  %4047 = vmatpush.msra.mxu0 %v6499_v35  ;;  %v6490_v35 = vld [vmem:[%s12400_s6 + $0x810] sm:$0xff] }
0x171b   : > { %3873 = vmatpush.msrb.mxu3 %v6431_v61  ;;  %v6530_v61 = vld [vmem:[%s12400_s6 + $0x950] sm:$0xff]  ;;  %4048 = vmatpush.msra.mxu0 %v6498_v63  ;;  %v6512_v63 = vld [vmem:[%s12400_s6 + $0x8c0] sm:$0xff] }
0x171d   : > { %3874 = vmatpush.msrb.mxu3 %v6430_v1  ;;  %v6483_v1 = vld [vmem:[%s12400_s6 + $0x7d8] sm:$0xff] }
0x171f   : > { %3875 = vmatpush.msrb.mxu3 %v6429_v3  ;;  %v6529_v3 = vld [vmem:[%s12400_s6 + $0x948] sm:$0xff] }
0x1721   : > { %3876 = vmatpush.msrb.mxu3 %v6428_v9  ;;  %v6497_v9 = vld [vmem:[%s12400_s6 + $0x848] sm:$0xff] }
0x1722   : > { %4049 = vmatpush.msra.mxu0 %v6497_v9  ;;  %v6551_v9 = vld [vmem:[%s12400_s6 + $0x9f8] sm:$0xff] }
0x1723   : > { %3877 = vmatpush.msrb.mxu3 %v6427_v6 }
0x1725   : > { %3878 = vmatpush.msrb.mxu3 %v6426_v15  ;;  %v6516_v15 = vld [vmem:[%s12400_s6 + $0x8e0] sm:$0xff] }
0x1726   : > { %4111 = vmatpush.msra.mxu1 %v6516_v15  ;;  %v6549_v15 = vld [vmem:[%s12400_s6 + $0x9e8] sm:$0xff] }
0x1727   : > { %3879 = vmatpush.msrb.mxu3 %v6425_v21  ;;  %v6496_v21 = vld [vmem:[%s12400_s6 + $0x840] sm:$0xff] }
0x1728   : > { %4050 = vmatpush.msra.mxu0 %v6496_v21  ;;  %v6548_v21 = vld [vmem:[%s12400_s6 + $0x9e0] sm:$0xff] }
0x1729   : > { %3880 = vmatpush.msrb.mxu3 %v6424_v48 }
0x172b   : > { %4066 = vmatpush.msra.mxu3 %v6487_v19  ;;  %v11001_v19 = vld [vmem:[#allocation2 + $0x1c] sm:$0xff] }
0x172d   : > { %4067 = vmatpush.msra.mxu3 %v6486_v50  ;;  %v6479_v50 = vld [vmem:[%s12400_s6 + $0x7b8] sm:$0xff] }
0x172f   : > { %4068 = vmatpush.msra.mxu3 %v6485_v54  ;;  %v6478_v54 = vld [vmem:[%s12400_s6 + $0x7b0] sm:$0xff] }
0x1731   : > { %4069 = vmatpush.msra.mxu3 %v6484_v57  ;;  %v6477_v57 = vld [vmem:[%s12400_s6 + $0x7a8] sm:$0xff] }
0x1733   : > { %4070 = vmatpush.msra.mxu3 %v6483_v1  ;;  %v6520_v1 = vld [vmem:[%s12400_s6 + $0x900] sm:$0xff] }
0x1735   : > { %4071 = vmatpush.msra.mxu3 %v6482_v12  ;;  %v6474_v12 = vld [vmem:[%s12400_s6 + $0x790] sm:$0xff] }
0x1737   : > { %4072 = vmatpush.msra.mxu3 %v6481_v22  ;;  %v6507_v22 = vld [vmem:[%s12400_s6 + $0x898] sm:$0xff] }
0x175b   : > { %v3754_v4 = vpop.permute.xlu2 %3753 }
0x175c   : > { %3759 = vst.msk [vmem:[#allocation2 + $0x9] sm:$0xff] %vm689_vm4, %v3754_v4 }
0x1763   : > { %v3781_v25 = vld [vmem:[#allocation2 + $0x6] sm:$0xff] }
0x1764   : > { %v3763_v26 = vld [vmem:[#allocation2 + $0x8] sm:$0xff]  ;;  %3816 = vmatmul.f32.vlgmr.msrb.gmra.mxu2 %v3781_v25  ;;  %v6495_v25 = vld [vmem:[%s12400_s6 + $0x838] sm:$0xff] }
0x1765   : > { %3842 = vmatmul.f32.gmra.mxu0 %v3763_v26  ;;  %4152 = vmatpush.msrb.mxu2 %v6535_v40  ;;  %v6480_v26 = vld [vmem:[%s12400_s6 + $0x7c0] sm:$0xff] }
0x1766   : > { %4051 = vmatpush.msra.mxu0 %v6495_v25  ;;  %4073 = vmatpush.msra.mxu3 %v6480_v26  ;;  %v6545_v25 = vld [vmem:[%s12400_s6 + $0x9c8] sm:$0xff]  ;;  %v6504_v26 = vld [vmem:[%s12400_s6 + $0x880] sm:$0xff] }
0x1767   : > { %4153 = vmatpush.msrb.mxu2 %v6534_v43 }
0x1768   : > { %4074 = vmatpush.msra.mxu3 %v6479_v50 }
0x176a   : > { %4075 = vmatpush.msra.mxu3 %v6478_v54 }
0x176c   : > { %4076 = vmatpush.msra.mxu3 %v6477_v57 }
0x177b   : > { %v3756_v28 = vpop.permute.xlu1 %3755 }
0x177c   : > { %3760 = vst.msk [vmem:[#allocation2 + $0x11] sm:$0xff] %vm689_vm4, %v3756_v28 }
0x1780   : > { %v3840_v5 = vpop.f32.mrf.mxu0 }
0x1783   : > { %v3782_v30 = vld [vmem:[#allocation2 + $0xe] sm:$0xff]  ;;  %v3934_v36 = vld [vmem:[#allocation2 + $0x18] sm:$0xff] }
0x1784   : > { %v3846_v31 = vld [vmem:[#allocation2 + $0xc] sm:$0xff]  ;;  %3819 = vmatmul.f32.gmra.mxu2 %v3782_v30  ;;  %v3847_v34 = vld [vmem:[#allocation2 + $0x14] sm:$0xff] }
0x1785   : > { %v3890_v32 = vld [vmem:[#allocation2 + $0x12] sm:$0xff]  ;;  %3881 = vmatmul.f32.vlgmr.msrb.gmra.mxu3 %v3846_v31 }
0x1786   : > { %3925 = vmatmul.f32.vlgmr.msrb.gmra.mxu1 %v3890_v32  ;;  %v6494_v30 = vld [vmem:[%s12400_s6 + $0x830] sm:$0xff]  ;;  %v6525_v32 = vld [vmem:[%s12400_s6 + $0x928] sm:$0xff] }
0x1787   : > { %4052 = vmatpush.msra.mxu0 %v6494_v30 }
0x178c   : > { %3969 = vmatmul.f32.vlgmr.msra.gmra.mxu2 %v3934_v36 }
0x178d   : > { %3884 = vmatmul.f32.gmra.mxu3 %v3847_v34 }
0x178e   : > { %3928 = vmatmul.f32.gmra.mxu1 %v3891_v49  ;;  %v6493_v49 = vld [vmem:[%s12400_s6 + $0x828] sm:$0xff] }
0x178f   : > { %4053 = vmatpush.msra.mxu0 %v6493_v49  ;;  %v6537_v49 = vld [vmem:[%s12400_s6 + $0x988] sm:$0xff] }
0x1794   : > { %3972 = vmatmul.f32.gmra.mxu2 %v10350_v29  ;;  %v6533_v29 = vld [vmem:[%s12400_s6 + $0x968] sm:$0xff] }
0x1795   : > { %4154 = vmatpush.msrb.mxu2 %v6533_v29 }
0x1797   : > { %4155 = vmatpush.msrb.mxu2 %v6532_v33  ;;  %v6492_v33 = vld [vmem:[%s12400_s6 + $0x820] sm:$0xff] }
0x1798   : > { %4054 = vmatpush.msra.mxu0 %v6492_v33  ;;  %v11143_v33 = vld [vmem:[#allocation2 + $0x20] sm:$0xff] }
0x1799   : > { %4156 = vmatpush.msrb.mxu2 %v6531_v56  ;;  %v6522_v56 = vld [vmem:[%s12400_s6 + $0x910] sm:$0xff] }
0x179a   : > { %4055 = vmatpush.msra.mxu0 %v6491_v52  ;;  %v6582_v52 = vld [vmem:[%s12400_s6 + $0xaf0] sm:$0xff] }
0x179b   : > { %4157 = vmatpush.msrb.mxu2 %v6530_v61  ;;  %v6489_v61 = vld [vmem:[%s12400_s6 + $0x808] sm:$0xff] }
0x179c   : > { %4056 = vmatpush.msra.mxu0 %v6490_v35  ;;  %v6566_v35 = vld [vmem:[%s12400_s6 + $0xa70] sm:$0xff] }
0x179d   : > { %4158 = vmatpush.msrb.mxu2 %v6529_v3  ;;  %v6475_v3 = vld [vmem:[%s12400_s6 + $0x798] sm:$0xff] }
0x179e   : > { %4057 = vmatpush.msra.mxu0 %v6489_v61  ;;  %v6565_v61 = vld [vmem:[%s12400_s6 + $0xa68] sm:$0xff] }
0x179f   : > { %4159 = vmatpush.msrb.mxu2 %v6528_v13  ;;  %v6509_v13 = vld [vmem:[%s12400_s6 + $0x8a8] sm:$0xff] }
0x17a0   : > { %4058 = vmatpush.msra.mxu0 %v6488_v0 }
0x17a1   : > { %4160 = vmatpush.msrb.mxu2 %v6527_v46  ;;  %v6505_v46 = vld [vmem:[%s12400_s6 + $0x888] sm:$0xff] }
0x17a2   : > { %4196 = vmatpush.msrb.mxu0 %v6551_v9  ;;  %v6563_v9 = vld [vmem:[%s12400_s6 + $0xa58] sm:$0xff] }
0x17a3   : > { %4161 = vmatpush.msrb.mxu2 %v6526_v53  ;;  %v6541_v53 = vld [vmem:[%s12400_s6 + $0x9a8] sm:$0xff] }
0x17a5   : > { %4162 = vmatpush.msrb.mxu2 %v6525_v32  ;;  %v6538_v32 = vld [vmem:[%s12400_s6 + $0x990] sm:$0xff] }
0x17e2   : > { %v3843_v4 = vpop.f32.mrf.mxu0 }
0x17e7   : > { %v3817_v37 = vpop.f32.mrf.mxu2 }
0x17e8   : > { %v3841_v55 = vadd.f32 %v3840_v5, %v3817_v37  ;;  %v6524_v37 = vld [vmem:[%s12400_s6 + $0x920] sm:$0xff] }
0x17e9   : > { %4163 = vmatpush.msrb.mxu2 %v6524_v37 }
0x1803   : > { %v3926_v62 = vpop.f32.mrf.mxu1 }
0x1807   : > { %v3820_v24 = vpop.f32.mrf.mxu2 }
0x1808   : > { %v3882_v51 = vpop.f32.mrf.mxu3  ;;  %v3844_v23 = vadd.f32 %v3843_v4, %v3820_v24  ;;  %v6515_v24 = vld [vmem:[%s12400_s6 + $0x8d8] sm:$0xff]  ;;  %v6510_v4 = vld [vmem:[%s12400_s6 + $0x8b0] sm:$0xff] }
0x1809   : > { %v3888_v60 = vadd.f32 %v3882_v51, %v3841_v55  ;;  %v6523_v51 = vld [vmem:[%s12400_s6 + $0x918] sm:$0xff]  ;;  %4112 = vmatpush.msra.mxu1 %v6515_v24  ;;  %v6514_v55 = vld [vmem:[%s12400_s6 + $0x8d0] sm:$0xff] }
0x180a   : > { %4164 = vmatpush.msrb.mxu2 %v6523_v51  ;;  %v6583_v51 = vld [vmem:[%s12400_s6 + $0xaf8] sm:$0xff] }
0x180b   : > { %v3932_v6 = vadd.f32 %v3926_v62, %v3888_v60  ;;  %v3929_v28 = vpop.f32.mrf.mxu1  ;;  %v6521_v60 = vld [vmem:[%s12400_s6 + $0x908] sm:$0xff]  ;;  %4113 = vmatpush.msra.mxu1 %v6514_v55  ;;  %v6476_v62 = vld [vmem:[%s12400_s6 + $0x7a0] sm:$0xff] }
0x180c   : > { %4165 = vmatpush.msrb.mxu2 %v6522_v56  ;;  %4077 = vmatpush.msra.mxu3 %v6476_v62  ;;  %v6581_v55 = vld [vmem:[%s12400_s6 + $0xae8] sm:$0xff]  ;;  %v6567_v56 = vld [vmem:[%s12400_s6 + $0xa78] sm:$0xff] }
0x180d   : > { %4114 = vmatpush.msra.mxu1 %v6513_v59 }
0x180e   : > { %4166 = vmatpush.msrb.mxu2 %v6521_v60  ;;  %4078 = vmatpush.msra.mxu3 %v6475_v3  ;;  %v6580_v60 = vld [vmem:[%s12400_s6 + $0xae0] sm:$0xff]  ;;  %v6599_v3 = vld [vmem:[%s12400_s6 + $0xb78] sm:$0xff] }
0x180f   : > { %v3970_v18 = vpop.f32.mrf.mxu2  ;;  %4115 = vmatpush.msra.mxu1 %v6512_v63  ;;  %v6579_v63 = vld [vmem:[%s12400_s6 + $0xad8] sm:$0xff] }
0x1810   : > { %v3885_v44 = vpop.f32.mrf.mxu3  ;;  %v3976_v48 = vadd.f32 %v3970_v18, %v3932_v6  ;;  %4167 = vmatpush.msrb.mxu2 %v6520_v1  ;;  %v6550_v6 = vld [vmem:[%s12400_s6 + $0x9f0] sm:$0xff]  ;;  %4079 = vmatpush.msra.mxu3 %v6474_v12  ;;  %v6508_v18 = vld [vmem:[%s12400_s6 + $0x8a0] sm:$0xff]  ;;  %v6615_v12 = vld [vmem:[%s12400_s6 + $0xbf8] sm:$0xff] }
0x1811   : > { %v3889_v27 = vadd.f32 %v3885_v44, %v3844_v23  ;;  %4116 = vmatpush.msra.mxu1 %v6511_v7  ;;  %4197 = vmatpush.msrb.mxu0 %v6550_v6  ;;  %v6472_v44 = vld [vmem:[%s12400_s6 + $0x780] sm:$0xff]  ;;  %v6547_v23 = vld [vmem:[%s12400_s6 + $0x9d8] sm:$0xff]  ;;  %v6578_v7 = vld [vmem:[%s12400_s6 + $0xad0] sm:$0xff] }
0x1812   : > { %v3979_v38 = vadd.f32 %v7000_v58, %v3976_v48  ;;  %v6506_v48 = vld [vmem:[%s12400_s6 + $0x890] sm:$0xff]  ;;  %v6564_v1 = vld [vmem:[%s12400_s6 + $0xa60] sm:$0xff]  ;;  %4353 = vmatpush.msra.mxu2 %v6599_v3  ;;  %v11188_v6 = vld [vmem:[%s12401_s7 + $0x19] ss:$0 sm:$0xff] }
0x1813   : > { %v3933_v34 = vadd.f32 %v3929_v28, %v3889_v27  ;;  %4117 = vmatpush.msra.mxu1 %v6510_v4  ;;  %4198 = vmatpush.msrb.mxu0 %v6549_v15  ;;  %v6544_v27 = vld [vmem:[%s12400_s6 + $0x9c0] sm:$0xff] }
0x1814   : > { %v3983_v31 = vmul.f32 %v7001_v20, %v3979_v38  ;;  %v6543_v38 = vld [vmem:[%s12400_s6 + $0x9b8] sm:$0xff]  ;;  %v6540_v28 = vld [vmem:[%s12400_s6 + $0x9a0] sm:$0xff] }
0x1815   : > { %4118 = vmatpush.msra.mxu1 %v6509_v13  ;;  %4199 = vmatpush.msrb.mxu0 %v6548_v21  ;;  %v6614_v13 = vld [vmem:[%s12400_s6 + $0xbf0] sm:$0xff] }
0x1816   : > { %v3987_v36 = vadd.f32 %v7002_v14, %v3983_v31  ;;  %v6539_v31 = vld [vmem:[%s12400_s6 + $0x998] sm:$0xff]  ;;  %v6562_v21 = vld [vmem:[%s12400_s6 + $0xa50] sm:$0xff] }
0x1817   : > { %v3973_v40 = vpop.f32.mrf.mxu2  ;;  %4119 = vmatpush.msra.mxu1 %v6508_v18  ;;  %4200 = vmatpush.msrb.mxu0 %v6547_v23  ;;  %v6577_v18 = vld [vmem:[%s12400_s6 + $0xac8] sm:$0xff] }
0x1818   : > { %v3977_v42 = vadd.f32 %v3973_v40, %v3933_v34  ;;  %v3989_v43 = vmax.f32 %v3987_v36, 0.0  ;;  %v6536_v34 = vld [vmem:[%s12400_s6 + $0x980] sm:$0xff] }
0x1819   : > { %4120 = vmatpush.msra.mxu1 %v6507_v22  ;;  %v6597_v22 = vld [vmem:[%s12400_s6 + $0xb68] sm:$0xff] }
0x181a   : > { %v3980_v45 = vadd.f32 %v7000_v58, %v3977_v42  ;;  %3996 = vrot.lane.b32.xlu0 %v3989_v43, %s7100_s20  ;;  %3992 = vst.msk [vmem:[#allocation2 + $0xc] sm:$0xff] %vm485_vm1, %v3989_v43  ;;  %v6473_v58 = vld [vmem:[%s12400_s6 + $0x788] sm:$0xff] }
0x181b   : > { %4080 = vmatpush.msra.mxu3 %v6473_v58  ;;  %4121 = vmatpush.msra.mxu1 %v6506_v48  ;;  %v6598_v58 = vld [vmem:[%s12400_s6 + $0xb70] sm:$0xff]  ;;  %v6613_v48 = vld [vmem:[%s12400_s6 + $0xbe8] sm:$0xff] }
0x181c   : > { %v3984_v5 = vmul.f32 %v7001_v20, %v3980_v45  ;;  %v6546_v20 = vld [vmem:[%s12400_s6 + $0x9d0] sm:$0xff]  ;;  %4354 = vmatpush.msra.mxu2 %v6598_v58 }
0x181d   : > { %4081 = vmatpush.msra.mxu3 %v6472_v44  ;;  %4201 = vmatpush.msrb.mxu0 %v6546_v20  ;;  %v6596_v20 = vld [vmem:[%s12400_s6 + $0xb60] sm:$0xff] }
0x181e   : > { %v3988_v29 = vadd.f32 %v7002_v14, %v3984_v5  ;;  %4082 = vmatmul.f32.vlgmr.msra.gmra.mxu3 %v11001_v19  ;;  %4122 = vmatpush.msra.mxu1 %v6505_v46  ;;  %v6542_v14 = vld [vmem:[%s12400_s6 + $0x9b0] sm:$0xff] }
0x181f   : > { %4202 = vmatpush.msrb.mxu0 %v6545_v25  ;;  %4288 = vmatpush.msrb.mxu3 %v6583_v51  ;;  %v6576_v25 = vld [vmem:[%s12400_s6 + $0xac0] sm:$0xff]  ;;  %v6609_v51 = vld [vmem:[%s12400_s6 + $0xbc8] sm:$0xff] }
0x1820   : > { %v3990_v10 = vmax.f32 %v3988_v29, 0.0  ;;  %4123 = vmatpush.msra.mxu1 %v6504_v26  ;;  %v6561_v26 = vld [vmem:[%s12400_s6 + $0xa48] sm:$0xff]  ;;  %4355 = vmatpush.msra.mxu2 %v6597_v22  ;;  %v6607_v22 = vld [vmem:[%s12400_s6 + $0xbb8] sm:$0xff] }
0x1821   : > { %4203 = vmatpush.msrb.mxu0 %v6544_v27  ;;  %4289 = vmatpush.msrb.mxu3 %v6582_v52  ;;  %v6592_v52 = vld [vmem:[%s12400_s6 + $0xb40] sm:$0xff] }
0x1822   : > { %3998 = vrot.lane.b32.xlu2 %v3990_v10, %s7100_s20  ;;  %3993 = vst.msk [vmem:[#allocation2 + $0x14] sm:$0xff] %vm485_vm1, %v3990_v10  ;;  %4311 = vmatpush.msrb.mxu1 %v6567_v56  ;;  %v6572_v56 = vld [vmem:[%s12400_s6 + $0xaa0] sm:$0xff] }
0x1823   : > { %4004 = vst.msk [vmem:[#allocation2 + $0x19] sm:$0x7] %vm3273_vm6, %v11001_v19  ;;  %4204 = vmatpush.msrb.mxu0 %v6543_v38  ;;  %4290 = vmatpush.msrb.mxu3 %v6581_v55  ;;  %v6612_v38 = vld [vmem:[%s12400_s6 + $0xbe0] sm:$0xff] }
0x1824   : > { %4312 = vmatpush.msrb.mxu1 %v6566_v35  ;;  %4356 = vmatpush.msra.mxu2 %v6596_v20  ;;  %v6557_v35 = vld [vmem:[%s12400_s6 + $0xa28] sm:$0xff]  ;;  %v6606_v20 = vld [vmem:[%s12400_s6 + $0xbb0] sm:$0xff] }
0x1825   : > { %4205 = vmatpush.msrb.mxu0 %v6542_v14  ;;  %4291 = vmatpush.msrb.mxu3 %v6580_v60  ;;  %v6595_v14 = vld [vmem:[%s12400_s6 + $0xb58] sm:$0xff] }
0x1826   : > { %4313 = vmatpush.msrb.mxu1 %v6565_v61  ;;  %4357 = vmatpush.msra.mxu2 %v6595_v14  ;;  %v6571_v61 = vld [vmem:[%s12400_s6 + $0xa98] sm:$0xff]  ;;  %v6604_v14 = vld [vmem:[%s12400_s6 + $0xba0] sm:$0xff] }
0x1827   : > { %4206 = vmatpush.msrb.mxu0 %v6541_v53  ;;  %4292 = vmatpush.msrb.mxu3 %v6579_v63 }
0x1828   : > { %4314 = vmatpush.msrb.mxu1 %v6564_v1  ;;  %v6570_v1 = vld [vmem:[%s12400_s6 + $0xa90] sm:$0xff] }
0x1829   : > { %4207 = vmatpush.msrb.mxu0 %v6540_v28  ;;  %4293 = vmatpush.msrb.mxu3 %v6578_v7  ;;  %v6554_v7 = vld [vmem:[%s12400_s6 + $0xa10] sm:$0xff] }
0x182a   : > { %v4134_v37 = vld [vmem:[#allocation2 + $0x1a] sm:$0xff]  ;;  %4315 = vmatpush.msrb.mxu1 %v6563_v9 }
0x182b   : > { %4208 = vmatpush.msrb.mxu0 %v6539_v31  ;;  %4294 = vmatpush.msrb.mxu3 %v6577_v18  ;;  %v6575_v31 = vld [vmem:[%s12400_s6 + $0xab8] sm:$0xff]  ;;  %v6628_v18 = vld [vmem:[%s12400_s6 + $0xc60] sm:$0xff] }
0x182c   : > { %4316 = vmatpush.msrb.mxu1 %v6562_v21  ;;  %v6591_v21 = vld [vmem:[%s12400_s6 + $0xb38] sm:$0xff] }
0x182d   : > { %4209 = vmatpush.msrb.mxu0 %v6538_v32  ;;  %v6560_v32 = vld [vmem:[%s12400_s6 + $0xa40] sm:$0xff]  ;;  %4295 = vmatpush.msrb.mxu3 %v6576_v25  ;;  %v6589_v25 = vld [vmem:[%s12400_s6 + $0xb28] sm:$0xff] }
0x182e   : > { %4317 = vmatpush.msrb.mxu1 %v6561_v26  ;;  %v6605_v26 = vld [vmem:[%s12400_s6 + $0xba8] sm:$0xff] }
0x182f   : > { %4210 = vmatpush.msrb.mxu0 %v6537_v49  ;;  %4296 = vmatpush.msrb.mxu3 %v6575_v31  ;;  %v6623_v31 = vld [vmem:[%s12400_s6 + $0xc38] sm:$0xff] }
0x1830   : > { %4318 = vmatpush.msrb.mxu1 %v6560_v32  ;;  %v6586_v32 = vld [vmem:[%s12400_s6 + $0xb10] sm:$0xff] }
0x1831   : > { %4211 = vmatpush.msrb.mxu0 %v6536_v34  ;;  %v6611_v34 = vld [vmem:[%s12400_s6 + $0xbd8] sm:$0xff] }
0x187c   : > { %v3999_v30 = vpop.permute.xlu2 %3998 }
0x187d   : > { %4003 = vst.msk [vmem:[#allocation2 + $0x11] sm:$0xff] %vm689_vm4, %v3999_v30  ;;  %v7004_v30 = vld [vmem:[%s12401_s7 + $0x32] ss:$0 sm:$0xff] }
0x1884   : > { %v4133_v36 = vld [vmem:[#allocation2 + $0x12] sm:$0xff] }
0x1885   : > { %4168 = vmatmul.f32.vlgmr.msrb.gmra.mxu2 %v4133_v36  ;;  %v4090_v29 = vld [vmem:[#allocation2 + $0x14] sm:$0xff] }
0x1886   : > { %v4177_v10 = vld [vmem:[#allocation2 + $0x18] sm:$0xff]  ;;  %v6594_v36 = vld [vmem:[%s12400_s6 + $0xb50] sm:$0xff] }
0x1887   : > { %4358 = vmatpush.msra.mxu2 %v6594_v36  ;;  %v6585_v36 = vld [vmem:[%s12400_s6 + $0xb08] sm:$0xff] }
0x188c   : > { %v3997_v40 = vpop.permute.xlu0 %3996 }
0x188d   : > { %4002 = vst.msk [vmem:[#allocation2 + $0x9] sm:$0xff] %vm689_vm4, %v3997_v40  ;;  %4171 = vmatmul.f32.gmra.mxu2 %v4134_v37  ;;  %v7005_v40 = vld [vmem:[%s12401_s7 + $0x4a] ss:$0 sm:$0xff] }
0x1894   : > { %v4024_v42 = vld [vmem:[#allocation2 + $0x6] sm:$0xff]  ;;  %v4025_v5 = vld [vmem:[#allocation2 + $0xe] sm:$0xff] }
0x1895   : > { %v4006_v43 = vld [vmem:[#allocation2 + $0x8] sm:$0xff]  ;;  %4059 = vmatmul.f32.vlgmr.msra.gmra.mxu0 %v4024_v42  ;;  %v6574_v42 = vld [vmem:[%s12400_s6 + $0xab0] sm:$0xff] }
0x1896   : > { %v4089_v45 = vld [vmem:[#allocation2 + $0xc] sm:$0xff]  ;;  %4085 = vmatmul.f32.gmra.mxu3 %v4006_v43  ;;  %4397 = vmatpush.msra.mxu0 %v6615_v12  ;;  %v6559_v43 = vld [vmem:[%s12400_s6 + $0xa38] sm:$0xff]  ;;  %v6568_v12 = vld [vmem:[%s12400_s6 + $0xa80] sm:$0xff] }
0x1897   : > { %4124 = vmatmul.f32.vlgmr.msra.gmra.mxu1 %v4089_v45  ;;  %v6593_v45 = vld [vmem:[%s12400_s6 + $0xb48] sm:$0xff]  ;;  %4297 = vmatpush.msrb.mxu3 %v6574_v42 }
0x1898   : > { %4398 = vmatpush.msra.mxu0 %v6614_v13  ;;  %4319 = vmatpush.msrb.mxu1 %v6559_v43  ;;  %v6552_v13 = vld [vmem:[%s12400_s6 + $0xa00] sm:$0xff]  ;;  %v6621_v42 = vld [vmem:[%s12400_s6 + $0xc28] sm:$0xff] }
0x1899   : > { %4359 = vmatpush.msra.mxu2 %v6593_v45  ;;  %v6584_v43 = vld [vmem:[%s12400_s6 + $0xb00] sm:$0xff] }
0x189a   : > { %4399 = vmatpush.msra.mxu0 %v6613_v48  ;;  %v6590_v48 = vld [vmem:[%s12400_s6 + $0xb30] sm:$0xff]  ;;  %v6620_v45 = vld [vmem:[%s12400_s6 + $0xc20] sm:$0xff] }
0x189b   : > { %4360 = vmatpush.msra.mxu2 %v6592_v52 }
0x189c   : > { %4400 = vmatpush.msra.mxu0 %v6612_v38  ;;  %v6588_v38 = vld [vmem:[%s12400_s6 + $0xb20] sm:$0xff] }
0x189d   : > { %4062 = vmatmul.f32.gmra.mxu0 %v4025_v5  ;;  %4361 = vmatpush.msra.mxu2 %v6591_v21  ;;  %v6659_v21 = vld [vmem:[%s12400_s6 + $0xd58] sm:$0xff] }
0x189e   : > { %4401 = vmatpush.msra.mxu0 %v6611_v34  ;;  %v6622_v34 = vld [vmem:[%s12400_s6 + $0xc30] sm:$0xff] }
0x189f   : > { %4127 = vmatmul.f32.gmra.mxu1 %v4090_v29  ;;  %4362 = vmatpush.msra.mxu2 %v6590_v48  ;;  %v6658_v48 = vld [vmem:[%s12400_s6 + $0xd50] sm:$0xff] }
0x18a1   : > { %v4083_v24 = vpop.f32.mrf.mxu3  ;;  %4363 = vmatpush.msra.mxu2 %v6589_v25  ;;  %v7006_v25 = vld [vmem:[%s12401_s7 + $0x1a] ss:$0 sm:$0xff] }
0x18a3   : > { %4364 = vmatpush.msra.mxu2 %v6588_v38 }
0x18a5   : > { %4212 = vmatmul.f32.vlgmr.msrb.gmra.mxu0 %v4177_v10  ;;  %v6573_v10 = vld [vmem:[%s12400_s6 + $0xaa8] sm:$0xff] }
0x18a6   : > { %4298 = vmatpush.msrb.mxu3 %v6573_v10  ;;  %v6617_v10 = vld [vmem:[%s12400_s6 + $0xc08] sm:$0xff] }
0x18a8   : > { %4299 = vmatpush.msrb.mxu3 %v6572_v56 }
0x18aa   : > { %4300 = vmatpush.msrb.mxu3 %v6571_v61 }
0x18ac   : > { %4301 = vmatpush.msrb.mxu3 %v6570_v1  ;;  %v6646_v1 = vld [vmem:[%s12400_s6 + $0xcf0] sm:$0xff] }
0x18ad   : > { %4215 = vmatmul.f32.gmra.mxu0 %v11143_v33 }
0x1908   : > { %v4169_v0 = vpop.f32.mrf.mxu2 }
0x1910   : > { %v4172_v49 = vpop.f32.mrf.mxu2 }
0x1912   : > { %v4060_v50 = vpop.f32.mrf.mxu0 }
0x1913   : > { %v4084_v54 = vadd.f32 %v4083_v24, %v4060_v50  ;;  %v6558_v50 = vld [vmem:[%s12400_s6 + $0xa30] sm:$0xff] }
0x1914   : > { %v4125_v57 = vpop.f32.mrf.mxu1  ;;  %4320 = vmatpush.msrb.mxu1 %v6558_v50  ;;  %v6616_v50 = vld [vmem:[%s12400_s6 + $0xc00] sm:$0xff] }
0x1915   : > { %v4131_v62 = vadd.f32 %v4125_v57, %v4084_v54  ;;  %v6608_v57 = vld [vmem:[%s12400_s6 + $0xbc0] sm:$0xff] }
0x1916   : > { %4321 = vmatpush.msrb.mxu1 %v6557_v35 }
0x1917   : > { %v4175_v44 = vadd.f32 %v4169_v0, %v4131_v62  ;;  %v6556_v62 = vld [vmem:[%s12400_s6 + $0xa20] sm:$0xff]  ;;  %v6555_v0 = vld [vmem:[%s12400_s6 + $0xa18] sm:$0xff] }
0x1918   : > { %4322 = vmatpush.msrb.mxu1 %v6556_v62  ;;  %v6647_v62 = vld [vmem:[%s12400_s6 + $0xcf8] sm:$0xff] }
0x1919   : > { %v4086_v4 = vpop.f32.mrf.mxu3 }
0x191a   : > { %v4063_v59 = vpop.f32.mrf.mxu0  ;;  %4323 = vmatpush.msrb.mxu1 %v6555_v0 }
0x191b   : > { %v4087_v15 = vadd.f32 %v4086_v4, %v4063_v59  ;;  %v6553_v4 = vld [vmem:[%s12400_s6 + $0xa08] sm:$0xff] }
0x191c   : > { %v4128_v27 = vpop.f32.mrf.mxu1  ;;  %4324 = vmatpush.msrb.mxu1 %v6554_v7  ;;  %v6662_v7 = vld [vmem:[%s12400_s6 + $0xd70] sm:$0xff] }
0x191d   : > { %v4132_v53 = vadd.f32 %v4128_v27, %v4087_v15  ;;  %v6630_v15 = vld [vmem:[%s12400_s6 + $0xc70] sm:$0xff]  ;;  %v6625_v27 = vld [vmem:[%s12400_s6 + $0xc48] sm:$0xff] }
0x191e   : > { %4325 = vmatpush.msrb.mxu1 %v6553_v4 }
0x191f   : > { %v4176_v5 = vadd.f32 %v4172_v49, %v4132_v53  ;;  %v6624_v53 = vld [vmem:[%s12400_s6 + $0xc40] sm:$0xff]  ;;  %v6602_v49 = vld [vmem:[%s12400_s6 + $0xb90] sm:$0xff] }
0x1920   : > { %4326 = vmatpush.msrb.mxu1 %v6552_v13  ;;  %v6643_v13 = vld [vmem:[%s12400_s6 + $0xcd8] sm:$0xff] }
0x1921   : > { %4327 = vmatmul.f32.vlgmr.msrb.gmra.mxu1 %v11001_v19 }
0x1922   : > { %v4213_v23 = vpop.f32.mrf.mxu0 }
0x1923   : > { %v4219_v46 = vadd.f32 %v4213_v23, %v4175_v44  ;;  %v6629_v44 = vld [vmem:[%s12400_s6 + $0xc68] sm:$0xff]  ;;  %v6627_v23 = vld [vmem:[%s12400_s6 + $0xc58] sm:$0xff] }
0x1925   : > { %v4222_v28 = vadd.f32 %v11188_v6, %v4219_v46  ;;  %v6626_v46 = vld [vmem:[%s12400_s6 + $0xc50] sm:$0xff] }
0x1927   : > { %v11240_v37 = vadd.f32 %v4222_v28, %v10674_v2  ;;  %v6610_v2 = vld [vmem:[%s12400_s6 + $0xbd0] sm:$0xff]  ;;  %v6587_v28 = vld [vmem:[%s12400_s6 + $0xb18] sm:$0xff] }
0x1928   : > { %4402 = vmatpush.msra.mxu0 %v6610_v2  ;;  %4365 = vmatpush.msra.mxu2 %v6587_v28  ;;  %v6600_v2 = vld [vmem:[%s12400_s6 + $0xb80] sm:$0xff] }
0x1929   : > { %v4228_v29 = vmul.f32 %v7004_v30, %v11240_v37 }
0x192a   : > { %v4216_v24 = vpop.f32.mrf.mxu0  ;;  %4403 = vmatpush.msra.mxu0 %v6609_v51  ;;  %4366 = vmatpush.msra.mxu2 %v6586_v32  ;;  %v6656_v32 = vld [vmem:[%s12400_s6 + $0xd40] sm:$0xff] }
0x192b   : > { %v4220_v54 = vadd.f32 %v4216_v24, %v4176_v5  ;;  %v4232_v55 = vadd.f32 %v7005_v40, %v4228_v29  ;;  %v6619_v5 = vld [vmem:[%s12400_s6 + $0xc18] sm:$0xff]  ;;  %v6618_v29 = vld [vmem:[%s12400_s6 + $0xc10] sm:$0xff] }
0x192c   : > { %4404 = vmatpush.msra.mxu0 %v6608_v57  ;;  %4367 = vmatpush.msra.mxu2 %v6585_v36  ;;  %v7008_v36 = vld [vmem:[%s12401_s7 + $0x4b] ss:$0 sm:$0xff] }
0x192d   : > { %v4223_v59 = vadd.f32 %v11188_v6, %v4220_v54  ;;  %v4234_v60 = vmax.f32 %v4232_v55, 0.0  ;;  %v6631_v6 = vld [vmem:[%s12400_s6 + $0xc78] sm:$0xff] }
0x192e   : > { %4405 = vmatpush.msra.mxu0 %v6607_v22  ;;  %4368 = vmatpush.msra.mxu2 %v6584_v43 }
0x192f   : > { %v11287_v63 = vadd.f32 %v4223_v59, %v10705_v47  ;;  %4241 = vrot.lane.b32.xlu1 %v4234_v60, %s7100_s20  ;;  %4237 = vst.msk [vmem:[#allocation2 + $0xc] sm:$0xff] %vm485_vm1, %v4234_v60  ;;  %v6569_v47 = vld [vmem:[%s12400_s6 + $0xa88] sm:$0xff] }
0x1930   : > { %4302 = vmatpush.msrb.mxu3 %v6569_v47  ;;  %4406 = vmatpush.msra.mxu0 %v6606_v20  ;;  %v6663_v47 = vld [vmem:[%s12400_s6 + $0xd78] sm:$0xff] }
0x1931   : > { %v4229_v3 = vmul.f32 %v7004_v30, %v11287_v63  ;;  %v6603_v30 = vld [vmem:[%s12400_s6 + $0xb98] sm:$0xff]  ;;  %4554 = vmatpush.msrb.mxu2 %v6647_v62  ;;  %4531 = vmatpush.msra.mxu1 %v6663_v47  ;;  %v6632_v62 = vld [vmem:[%s12400_s6 + $0xc80] sm:$0xff]  ;;  %v6649_v47 = vld [vmem:[%s12400_s6 + $0xd08] sm:$0xff] }
0x1932   : > { %4303 = vmatpush.msrb.mxu3 %v6568_v12  ;;  %4407 = vmatpush.msra.mxu0 %v6605_v26  ;;  %v6661_v12 = vld [vmem:[%s12400_s6 + $0xd68] sm:$0xff]  ;;  %v6640_v26 = vld [vmem:[%s12400_s6 + $0xcc0] sm:$0xff] }
0x1933   : > { %v4233_v9 = vadd.f32 %v7005_v40, %v4229_v3  ;;  %v6601_v40 = vld [vmem:[%s12400_s6 + $0xb88] sm:$0xff]  ;;  %4555 = vmatpush.msrb.mxu2 %v6646_v1  ;;  %4532 = vmatpush.msra.mxu1 %v6662_v7  ;;  %v6648_v7 = vld [vmem:[%s12400_s6 + $0xd00] sm:$0xff] }
0x1934   : > { %4441 = vmatpush.msra.mxu3 %v6631_v6  ;;  %4408 = vmatpush.msra.mxu0 %v6604_v14  ;;  %v6645_v3 = vld [vmem:[%s12400_s6 + $0xce8] sm:$0xff] }
0x1935   : > { %v4235_v58 = vmax.f32 %v4233_v9, 0.0  ;;  %v6644_v9 = vld [vmem:[%s12400_s6 + $0xce0] sm:$0xff]  ;;  %4556 = vmatpush.msrb.mxu2 %v6645_v3  ;;  %4533 = vmatpush.msra.mxu1 %v6661_v12  ;;  %v6650_v3 = vld [vmem:[%s12400_s6 + $0xd10] sm:$0xff] }
0x1936   : > { %4442 = vmatpush.msra.mxu3 %v6630_v15  ;;  %4409 = vmatpush.msra.mxu0 %v6603_v30  ;;  %v6660_v15 = vld [vmem:[%s12400_s6 + $0xd60] sm:$0xff]  ;;  %v7007_v30 = vld [vmem:[%s12401_s7 + $0x33] ss:$0 sm:$0xff] }
0x1937   : > { %4243 = vrot.lane.b32.xlu0 %v4235_v58, %s7100_s20  ;;  %4238 = vst.msk [vmem:[#allocation2 + $0x14] sm:$0xff] %vm485_vm1, %v4235_v58  ;;  %4557 = vmatpush.msrb.mxu2 %v6644_v9  ;;  %v6695_v9 = vld [vmem:[%s12400_s6 + $0xe78] sm:$0xff]  ;;  %v6678_v12 = vld [vmem:[%s12400_s6 + $0xdf0] sm:$0xff] }
0x1938   : > { %4249 = vst.msk [vmem:[#allocation2 + $0x19] sm:$0x7] %vm3273_vm6, %v11001_v19  ;;  %4443 = vmatpush.msra.mxu3 %v6629_v44  ;;  %4410 = vmatpush.msra.mxu0 %v6602_v49 }
0x1939   : > { %4558 = vmatpush.msrb.mxu2 %v6643_v13  ;;  %4534 = vmatpush.msra.mxu1 %v6660_v15  ;;  %v6711_v13 = vld [vmem:[%s12400_s6 + $0xef8] sm:$0xff]  ;;  %v6676_v15 = vld [vmem:[%s12400_s6 + $0xde0] sm:$0xff] }
0x193a   : > { %4444 = vmatpush.msra.mxu3 %v6628_v18  ;;  %4411 = vmatpush.msra.mxu0 %v6601_v40  ;;  %v6642_v18 = vld [vmem:[%s12400_s6 + $0xcd0] sm:$0xff] }
0x193b   : > { %4559 = vmatpush.msrb.mxu2 %v6642_v18  ;;  %4535 = vmatpush.msra.mxu1 %v6659_v21  ;;  %v6638_v40 = vld [vmem:[%s12400_s6 + $0xcb0] sm:$0xff]  ;;  %v6709_v21 = vld [vmem:[%s12400_s6 + $0xee8] sm:$0xff] }
0x193c   : > { %4445 = vmatpush.msra.mxu3 %v6627_v23  ;;  %4412 = vmatpush.msra.mxu0 %v6600_v2  ;;  %v6641_v23 = vld [vmem:[%s12400_s6 + $0xcc8] sm:$0xff]  ;;  %v6710_v18 = vld [vmem:[%s12400_s6 + $0xef0] sm:$0xff] }
0x193d   : > { %4560 = vmatpush.msrb.mxu2 %v6641_v23  ;;  %4536 = vmatpush.msra.mxu1 %v6658_v48  ;;  %v6691_v23 = vld [vmem:[%s12400_s6 + $0xe58] sm:$0xff]  ;;  %v6708_v48 = vld [vmem:[%s12400_s6 + $0xee0] sm:$0xff] }
0x193e   : > { %4446 = vmatpush.msra.mxu3 %v6626_v46 }
0x193f   : > { %v4379_v57 = vld [vmem:[#allocation2 + $0x1a] sm:$0xff]  ;;  %4561 = vmatpush.msrb.mxu2 %v6640_v26  ;;  %v6673_v26 = vld [vmem:[%s12400_s6 + $0xdc8] sm:$0xff] }
0x1940   : > { %4447 = vmatpush.msra.mxu3 %v6625_v27  ;;  %v6657_v27 = vld [vmem:[%s12400_s6 + $0xd48] sm:$0xff] }
0x1941   : > { %4537 = vmatpush.msra.mxu1 %v6657_v27  ;;  %v6689_v27 = vld [vmem:[%s12400_s6 + $0xe48] sm:$0xff] }
0x1942   : > { %4448 = vmatpush.msra.mxu3 %v6624_v53 }
0x1943   : > { %4538 = vmatpush.msra.mxu1 %v6656_v32  ;;  %v6704_v32 = vld [vmem:[%s12400_s6 + $0xec0] sm:$0xff] }
0x1944   : > { %4449 = vmatpush.msra.mxu3 %v6623_v31  ;;  %v6639_v31 = vld [vmem:[%s12400_s6 + $0xcb8] sm:$0xff] }
0x1945   : > { %4562 = vmatpush.msrb.mxu2 %v6639_v31  ;;  %v6687_v31 = vld [vmem:[%s12400_s6 + $0xe38] sm:$0xff] }
0x1946   : > { %4450 = vmatpush.msra.mxu3 %v6622_v34 }
0x1947   : > { %4563 = vmatpush.msrb.mxu2 %v6638_v40  ;;  %v6685_v40 = vld [vmem:[%s12400_s6 + $0xe28] sm:$0xff] }
0x1948   : > { %4451 = vmatpush.msra.mxu3 %v6621_v42  ;;  %v6655_v42 = vld [vmem:[%s12400_s6 + $0xd38] sm:$0xff] }
0x1949   : > { %4539 = vmatpush.msra.mxu1 %v6655_v42  ;;  %v6668_v42 = vld [vmem:[%s12400_s6 + $0xda0] sm:$0xff] }
0x194a   : > { %4452 = vmatpush.msra.mxu3 %v6620_v45  ;;  %v6637_v45 = vld [vmem:[%s12400_s6 + $0xca8] sm:$0xff] }
0x194b   : > { %4564 = vmatpush.msrb.mxu2 %v6637_v45  ;;  %v6667_v45 = vld [vmem:[%s12400_s6 + $0xd98] sm:$0xff] }
0x194c   : > { %4453 = vmatpush.msra.mxu3 %v6619_v5  ;;  %v6654_v5 = vld [vmem:[%s12400_s6 + $0xd30] sm:$0xff] }
0x194d   : > { %4540 = vmatpush.msra.mxu1 %v6654_v5  ;;  %v6683_v5 = vld [vmem:[%s12400_s6 + $0xe18] sm:$0xff] }
0x194e   : > { %4454 = vmatpush.msra.mxu3 %v6618_v29 }
0x1950   : > { %4455 = vmatpush.msra.mxu3 %v6617_v10 }
0x1952   : > { %4456 = vmatpush.msra.mxu3 %v6616_v50  ;;  %v6636_v50 = vld [vmem:[%s12400_s6 + $0xca0] sm:$0xff] }
0x1953   : > { %4565 = vmatpush.msrb.mxu2 %v6636_v50  ;;  %v6682_v50 = vld [vmem:[%s12400_s6 + $0xe10] sm:$0xff] }
0x199e   : > { %v4328_v0 = vpop.f32.mrf.mxu1 }
0x19a1   : > { %v4242_v24 = vpop.permute.xlu1 %4241 }
0x19a2   : > { %4247 = vst.msk [vmem:[#allocation2 + $0x9] sm:$0xff] %vm689_vm4, %v4242_v24  ;;  %v6653_v24 = vld [vmem:[%s12400_s6 + $0xd28] sm:$0xff] }
0x19a3   : > { %4541 = vmatpush.msra.mxu1 %v6653_v24  ;;  %v6702_v24 = vld [vmem:[%s12400_s6 + $0xeb0] sm:$0xff] }
0x19a9   : > { %v4244_v51 = vpop.permute.xlu0 %4243  ;;  %v4269_v52 = vld [vmem:[#allocation2 + $0x6] sm:$0xff] }
0x19aa   : > { %v4251_v54 = vld [vmem:[#allocation2 + $0x8] sm:$0xff]  ;;  %4248 = vst.msk [vmem:[#allocation2 + $0x11] sm:$0xff] %vm689_vm4, %v4244_v51  ;;  %4304 = vmatmul.f32.vlgmr.msrb.gmra.mxu3 %v4269_v52 }
0x19ab   : > { %4330 = vmatmul.f32.gmra.mxu1 %v4251_v54  ;;  %4640 = vmatpush.msrb.mxu3 %v6695_v9 }
0x19b1   : > { %v4270_v55 = vld [vmem:[#allocation2 + $0xe] sm:$0xff]  ;;  %v4422_v60 = vld [vmem:[#allocation2 + $0x18] sm:$0xff] }
0x19b2   : > { %v4334_v56 = vld [vmem:[#allocation2 + $0xc] sm:$0xff]  ;;  %4307 = vmatmul.f32.gmra.mxu3 %v4270_v55  ;;  %v4335_v59 = vld [vmem:[#allocation2 + $0x14] sm:$0xff] }
0x19b3   : > { %v4378_v35 = vld [vmem:[#allocation2 + $0x12] sm:$0xff]  ;;  %4369 = vmatmul.f32.vlgmr.msra.gmra.mxu2 %v4334_v56  ;;  %v6652_v56 = vld [vmem:[%s12400_s6 + $0xd20] sm:$0xff] }
0x19b4   : > { %4413 = vmatmul.f32.vlgmr.msra.gmra.mxu0 %v4378_v35  ;;  %v6635_v55 = vld [vmem:[%s12400_s6 + $0xc98] sm:$0xff]  ;;  %4542 = vmatpush.msra.mxu1 %v6652_v56  ;;  %v6680_v56 = vld [vmem:[%s12400_s6 + $0xe00] sm:$0xff] }
0x19b5   : > { %4566 = vmatpush.msrb.mxu2 %v6635_v55  ;;  %v6664_v55 = vld [vmem:[%s12400_s6 + $0xd80] sm:$0xff] }
0x19ba   : > { %4457 = vmatmul.f32.vlgmr.msra.gmra.mxu3 %v4422_v60  ;;  %v6633_v60 = vld [vmem:[%s12400_s6 + $0xc88] sm:$0xff] }
0x19bb   : > { %4372 = vmatmul.f32.gmra.mxu2 %v4335_v59 }
0x19bc   : > { %4416 = vmatmul.f32.gmra.mxu0 %v4379_v57  ;;  %v6634_v57 = vld [vmem:[%s12400_s6 + $0xc90] sm:$0xff] }
0x19bd   : > { %4567 = vmatpush.msrb.mxu2 %v6634_v57 }
0x19bf   : > { %4568 = vmatpush.msrb.mxu2 %v6633_v60  ;;  %v6699_v60 = vld [vmem:[%s12400_s6 + $0xe98] sm:$0xff] }
0x19c1   : > { %4569 = vmatpush.msrb.mxu2 %v6632_v62  ;;  %v6697_v62 = vld [vmem:[%s12400_s6 + $0xe88] sm:$0xff] }
0x19c2   : > { %4460 = vmatmul.f32.gmra.mxu3 %v11143_v33 }
0x19c3   : > { %4570 = vmatmul.f32.vlgmr.msrb.gmra.mxu2 %v11001_v19 }
0x1a28   : > { %v4331_v20 = vpop.f32.mrf.mxu1 }
0x1a2d   : > { %v4305_v61 = vpop.f32.mrf.mxu3 }
0x1a2e   : > { %v4329_v58 = vadd.f32 %v4328_v0, %v4305_v61  ;;  %v6651_v0 = vld [vmem:[%s12400_s6 + $0xd18] sm:$0xff] }
0x1a2f   : > { %4543 = vmatpush.msra.mxu1 %v6651_v0 }
0x1a31   : > { %v4414_v22 = vpop.f32.mrf.mxu0  ;;  %4544 = vmatpush.msra.mxu1 %v6650_v3 }
0x1a33   : > { %4545 = vmatpush.msra.mxu1 %v6649_v47 }
0x1a35   : > { %v4308_v4 = vpop.f32.mrf.mxu3  ;;  %4546 = vmatpush.msra.mxu1 %v6648_v7 }
0x1a36   : > { %v4370_v6 = vpop.f32.mrf.mxu2  ;;  %v4332_v53 = vadd.f32 %v4331_v20, %v4308_v4  ;;  %v6694_v4 = vld [vmem:[%s12400_s6 + $0xe70] sm:$0xff] }
0x1a37   : > { %v4376_v44 = vadd.f32 %v4370_v6, %v4329_v58  ;;  %v6677_v6 = vld [vmem:[%s12400_s6 + $0xde8] sm:$0xff]  ;;  %4641 = vmatpush.msrb.mxu3 %v6694_v4  ;;  %4684 = vmatpush.msrb.mxu1 %v6711_v13  ;;  %v6674_v20 = vld [vmem:[%s12400_s6 + $0xdd0] sm:$0xff] }
0x1a38   : > { %v6693_v58 = vld [vmem:[%s12400_s6 + $0xe68] sm:$0xff]  ;;  %v6774_v13 = vld [vmem:[%s12400_s6 + $0x10f0] sm:$0xff] }
0x1a39   : > { %v4420_v46 = vadd.f32 %v4414_v22, %v4376_v44  ;;  %v4417_v43 = vpop.f32.mrf.mxu0  ;;  %v6692_v44 = vld [vmem:[%s12400_s6 + $0xe60] sm:$0xff]  ;;  %4642 = vmatpush.msrb.mxu3 %v6693_v58  ;;  %v6675_v22 = vld [vmem:[%s12400_s6 + $0xdd8] sm:$0xff]  ;;  %4685 = vmatpush.msrb.mxu1 %v6710_v18 }
0x1a3a   : > { %v6743_v58 = vld [vmem:[%s12400_s6 + $0xff8] sm:$0xff] }
0x1a3b   : > { %4643 = vmatpush.msrb.mxu3 %v6692_v44  ;;  %4686 = vmatpush.msrb.mxu1 %v6709_v21 }
0x1a3c   : > { %4776 = vmatpush.msra.mxu2 %v6743_v58  ;;  %v6764_v58 = vld [vmem:[%s12400_s6 + $0x10a0] sm:$0xff] }
0x1a3d   : > { %v4458_v14 = vpop.f32.mrf.mxu3  ;;  %4644 = vmatpush.msrb.mxu3 %v6691_v23  ;;  %4687 = vmatpush.msrb.mxu1 %v6708_v48  ;;  %v6727_v23 = vld [vmem:[%s12400_s6 + $0xf78] sm:$0xff]  ;;  %v6772_v48 = vld [vmem:[%s12400_s6 + $0x10e0] sm:$0xff] }
0x1a3e   : > { %v4373_v38 = vpop.f32.mrf.mxu2  ;;  %v4464_v28 = vadd.f32 %v4458_v14, %v4420_v46  ;;  %v6690_v46 = vld [vmem:[%s12400_s6 + $0xe50] sm:$0xff]  ;;  %v6672_v14 = vld [vmem:[%s12400_s6 + $0xdc0] sm:$0xff] }
0x1a3f   : > { %v4377_v49 = vadd.f32 %v4373_v38, %v4332_v53  ;;  %4645 = vmatpush.msrb.mxu3 %v6690_v46  ;;  %v6706_v38 = vld [vmem:[%s12400_s6 + $0xed0] sm:$0xff]  ;;  %v6688_v53 = vld [vmem:[%s12400_s6 + $0xe40] sm:$0xff] }
0x1a40   : > { %v4467_v34 = vadd.f32 %v7006_v25, %v4464_v28  ;;  %v6705_v28 = vld [vmem:[%s12400_s6 + $0xec8] sm:$0xff]  ;;  %v6740_v46 = vld [vmem:[%s12400_s6 + $0xfe0] sm:$0xff] }
0x1a41   : > { %v4421_v29 = vadd.f32 %v4417_v43, %v4377_v49  ;;  %4646 = vmatpush.msrb.mxu3 %v6689_v27  ;;  %v6670_v49 = vld [vmem:[%s12400_s6 + $0xdb0] sm:$0xff]  ;;  %v6684_v43 = vld [vmem:[%s12400_s6 + $0xe20] sm:$0xff]  ;;  %v6771_v27 = vld [vmem:[%s12400_s6 + $0x10d8] sm:$0xff] }
0x1a42   : > { %v4471_v2 = vmul.f32 %v7007_v30, %v4467_v34  ;;  %v6686_v34 = vld [vmem:[%s12400_s6 + $0xe30] sm:$0xff] }
0x1a43   : > { %4647 = vmatpush.msrb.mxu3 %v6688_v53  ;;  %v6759_v53 = vld [vmem:[%s12400_s6 + $0x1078] sm:$0xff] }
0x1a44   : > { %v4475_v10 = vadd.f32 %v7008_v36, %v4471_v2 }
0x1a45   : > { %v4461_v51 = vpop.f32.mrf.mxu3  ;;  %4648 = vmatpush.msrb.mxu3 %v6687_v31 }
0x1a46   : > { %v4465_v52 = vadd.f32 %v4461_v51, %v4421_v29  ;;  %v4477_v54 = vmax.f32 %v4475_v10, 0.0  ;;  %v6703_v29 = vld [vmem:[%s12400_s6 + $0xeb8] sm:$0xff]  ;;  %v6666_v10 = vld [vmem:[%s12400_s6 + $0xd90] sm:$0xff]  ;;  %v6665_v51 = vld [vmem:[%s12400_s6 + $0xd88] sm:$0xff]  ;;  %v4571_v18 = vpop.f32.mrf.mxu2 }
0x1a47   : > { %4649 = vmatpush.msrb.mxu3 %v6686_v34  ;;  %v6758_v34 = vld [vmem:[%s12400_s6 + $0x1070] sm:$0xff] }
0x1a48   : > { %v4468_v35 = vadd.f32 %v7006_v25, %v4465_v52  ;;  %4484 = vrot.lane.b32.xlu2 %v4477_v54, %s7100_s20  ;;  %4480 = vst.msk [vmem:[#allocation2 + $0xc] sm:$0xff] %vm485_vm1, %v4477_v54  ;;  %v6707_v25 = vld [vmem:[%s12400_s6 + $0xed8] sm:$0xff]  ;;  %v6681_v52 = vld [vmem:[%s12400_s6 + $0xe08] sm:$0xff] }
0x1a49   : > { %4688 = vmatpush.msrb.mxu1 %v6707_v25  ;;  %4650 = vmatpush.msrb.mxu3 %v6685_v40  ;;  %v6701_v54 = vld [vmem:[%s12400_s6 + $0xea8] sm:$0xff] }
0x1a4a   : > { %v4472_v59 = vmul.f32 %v7007_v30, %v4468_v35  ;;  %v6671_v30 = vld [vmem:[%s12400_s6 + $0xdb8] sm:$0xff]  ;;  %v6700_v35 = vld [vmem:[%s12400_s6 + $0xea0] sm:$0xff]  ;;  %v6725_v25 = vld [vmem:[%s12400_s6 + $0xf68] sm:$0xff] }
0x1a4b   : > { %4689 = vmatpush.msrb.mxu1 %v6706_v38  ;;  %4651 = vmatpush.msrb.mxu3 %v6684_v43  ;;  %v6739_v38 = vld [vmem:[%s12400_s6 + $0xfd8] sm:$0xff]  ;;  %v6769_v43 = vld [vmem:[%s12400_s6 + $0x10c8] sm:$0xff] }
0x1a4c   : > { %v4476_v61 = vadd.f32 %v7008_v36, %v4472_v59  ;;  %v6669_v36 = vld [vmem:[%s12400_s6 + $0xda8] sm:$0xff] }
0x1a4d   : > { %4690 = vmatpush.msrb.mxu1 %v6705_v28  ;;  %4652 = vmatpush.msrb.mxu3 %v6683_v5  ;;  %v6722_v5 = vld [vmem:[%s12400_s6 + $0xf50] sm:$0xff] }
0x1a4e   : > { %v4478_v1 = vmax.f32 %v4476_v61, 0.0  ;;  %v6698_v61 = vld [vmem:[%s12400_s6 + $0xe90] sm:$0xff] }
0x1a4f   : > { %4691 = vmatpush.msrb.mxu1 %v6704_v32  ;;  %4653 = vmatpush.msrb.mxu3 %v6682_v50  ;;  %v6738_v32 = vld [vmem:[%s12400_s6 + $0xfd0] sm:$0xff]  ;;  %v6756_v50 = vld [vmem:[%s12400_s6 + $0x1060] sm:$0xff] }
0x1a50   : > { %4486 = vrot.lane.b32.xlu1 %v4478_v1, %s7100_s20  ;;  %4481 = vst.msk [vmem:[#allocation2 + $0x14] sm:$0xff] %vm485_vm1, %v4478_v1  ;;  %v6696_v1 = vld [vmem:[%s12400_s6 + $0xe80] sm:$0xff] }
0x1a51   : > { %4492 = vst.msk [vmem:[#allocation2 + $0x19] sm:$0x7] %vm3273_vm6, %v11001_v19  ;;  %v6679_v19 = vld [vmem:[%s12400_s6 + $0xdf8] sm:$0xff]  ;;  %4692 = vmatpush.msrb.mxu1 %v6703_v29  ;;  %4654 = vmatpush.msrb.mxu3 %v6681_v52  ;;  %v6736_v52 = vld [vmem:[%s12400_s6 + $0xfc0] sm:$0xff] }
0x1a52   : > { %4596 = vmatpush.msrb.mxu0 %v6679_v19 }
0x1a53   : > { %4693 = vmatpush.msrb.mxu1 %v6702_v24  ;;  %4655 = vmatpush.msrb.mxu3 %v6680_v56 }
0x1a54   : > { %4597 = vmatpush.msrb.mxu0 %v6678_v12 }
0x1a55   : > { %4694 = vmatpush.msrb.mxu1 %v6701_v54  ;;  %4841 = vmatpush.msra.mxu3 %v6759_v53  ;;  %v6721_v54 = vld [vmem:[%s12400_s6 + $0xf48] sm:$0xff] }
0x1a56   : > { %4598 = vmatpush.msrb.mxu0 %v6677_v6  ;;  %v6775_v6 = vld [vmem:[%s12400_s6 + $0x10f8] sm:$0xff]  ;;  %v6753_v53 = vld [vmem:[%s12400_s6 + $0x1048] sm:$0xff] }
0x1a57   : > { %4695 = vmatpush.msrb.mxu1 %v6700_v35  ;;  %4842 = vmatpush.msra.mxu3 %v6758_v34  ;;  %v7010_v35 = vld [vmem:[%s12401_s7 + $0x34] ss:$0 sm:$0xff]  ;;  %v6728_v34 = vld [vmem:[%s12400_s6 + $0xf80] sm:$0xff] }
0x1a58   : > { %4599 = vmatpush.msrb.mxu0 %v6676_v15  ;;  %v4622_v19 = vld [vmem:[#allocation2 + $0x1a] sm:$0xff]  ;;  %v6742_v15 = vld [vmem:[%s12400_s6 + $0xff0] sm:$0xff] }
0x1a59   : > { %4696 = vmatpush.msrb.mxu1 %v6699_v60  ;;  %4777 = vmatpush.msra.mxu2 %v6742_v15  ;;  %v6720_v60 = vld [vmem:[%s12400_s6 + $0xf40] sm:$0xff] }
0x1a5a   : > { %4600 = vmatpush.msrb.mxu0 %v6675_v22  ;;  %v6741_v22 = vld [vmem:[%s12400_s6 + $0xfe8] sm:$0xff] }
0x1a5b   : > { %4697 = vmatpush.msrb.mxu1 %v6698_v61  ;;  %4778 = vmatpush.msra.mxu2 %v6741_v22  ;;  %v11802_v22 = vld [vmem:[#allocation2 + $0x1c] sm:$0xff] }
0x1a5c   : > { %4601 = vmatpush.msrb.mxu0 %v6674_v20  ;;  %v6726_v20 = vld [vmem:[%s12400_s6 + $0xf70] sm:$0xff] }
0x1a5d   : > { %4698 = vmatpush.msrb.mxu1 %v6697_v62  ;;  %4779 = vmatpush.msra.mxu2 %v6740_v46  ;;  %v6731_v46 = vld [vmem:[%s12400_s6 + $0xf98] sm:$0xff] }
0x1a5e   : > { %4602 = vmatpush.msrb.mxu0 %v6673_v26 }
0x1a5f   : > { %4699 = vmatpush.msrb.mxu1 %v6696_v1  ;;  %4780 = vmatpush.msra.mxu2 %v6739_v38  ;;  %v7011_v1 = vld [vmem:[%s12401_s7 + $0x4c] ss:$0 sm:$0xff]  ;;  %v6730_v38 = vld [vmem:[%s12400_s6 + $0xf90] sm:$0xff] }
0x1a60   : > { %4603 = vmatpush.msrb.mxu0 %v6672_v14  ;;  %v6724_v14 = vld [vmem:[%s12400_s6 + $0xf60] sm:$0xff] }
0x1a61   : > { %4781 = vmatpush.msra.mxu2 %v6738_v32  ;;  %v6752_v32 = vld [vmem:[%s12400_s6 + $0x1040] sm:$0xff] }
0x1a62   : > { %4604 = vmatpush.msrb.mxu0 %v6671_v30  ;;  %v6770_v30 = vld [vmem:[%s12400_s6 + $0x10d0] sm:$0xff] }
0x1a64   : > { %4605 = vmatpush.msrb.mxu0 %v6670_v49  ;;  %v6723_v49 = vld [vmem:[%s12400_s6 + $0xf58] sm:$0xff] }
0x1a66   : > { %4606 = vmatpush.msrb.mxu0 %v6669_v36 }
0x1a68   : > { %4607 = vmatpush.msrb.mxu0 %v6668_v42  ;;  %v7009_v42 = vld [vmem:[%s12401_s7 + $0x1b] ss:$0 sm:$0xff] }
0x1a6a   : > { %4608 = vmatpush.msrb.mxu0 %v6667_v45  ;;  %v6737_v45 = vld [vmem:[%s12400_s6 + $0xfc8] sm:$0xff] }
0x1a6b   : > { %4782 = vmatpush.msra.mxu2 %v6737_v45  ;;  %v6790_v45 = vld [vmem:[%s12400_s6 + $0x1170] sm:$0xff] }
0x1a6c   : > { %4609 = vmatpush.msrb.mxu0 %v6666_v10  ;;  %v6768_v10 = vld [vmem:[%s12400_s6 + $0x10c0] sm:$0xff] }
0x1a6d   : > { %4783 = vmatpush.msra.mxu2 %v6736_v52  ;;  %v6747_v52 = vld [vmem:[%s12400_s6 + $0x1018] sm:$0xff] }
0x1a6e   : > { %4610 = vmatpush.msrb.mxu0 %v6665_v51 }
0x1a70   : > { %4611 = vmatpush.msrb.mxu0 %v6664_v55 }
0x1a72   : > { %4799 = vmatpush.msra.mxu0 %v6727_v23  ;;  %v6719_v23 = vld [vmem:[%s12400_s6 + $0xf38] sm:$0xff] }
0x1a74   : > { %4800 = vmatpush.msra.mxu0 %v6726_v20  ;;  %v6763_v20 = vld [vmem:[%s12400_s6 + $0x1098] sm:$0xff] }
0x1a76   : > { %4801 = vmatpush.msra.mxu0 %v6725_v25  ;;  %v6718_v25 = vld [vmem:[%s12400_s6 + $0xf30] sm:$0xff] }
0x1a78   : > { %4802 = vmatpush.msra.mxu0 %v6724_v14  ;;  %v6717_v14 = vld [vmem:[%s12400_s6 + $0xf28] sm:$0xff] }
0x1a7a   : > { %4803 = vmatpush.msra.mxu0 %v6723_v49  ;;  %v6760_v49 = vld [vmem:[%s12400_s6 + $0x1080] sm:$0xff] }
0x1a7c   : > { %4804 = vmatpush.msra.mxu0 %v6722_v5  ;;  %v6713_v5 = vld [vmem:[%s12400_s6 + $0xf08] sm:$0xff] }
0x1a7e   : > { %4805 = vmatpush.msra.mxu0 %v6721_v54  ;;  %v6787_v54 = vld [vmem:[%s12400_s6 + $0x1158] sm:$0xff] }
0x1a80   : > { %4806 = vmatpush.msra.mxu0 %v6720_v60  ;;  %v6784_v60 = vld [vmem:[%s12400_s6 + $0x1140] sm:$0xff] }
0x1a82   : > { %4807 = vmatpush.msra.mxu0 %v6719_v23 }
0x1a84   : > { %4808 = vmatpush.msra.mxu0 %v6718_v25  ;;  %v6821_v25 = vld [vmem:[%s12400_s6 + $0x1268] sm:$0xff] }
0x1a86   : > { %4809 = vmatpush.msra.mxu0 %v6717_v14  ;;  %v6820_v14 = vld [vmem:[%s12400_s6 + $0x1260] sm:$0xff] }
0x1aa2   : > { %v4485_v2 = vpop.permute.xlu2 %4484 }
0x1aa3   : > { %4490 = vst.msk [vmem:[#allocation2 + $0x9] sm:$0xff] %vm689_vm4, %v4485_v2  ;;  %v6757_v2 = vld [vmem:[%s12400_s6 + $0x1068] sm:$0xff] }
0x1aa4   : > { %4843 = vmatpush.msra.mxu3 %v6757_v2  ;;  %v6750_v2 = vld [vmem:[%s12400_s6 + $0x1030] sm:$0xff] }
0x1aa6   : > { %4844 = vmatpush.msra.mxu3 %v6756_v50  ;;  %v6712_v50 = vld [vmem:[%s12400_s6 + $0xf00] sm:$0xff] }
0x1aaa   : > { %v4512_v57 = vld [vmem:[#allocation2 + $0x6] sm:$0xff] }
0x1aab   : > { %v4494_v59 = vld [vmem:[#allocation2 + $0x8] sm:$0xff]  ;;  %4547 = vmatmul.f32.vlgmr.msra.gmra.mxu1 %v4512_v57  ;;  %v6767_v57 = vld [vmem:[%s12400_s6 + $0x10b8] sm:$0xff] }
0x1aac   : > { %4573 = vmatmul.f32.gmra.mxu2 %v4494_v59  ;;  %4885 = vmatpush.msra.mxu1 %v6775_v6  ;;  %v6735_v59 = vld [vmem:[%s12400_s6 + $0xfb8] sm:$0xff] }
0x1aad   : > { %4784 = vmatpush.msra.mxu2 %v6735_v59  ;;  %v6744_v59 = vld [vmem:[%s12400_s6 + $0x1000] sm:$0xff] }
0x1aae   : > { %4886 = vmatpush.msra.mxu1 %v6774_v13 }
0x1ac2   : > { %v4487_v0 = vpop.permute.xlu1 %4486 }
0x1ac3   : > { %4491 = vst.msk [vmem:[#allocation2 + $0x11] sm:$0xff] %vm689_vm4, %v4487_v0  ;;  %v6766_v0 = vld [vmem:[%s12400_s6 + $0x10b0] sm:$0xff] }
0x1aca   : > { %v4513_v3 = vld [vmem:[#allocation2 + $0xe] sm:$0xff]  ;;  %v4665_v12 = vld [vmem:[#allocation2 + $0x18] sm:$0xff] }
0x1acb   : > { %v4577_v47 = vld [vmem:[#allocation2 + $0xc] sm:$0xff]  ;;  %4550 = vmatmul.f32.gmra.mxu1 %v4513_v3  ;;  %v4578_v9 = vld [vmem:[#allocation2 + $0x14] sm:$0xff] }
0x1acc   : > { %v4621_v7 = vld [vmem:[#allocation2 + $0x12] sm:$0xff]  ;;  %4612 = vmatmul.f32.vlgmr.msrb.gmra.mxu0 %v4577_v47 }
0x1acd   : > { %4656 = vmatmul.f32.vlgmr.msrb.gmra.mxu3 %v4621_v7  ;;  %v6734_v47 = vld [vmem:[%s12400_s6 + $0xfb0] sm:$0xff] }
0x1ace   : > { %4785 = vmatpush.msra.mxu2 %v6734_v47 }
0x1ad3   : > { %4700 = vmatmul.f32.vlgmr.msrb.gmra.mxu1 %v4665_v12  ;;  %v6733_v12 = vld [vmem:[%s12400_s6 + $0xfa8] sm:$0xff] }
0x1ad4   : > { %4615 = vmatmul.f32.gmra.mxu0 %v4578_v9  ;;  %v6765_v9 = vld [vmem:[%s12400_s6 + $0x10a8] sm:$0xff]  ;;  %4786 = vmatpush.msra.mxu2 %v6733_v12 }
0x1ad5   : > { %4659 = vmatmul.f32.gmra.mxu3 %v4622_v19 }
0x1adb   : > { %4703 = vmatmul.f32.gmra.mxu1 %v11143_v33  ;;  %v6773_v33 = vld [vmem:[%s12400_s6 + $0x10e8] sm:$0xff] }
0x1adc   : > { %4887 = vmatpush.msra.mxu1 %v6773_v33 }
0x1ade   : > { %4888 = vmatpush.msra.mxu1 %v6772_v48  ;;  %v6755_v48 = vld [vmem:[%s12400_s6 + $0x1058] sm:$0xff] }
0x1adf   : > { %4845 = vmatpush.msra.mxu3 %v6755_v48  ;;  %v6823_v48 = vld [vmem:[%s12400_s6 + $0x1278] sm:$0xff] }
0x1ae0   : > { %4889 = vmatpush.msra.mxu1 %v6771_v27  ;;  %v6762_v27 = vld [vmem:[%s12400_s6 + $0x1090] sm:$0xff] }
0x1ae2   : > { %4890 = vmatpush.msra.mxu1 %v6770_v30  ;;  %v6729_v30 = vld [vmem:[%s12400_s6 + $0xf88] sm:$0xff] }
0x1ae4   : > { %4891 = vmatpush.msra.mxu1 %v6769_v43  ;;  %v6714_v43 = vld [vmem:[%s12400_s6 + $0xf10] sm:$0xff] }
0x1ae6   : > { %4892 = vmatpush.msra.mxu1 %v6768_v10  ;;  %v6789_v10 = vld [vmem:[%s12400_s6 + $0x1168] sm:$0xff] }
0x1ae8   : > { %4893 = vmatpush.msra.mxu1 %v6767_v57  ;;  %v6785_v57 = vld [vmem:[%s12400_s6 + $0x1148] sm:$0xff] }
0x1aea   : > { %4894 = vmatpush.msra.mxu1 %v6766_v0  ;;  %v6781_v0 = vld [vmem:[%s12400_s6 + $0x1128] sm:$0xff] }
0x1aec   : > { %4895 = vmatpush.msra.mxu1 %v6765_v9  ;;  %v6776_v9 = vld [vmem:[%s12400_s6 + $0x1100] sm:$0xff] }
0x1aee   : > { %4896 = vmatpush.msra.mxu1 %v6764_v58 }
0x1af0   : > { %4897 = vmatpush.msra.mxu1 %v6763_v20 }
0x1af2   : > { %4898 = vmatpush.msra.mxu1 %v6762_v27  ;;  %v6806_v27 = vld [vmem:[%s12400_s6 + $0x11f0] sm:$0xff] }
0x1b28   : > { %v4548_v4 = vpop.f32.mrf.mxu1 }
0x1b29   : > { %v4572_v26 = vadd.f32 %v4571_v18, %v4548_v4 }
0x1b2f   : > { %v4574_v24 = vpop.f32.mrf.mxu2 }
0x1b48   : > { %v4551_v44 = vpop.f32.mrf.mxu1 }
0x1b49   : > { %v4613_v21 = vpop.f32.mrf.mxu0  ;;  %v4575_v55 = vadd.f32 %v4574_v24, %v4551_v44  ;;  %v6748_v24 = vld [vmem:[%s12400_s6 + $0x1020] sm:$0xff] }
0x1b4a   : > { %v4619_v28 = vadd.f32 %v4613_v21, %v4572_v26  ;;  %v6754_v26 = vld [vmem:[%s12400_s6 + $0x1050] sm:$0xff] }
0x1b4b   : > { %4846 = vmatpush.msra.mxu3 %v6754_v26  ;;  %v6807_v26 = vld [vmem:[%s12400_s6 + $0x11f8] sm:$0xff] }
0x1b4d   : > { %4847 = vmatpush.msra.mxu3 %v6753_v53  ;;  %v6805_v53 = vld [vmem:[%s12400_s6 + $0x11e8] sm:$0xff] }
0x1b4f   : > { %4848 = vmatpush.msra.mxu3 %v6752_v32  ;;  %v6804_v32 = vld [vmem:[%s12400_s6 + $0x11e0] sm:$0xff] }
0x1b50   : > { %v4657_v31 = vpop.f32.mrf.mxu3  ;;  %v4701_v40 = vpop.f32.mrf.mxu1 }
0x1b51   : > { %v4663_v36 = vadd.f32 %v4657_v31, %v4619_v28  ;;  %v4616_v51 = vpop.f32.mrf.mxu0  ;;  %v6761_v28 = vld [vmem:[%s12400_s6 + $0x1088] sm:$0xff]  ;;  %v6716_v31 = vld [vmem:[%s12400_s6 + $0xf20] sm:$0xff] }
0x1b52   : > { %v4620_v61 = vadd.f32 %v4616_v51, %v4575_v55  ;;  %4899 = vmatpush.msra.mxu1 %v6761_v28  ;;  %4810 = vmatpush.msra.mxu0 %v6716_v31  ;;  %v6788_v51 = vld [vmem:[%s12400_s6 + $0x1160] sm:$0xff]  ;;  %v6746_v55 = vld [vmem:[%s12400_s6 + $0x1010] sm:$0xff]  ;;  %v6819_v31 = vld [vmem:[%s12400_s6 + $0x1258] sm:$0xff] }
0x1b53   : > { %v4707_v29 = vadd.f32 %v4701_v40, %v4663_v36  ;;  %v6715_v36 = vld [vmem:[%s12400_s6 + $0xf18] sm:$0xff] }
0x1b54   : > { %4900 = vmatpush.msra.mxu1 %v6760_v49  ;;  %v6751_v40 = vld [vmem:[%s12400_s6 + $0x1038] sm:$0xff]  ;;  %4811 = vmatpush.msra.mxu0 %v6715_v36  ;;  %v6818_v36 = vld [vmem:[%s12400_s6 + $0x1250] sm:$0xff] }
0x1b55   : > { %v4710_v56 = vadd.f32 %v7009_v42, %v4707_v29  ;;  %4849 = vmatpush.msra.mxu3 %v6751_v40  ;;  %v6749_v29 = vld [vmem:[%s12400_s6 + $0x1028] sm:$0xff]  ;;  %v6839_v49 = vld [vmem:[%s12400_s6 + $0x12f8] sm:$0xff] }
0x1b56   : > { %4812 = vmatpush.msra.mxu0 %v6714_v43  ;;  %v6803_v40 = vld [vmem:[%s12400_s6 + $0x11d8] sm:$0xff]  ;;  %5084 = vmatpush.msrb.mxu1 %v6839_v49 }
0x1b57   : > { %v11773_v62 = vadd.f32 %v4710_v56, %v11240_v37  ;;  %4850 = vmatpush.msra.mxu3 %v6750_v2  ;;  %v6786_v56 = vld [vmem:[%s12400_s6 + $0x1150] sm:$0xff]  ;;  %v6795_v49 = vld [vmem:[%s12400_s6 + $0x1198] sm:$0xff] }
0x1b58   : > { %v4660_v3 = vpop.f32.mrf.mxu3  ;;  %v4704_v19 = vpop.f32.mrf.mxu1  ;;  %4813 = vmatpush.msra.mxu0 %v6713_v5  ;;  %v6838_v2 = vld [vmem:[%s12400_s6 + $0x12f0] sm:$0xff]  ;;  %v6817_v5 = vld [vmem:[%s12400_s6 + $0x1248] sm:$0xff] }
0x1b59   : > { %v4664_v7 = vadd.f32 %v4660_v3, %v4620_v61  ;;  %v4716_v37 = vmul.f32 %v7010_v35, %v11773_v62  ;;  %4851 = vmatpush.msra.mxu3 %v6749_v29  ;;  %v6783_v61 = vld [vmem:[%s12400_s6 + $0x1138] sm:$0xff]  ;;  %v6780_v3 = vld [vmem:[%s12400_s6 + $0x1120] sm:$0xff]  ;;  %v6802_v29 = vld [vmem:[%s12400_s6 + $0x11d0] sm:$0xff]  ;;  %5085 = vmatpush.msrb.mxu1 %v6838_v2 }
0x1b5a   : > { %4814 = vmatpush.msra.mxu0 %v6712_v50  ;;  %v6793_v2 = vld [vmem:[%s12400_s6 + $0x1188] sm:$0xff] }
0x1b5b   : > { %v4708_v4 = vadd.f32 %v4704_v19, %v4664_v7  ;;  %v4720_v6 = vadd.f32 %v7011_v1, %v4716_v37  ;;  %4852 = vmatpush.msra.mxu3 %v6748_v24  ;;  %4815 = vmatmul.f32.vlgmr.msra.gmra.mxu0 %v11802_v22  ;;  %v6779_v7 = vld [vmem:[%s12400_s6 + $0x1118] sm:$0xff]  ;;  %v6778_v19 = vld [vmem:[%s12400_s6 + $0x1110] sm:$0xff]  ;;  %v6777_v37 = vld [vmem:[%s12400_s6 + $0x1108] sm:$0xff] }
0x1b5c   : > { %5019 = vmatpush.msrb.mxu0 %v6823_v48  ;;  %v6853_v24 = vld [vmem:[%s12400_s6 + $0x1368] sm:$0xff]  ;;  %v6832_v48 = vld [vmem:[%s12400_s6 + $0x12c0] sm:$0xff] }
0x1b5d   : > { %v4711_v13 = vadd.f32 %v7009_v42, %v4708_v4  ;;  %v4722_v15 = vmax.f32 %v4720_v6, 0.0  ;;  %v6791_v42 = vld [vmem:[%s12400_s6 + $0x1178] sm:$0xff]  ;;  %4853 = vmatpush.msra.mxu3 %v6747_v52 }
0x1b5f   : > { %v11795_v44 = vadd.f32 %v4711_v13, %v11287_v63  ;;  %4729 = vrot.lane.b32.xlu0 %v4722_v15, %s7100_s20  ;;  %4725 = vst.msk [vmem:[#allocation2 + $0xc] sm:$0xff] %vm485_vm1, %v4722_v15  ;;  %v6732_v63 = vld [vmem:[%s12400_s6 + $0xfa0] sm:$0xff]  ;;  %4854 = vmatpush.msra.mxu3 %v6746_v55  ;;  %v7012_v55 = vld [vmem:[%s12401_s7 + $0x1c] ss:$0 sm:$0xff] }
0x1b60   : > { %4787 = vmatpush.msra.mxu2 %v6732_v63  ;;  %v11944_v63 = vld [vmem:[#allocation2 + $0x20] sm:$0xff] }
0x1b61   : > { %v4717_v33 = vmul.f32 %v7010_v35, %v11795_v44  ;;  %v6745_v35 = vld [vmem:[%s12400_s6 + $0x1008] sm:$0xff] }
0x1b62   : > { %4788 = vmatpush.msra.mxu2 %v6731_v46  ;;  %4855 = vmatpush.msra.mxu3 %v6745_v35  ;;  %v6822_v46 = vld [vmem:[%s12400_s6 + $0x1270] sm:$0xff]  ;;  %v6801_v35 = vld [vmem:[%s12400_s6 + $0x11c8] sm:$0xff] }
0x1b63   : > { %v4721_v18 = vadd.f32 %v7011_v1, %v4717_v33  ;;  %v6782_v1 = vld [vmem:[%s12400_s6 + $0x1130] sm:$0xff]  ;;  %5020 = vmatpush.msrb.mxu0 %v6822_v46 }
0x1b64   : > { %4789 = vmatpush.msra.mxu2 %v6730_v38  ;;  %4856 = vmatpush.msra.mxu3 %v6744_v59  ;;  %v6852_v59 = vld [vmem:[%s12400_s6 + $0x1360] sm:$0xff] }
0x1b65   : > { %v4723_v21 = vmax.f32 %v4721_v18, 0.0  ;;  %5021 = vmatpush.msrb.mxu0 %v6821_v25  ;;  %v6812_v25 = vld [vmem:[%s12400_s6 + $0x1220] sm:$0xff] }
0x1b66   : > { %4790 = vmatpush.msra.mxu2 %v6729_v30  ;;  %5042 = vmatpush.msrb.mxu3 %v6807_v26  ;;  %v6797_v26 = vld [vmem:[%s12400_s6 + $0x11a8] sm:$0xff] }
0x1b67   : > { %4731 = vrot.lane.b32.xlu2 %v4723_v21, %s7100_s20  ;;  %4726 = vst.msk [vmem:[#allocation2 + $0x14] sm:$0xff] %vm485_vm1, %v4723_v21  ;;  %5022 = vmatpush.msrb.mxu0 %v6820_v14 }
0x1b68   : > { %4737 = vst.msk [vmem:[#allocation2 + $0x19] sm:$0x7] %vm3273_vm6, %v11802_v22  ;;  %4791 = vmatpush.msra.mxu2 %v6728_v34  ;;  %5043 = vmatpush.msrb.mxu3 %v6806_v27 }
0x1b69   : > { %5023 = vmatpush.msrb.mxu0 %v6819_v31 }
0x1b6a   : > { %4929 = vmatpush.msrb.mxu2 %v6791_v42  ;;  %5044 = vmatpush.msrb.mxu3 %v6805_v53  ;;  %v6855_v42 = vld [vmem:[%s12400_s6 + $0x1378] sm:$0xff] }
0x1b6b   : > { %5024 = vmatpush.msrb.mxu0 %v6818_v36  ;;  %v6809_v36 = vld [vmem:[%s12400_s6 + $0x1208] sm:$0xff] }
0x1b6c   : > { %4930 = vmatpush.msrb.mxu2 %v6790_v45  ;;  %5045 = vmatpush.msrb.mxu3 %v6804_v32  ;;  %v6854_v45 = vld [vmem:[%s12400_s6 + $0x1370] sm:$0xff] }
0x1b6d   : > { %5025 = vmatpush.msrb.mxu0 %v6817_v5  ;;  %v6810_v32 = vld [vmem:[%s12400_s6 + $0x1210] sm:$0xff] }
0x1b6e   : > { %4931 = vmatpush.msrb.mxu2 %v6789_v10  ;;  %v6837_v10 = vld [vmem:[%s12400_s6 + $0x12e8] sm:$0xff]  ;;  %5046 = vmatpush.msrb.mxu3 %v6803_v40  ;;  %v6794_v40 = vld [vmem:[%s12400_s6 + $0x1190] sm:$0xff] }
0x1b6f   : > { %v4867_v4 = vld [vmem:[#allocation2 + $0x1a] sm:$0xff]  ;;  %5086 = vmatpush.msrb.mxu1 %v6837_v10  ;;  %v6870_v10 = vld [vmem:[%s12400_s6 + $0x13f0] sm:$0xff] }
0x1b70   : > { %4932 = vmatpush.msrb.mxu2 %v6788_v51  ;;  %v6836_v51 = vld [vmem:[%s12400_s6 + $0x12e0] sm:$0xff]  ;;  %5047 = vmatpush.msrb.mxu3 %v6802_v29 }
0x1b71   : > { %5087 = vmatpush.msrb.mxu1 %v6836_v51  ;;  %v6792_v29 = vld [vmem:[%s12400_s6 + $0x1180] sm:$0xff]  ;;  %v6831_v51 = vld [vmem:[%s12400_s6 + $0x12b8] sm:$0xff] }
0x1b72   : > { %4933 = vmatpush.msrb.mxu2 %v6787_v54  ;;  %5048 = vmatpush.msrb.mxu3 %v6801_v35  ;;  %v6829_v35 = vld [vmem:[%s12400_s6 + $0x12a8] sm:$0xff] }
0x1b74   : > { %4934 = vmatpush.msrb.mxu2 %v6786_v56  ;;  %v6816_v56 = vld [vmem:[%s12400_s6 + $0x1240] sm:$0xff] }
0x1b75   : > { %5026 = vmatpush.msrb.mxu0 %v6816_v56  ;;  %v6866_v56 = vld [vmem:[%s12400_s6 + $0x13d0] sm:$0xff] }
0x1b76   : > { %4935 = vmatpush.msrb.mxu2 %v6785_v57 }
0x1b78   : > { %4936 = vmatpush.msrb.mxu2 %v6784_v60  ;;  %v6835_v60 = vld [vmem:[%s12400_s6 + $0x12d8] sm:$0xff] }
0x1b79   : > { %5088 = vmatpush.msrb.mxu1 %v6835_v60  ;;  %v6828_v60 = vld [vmem:[%s12400_s6 + $0x12a0] sm:$0xff] }
0x1b7a   : > { %4937 = vmatpush.msrb.mxu2 %v6783_v61 }
0x1b7c   : > { %4938 = vmatpush.msrb.mxu2 %v6782_v1  ;;  %v7013_v1 = vld [vmem:[%s12401_s7 + $0x35] ss:$0 sm:$0xff] }
0x1b7e   : > { %4939 = vmatpush.msrb.mxu2 %v6781_v0  ;;  %v6815_v0 = vld [vmem:[%s12400_s6 + $0x1238] sm:$0xff] }
0x1b7f   : > { %5027 = vmatpush.msrb.mxu0 %v6815_v0  ;;  %v6827_v0 = vld [vmem:[%s12400_s6 + $0x1298] sm:$0xff] }
0x1b80   : > { %4940 = vmatpush.msrb.mxu2 %v6780_v3  ;;  %v6800_v3 = vld [vmem:[%s12400_s6 + $0x11c0] sm:$0xff] }
0x1b81   : > { %5049 = vmatpush.msrb.mxu3 %v6800_v3  ;;  %v6843_v3 = vld [vmem:[%s12400_s6 + $0x1318] sm:$0xff] }
0x1b82   : > { %4941 = vmatpush.msrb.mxu2 %v6779_v7  ;;  %v6851_v7 = vld [vmem:[%s12400_s6 + $0x1358] sm:$0xff] }
0x1b84   : > { %4942 = vmatpush.msrb.mxu2 %v6778_v19  ;;  %v6834_v19 = vld [vmem:[%s12400_s6 + $0x12d0] sm:$0xff] }
0x1b85   : > { %5089 = vmatpush.msrb.mxu1 %v6834_v19  ;;  %v6842_v19 = vld [vmem:[%s12400_s6 + $0x1310] sm:$0xff] }
0x1b86   : > { %4943 = vmatpush.msrb.mxu2 %v6777_v37 }
0x1b88   : > { %4944 = vmatpush.msrb.mxu2 %v6776_v9 }
0x1bc1   : > { %v4732_v47 = vpop.permute.xlu2 %4731 }
0x1bc2   : > { %4736 = vst.msk [vmem:[#allocation2 + $0x11] sm:$0xff] %vm689_vm4, %v4732_v47 }
0x1bc9   : > { %v4866_v12 = vld [vmem:[#allocation2 + $0x12] sm:$0xff] }
0x1bca   : > { %4901 = vmatmul.f32.vlgmr.msra.gmra.mxu1 %v4866_v12  ;;  %v4823_v18 = vld [vmem:[#allocation2 + $0x14] sm:$0xff]  ;;  %v7014_v12 = vld [vmem:[%s12401_s7 + $0x4d] ss:$0 sm:$0xff] }
0x1bcb   : > { %v4910_v21 = vld [vmem:[#allocation2 + $0x18] sm:$0xff] }
0x1bd1   : > { %v4730_v6 = vpop.permute.xlu0 %4729 }
0x1bd2   : > { %4735 = vst.msk [vmem:[#allocation2 + $0x9] sm:$0xff] %vm689_vm4, %v4730_v6  ;;  %4904 = vmatmul.f32.gmra.mxu1 %v4867_v4  ;;  %v6814_v4 = vld [vmem:[%s12400_s6 + $0x1230] sm:$0xff]  ;;  %v6799_v6 = vld [vmem:[%s12400_s6 + $0x11b8] sm:$0xff] }
0x1bd3   : > { %5028 = vmatpush.msrb.mxu0 %v6814_v4  ;;  %5050 = vmatpush.msrb.mxu3 %v6799_v6  ;;  %v6861_v4 = vld [vmem:[%s12400_s6 + $0x13a8] sm:$0xff]  ;;  %v6824_v6 = vld [vmem:[%s12400_s6 + $0x1280] sm:$0xff] }
0x1bd8   : > { %v4816_v20 = vpop.f32.mrf.mxu0 }
0x1bd9   : > { %v4757_v58 = vld [vmem:[#allocation2 + $0x6] sm:$0xff]  ;;  %v4758_v33 = vld [vmem:[#allocation2 + $0xe] sm:$0xff] }
0x1bda   : > { %v4739_v13 = vld [vmem:[#allocation2 + $0x8] sm:$0xff]  ;;  %4792 = vmatmul.f32.vlgmr.msra.gmra.mxu2 %v4757_v58 }
0x1bdb   : > { %v4822_v15 = vld [vmem:[#allocation2 + $0xc] sm:$0xff]  ;;  %4818 = vmatmul.f32.gmra.mxu0 %v4739_v13  ;;  %5128 = vmatpush.msra.mxu2 %v6855_v42 }
0x1bdc   : > { %4857 = vmatmul.f32.vlgmr.msra.gmra.mxu3 %v4822_v15  ;;  %v6850_v13 = vld [vmem:[%s12400_s6 + $0x1350] sm:$0xff]  ;;  %v6833_v15 = vld [vmem:[%s12400_s6 + $0x12c8] sm:$0xff] }
0x1bdd   : > { %5129 = vmatpush.msra.mxu2 %v6854_v45  ;;  %5090 = vmatpush.msrb.mxu1 %v6833_v15  ;;  %v6871_v45 = vld [vmem:[%s12400_s6 + $0x13f8] sm:$0xff] }
0x1bde   : > { %v6859_v15 = vld [vmem:[%s12400_s6 + $0x1398] sm:$0xff] }
0x1bdf   : > { %5130 = vmatpush.msra.mxu2 %v6853_v24  ;;  %5091 = vmatpush.msrb.mxu1 %v6832_v48  ;;  %v6868_v24 = vld [vmem:[%s12400_s6 + $0x13e0] sm:$0xff] }
0x1be1   : > { %5131 = vmatpush.msra.mxu2 %v6852_v59  ;;  %5092 = vmatpush.msrb.mxu1 %v6831_v51  ;;  %v6865_v59 = vld [vmem:[%s12400_s6 + $0x13c8] sm:$0xff] }
0x1be2   : > { %4795 = vmatmul.f32.gmra.mxu2 %v4758_v33 }
0x1be3   : > { %5132 = vmatpush.msra.mxu2 %v6851_v7  ;;  %v6826_v7 = vld [vmem:[%s12400_s6 + $0x1290] sm:$0xff] }
0x1be4   : > { %4860 = vmatmul.f32.gmra.mxu3 %v4823_v18  ;;  %v6813_v18 = vld [vmem:[%s12400_s6 + $0x1228] sm:$0xff] }
0x1be5   : > { %5133 = vmatpush.msra.mxu2 %v6850_v13  ;;  %5029 = vmatpush.msrb.mxu0 %v6813_v18  ;;  %v6860_v13 = vld [vmem:[%s12400_s6 + $0x13a0] sm:$0xff]  ;;  %v6857_v18 = vld [vmem:[%s12400_s6 + $0x1388] sm:$0xff] }
0x1be7   : > { %5030 = vmatpush.msrb.mxu0 %v6812_v25 }
0x1bea   : > { %4945 = vmatmul.f32.vlgmr.msrb.gmra.mxu2 %v4910_v21  ;;  %v6798_v21 = vld [vmem:[%s12400_s6 + $0x11b0] sm:$0xff] }
0x1beb   : > { %5051 = vmatpush.msrb.mxu3 %v6798_v21  ;;  %v6856_v21 = vld [vmem:[%s12400_s6 + $0x1380] sm:$0xff] }
0x1bed   : > { %5052 = vmatpush.msrb.mxu3 %v6797_v26 }
0x1bf2   : > { %4948 = vmatmul.f32.gmra.mxu2 %v11944_v63 }
0x1c47   : > { %v4902_v43 = vpop.f32.mrf.mxu1 }
0x1c4f   : > { %v4905_v58 = vpop.f32.mrf.mxu1 }
0x1c58   : > { %v4819_v50 = vpop.f32.mrf.mxu0 }
0x1c5d   : > { %v4793_v23 = vpop.f32.mrf.mxu2 }
0x1c5e   : > { %v4817_v38 = vadd.f32 %v4816_v20, %v4793_v23  ;;  %v6849_v23 = vld [vmem:[%s12400_s6 + $0x1348] sm:$0xff] }
0x1c5f   : > { %v4858_v28 = vpop.f32.mrf.mxu3  ;;  %5134 = vmatpush.msra.mxu2 %v6849_v23 }
0x1c60   : > { %v4864_v34 = vadd.f32 %v4858_v28, %v4817_v38  ;;  %v6848_v38 = vld [vmem:[%s12400_s6 + $0x1340] sm:$0xff]  ;;  %v6811_v28 = vld [vmem:[%s12400_s6 + $0x1218] sm:$0xff] }
0x1c61   : > { %5135 = vmatpush.msra.mxu2 %v6848_v38  ;;  %5031 = vmatpush.msrb.mxu0 %v6811_v28  ;;  %v6879_v28 = vld [vmem:[%s12398_s4 + $0xf8] sm:$0xff] }
0x1c62   : > { %v4908_v54 = vadd.f32 %v4902_v43, %v4864_v34  ;;  %v6808_v43 = vld [vmem:[%s12400_s6 + $0x1200] sm:$0xff] }
0x1c63   : > { %5032 = vmatpush.msrb.mxu0 %v6810_v32  ;;  %v6876_v32 = vld [vmem:[%s12398_s4 + $0xe0] sm:$0xff] }
0x1c65   : > { %v4796_v30 = vpop.f32.mrf.mxu2  ;;  %5033 = vmatpush.msrb.mxu0 %v6809_v36  ;;  %v6872_v36 = vld [vmem:[%s12398_s4 + $0xc0] sm:$0xff] }
0x1c66   : > { %v4820_v52 = vadd.f32 %v4819_v50, %v4796_v30  ;;  %v6796_v30 = vld [vmem:[%s12400_s6 + $0x11a0] sm:$0xff]  ;;  %v6869_v50 = vld [vmem:[%s12400_s6 + $0x13e8] sm:$0xff] }
0x1c67   : > { %v4861_v47 = vpop.f32.mrf.mxu3  ;;  %5053 = vmatpush.msrb.mxu3 %v6796_v30  ;;  %5034 = vmatpush.msrb.mxu0 %v6808_v43  ;;  %v6878_v30 = vld [vmem:[%s12398_s4 + $0xf0] sm:$0xff] }
0x1c68   : > { %v4865_v37 = vadd.f32 %v4861_v47, %v4820_v52  ;;  %v6847_v52 = vld [vmem:[%s12400_s6 + $0x1338] sm:$0xff]  ;;  %v6888_v43 = vld [vmem:[%s12398_s4 + $0x130] sm:$0xff] }
0x1c69   : > { %5054 = vmatpush.msrb.mxu3 %v6795_v49  ;;  %5172 = vmatpush.msra.mxu0 %v6871_v45  ;;  %v6863_v47 = vld [vmem:[%s12400_s6 + $0x13b8] sm:$0xff]  ;;  %v6874_v49 = vld [vmem:[%s12398_s4 + $0xd0] sm:$0xff]  ;;  %v6886_v45 = vld [vmem:[%s12398_s4 + $0x120] sm:$0xff] }
0x1c6a   : > { %v4909_v20 = vadd.f32 %v4905_v58, %v4865_v37  ;;  %5136 = vmatpush.msra.mxu2 %v6847_v52  ;;  %v6862_v37 = vld [vmem:[%s12400_s6 + $0x13b0] sm:$0xff]  ;;  %v6840_v58 = vld [vmem:[%s12400_s6 + $0x1300] sm:$0xff] }
0x1c6b   : > { %5055 = vmatpush.msrb.mxu3 %v6794_v40  ;;  %5173 = vmatpush.msra.mxu0 %v6870_v10  ;;  %v6884_v10 = vld [vmem:[%s12398_s4 + $0x110] sm:$0xff] }
0x1c6d   : > { %v4946_v57 = vpop.f32.mrf.mxu2  ;;  %5056 = vmatpush.msrb.mxu3 %v6793_v2  ;;  %5174 = vmatpush.msra.mxu0 %v6869_v50  ;;  %v6887_v2 = vld [vmem:[%s12398_s4 + $0x128] sm:$0xff] }
0x1c6e   : > { %v4952_v61 = vadd.f32 %v4946_v57, %v4908_v54  ;;  %v6867_v54 = vld [vmem:[%s12400_s6 + $0x13d8] sm:$0xff]  ;;  %v6845_v57 = vld [vmem:[%s12400_s6 + $0x1328] sm:$0xff] }
0x1c6f   : > { %5057 = vmatpush.msrb.mxu3 %v6792_v29  ;;  %5175 = vmatpush.msra.mxu0 %v6868_v24 }
0x1c70   : > { %v4955_v9 = vadd.f32 %v7012_v55, %v4952_v61  ;;  %5058 = vmatmul.f32.vlgmr.msrb.gmra.mxu3 %v11802_v22  ;;  %v6844_v61 = vld [vmem:[%s12400_s6 + $0x1320] sm:$0xff] }
0x1c71   : > { %5176 = vmatpush.msra.mxu0 %v6867_v54  ;;  %5227 = vmatpush.msra.mxu3 %v6879_v28  ;;  %v5295_v28 = vld [vmem:[%s12402_s8 + $0x10] sm:$0xff] }
0x1c72   : > { %v4959_v33 = vmul.f32 %v7013_v1, %v4955_v9  ;;  %v6825_v9 = vld [vmem:[%s12400_s6 + $0x1288] sm:$0xff] }
0x1c73   : > { %5177 = vmatpush.msra.mxu0 %v6866_v56  ;;  %5228 = vmatpush.msra.mxu3 %v6878_v30  ;;  %v7015_v56 = vld [vmem:[%s12401_s7 + $0x1d] ss:$0 sm:$0xff]  ;;  %v5294_v30 = vld [vmem:[%s12402_s8 + $0x8] sm:$0xff] }
0x1c74   : > { %v4963_v46 = vadd.f32 %v7014_v12, %v4959_v33  ;;  %v6858_v33 = vld [vmem:[%s12400_s6 + $0x1390] sm:$0xff] }
0x1c75   : > { %v4949_v27 = vpop.f32.mrf.mxu2  ;;  %5178 = vmatpush.msra.mxu0 %v6865_v59 }
0x1c76   : > { %v4953_v14 = vadd.f32 %v4949_v27, %v4909_v20  ;;  %v4965_v53 = vmax.f32 %v4963_v46, 0.0 }
0x1c78   : > { %v4956_v31 = vadd.f32 %v7012_v55, %v4953_v14  ;;  %4972 = vrot.lane.b32.xlu1 %v4965_v53, %s7100_s20  ;;  %4968 = vst.msk [vmem:[#allocation2 + $0xc] sm:$0xff] %vm485_vm1, %v4965_v53  ;;  %v6846_v55 = vld [vmem:[%s12400_s6 + $0x1330] sm:$0xff] }
0x1c79   : > { %5137 = vmatpush.msra.mxu2 %v6846_v55 }
0x1c7a   : > { %v4960_v34 = vmul.f32 %v7013_v1, %v4956_v31  ;;  %v6864_v1 = vld [vmem:[%s12400_s6 + $0x13c0] sm:$0xff]  ;;  %v6877_v31 = vld [vmem:[%s12398_s4 + $0xe8] sm:$0xff] }
0x1c7b   : > { %5138 = vmatpush.msra.mxu2 %v6845_v57  ;;  %5179 = vmatpush.msra.mxu0 %v6864_v1 }
0x1c7c   : > { %v4964_v42 = vadd.f32 %v7014_v12, %v4960_v34  ;;  %v6841_v12 = vld [vmem:[%s12400_s6 + $0x1308] sm:$0xff]  ;;  %5229 = vmatpush.msra.mxu3 %v6877_v31  ;;  %v5293_v31 = vld [vmem:[%s12402_s8] sm:$0xff] }
0x1c7d   : > { %5139 = vmatpush.msra.mxu2 %v6844_v61  ;;  %5180 = vmatpush.msra.mxu0 %v6863_v47  ;;  %v6873_v34 = vld [vmem:[%s12398_s4 + $0xc8] sm:$0xff] }
0x1c7e   : > { %v4966_v5 = vmax.f32 %v4964_v42, 0.0  ;;  %5230 = vmatpush.msra.mxu3 %v6876_v32  ;;  %v6889_v42 = vld [vmem:[%s12398_s4 + $0x138] sm:$0xff] }
0x1c7f   : > { %5140 = vmatpush.msra.mxu2 %v6843_v3  ;;  %5181 = vmatpush.msra.mxu0 %v6862_v37  ;;  %v5341_v32 = vld [vmem:[%s12404_s10 + $0x78] sm:$0xff] }
0x1c80   : > { %4974 = vrot.lane.b32.xlu0 %v4966_v5, %s7100_s20  ;;  %4969 = vst.msk [vmem:[#allocation2 + $0x14] sm:$0xff] %vm485_vm1, %v4966_v5  ;;  %v6885_v5 = vld [vmem:[%s12398_s4 + $0x118] sm:$0xff]  ;;  %s5401_s20 = sshll.u32 %s5397_s16, 4  ;;  %s5402_s20 = int_to_ptr.hbm [resolvable:$true] %s5401_s20 }
0x1c81   : > { %4980 = vst.msk [vmem:[#allocation2 + $0x19] sm:$0x7] %vm3273_vm6, %v11802_v22  ;;  %v6830_v22 = vld [vmem:[%s12400_s6 + $0x12b0] sm:$0xff]  ;;  %5141 = vmatpush.msra.mxu2 %v6842_v19  ;;  %5182 = vmatpush.msra.mxu0 %v6861_v4  ;;  %v6968_v4 = vld [vmem:[%s12401_s7 + $0x2] ss:$0 sm:$0xff]  ;;  %s7050_s18 = sshra.s32 %s5402_s20, 4  ;;  %s7051_s18 = int_to_ptr.hbm [resolvable:$true] %s7050_s18 }
0x1c82   : > { %5093 = vmatpush.msrb.mxu1 %v6830_v22  ;;  %s7052_s19 = scalar_lea.hbm %s7051_s18, 1  ;;  %p7057_p0 = scmp.lt.s32.totalorder %s7051_s18, %s12406_s12 }
0x1c83   : > { %5142 = vmatpush.msra.mxu2 %v6841_v12  ;;  %5183 = vmatpush.msra.mxu0 %v6860_v13  ;;  %v6883_v12 = vld [vmem:[%s12398_s4 + $0x108] sm:$0xff]  ;;  %p7053_p11 = scmp.ne.s32.totalorder %s7051_s18, %s7052_s19  ;;  %p7058_p1 = scmp.lt.s32.totalorder %s7056_s29, %s7052_s19 }
0x1c84   : > { %5094 = vmatpush.msrb.mxu1 %v6829_v35 }
0x1c85   : > { %5143 = vmatpush.msra.mxu2 %v6840_v58  ;;  %5184 = vmatpush.msra.mxu0 %v6859_v15  ;;  %v1952_v58 = vadd.f32 %v6968_v4, %v9058_v8  ;;  %p7054_p12 = pnand %p7053_p11, %p7209_p5  ;;  %p7059_p2 = por %p7058_p1, %p7057_p0 }
0x1c86   : > { %5095 = vmatpush.msrb.mxu1 %v6828_v60 }
0x1c87   : > { %5185 = vmatpush.msra.mxu0 %v6858_v33  ;;  %v7016_v33 = vld [vmem:[%s12401_s7 + $0x4] ss:$0 sm:$0xff]  ;;  %p7055_p13 = pneg %p7054_p12 }
0x1c88   : > { %5096 = vmatpush.msrb.mxu1 %v6827_v0  ;;  %v5110_v38 = vld [vmem:[#allocation2 + $0x1a] sm:$0xff] }
0x1c89   : > { %5186 = vmatpush.msra.mxu0 %v6857_v18  ;;  %p7060_p3 = pnand %p7059_p2, %p7055_p13 }
0x1c8a   : > { %5097 = vmatpush.msrb.mxu1 %v6826_v7 }
0x1c8b   : > { %5187 = vmatpush.msra.mxu0 %v6856_v21 }
0x1c8c   : > { %5098 = vmatpush.msrb.mxu1 %v6825_v9 }
0x1c8e   : > { %5099 = vmatpush.msrb.mxu1 %v6824_v6  ;;  %v6993_v6 = vld [vmem:[%s12401_s7 + $0x3] ss:$0 sm:$0xff] }
0x1c8f   : > { %v3243_v15 = vadd.f32 %v6993_v6, %v10353_v16 }
0x1c90   : > { %5269 = vmatpush.msra.mxu1 %v6889_v42  ;;  %v5336_v42 = vld [vmem:[%s12404_s10 + $0x50] sm:$0xff] }
0x1c92   : > { %5270 = vmatpush.msra.mxu1 %v6888_v43  ;;  %v7017_v43 = vld [vmem:[%s12401_s7 + $0x5] ss:$0 sm:$0xff] }
0x1c94   : > { %5271 = vmatpush.msra.mxu1 %v6887_v2  ;;  %v5335_v2 = vld [vmem:[%s12404_s10 + $0x48] sm:$0xff] }
0x1c96   : > { %5272 = vmatpush.msra.mxu1 %v6886_v45  ;;  %v5334_v45 = vld [vmem:[%s12404_s10 + $0x40] sm:$0xff] }
0x1c98   : > { %5273 = vmatpush.msra.mxu1 %v6885_v5 }
0x1c9a   : > { %5274 = vmatpush.msra.mxu1 %v6884_v10  ;;  %v5333_v10 = vld [vmem:[%s12404_s10 + $0x38] sm:$0xff] }
0x1c9c   : > { %5275 = vmatpush.msra.mxu1 %v6883_v12  ;;  %v7102_v12 = vmov 0  }
0x1c9d   : > { %6938 = vset.pattern.permute.xlu2 %v7102_v12  ;;  %6939 = vset.pattern.permute.xlu0 %v7102_v12 }
0x1cea   : > { %v4973_v23 = vpop.permute.xlu1 %4972 }
0x1ceb   : > { %4978 = vst.msk [vmem:[#allocation2 + $0x9] sm:$0xff] %vm689_vm4, %v4973_v23 }
0x1cf2   : > { %v4975_v48 = vpop.permute.xlu0 %4974  ;;  %v5000_v20 = vld [vmem:[#allocation2 + $0x6] sm:$0xff] }
0x1cf3   : > { %v4982_v46 = vld [vmem:[#allocation2 + $0x8] sm:$0xff]  ;;  %4979 = vst.msk [vmem:[#allocation2 + $0x11] sm:$0xff] %vm689_vm4, %v4975_v48  ;;  %5035 = vmatmul.f32.vlgmr.msrb.gmra.mxu0 %v5000_v20  ;;  %v5059_v50 = vpop.f32.mrf.mxu3  ;;  %v1955_v20 = vadd.f32 %v6968_v4, %v9063_v11 }
0x1cf4   : > { %5061 = vmatmul.f32.gmra.mxu3 %v4982_v46  ;;  %v5298_v11 = vld [vmem:[%s12402_s8 + $0x28] sm:$0xff]  ;;  %5343 = vmatpush.msrb.mxu0 %v5341_v32 }
0x1cfa   : > { %v5001_v25 = vld [vmem:[#allocation2 + $0xe] sm:$0xff]  ;;  %v5153_v53 = vld [vmem:[#allocation2 + $0x18] sm:$0xff] }
0x1cfb   : > { %v5065_v26 = vld [vmem:[#allocation2 + $0xc] sm:$0xff]  ;;  %5038 = vmatmul.f32.gmra.mxu0 %v5001_v25  ;;  %v5066_v14 = vld [vmem:[#allocation2 + $0x14] sm:$0xff] }
0x1cfc   : > { %v5109_v27 = vld [vmem:[#allocation2 + $0x12] sm:$0xff]  ;;  %5100 = vmatmul.f32.vlgmr.msrb.gmra.mxu1 %v5065_v26  ;;  %v3246_v26 = vadd.f32 %v6993_v6, %v10355_v17  ;;  %v5297_v17 = vld [vmem:[%s12402_s8 + $0x20] sm:$0xff] }
0x1cfd   : > { %5144 = vmatmul.f32.vlgmr.msra.gmra.mxu2 %v5109_v27 }
0x1d03   : > { %5188 = vmatmul.f32.vlgmr.msra.gmra.mxu0 %v5153_v53  ;;  %v5296_v53 = vld [vmem:[%s12402_s8 + $0x18] sm:$0xff] }
0x1d04   : > { %5103 = vmatmul.f32.gmra.mxu1 %v5066_v14  ;;  %v5300_v14 = vld [vmem:[%s12402_s8 + $0x38] sm:$0xff] }
0x1d05   : > { %5147 = vmatmul.f32.gmra.mxu2 %v5110_v38 }
0x1d0b   : > { %5191 = vmatmul.f32.gmra.mxu0 %v11944_v63  ;;  %v6875_v63 = vld [vmem:[%s12398_s4 + $0xd8] sm:$0xff] }
0x1d0c   : > { %5231 = vmatpush.msra.mxu3 %v6875_v63  ;;  %v5340_v63 = vld [vmem:[%s12404_s10 + $0x70] sm:$0xff] }
0x1d0d   : > { %5344 = vmatpush.msrb.mxu0 %v5340_v63 }
0x1d0e   : > { %5232 = vmatpush.msra.mxu3 %v6874_v49  ;;  %v5339_v49 = vld [vmem:[%s12404_s10 + $0x68] sm:$0xff] }
0x1d0f   : > { %5345 = vmatpush.msrb.mxu0 %v5339_v49 }
0x1d10   : > { %5233 = vmatpush.msra.mxu3 %v6873_v34  ;;  %v5338_v34 = vld [vmem:[%s12404_s10 + $0x60] sm:$0xff] }
0x1d11   : > { %5346 = vmatpush.msrb.mxu0 %v5338_v34 }
0x1d12   : > { %5234 = vmatpush.msra.mxu3 %v6872_v36 }
0x1d14   : > { %5313 = vmatpush.msrb.mxu3 %v5300_v14 }
0x1d70   : > { %v5036_v40 = vpop.f32.mrf.mxu0 }
0x1d71   : > { %v5060_v51 = vadd.f32 %v5059_v50, %v5036_v40  ;;  %v5337_v40 = vld [vmem:[%s12404_s10 + $0x58] sm:$0xff] }
0x1d72   : > { %5347 = vmatpush.msrb.mxu0 %v5337_v40 }
0x1d74   : > { %5348 = vmatpush.msrb.mxu0 %v5336_v42 }
0x1d76   : > { %5349 = vmatpush.msrb.mxu0 %v5335_v2 }
0x1d77   : > { %v5062_v57 = vpop.f32.mrf.mxu3 }
0x1d78   : > { %v5039_v29 = vpop.f32.mrf.mxu0  ;;  %5350 = vmatpush.msrb.mxu0 %v5334_v45 }
0x1d79   : > { %v5101_v24 = vpop.f32.mrf.mxu1  ;;  %v5063_v60 = vadd.f32 %v5062_v57, %v5039_v29  ;;  %v5329_v57 = vld [vmem:[%s12404_s10 + $0x18] sm:$0xff] }
0x1d7a   : > { %v5107_v52 = vadd.f32 %v5101_v24, %v5060_v51  ;;  %v5332_v24 = vld [vmem:[%s12404_s10 + $0x30] sm:$0xff]  ;;  %5351 = vmatpush.msrb.mxu0 %v5333_v10 }
0x1d7c   : > { %5352 = vmatpush.msrb.mxu0 %v5332_v24 }
0x1d80   : > { %v5145_v54 = vpop.f32.mrf.mxu2  ;;  %v5189_v55 = vpop.f32.mrf.mxu0 }
0x1d81   : > { %v5151_v22 = vadd.f32 %v5145_v54, %v5107_v52  ;;  %v5104_v59 = vpop.f32.mrf.mxu1 }
0x1d82   : > { %v5108_v1 = vadd.f32 %v5104_v59, %v5063_v60 }
0x1d83   : > { %v5195_v35 = vadd.f32 %v5189_v55, %v5151_v22  ;;  %v5331_v22 = vld [vmem:[%s12404_s10 + $0x28] sm:$0xff] }
0x1d84   : > { %5353 = vmatpush.msrb.mxu0 %v5331_v22 }
0x1d85   : > { %v5198_v61 = vadd.f32 %v7015_v56, %v5195_v35 }
0x1d87   : > { %v5200_v0 = vadd.f32 %v5198_v61, %v11773_v62  ;;  %v6882_v62 = vld [vmem:[%s12398_s4 + $0x100] sm:$0xff] }
0x1d88   : > { %v5148_v3 = vpop.f32.mrf.mxu2  ;;  %v5192_v7 = vpop.f32.mrf.mxu0  ;;  %5276 = vmatpush.msra.mxu1 %v6882_v62  ;;  %v5342_v62 = vld [vmem:[#allocation3] sm:$0x1] }
0x1d89   : > { %v5152_v47 = vadd.f32 %v5148_v3, %v5108_v1  ;;  %6880 = vmatmul.msk.f32.vlgmr.msra.gmra.mxu3 %vm485_vm1, %v5200_v0  ;;  %v5328_v0 = vld [vmem:[%s12404_s10 + $0x10] sm:$0xff]  ;;  %v5327_v3 = vld [vmem:[%s12404_s10 + $0x8] sm:$0xff] }
0x1d8b   : > { %v5196_v19 = vadd.f32 %v5192_v7, %v5152_v47  ;;  %v5326_v47 = vld [vmem:[%s12404_s10] sm:$0xff] }
0x1d8c   : > { %v5301_v7 = vld [vmem:[%s12403_s9] sm:$0x1] }
0x1d8d   : > { %v5199_v37 = vadd.f32 %v7015_v56, %v5196_v19  ;;  %v5330_v56 = vld [vmem:[%s12404_s10 + $0x20] sm:$0xff] }
0x1d8e   : > { %5354 = vmatpush.msrb.mxu0 %v5330_v56 }
0x1d8f   : > { %v5201_v9 = vadd.f32 %v5199_v37, %v11795_v44  ;;  %v6943_v44 = vld [vmem:[%s12401_s7 + $0x1] ss:$0 sm:$0xff] }
0x1d90   : > { %v663_v13 = vadd.f32 %v6943_v44, %v7702_v39  ;;  %v666_v25 = vadd.f32 %v6943_v44, %v7707_v41  ;;  %v5299_v41 = vld [vmem:[%s12402_s8 + $0x30] sm:$0xff]  ;;  %5355 = vmatpush.msrb.mxu0 %v5329_v57 }
0x1d91   : > { %6881 = vmatmul.msk.f32.gmra.mxu3 %vm485_vm1, %v5201_v9 }
0x1d92   : > { %v1957_v18 = vadd.f32 %v1952_v58, %v663_v13  ;;  %v1958_v39 = vadd.f32 %v1955_v20, %v666_v25  ;;  %5314 = vmatpush.msrb.mxu3 %v5299_v41  ;;  %5356 = vmatpush.msrb.mxu0 %v5328_v0 }
0x1d94   : > { %v3248_v23 = vadd.f32 %v3243_v15, %v1957_v18  ;;  %v3249_v16 = vadd.f32 %v3246_v26, %v1958_v39  ;;  %5315 = vmatpush.msrb.mxu3 %v5298_v11  ;;  %5357 = vmatpush.msrb.mxu0 %v5327_v3 }
0x1d96   : > { %5316 = vmatpush.msrb.mxu3 %v5297_v17  ;;  %5358 = vmatpush.msrb.mxu0 %v5326_v47 }
0x1d98   : > { %5317 = vmatpush.msrb.mxu3 %v5296_v53 }
0x1d9a   : > { %5318 = vmatpush.msrb.mxu3 %v5295_v28 }
0x1d9c   : > { %5319 = vmatpush.msrb.mxu3 %v5294_v30 }
0x1d9e   : > { %5320 = vmatpush.msrb.mxu3 %v5293_v31 }
0x1e0c   : > { %v5236_v21 = vpop.f32.mrf.mxu3 }
0x1e0d   : > { %v5237_v48 = vadd.f32 %v7016_v33, %v5236_v21 }
0x1e0f   : > { %v5242_v46 = vadd.f32 %v5237_v48, %v3248_v23 }
0x1e11   : > { %6890 = vmatmul.msk.f32.vlgmr.msra.gmra.mxu1 %vm485_vm1, %v5242_v46 }
0x1e14   : > { %v5239_v8 = vpop.f32.mrf.mxu3 }
0x1e15   : > { %v5240_v27 = vadd.f32 %v7016_v33, %v5239_v8 }
0x1e17   : > { %v5243_v38 = vadd.f32 %v5240_v27, %v3249_v16 }
0x1e19   : > { %6891 = vmatmul.msk.f32.gmra.mxu1 %vm485_vm1, %v5243_v38 }
0x1e8e   : > { %v5278_v36 = vpop.f32.mrf.mxu1 }
0x1e8f   : > { %v5279_v5 = vadd.f32 %v7017_v43, %v5278_v36 }
0x1e91   : > { %v5284_v51 = vsel %vm485_vm1, %v5279_v5, -inf }
0x1e96   : > { %v5281_v29 = vpop.f32.mrf.mxu1 }
0x1e97   : > { %v5282_v50 = vadd.f32 %v7017_v43, %v5281_v29 }
0x1e99   : > { %v5285_v52 = vsel %vm485_vm1, %v5282_v50, -inf }
0x1e9a   : > { %v5286_v54 = vmax.f32 %v5284_v51, %v5285_v52 }
0x1e9c   : > { %v5287_v55 = vrot.slane %v5286_v54, 4 }
0x1e9e   : > { %v5288_v35 = vmax.f32 %v5286_v54, %v5287_v55 }
0x1ea0   : > { %v5289_v59 = vrot.slane %v5288_v35, 2 }
0x1ea2   : > { %v5290_v60 = vmax.f32 %v5288_v35, %v5289_v59 }
0x1ea4   : > { %v5291_v61 = vrot.slane %v5290_v60, 1 }
0x1ea6   : > { %v5292_v1 = vmax.f32 %v5290_v60, %v5291_v61 }
0x1ea8   : > { %6892 = vmatmul.msk.f32.vlgmr.msrb.gmra.mxu3 %vm485_vm1, %v5292_v1 }
0x1f2b   : > { %v5322_v19 = vpop.f32.mrf.mxu3 }
0x1f2c   : > { %v5323_v37 = vadd.f32 %v5322_v19, %v5301_v7 }
0x1f2e   : > { %v5325_v9 = vmax.f32 %v5323_v37, 0.0 }
0x1f30   : > { %5359 = vmatmul.f32.vlgmr.msrb.gmra.mxu0 %v5325_v9 }
0x1fad   : > { %v5360_v4 = vpop.f32.mrf.mxu0 }
0x1fae   : > { %v5361_v44 = vadd.f32 %v5360_v4, %v5342_v62 }
0x1fb0   : > { %v5363_v6 = vsub.f32 0.0, %v5361_v44 }
0x1fb2   : > { %v5364_v58 = vmul.f32 1.442695, %v5363_v6 }
0x1fb4   : > { %7026 = vpow2.f32 %v5364_v58 }
0x1fba   : > { %v7027_v13 = vpop.eup %7026 }
0x1fbb   : > { %v5366_v15 = vadd.f32 1.0, %v7027_v13 }
0x1fbd   : > { %7028 = vrcp.f32 %v5366_v15  ;;  %v5378_v23 = vand.u32 2147483648, %v5366_v15  ;;  %v5376_v20 = vand.u32 2147483647, %v5366_v15  ;;  %vm5372_vm8 = vweird.f32 %v5366_v15 }
0x1fbf   : > { %v5379_v25 = vor.u32 1.1754944e-38, %v5378_v23  ;;  %vm5377_vm10 = vcmp.eq.f32.partialorder %v5376_v20, 8.507059e+37 }
0x1fc3   : > { %v7029_v33 = vpop.eup %7028 }
0x1fc4   : > { %v5368_v18 = vmul.f32 %v7029_v33, %v5366_v15  ;;  %vm5373_vm7 = vweird.f32 %v7029_v33 }
0x1fc5   : > { %vm5374_vm9 = vmor %vm5372_vm8, %vm5373_vm7 }
0x1fc6   : > { %v5369_v21 = vsub.f32 1.0, %v5368_v18 }
0x1fc8   : > { %v5370_v48 = vmul.f32 %v7029_v33, %v5369_v21 }
0x1fca   : > { %v5371_v46 = vadd.f32 %v7029_v33, %v5370_v48 }
0x1fcc   : > { %v5375_v26 = vsel %vm5374_vm9, %v7029_v33, %v5371_v46 }
0x1fcd   : > { %v5380_v39 = vsel %vm5377_vm10, %v5379_v25, %v5375_v26 }
0x1fce   : > { %5384 = vperm.xlu2 %6938, %v5380_v39  }
0x2028   : > { %v5385_v8 = vpop.permute.xlu2 %5384 }
0x2029   : > { %5387 = vst [vmem:[%s407_s17] sm:$0x1] %v5385_v8 }
0x202a   : > { %7063 = shalt.err (!%p7060_p3)
}
0x202b   : > { %6896 = dma.vmem_to_hbm [thread:$0]  (%p7209_p5), %s5400_s13, 16, %s5402_s20, %s5389_s25  }
0x202c PF: > { %p6902_p4 = scmp.ge.s32.totalorder %s7098_s26, 2  ;;  %s5413_s27 = sand.u32 1, %s7086_s23  }
0x202d   : > { %s5414_s16 = scalar_lea.sflag [#allocation5], %s5413_s27 }
0x202e   : > { %p6899_p7 = pnand %p6902_p4, %p7213_p6 }
0x2030   : > { %p6900_p8 = pneg %p6899_p7 }
0x2032   : > { %7081 = dma.done.wait (%p6900_p8), %s5414_s16, 16  }
0x2033   : > { %7083 = vsyncadd (%p6900_p8), %s5414_s16, 4294967280  ;;  %s12412_s17 = sld [smem:[#allocation7_spill]]  ;;  %p24_p9 = scmp.ge.s32.totalorder %s7196_s28, 4  }
0x2034   : > { %s12413_s25 = sld [smem:[#allocation8_spill]]  ;;  %s12414_s23 = smov %s7090_s24 }
0x2035   : > { %s12416_s26 = smov %s7196_s28  ;;  %26 = sbr.rel (!%p24_p9) target bundleno = 6 (0x6), region = 193 }
0x2039   : > { %s12415_s24 = smov %s12412_s17 }
0x203a   :  { %5419 = vsyncpa [#allocation5], 1 }
0x203b   :  { %5421 = vsyncpa [#allocation5 + $0x1], 1 }

</bundles_post_ra>
